<compile_context>
chip_gen: v6e
topology: v6e:2x2x1
jax: 0.10.0
libtpu: 0.0.40
codegen_flags: <defaults>
</compile_context>

<pallas_src>
import jax
import jax.numpy as jnp
from jax.experimental import pallas as pl
from jax.experimental.pallas import tpu as pltpu


def _round_up(x, m):
    return (x + m - 1) // m * m


def _choose_tile(batch):
    """Pick (tile, padded_batch) with tile in {16, 32, 64, 128, 256}.

    Goals (per review): (a) >= 2 grid tiles whenever the batch is big enough
    to split, so both v7x TensorCores get work; (b) small padding waste;
    (c) few grid steps.  Waste and step count are traded at roughly
    16 padded rows ~= 1 extra grid step of pipeline overhead.
    """
    bp0 = _round_up(max(batch, 1), 16)
    cands = [c for c in (16, 32, 64, 128, 256) if c <= bp0]

    def cost(tb):
        padded = _round_up(bp0, tb)
        n_tiles = padded // tb
        waste = padded - bp0
        single_tile = int(n_tiles < 2 and bp0 > 16)   # v7x: avoid idle 2nd TC
        return (single_tile, waste + 16 * n_tiles)

    tb = min(cands, key=cost)
    return tb, _round_up(bp0, tb)


def siamese_kernel(x_ref, w1_ref, b1_ref, w2_ref, b2_ref, w3_ref, b3_ref,
                   dist_ref):
    """Fused fc1 MLP over a pre-stacked (2*TB, 2048) LHS + pairwise L2 distance.

    x_ref   : (2*TB, 2048) bf16 — rows [0:TB] are branch-1 pooled features of
              this batch tile, rows [TB:2*TB] are branch-2 (stacked in wrapper).
    w1/w2/w3: bf16 weights (resident across tiles); b1/b2/b3: (1, N) f32 biases.
    dist_ref: (1, 1, TB) f32 — lane-dense per-pair ||o1 - o2 + 1e-6||_2.
    """
    tb = dist_ref.shape[-1]

    x = x_ref[...]                                                  # (2TB, 2048) bf16
    h = jnp.dot(x, w1_ref[...], preferred_element_type=jnp.float32) + b1_ref[...]
    h = jnp.maximum(h, 0.0).astype(jnp.bfloat16)   # ReLU; Dropout2d = identity in eval
    h = jnp.dot(h, w2_ref[...], preferred_element_type=jnp.float32) + b2_ref[...]
    h = jnp.maximum(h, 0.0).astype(jnp.bfloat16)   # ReLU
    out = jnp.dot(h, w3_ref[...], preferred_element_type=jnp.float32) + b3_ref[...]  # (2TB, 256) f32

    # torch.nn.PairwiseDistance(p=2): ||x1 - x2 + eps||_2 with eps = 1e-6
    diff = out[:tb, :] - out[tb:, :] + 1e-6
    d = jnp.sqrt(jnp.sum(diff * diff, axis=-1))                     # (TB,)
    dist_ref[...] = d.reshape(1, 1, tb)                             # lane-dense store


def siamese_forward(feat1_nchw, feat2_nchw, params):
    """feat*_nchw: (B, 2048, H, W) f32 backbone feature maps (NCHW, as in PyTorch).

    Returns the pairwise distance, shape (B,), matching SiameseNetwork.forward.
    """
    B, C, H, W = feat1_nchw.shape
    assert C == 2048, "fc1 expects 2048-dim pooled features"

    # adaptive_avg_pool2d((1,1)) + flatten: single trailing-axis reduce in XLA
    # (no full-feature-map transpose); pooled features cast to bf16 so only
    # (B, 2048) bf16 per branch crosses HBM into the kernel.
    # TODO(synk): for realistic 7x7 f32 feature maps this pooling read is the
    # end-to-end HBM bottleneck; a bf16 backbone output would halve it.
    p1 = jnp.mean(feat1_nchw.reshape(B, C, H * W), axis=-1).astype(jnp.bfloat16)
    p2 = jnp.mean(feat2_nchw.reshape(B, C, H * W), axis=-1).astype(jnp.bfloat16)

    tb, bp = _choose_tile(B)
    grid = bp // tb
    if bp != B:
        p1 = jnp.pad(p1, ((0, bp - B), (0, 0)))
        p2 = jnp.pad(p2, ((0, bp - B), (0, 0)))

    # Pre-stack both branches per tile: rows [0:TB] of each (2*TB, C) block are
    # branch 1, rows [TB:2*TB] are branch 2 (cheap XLA copy of tiny bf16 data;
    # replaces the per-tile in-kernel concatenate).
    x_stacked = jnp.concatenate(
        [p1.reshape(grid, tb, C), p2.reshape(grid, tb, C)], axis=1
    ).reshape(grid * 2 * tb, C)

    w1, b1, w2, b2, w3, b3 = params
    # bf16 weights, f32 accumulation inside the dots.
    # TODO(synk): int8 (+per-channel scales) on v5e/v6e or fp8-e4m3 on v7x
    # would halve weight HBM traffic again; needs re-validated tolerances.
    w1 = w1.astype(jnp.bfloat16)
    w2 = w2.astype(jnp.bfloat16)
    w3 = w3.astype(jnp.bfloat16)
    b1 = b1.astype(jnp.float32)    # biases are tiny: keep f32 for accuracy
    b2 = b2.astype(jnp.float32)
    b3 = b3.astype(jnp.float32)

    const = lambda i: (0, 0)       # weights/biases stay resident across batch tiles
    grid_spec = pltpu.PrefetchScalarGridSpec(
        num_scalar_prefetch=0,
        grid=(grid,),
        in_specs=[
            pl.BlockSpec((2 * tb, C), lambda i: (i, 0)),   # pre-stacked pooled feats
            pl.BlockSpec((2048, 1024), const),
            pl.BlockSpec((1, 1024), const),
            pl.BlockSpec((1024, 512), const),
            pl.BlockSpec((1, 512), const),
            pl.BlockSpec((512, 256), const),
            pl.BlockSpec((1, 256), const),
        ],
        out_specs=pl.BlockSpec((1, 1, tb), lambda i: (i, 0, 0)),
    )

    dist = pl.pallas_call(
        siamese_kernel,
        out_shape=jax.ShapeDtypeStruct((grid, 1, tb), jnp.float32),
        grid_spec=grid_spec,
        compiler_params=pltpu.CompilerParams(
            dimension_semantics=("parallel",),       # v7x: 2 TCs split batch tiles
            vmem_limit_bytes=48 * 1024 * 1024,       # weights ~10.5 MB dbl-buffered
        ),                                           # + <=8 MB acts at TB=256
    )(x_stacked, w1, b1, w2, b2, w3, b3)

    return dist.reshape(bp)[:B]    # matches torch PairwiseDistance output shape (B,)


def init_params(key):
    """Deterministic init matching nn.Linear default (U(-1/sqrt(fan_in), 1/sqrt(fan_in)))."""
    dims = [(2048, 1024), (1024, 512), (512, 256)]
    params = []
    for i, (fan_in, fan_out) in enumerate(dims):
        kw, kb = jax.random.split(jax.random.fold_in(key, i))
        bound = 1.0 / (fan_in ** 0.5)
        w = jax.random.uniform(kw, (fan_in, fan_out), jnp.float32, -bound, bound)
        b = jax.random.uniform(kb, (1, fan_out), jnp.float32, -bound, bound)
        params += [w, b]
    return tuple(params)


if __name__ == "__main__":
    key = jax.random.PRNGKey(0)
    k1, k2, kp = jax.random.split(key, 3)

    # Small spatial extent, but channel dim must be 2048 to match fc1's Linear(2048, 1024).
    B, C, H, W = 2, 2048, 4, 4
    feat1 = jax.random.normal(k1, (B, C, H, W), jnp.float32)   # NCHW, like PyTorch
    feat2 = jax.random.normal(k2, (B, C, H, W), jnp.float32)
    params = init_params(kp)

    score = siamese_forward(feat1, feat2, params)
    jax.block_until_ready(score)

    w1, b1, w2, b2, w3, b3 = params

    # Reference 1: identical bf16-weight math in plain JAX (kernel correctness).
    def ref_bf16(f1, f2):
        w1b, w2b, w3b = (w.astype(jnp.bfloat16) for w in (w1, w2, w3))
        def branch(f):
            p = jnp.mean(f, axis=(2, 3)).astype(jnp.bfloat16)
            h = jnp.maximum(jnp.dot(p, w1b, preferred_element_type=jnp.float32) + b1, 0.0).astype(jnp.bfloat16)
            h = jnp.maximum(jnp.dot(h, w2b, preferred_element_type=jnp.float32) + b2, 0.0).astype(jnp.bfloat16)
            return jnp.dot(h, w3b, preferred_element_type=jnp.float32) + b3
        d = branch(f1) - branch(f2) + 1e-6
        return jnp.sqrt(jnp.sum(d * d, axis=-1))

    # Reference 2: full f32 math (fidelity to the original torch module).
    def ref_f32(f1, f2):
        def branch(f):
            p = jnp.mean(f, axis=(2, 3))
            h = jnp.maximum(p @ w1 + b1, 0.0)
            h = jnp.maximum(h @ w2 + b2, 0.0)
            return h @ w3 + b3
        d = branch(f1) - branch(f2) + 1e-6
        return jnp.sqrt(jnp.sum(d * d, axis=-1))

    exp_bf16 = ref_bf16(feat1, feat2)
    exp_f32 = ref_f32(feat1, feat2)
    assert jnp.allclose(score, exp_bf16, rtol=2e-2, atol=2e-3), (score, exp_bf16)
    assert jnp.allclose(score, exp_f32, rtol=5e-2, atol=2e-2), (score, exp_f32)

    print("KERNEL_OK")
</pallas_src>

<mosaic_0001>
module attributes {stable_mosaic.version = 11 : i64} {
  func.func @siamese_kernel(%arg0: i32, %arg1: memref<32x2048xbf16, #tpu.memory_space<vmem>>, %arg2: memref<2048x1024xbf16, #tpu.memory_space<vmem>>, %arg3: memref<1x1024xf32, #tpu.memory_space<vmem>>, %arg4: memref<1024x512xbf16, #tpu.memory_space<vmem>>, %arg5: memref<1x512xf32, #tpu.memory_space<vmem>>, %arg6: memref<512x256xbf16, #tpu.memory_space<vmem>>, %arg7: memref<1x256xf32, #tpu.memory_space<vmem>>, %arg8: memref<1x1x16xf32, #tpu.memory_space<vmem>>) attributes {dimension_semantics = [#tpu.dimension_semantics<parallel>], iteration_bounds = array<i64: 1>, scalar_prefetch = 0 : i64, scratch_operands = 0 : i64, tpu.core_type = #tpu.core_type<tc>, window_params = [{transform_indices = @transform_0, window_bounds = array<i64: 32, 2048>}, {pipeline_mode = #tpu.pipeline_mode<synchronous>, transform_indices = @transform_1, window_bounds = array<i64: 2048, 1024>}, {pipeline_mode = #tpu.pipeline_mode<synchronous>, transform_indices = @transform_2, window_bounds = array<i64: 1, 1024>}, {pipeline_mode = #tpu.pipeline_mode<synchronous>, transform_indices = @transform_3, window_bounds = array<i64: 1024, 512>}, {pipeline_mode = #tpu.pipeline_mode<synchronous>, transform_indices = @transform_4, window_bounds = array<i64: 1, 512>}, {pipeline_mode = #tpu.pipeline_mode<synchronous>, transform_indices = @transform_5, window_bounds = array<i64: 512, 256>}, {pipeline_mode = #tpu.pipeline_mode<synchronous>, transform_indices = @transform_6, window_bounds = array<i64: 1, 256>}, {transform_indices = @transform_7, window_bounds = array<i64: 1, 1, 16>}]} {
    %c0 = arith.constant 0 : index
    %c0_0 = arith.constant 0 : index
    %0 = vector.load %arg1[%c0, %c0_0] : memref<32x2048xbf16, #tpu.memory_space<vmem>>, vector<32x2048xbf16>
    %c0_1 = arith.constant 0 : index
    %c0_2 = arith.constant 0 : index
    %1 = vector.load %arg2[%c0_1, %c0_2] : memref<2048x1024xbf16, #tpu.memory_space<vmem>>, vector<2048x1024xbf16>
    %cst = arith.constant dense<0.000000e+00> : vector<32x1024xf32>
    %2 = tpu.matmul %0, %1, %cst {dimension_numbers = #tpu.dot_dimension_numbers<[1], [0], [0], [1], [0, 0, 1, 1], [], []>} : vector<32x2048xbf16>, vector<2048x1024xbf16>, vector<32x1024xf32> -> vector<32x1024xf32>
    %c0_3 = arith.constant 0 : index
    %c0_4 = arith.constant 0 : index
    %3 = vector.load %arg3[%c0_3, %c0_4] : memref<1x1024xf32, #tpu.memory_space<vmem>>, vector<1x1024xf32>
    %4 = vector.broadcast %3 : vector<1x1024xf32> to vector<32x1024xf32>
    %5 = arith.addf %2, %4 : vector<32x1024xf32>
    %cst_5 = arith.constant 0.000000e+00 : f32
    %6 = vector.broadcast %cst_5 : f32 to vector<32x1024xf32>
    %7 = arith.maximumf %5, %6 : vector<32x1024xf32>
    %8 = arith.truncf %7 : vector<32x1024xf32> to vector<32x1024xbf16>
    %c0_6 = arith.constant 0 : index
    %c0_7 = arith.constant 0 : index
    %9 = vector.load %arg4[%c0_6, %c0_7] : memref<1024x512xbf16, #tpu.memory_space<vmem>>, vector<1024x512xbf16>
    %cst_8 = arith.constant dense<0.000000e+00> : vector<32x512xf32>
    %10 = tpu.matmul %8, %9, %cst_8 {dimension_numbers = #tpu.dot_dimension_numbers<[1], [0], [0], [1], [0, 0, 1, 1], [], []>} : vector<32x1024xbf16>, vector<1024x512xbf16>, vector<32x512xf32> -> vector<32x512xf32>
    %c0_9 = arith.constant 0 : index
    %c0_10 = arith.constant 0 : index
    %11 = vector.load %arg5[%c0_9, %c0_10] : memref<1x512xf32, #tpu.memory_space<vmem>>, vector<1x512xf32>
    %12 = vector.broadcast %11 : vector<1x512xf32> to vector<32x512xf32>
    %13 = arith.addf %10, %12 : vector<32x512xf32>
    %cst_11 = arith.constant 0.000000e+00 : f32
    %14 = vector.broadcast %cst_11 : f32 to vector<32x512xf32>
    %15 = arith.maximumf %13, %14 : vector<32x512xf32>
    %16 = arith.truncf %15 : vector<32x512xf32> to vector<32x512xbf16>
    %c0_12 = arith.constant 0 : index
    %c0_13 = arith.constant 0 : index
    %17 = vector.load %arg6[%c0_12, %c0_13] : memref<512x256xbf16, #tpu.memory_space<vmem>>, vector<512x256xbf16>
    %cst_14 = arith.constant dense<0.000000e+00> : vector<32x256xf32>
    %18 = tpu.matmul %16, %17, %cst_14 {dimension_numbers = #tpu.dot_dimension_numbers<[1], [0], [0], [1], [0, 0, 1, 1], [], []>} : vector<32x512xbf16>, vector<512x256xbf16>, vector<32x256xf32> -> vector<32x256xf32>
    %c0_15 = arith.constant 0 : index
    %c0_16 = arith.constant 0 : index
    %19 = vector.load %arg7[%c0_15, %c0_16] : memref<1x256xf32, #tpu.memory_space<vmem>>, vector<1x256xf32>
    %20 = vector.broadcast %19 : vector<1x256xf32> to vector<32x256xf32>
    %21 = arith.addf %18, %20 : vector<32x256xf32>
    %22 = vector.extract_strided_slice %21 {offsets = [0, 0], sizes = [16, 256], strides = [1, 1]} : vector<32x256xf32> to vector<16x256xf32>
    %23 = vector.extract_strided_slice %21 {offsets = [16, 0], sizes = [16, 256], strides = [1, 1]} : vector<32x256xf32> to vector<16x256xf32>
    %24 = arith.subf %22, %23 : vector<16x256xf32>
    %cst_17 = arith.constant 9.99999997E-7 : f32
    %25 = vector.broadcast %cst_17 : f32 to vector<16x256xf32>
    %26 = arith.addf %24, %25 : vector<16x256xf32>
    %27 = arith.mulf %26, %26 : vector<16x256xf32>
    %cst_18 = arith.constant dense<0.000000e+00> : vector<16xf32>
    %28 = vector.multi_reduction <add>, %27, %cst_18 [1] : vector<16x256xf32> to vector<16xf32>
    %29 = math.sqrt %28 : vector<16xf32>
    %30 = vector.shape_cast %29 : vector<16xf32> to vector<1x1x16xf32>
    %c0_19 = arith.constant 0 : index
    %c0_20 = arith.constant 0 : index
    %c0_21 = arith.constant 0 : index
    %31 = vector.load %arg8[%c0_19, %c0_20, %c0_21] : memref<1x1x16xf32, #tpu.memory_space<vmem>>, vector<1x1x16xf32>
    tpu.vector_store %arg8[%c0_19, %c0_20, %c0_21], %30 {strides = array<i32>} : memref<1x1x16xf32, #tpu.memory_space<vmem>>, vector<1x1x16xf32>,
    return
  }
  func.func @transform_0(%arg0: i32) -> (i32, i32) {
    %c0_i32 = arith.constant 0 : i32
    %c0_i32_0 = arith.constant 0 : i32
    return %arg0, %c0_i32 : i32, i32
  }
  func.func @transform_1(%arg0: i32) -> (i32, i32) {
    %c0_i32 = arith.constant 0 : i32
    %c0_i32_0 = arith.constant 0 : i32
    %c0_i32_1 = arith.constant 0 : i32
    return %c0_i32, %c0_i32_0 : i32, i32
  }
  func.func @transform_2(%arg0: i32) -> (i32, i32) {
    %c0_i32 = arith.constant 0 : i32
    %c0_i32_0 = arith.constant 0 : i32
    %c0_i32_1 = arith.constant 0 : i32
    return %c0_i32, %c0_i32_0 : i32, i32
  }
  func.func @transform_3(%arg0: i32) -> (i32, i32) {
    %c0_i32 = arith.constant 0 : i32
    %c0_i32_0 = arith.constant 0 : i32
    %c0_i32_1 = arith.constant 0 : i32
    return %c0_i32, %c0_i32_0 : i32, i32
  }
  func.func @transform_4(%arg0: i32) -> (i32, i32) {
    %c0_i32 = arith.constant 0 : i32
    %c0_i32_0 = arith.constant 0 : i32
    %c0_i32_1 = arith.constant 0 : i32
    return %c0_i32, %c0_i32_0 : i32, i32
  }
  func.func @transform_5(%arg0: i32) -> (i32, i32) {
    %c0_i32 = arith.constant 0 : i32
    %c0_i32_0 = arith.constant 0 : i32
    %c0_i32_1 = arith.constant 0 : i32
    return %c0_i32, %c0_i32_0 : i32, i32
  }
  func.func @transform_6(%arg0: i32) -> (i32, i32) {
    %c0_i32 = arith.constant 0 : i32
    %c0_i32_0 = arith.constant 0 : i32
    %c0_i32_1 = arith.constant 0 : i32
    return %c0_i32, %c0_i32_0 : i32, i32
  }
  func.func @transform_7(%arg0: i32) -> (i32, i32, i32) {
    %c0_i32 = arith.constant 0 : i32
    %c0_i32_0 = arith.constant 0 : i32
    %c0_i32_1 = arith.constant 0 : i32
    return %arg0, %c0_i32, %c0_i32_0 : i32, i32, i32
  }
}

</mosaic_0001>

<bundles_post_ra>
// kernel: tpu_custom_call.1
= control target key start
LH: loop header
LB: loop body
LE: loop exit
PB: predicated region body
PF: predicated region fallthrough
CT: control target
= control target key end

     0   :  { %12 = vsyncpa [#allocation3], 0  ;;  %s13814_s0 = inlined_call_operand.hbm [shape: bf16[32,2048], index: 0, kind: input, shape index: {}]   ;;  %s13815_s1 = inlined_call_operand.hbm [shape: bf16[2048,1024], index: 1, kind: input, shape index: {}]   ;;  %s13816_s2 = inlined_call_operand.hbm [shape: f32[1,1024], index: 2, kind: input, shape index: {}]   ;;  %s13817_s3 = inlined_call_operand.hbm [shape: bf16[1024,512], index: 3, kind: input, shape index: {}]   ;;  %s13818_s4 = inlined_call_operand.hbm [shape: f32[1,512], index: 4, kind: input, shape index: {}]   ;;  %s13819_s5 = inlined_call_operand.hbm [shape: bf16[512,256], index: 5, kind: input, shape index: {}]   ;;  %s13820_s6 = inlined_call_operand.hbm [shape: f32[1,256], index: 6, kind: input, shape index: {}]   ;;  %s13821_s7 = inlined_call_operand.hbm [shape: f32[1,1,16], index: 7, kind: output, shape index: {}]  }
   0x1   :  { %13 = vsyncpa [#allocation6], 0 }
   0x2   :  { %14 = vsyncpa [#allocation9], 0 }
   0x3   :  { %15 = vsyncpa [#allocation12], 0 }
   0x4   :  { %16 = vsyncpa [#allocation4], 0  ;;  %s12863_s24 = smov [#allocation5]  }
   0x5   :  { %s34_s25 = sshll.u32 %s12863_s24, 4  ;;  %s35_s25 = int_to_ptr.vmem [resolvable:$true] %s34_s25 }
   0x6   :  { %s12701_s26 = scalar_lea.vmem %s35_s25, 131072  ;;  %p12706_p1 = scmp.lt.s32.totalorder %s35_s25, %s35_s25 }
   0x7   :  { %p12702_p0 = scmp.ne.s32.totalorder %s35_s25, %s12701_s26  ;;  %p12707_p2 = scmp.lt.s32.totalorder %s12701_s26, %s12701_s26 }
   0x9   :  { %p12708_p3 = por %p12707_p2, %p12706_p1 }
   0xb   :  { %p12709_p4 = pnand %p12708_p3, %p12702_p0 }
   0xd   :  { %12712 = shalt.err (!%p12709_p4)
}
   0xe   :  { %s12864_s27 = smov 512   ;;  %s12865_s28 = smov 32  }
   0xf   :  { %40 = dma.hbm_to_vmem [thread:$0]  %s13815_s1, 131072, %s35_s25, [#allocation6], %s12864_s27, %s12864_s27, %s12865_s28  }
  0x10   :  { %s12866_s8 = smov [#allocation8]  }
  0x11   :  { %s56_s9 = sshll.u32 %s12866_s8, 4  ;;  %s57_s9 = int_to_ptr.vmem [resolvable:$true] %s56_s9 }
  0x12   :  { %s12721_s10 = scalar_lea.vmem %s57_s9, 32768  ;;  %p12726_p6 = scmp.lt.s32.totalorder %s57_s9, %s57_s9 }
  0x13   :  { %p12722_p5 = scmp.ne.s32.totalorder %s57_s9, %s12721_s10  ;;  %p12727_p7 = scmp.lt.s32.totalorder %s12721_s10, %s12721_s10 }
  0x15   :  { %p12728_p8 = por %p12727_p7, %p12726_p6 }
  0x17   :  { %p12729_p9 = pnand %p12728_p8, %p12722_p5 }
  0x19   :  { %12732 = shalt.err (!%p12729_p9)
}
  0x1a   :  { %s12867_s11 = smov 256   ;;  %s12868_s12 = smov 16  }
  0x1b   :  { %62 = dma.hbm_to_vmem [thread:$0]  %s13817_s3, 32768, %s57_s9, [#allocation9], %s12867_s11, %s12867_s11, %s12868_s12  }
  0x1c   :  { %s12869_s15 = smov [#allocation11]  }
  0x1d   :  { %s78_s16 = sshll.u32 %s12869_s15, 4  ;;  %s79_s16 = int_to_ptr.vmem [resolvable:$true] %s78_s16 }
  0x1e   :  { %s12741_s1 = scalar_lea.vmem %s79_s16, 8192  ;;  %p12746_p11 = scmp.lt.s32.totalorder %s79_s16, %s79_s16 }
  0x1f   :  { %p12742_p10 = scmp.ne.s32.totalorder %s79_s16, %s12741_s1  ;;  %p12747_p12 = scmp.lt.s32.totalorder %s12741_s1, %s12741_s1 }
  0x21   :  { %p12748_p13 = por %p12747_p12, %p12746_p11 }
  0x23   :  { %p12749_p0 = pnand %p12748_p13, %p12742_p10 }
  0x25   :  { %12752 = shalt.err (!%p12749_p0)
}
  0x26   :  { %s12870_s17 = smov 128   ;;  %s12871_s18 = smov 8  }
  0x27   :  { %84 = dma.hbm_to_vmem [thread:$0]  %s13819_s5, 8192, %s79_s16, [#allocation12], %s12870_s17, %s12870_s17, %s12871_s18  }
  0x28   :  { %s12872_s21 = smov [#allocation2]  }
  0x29   :  { %s22_s22 = sshll.u32 %s12872_s21, 4  ;;  %s23_s22 = int_to_ptr.vmem [resolvable:$true] %s22_s22 }
  0x2a   :  { %s12761_s3 = scalar_lea.vmem %s23_s22, 4096  ;;  %p12766_p2 = scmp.lt.s32.totalorder %s23_s22, %s23_s22 }
  0x2b   :  { %p12762_p1 = scmp.ne.s32.totalorder %s23_s22, %s12761_s3  ;;  %p12767_p3 = scmp.lt.s32.totalorder %s12761_s3, %s12761_s3 }
  0x2d   :  { %p12768_p4 = por %p12767_p3, %p12766_p2 }
  0x2f   :  { %p12769_p5 = pnand %p12768_p4, %p12762_p1 }
  0x31   :  { %12772 = shalt.err (!%p12769_p5)
}
  0x32   :  { %s12873_s23 = smov 1024   ;;  %s12874_s24 = smov 64  }
  0x33   :  { %28 = dma.hbm_to_vmem [thread:$0]  %s13814_s0, 4096, %s23_s22, [#allocation3], %s12873_s23, %s12873_s23, %s12874_s24  }
  0x34   :  { %s12875_s27 = smov [#allocation7]   ;;  %s12876_s29 = smov [#allocation10]  }
  0x35   :  { %s47_s28 = sshll.u32 %s12875_s27, 4  ;;  %s69_s5 = sshll.u32 %s12876_s29, 4  ;;  %s48_s28 = int_to_ptr.vmem [resolvable:$true] %s47_s28  ;;  %s70_s5 = int_to_ptr.vmem [resolvable:$true] %s69_s5 }
  0x36   :  { %s12781_s30 = scalar_lea.vmem %s48_s28, 128  ;;  %p12786_p7 = scmp.lt.s32.totalorder %s48_s28, %s48_s28 }
  0x37   :  { %p12782_p6 = scmp.ne.s32.totalorder %s48_s28, %s12781_s30  ;;  %p12787_p8 = scmp.lt.s32.totalorder %s12781_s30, %s12781_s30 }
  0x39   :  { %p12788_p9 = por %p12787_p8, %p12786_p7 }
  0x3b   :  { %p12789_p10 = pnand %p12788_p9, %p12782_p6 }
  0x3d   :  { %12792 = shalt.err (!%p12789_p10)
}
  0x3e   :  { %50 = dma.hbm_to_vmem [thread:$0]  %s13816_s2, 128, %s48_s28, [#allocation6]  }
  0x3f   :  { %s12801_s10 = scalar_lea.vmem %s70_s5, 64  ;;  %p12806_p12 = scmp.lt.s32.totalorder %s70_s5, %s70_s5 }
  0x40   :  { %p12802_p11 = scmp.ne.s32.totalorder %s70_s5, %s12801_s10  ;;  %p12807_p13 = scmp.lt.s32.totalorder %s12801_s10, %s12801_s10 }
  0x42   :  { %p12808_p0 = por %p12807_p13, %p12806_p12 }
  0x44   :  { %p12809_p1 = pnand %p12808_p0, %p12802_p11 }
  0x46   :  { %12812 = shalt.err (!%p12809_p1)
}
  0x47   :  { %72 = dma.hbm_to_vmem [thread:$0]  %s13818_s4, 64, %s70_s5, [#allocation9]  }
  0x48   :  { %s12877_s12 = smov [#allocation13]  }
  0x49   :  { %s91_s13 = sshll.u32 %s12877_s12, 4  ;;  %s92_s13 = int_to_ptr.vmem [resolvable:$true] %s91_s13 }
  0x4a   :  { %s12821_s14 = scalar_lea.vmem %s92_s13, 32  ;;  %p12826_p3 = scmp.lt.s32.totalorder %s92_s13, %s92_s13 }
  0x4b   :  { %p12822_p2 = scmp.ne.s32.totalorder %s92_s13, %s12821_s14  ;;  %p12827_p4 = scmp.lt.s32.totalorder %s12821_s14, %s12821_s14 }
  0x4d   :  { %p12828_p5 = por %p12827_p4, %p12826_p3 }
  0x4f   :  { %p12829_p6 = pnand %p12828_p5, %p12822_p2 }
  0x51   :  { %12832 = shalt.err (!%p12829_p6)
}
  0x52   :  { %94 = dma.hbm_to_vmem [thread:$0]  %s13820_s6, 32, %s92_s13, [#allocation12]  }
  0x53   :  { %12853 = dma.done.wait [#allocation3], 4096  }
  0x54   :  { %12854 = vsyncadd [#allocation3], 4294963200 }
  0x55   :  { %12855 = dma.done.wait [#allocation6], 131200  }
  0x56   :  { %12856 = vsyncadd [#allocation6], 4294836096 }
  0x57   :  { %12857 = dma.done.wait [#allocation9], 32832  }
  0x58   :  { %12858 = vsyncadd [#allocation9], 4294934464 }
  0x59   :  { %12859 = dma.done.wait [#allocation12], 8224  }
  0x5a   :  { %12860 = vsyncadd [#allocation12], 4294959072  ;;  %v204_v0 = vld [vmem:[#allocation5 + $0x1c0] sm:$0xff]  ;;  %v12948_v59 = vld [vmem:[#allocation2 + $0x8] sm:$0xff]  ;;  %s12878_s4 = smov [#allocation14]   ;;  %vm10791_vm4 = vcmask 130112  }
  0x5b   :  { %v208_v1 = vld [vmem:[#allocation5 + $0x1e0] sm:$0xff]  ;;  %v12950_v60 = vld [vmem:[#allocation2 + $0x48] sm:$0xff]  ;;  %s10802_s6 = sshll.u32 %s12878_s4, 4  ;;  %vm10794_vm5 = vcmask 122880   ;;  %s10803_s6 = int_to_ptr.vmem [resolvable:$true] %s10802_s6 }
  0x5c   :  { %v332_v2 = vld [vmem:[#allocation5 + $0x5c0] sm:$0xff]  ;;  %v10903_v3 = vcombine.high %v204_v0, %v208_v1  ;;  %v10902_v5 = vcombine.low %v204_v0, %v208_v1  ;;  %v12954_v63 = vcombine.high %v12948_v59, %v12950_v60  ;;  %s12833_s16 = scalar_lea.vmem %s10803_s6, 16  ;;  %s12837_s1 = scalar_lea.vmem %s10803_s6, 32 }
  0x5d   :  { %v336_v4 = vld [vmem:[#allocation5 + $0x5e0] sm:$0xff]  ;;  %p12834_p7 = scmp.ne.s32.totalorder %s10803_s6, %s12833_s16  ;;  %p12838_p8 = scmp.lt.s32.totalorder %s10803_s6, %s10803_s6 }
  0x5e   :  { %v196_v6 = vld [vmem:[#allocation5 + $0x180] sm:$0xff]  ;;  %v11031_v8 = vcombine.high %v332_v2, %v336_v4  ;;  %v11030_v9 = vcombine.low %v332_v2, %v336_v4  ;;  %6494 = vmatprep.subr.bf16.mxu0 %v10903_v3  ;;  %6579 = vmatprep.mubr.bf16.mxu1 %v12954_v63  ;;  %p12839_p9 = scmp.lt.s32.totalorder %s12837_s1, %s12833_s16 }
  0x5f   :  { %v200_v7 = vld [vmem:[#allocation5 + $0x1a0] sm:$0xff]  ;;  %6495 = vmatpush1.bf16.msra.mxu0 %v10902_v5 }
  0x60   :  { %v10895_v10 = vcombine.high %v196_v6, %v200_v7  ;;  %v324_v11 = vld [vmem:[#allocation5 + $0x580] sm:$0xff]  ;;  %6547 = vmatprep.subr.bf16.mxu1 %v11031_v8  ;;  %v10894_v18 = vcombine.low %v196_v6, %v200_v7  ;;  %p12840_p10 = por %p12839_p9, %p12838_p8 }
  0x61   :  { %v328_v12 = vld [vmem:[#allocation5 + $0x5a0] sm:$0xff]  ;;  %6548 = vmatpush1.bf16.msra.mxu1 %v11030_v9 }
  0x62   :  { %v188_v13 = vld [vmem:[#allocation5 + $0x140] sm:$0xff]  ;;  %v11023_v14 = vcombine.high %v324_v11, %v328_v12  ;;  %6496 = vmatprep.subr.bf16.mxu0 %v10895_v10  ;;  %v11022_v19 = vcombine.low %v324_v11, %v328_v12  ;;  %p12841_p11 = pnand %p12840_p10, %p12834_p7 }
  0x63   :  { %v192_v15 = vld [vmem:[#allocation5 + $0x160] sm:$0xff]  ;;  %6497 = vmatpush1.bf16.msra.mxu0 %v10894_v18 }
  0x64   :  { %v316_v16 = vld [vmem:[#allocation5 + $0x540] sm:$0xff]  ;;  %v10887_v20 = vcombine.high %v188_v13, %v192_v15  ;;  %6549 = vmatprep.subr.bf16.mxu1 %v11023_v14  ;;  %v10886_v26 = vcombine.low %v188_v13, %v192_v15 }
  0x65   :  { %v320_v17 = vld [vmem:[#allocation5 + $0x560] sm:$0xff]  ;;  %6550 = vmatpush1.bf16.msra.mxu1 %v11022_v19 }
  0x66   :  { %v11015_v21 = vcombine.high %v316_v16, %v320_v17  ;;  %v180_v22 = vld [vmem:[#allocation5 + $0x100] sm:$0xff]  ;;  %6498 = vmatprep.subr.bf16.mxu0 %v10887_v20  ;;  %v11014_v27 = vcombine.low %v316_v16, %v320_v17 }
  0x67   :  { %v184_v23 = vld [vmem:[#allocation5 + $0x120] sm:$0xff]  ;;  %6499 = vmatpush1.bf16.msra.mxu0 %v10886_v26 }
  0x68   :  { %v308_v24 = vld [vmem:[#allocation5 + $0x500] sm:$0xff]  ;;  %v10879_v28 = vcombine.high %v180_v22, %v184_v23  ;;  %6551 = vmatprep.subr.bf16.mxu1 %v11015_v21  ;;  %v10878_v34 = vcombine.low %v180_v22, %v184_v23 }
  0x69   :  { %v312_v25 = vld [vmem:[#allocation5 + $0x520] sm:$0xff]  ;;  %6552 = vmatpush1.bf16.msra.mxu1 %v11014_v27 }
  0x6a   :  { %v11007_v29 = vcombine.high %v308_v24, %v312_v25  ;;  %v172_v30 = vld [vmem:[#allocation5 + $0xc0] sm:$0xff]  ;;  %6500 = vmatprep.subr.bf16.mxu0 %v10879_v28  ;;  %v11006_v35 = vcombine.low %v308_v24, %v312_v25 }
  0x6b   :  { %v176_v31 = vld [vmem:[#allocation5 + $0xe0] sm:$0xff]  ;;  %6501 = vmatpush1.bf16.msra.mxu0 %v10878_v34 }
  0x6c   :  { %v300_v32 = vld [vmem:[#allocation5 + $0x4c0] sm:$0xff]  ;;  %v10871_v36 = vcombine.high %v172_v30, %v176_v31  ;;  %6553 = vmatprep.subr.bf16.mxu1 %v11007_v29  ;;  %v10870_v42 = vcombine.low %v172_v30, %v176_v31 }
  0x6d   :  { %v304_v33 = vld [vmem:[#allocation5 + $0x4e0] sm:$0xff]  ;;  %6554 = vmatpush1.bf16.msra.mxu1 %v11006_v35 }
  0x6e   :  { %v10999_v37 = vcombine.high %v300_v32, %v304_v33  ;;  %v164_v38 = vld [vmem:[#allocation5 + $0x80] sm:$0xff]  ;;  %6502 = vmatprep.subr.bf16.mxu0 %v10871_v36  ;;  %v10998_v43 = vcombine.low %v300_v32, %v304_v33 }
  0x6f   :  { %v168_v39 = vld [vmem:[#allocation5 + $0xa0] sm:$0xff]  ;;  %6503 = vmatpush1.bf16.msra.mxu0 %v10870_v42 }
  0x70   :  { %v292_v40 = vld [vmem:[#allocation5 + $0x480] sm:$0xff]  ;;  %v10863_v44 = vcombine.high %v164_v38, %v168_v39  ;;  %6555 = vmatprep.subr.bf16.mxu1 %v10999_v37  ;;  %v10862_v50 = vcombine.low %v164_v38, %v168_v39 }
  0x71   :  { %v296_v41 = vld [vmem:[#allocation5 + $0x4a0] sm:$0xff]  ;;  %6556 = vmatpush1.bf16.msra.mxu1 %v10998_v43 }
  0x72   :  { %v10991_v45 = vcombine.high %v292_v40, %v296_v41  ;;  %v156_v46 = vld [vmem:[#allocation5 + $0x40] sm:$0xff]  ;;  %6504 = vmatprep.subr.bf16.mxu0 %v10863_v44  ;;  %v10990_v51 = vcombine.low %v292_v40, %v296_v41 }
  0x73   :  { %v160_v47 = vld [vmem:[#allocation5 + $0x60] sm:$0xff]  ;;  %6505 = vmatpush1.bf16.msra.mxu0 %v10862_v50 }
  0x74   :  { %v284_v48 = vld [vmem:[#allocation5 + $0x440] sm:$0xff]  ;;  %v10855_v52 = vcombine.high %v156_v46, %v160_v47  ;;  %6557 = vmatprep.subr.bf16.mxu1 %v10991_v45  ;;  %v10854_v0 = vcombine.low %v156_v46, %v160_v47 }
  0x75   :  { %v288_v49 = vld [vmem:[#allocation5 + $0x460] sm:$0xff]  ;;  %6558 = vmatpush1.bf16.msra.mxu1 %v10990_v51 }
  0x76   :  { %v148_v53 = vld [vmem:[#allocation5] sm:$0xff]  ;;  %v10983_v56 = vcombine.high %v284_v48, %v288_v49  ;;  %6506 = vmatprep.subr.bf16.mxu0 %v10855_v52  ;;  %v10982_v1 = vcombine.low %v284_v48, %v288_v49 }
  0x77   :  { %v12940_v54 = vld [vmem:[#allocation2] sm:$0xff]  ;;  %6507 = vmatpush1.bf16.msra.mxu0 %v10854_v0 }
  0x78   :  { %v12942_v55 = vld [vmem:[#allocation2 + $0x40] sm:$0xff]  ;;  %6559 = vmatprep.subr.bf16.mxu1 %v10983_v56 }
  0x79   :  { %v152_v57 = vld [vmem:[#allocation5 + $0x20] sm:$0xff]  ;;  %v12946_v58 = vcombine.high %v12940_v54, %v12942_v55  ;;  %6560 = vmatpush1.bf16.msra.mxu1 %v10982_v1 }
  0x7a   :  { %v276_v61 = vld [vmem:[#allocation5 + $0x400] sm:$0xff]  ;;  %v10847_v2 = vcombine.high %v148_v53, %v152_v57  ;;  %v10846_v8 = vcombine.low %v148_v53, %v152_v57 }
  0x7b   :  { %13844 = vst [vmem:[#allocation20_spill] sm:$0xff] %v12946_v58  ;;  %v280_v62 = vld [vmem:[#allocation5 + $0x420] sm:$0xff]  ;;  %6526 = vmatprep.mubr.bf16.mxu0 %v12946_v58 }
  0x7c   :  { %v10975_v3 = vcombine.high %v276_v61, %v280_v62  ;;  %v268_v4 = vld [vmem:[#allocation5 + $0x3c0] sm:$0xff]  ;;  %6508 = vmatprep.subr.bf16.mxu0 %v10847_v2  ;;  %v10974_v9 = vcombine.low %v276_v61, %v280_v62 }
  0x7d   :  { %v272_v5 = vld [vmem:[#allocation5 + $0x3e0] sm:$0xff]  ;;  %6509 = vmatpush1.bf16.msra.mxu0 %v10846_v8 }
  0x7e   :  { %v396_v6 = vld [vmem:[#allocation5 + $0x7c0] sm:$0xff]  ;;  %v10967_v10 = vcombine.high %v268_v4, %v272_v5  ;;  %6561 = vmatprep.subr.bf16.mxu1 %v10975_v3  ;;  %v10966_v16 = vcombine.low %v268_v4, %v272_v5 }
  0x7f   :  { %v400_v7 = vld [vmem:[#allocation5 + $0x7e0] sm:$0xff]  ;;  %6562 = vmatpush1.bf16.msra.mxu1 %v10974_v9 }
  0x80   :  { %v11095_v11 = vcombine.high %v396_v6, %v400_v7  ;;  %v260_v12 = vld [vmem:[#allocation5 + $0x380] sm:$0xff]  ;;  %6510 = vmatprep.subr.bf16.mxu0 %v10967_v10  ;;  %v11094_v17 = vcombine.low %v396_v6, %v400_v7 }
  0x81   :  { %v264_v13 = vld [vmem:[#allocation5 + $0x3a0] sm:$0xff]  ;;  %6511 = vmatpush2.bf16.msra.mxu0 %v10966_v16 }
  0x82   :  { %v388_v14 = vld [vmem:[#allocation5 + $0x780] sm:$0xff]  ;;  %v10959_v18 = vcombine.high %v260_v12, %v264_v13  ;;  %6563 = vmatprep.subr.bf16.mxu1 %v11095_v11  ;;  %v10958_v24 = vcombine.low %v260_v12, %v264_v13 }
  0x83   :  { %v392_v15 = vld [vmem:[#allocation5 + $0x7a0] sm:$0xff]  ;;  %6564 = vmatpush2.bf16.msra.mxu1 %v11094_v17 }
  0x84   :  { %v11087_v19 = vcombine.high %v388_v14, %v392_v15  ;;  %v252_v20 = vld [vmem:[#allocation5 + $0x340] sm:$0xff]  ;;  %6512 = vmatprep.subr.bf16.mxu0 %v10959_v18  ;;  %v11086_v25 = vcombine.low %v388_v14, %v392_v15 }
  0x85   :  { %v256_v21 = vld [vmem:[#allocation5 + $0x360] sm:$0xff]  ;;  %6513 = vmatpush2.bf16.msra.mxu0 %v10958_v24 }
  0x86   :  { %v380_v22 = vld [vmem:[#allocation5 + $0x740] sm:$0xff]  ;;  %v10951_v26 = vcombine.high %v252_v20, %v256_v21  ;;  %6565 = vmatprep.subr.bf16.mxu1 %v11087_v19  ;;  %v10950_v32 = vcombine.low %v252_v20, %v256_v21  ;;  %v12960_v21 = vcombine.low %v12940_v54, %v12942_v55 }
  0x87   :  { %v384_v23 = vld [vmem:[#allocation5 + $0x760] sm:$0xff]  ;;  %6566 = vmatpush2.bf16.msra.mxu1 %v11086_v25  ;;  %v12964_v25 = vcombine.low %v12948_v59, %v12950_v60 }
  0x88   :  { %v11079_v27 = vcombine.high %v380_v22, %v384_v23  ;;  %v244_v28 = vld [vmem:[#allocation5 + $0x300] sm:$0xff]  ;;  %6514 = vmatprep.subr.bf16.mxu0 %v10951_v26  ;;  %v11078_v33 = vcombine.low %v380_v22, %v384_v23 }
  0x89   :  { %v248_v29 = vld [vmem:[#allocation5 + $0x320] sm:$0xff]  ;;  %6515 = vmatpush2.bf16.msra.mxu0 %v10950_v32 }
  0x8a   :  { %v372_v30 = vld [vmem:[#allocation5 + $0x700] sm:$0xff]  ;;  %v10943_v34 = vcombine.high %v244_v28, %v248_v29  ;;  %6567 = vmatprep.subr.bf16.mxu1 %v11079_v27  ;;  %v10942_v40 = vcombine.low %v244_v28, %v248_v29  ;;  %v133_v27 = vld [vmem:[#allocation2 + $0x88] sm:$0xff] }
  0x8b   :  { %v376_v31 = vld [vmem:[#allocation5 + $0x720] sm:$0xff]  ;;  %6568 = vmatpush2.bf16.msra.mxu1 %v11078_v33  ;;  %v141_v28 = vld [vmem:[#allocation2 + $0xc8] sm:$0xff] }
  0x8c   :  { %v11071_v35 = vcombine.high %v372_v30, %v376_v31  ;;  %v236_v36 = vld [vmem:[#allocation5 + $0x2c0] sm:$0xff]  ;;  %6516 = vmatprep.subr.bf16.mxu0 %v10943_v34  ;;  %v11070_v41 = vcombine.low %v372_v30, %v376_v31 }
  0x8d   :  { %v240_v37 = vld [vmem:[#allocation5 + $0x2e0] sm:$0xff]  ;;  %6517 = vmatpush2.bf16.msra.mxu0 %v10942_v40 }
  0x8e   :  { %v364_v38 = vld [vmem:[#allocation5 + $0x6c0] sm:$0xff]  ;;  %v10935_v42 = vcombine.high %v236_v36, %v240_v37  ;;  %6569 = vmatprep.subr.bf16.mxu1 %v11071_v35  ;;  %v10934_v48 = vcombine.low %v236_v36, %v240_v37  ;;  %v12969_v35 = vcombine.high %v133_v27, %v141_v28 }
  0x8f   :  { %v368_v39 = vld [vmem:[#allocation5 + $0x6e0] sm:$0xff]  ;;  %6570 = vmatpush2.bf16.msra.mxu1 %v11070_v41 }
  0x90   :  { %v11063_v43 = vcombine.high %v364_v38, %v368_v39  ;;  %v228_v44 = vld [vmem:[#allocation5 + $0x280] sm:$0xff]  ;;  %6518 = vmatprep.subr.bf16.mxu0 %v10935_v42  ;;  %v11062_v49 = vcombine.low %v364_v38, %v368_v39 }
  0x91   :  { %v232_v45 = vld [vmem:[#allocation5 + $0x2a0] sm:$0xff]  ;;  %6519 = vmatpush2.bf16.msra.mxu0 %v10934_v48  ;;  %v12984_v48 = vld [vmem:[#allocation2 + $0x58] sm:$0xff] }
  0x92   :  { %v356_v46 = vld [vmem:[#allocation5 + $0x680] sm:$0xff]  ;;  %v10927_v50 = vcombine.high %v228_v44, %v232_v45  ;;  %6571 = vmatprep.subr.bf16.mxu1 %v11063_v43  ;;  %v10926_v61 = vcombine.low %v228_v44, %v232_v45  ;;  %v12976_v43 = vld [vmem:[#allocation2 + $0x10] sm:$0xff] }
  0x93   :  { %v360_v47 = vld [vmem:[#allocation5 + $0x6a0] sm:$0xff]  ;;  %6572 = vmatpush2.bf16.msra.mxu1 %v11062_v49  ;;  %v12978_v44 = vld [vmem:[#allocation2 + $0x50] sm:$0xff] }
  0x94   :  { %v11055_v51 = vcombine.high %v356_v46, %v360_v47  ;;  %v220_v52 = vld [vmem:[#allocation5 + $0x240] sm:$0xff]  ;;  %6520 = vmatprep.subr.bf16.mxu0 %v10927_v50  ;;  %v11054_v62 = vcombine.low %v356_v46, %v360_v47  ;;  %v12980_v46 = vcombine.low %v133_v27, %v141_v28  ;;  %v12982_v47 = vld [vmem:[#allocation2 + $0x18] sm:$0xff] }
  0x95   :  { %v224_v53 = vld [vmem:[#allocation5 + $0x260] sm:$0xff]  ;;  %6521 = vmatpush2.bf16.msra.mxu0 %v10926_v61 }
  0x96   :  { %v348_v56 = vld [vmem:[#allocation5 + $0x640] sm:$0xff]  ;;  %v10919_v0 = vcombine.high %v220_v52, %v224_v53  ;;  %6573 = vmatprep.subr.bf16.mxu1 %v11055_v51  ;;  %v10918_v6 = vcombine.low %v220_v52, %v224_v53 }
  0x97   :  { %v352_v57 = vld [vmem:[#allocation5 + $0x660] sm:$0xff]  ;;  %6574 = vmatpush2.bf16.msra.mxu1 %v11054_v62  ;;  %v12993_v62 = vcombine.high %v12982_v47, %v12984_v48 }
  0x98   :  { %v11047_v1 = vcombine.high %v348_v56, %v352_v57  ;;  %v212_v2 = vld [vmem:[#allocation5 + $0x200] sm:$0xff]  ;;  %6522 = vmatprep.subr.bf16.mxu0 %v10919_v0  ;;  %v11046_v7 = vcombine.low %v348_v56, %v352_v57  ;;  %v12988_v56 = vcombine.high %v12976_v43, %v12978_v44 }
  0x99   :  { %v216_v3 = vld [vmem:[#allocation5 + $0x220] sm:$0xff]  ;;  %6523 = vmatpush2.bf16.msra.mxu0 %v10918_v6  ;;  %13845 = vst [vmem:[#allocation21_spill] sm:$0xff] %v12993_v62 }
  0x9a   :  { %v340_v4 = vld [vmem:[#allocation5 + $0x600] sm:$0xff]  ;;  %v10911_v8 = vcombine.high %v212_v2, %v216_v3  ;;  %6575 = vmatprep.subr.bf16.mxu1 %v11047_v1  ;;  %v10910_v14 = vcombine.low %v212_v2, %v216_v3 }
  0x9b   :  { %v344_v5 = vld [vmem:[#allocation5 + $0x620] sm:$0xff]  ;;  %6576 = vmatpush2.bf16.msra.mxu1 %v11046_v7 }
  0x9c   :  { %v11039_v9 = vcombine.high %v340_v4, %v344_v5  ;;  %v460_v10 = vld [vmem:[#allocation5 + $0x9c0] sm:$0xff]  ;;  %6524 = vmatprep.subr.bf16.mxu0 %v10911_v8  ;;  %v11038_v15 = vcombine.low %v340_v4, %v344_v5 }
  0x9d   :  { %v464_v11 = vld [vmem:[#allocation5 + $0x9e0] sm:$0xff]  ;;  %6525 = vmatpush2.bf16.msra.mxu0 %v10910_v14 }
  0x9e   :  { %v588_v12 = vld [vmem:[#allocation5 + $0xdc0] sm:$0xff]  ;;  %v11159_v16 = vcombine.high %v460_v10, %v464_v11  ;;  %6577 = vmatprep.subr.bf16.mxu1 %v11039_v9  ;;  %v11158_v26 = vcombine.low %v460_v10, %v464_v11 }
  0x9f   :  { %v592_v13 = vld [vmem:[#allocation5 + $0xde0] sm:$0xff]  ;;  %6578 = vmatpush2.bf16.msra.mxu1 %v11038_v15 }
  0xa0   :  { %v11287_v17 = vcombine.high %v588_v12, %v592_v13  ;;  %v452_v18 = vld [vmem:[#allocation5 + $0x980] sm:$0xff]  ;;  %6600 = vmatprep.subr.bf16.mxu0 %v11159_v16  ;;  %v11286_v29 = vcombine.low %v588_v12, %v592_v13  ;;  %6527 = vmatmul.mubr.bf16.vlgmr.msra.gmra.mxu0 %v12960_v21 }
  0xa1   :  { %v456_v19 = vld [vmem:[#allocation5 + $0x9a0] sm:$0xff]  ;;  %6601 = vmatpush1.bf16.msra.mxu0 %v11158_v26 }
  0xa2   :  { %v580_v20 = vld [vmem:[#allocation5 + $0xd80] sm:$0xff]  ;;  %v11151_v30 = vcombine.high %v452_v18, %v456_v19  ;;  %6653 = vmatprep.subr.bf16.mxu1 %v11287_v17  ;;  %6580 = vmatmul.mubr.bf16.vlgmr.msra.gmra.mxu1 %v12964_v25  ;;  %v11150_v59 = vcombine.low %v452_v18, %v456_v19 }
  0xa3   :  { %v584_v22 = vld [vmem:[#allocation5 + $0xda0] sm:$0xff]  ;;  %6654 = vmatpush1.bf16.msra.mxu1 %v11286_v29  ;;  %6589 = vmatprep.mubr.bf16.mxu1 %v12969_v35 }
  0xa4   :  { %v132_v23 = vld [vmem:[#allocation2 + $0x80] sm:$0xff]  ;;  %v11279_v31 = vcombine.high %v580_v20, %v584_v22  ;;  %6602 = vmatprep.subr.bf16.mxu0 %v11151_v30  ;;  %v11278_v60 = vcombine.low %v580_v20, %v584_v22 }
  0xa5   :  { %v140_v24 = vld [vmem:[#allocation2 + $0xc0] sm:$0xff]  ;;  %6603 = vmatpush1.bf16.msra.mxu0 %v11150_v59 }
  0xa6   :  { %v444_v32 = vld [vmem:[#allocation5 + $0x940] sm:$0xff]  ;;  %v12966_v55 = vcombine.high %v132_v23, %v140_v24  ;;  %6655 = vmatprep.subr.bf16.mxu1 %v11279_v31  ;;  %v12973_v42 = vcombine.low %v132_v23, %v140_v24 }
  0xa7   :  { %v448_v54 = vld [vmem:[#allocation5 + $0x960] sm:$0xff]  ;;  %6656 = vmatpush1.bf16.msra.mxu1 %v11278_v60 }
  0xa8   :  { %v572_v33 = vld [vmem:[#allocation5 + $0xd40] sm:$0xff]  ;;  %v11143_v36 = vcombine.high %v444_v32, %v448_v54  ;;  %6536 = vmatprep.mubr.bf16.mxu0 %v12966_v55  ;;  %v11142_v45 = vcombine.low %v444_v32, %v448_v54 }
  0xa9   :  { %v576_v34 = vld [vmem:[#allocation5 + $0xd60] sm:$0xff]  ;;  %6537 = vmatmul.mubr.bf16.gmra.mxu0 %v12973_v42 }
  0xaa   :  { %v11271_v37 = vcombine.high %v572_v33, %v576_v34  ;;  %v436_v38 = vld [vmem:[#allocation5 + $0x900] sm:$0xff]  ;;  %6604 = vmatprep.subr.bf16.mxu0 %v11143_v36  ;;  %v11270_v49 = vcombine.low %v572_v33, %v576_v34  ;;  %6590 = vmatmul.mubr.bf16.gmra.mxu1 %v12980_v46 }
  0xab   :  { %v440_v39 = vld [vmem:[#allocation5 + $0x920] sm:$0xff]  ;;  %6605 = vmatpush1.bf16.msra.mxu0 %v11142_v45  ;;  %6632 = vmatprep.mubr.bf16.mxu0 %v12988_v56 }
  0xac   :  { %v564_v40 = vld [vmem:[#allocation5 + $0xd00] sm:$0xff]  ;;  %v11135_v50 = vcombine.high %v436_v38, %v440_v39  ;;  %6657 = vmatprep.subr.bf16.mxu1 %v11271_v37  ;;  %v11134_v0 = vcombine.low %v436_v38, %v440_v39  ;;  %6685 = vmatprep.mubr.bf16.mxu1 %v12993_v62 }
  0xad   :  { %v568_v41 = vld [vmem:[#allocation5 + $0xd20] sm:$0xff]  ;;  %6658 = vmatpush1.bf16.msra.mxu1 %v11270_v49 }
  0xae   :  { %v11263_v51 = vcombine.high %v564_v40, %v568_v41  ;;  %v428_v52 = vld [vmem:[#allocation5 + $0x8c0] sm:$0xff]  ;;  %6606 = vmatprep.subr.bf16.mxu0 %v11135_v50  ;;  %v11262_v1 = vcombine.low %v564_v40, %v568_v41 }
  0xaf   :  { %v432_v53 = vld [vmem:[#allocation5 + $0x8e0] sm:$0xff]  ;;  %6607 = vmatpush1.bf16.msra.mxu0 %v11134_v0 }
  0xb0   :  { %v556_v57 = vld [vmem:[#allocation5 + $0xcc0] sm:$0xff]  ;;  %v11127_v2 = vcombine.high %v428_v52, %v432_v53  ;;  %6659 = vmatprep.subr.bf16.mxu1 %v11263_v51  ;;  %v11126_v8 = vcombine.low %v428_v52, %v432_v53 }
  0xb1   :  { %v560_v61 = vld [vmem:[#allocation5 + $0xce0] sm:$0xff]  ;;  %6660 = vmatpush1.bf16.msra.mxu1 %v11262_v1 }
  0xb2   :  { %v420_v3 = vld [vmem:[#allocation5 + $0x880] sm:$0xff]  ;;  %v11255_v6 = vcombine.high %v556_v57, %v560_v61  ;;  %6608 = vmatprep.subr.bf16.mxu0 %v11127_v2  ;;  %v11254_v9 = vcombine.low %v556_v57, %v560_v61 }
  0xb3   :  { %v424_v4 = vld [vmem:[#allocation5 + $0x8a0] sm:$0xff]  ;;  %6609 = vmatpush1.bf16.msra.mxu0 %v11126_v8 }
  0xb4   :  { %v548_v5 = vld [vmem:[#allocation5 + $0xc80] sm:$0xff]  ;;  %v11119_v10 = vcombine.high %v420_v3, %v424_v4  ;;  %6661 = vmatprep.subr.bf16.mxu1 %v11255_v6  ;;  %v11118_v16 = vcombine.low %v420_v3, %v424_v4 }
  0xb5   :  { %v552_v7 = vld [vmem:[#allocation5 + $0xca0] sm:$0xff]  ;;  %6662 = vmatpush1.bf16.msra.mxu1 %v11254_v9 }
  0xb6   :  { %v412_v11 = vld [vmem:[#allocation5 + $0x840] sm:$0xff]  ;;  %v11247_v14 = vcombine.high %v548_v5, %v552_v7  ;;  %6610 = vmatprep.subr.bf16.mxu0 %v11119_v10  ;;  %v11246_v17 = vcombine.low %v548_v5, %v552_v7 }
  0xb7   :  { %v416_v12 = vld [vmem:[#allocation5 + $0x860] sm:$0xff]  ;;  %6611 = vmatpush1.bf16.msra.mxu0 %v11118_v16 }
  0xb8   :  { %v540_v13 = vld [vmem:[#allocation5 + $0xc40] sm:$0xff]  ;;  %v11111_v18 = vcombine.high %v412_v11, %v416_v12  ;;  %6663 = vmatprep.subr.bf16.mxu1 %v11247_v14  ;;  %v11110_v26 = vcombine.low %v412_v11, %v416_v12 }
  0xb9   :  { %v544_v15 = vld [vmem:[#allocation5 + $0xc60] sm:$0xff]  ;;  %6664 = vmatpush1.bf16.msra.mxu1 %v11246_v17 }
  0xba   :  { %v404_v19 = vld [vmem:[#allocation5 + $0x800] sm:$0xff]  ;;  %v11239_v23 = vcombine.high %v540_v13, %v544_v15  ;;  %6612 = vmatprep.subr.bf16.mxu0 %v11111_v18  ;;  %v11238_v27 = vcombine.low %v540_v13, %v544_v15 }
  0xbb   :  { %v408_v20 = vld [vmem:[#allocation5 + $0x820] sm:$0xff]  ;;  %6613 = vmatpush1.bf16.msra.mxu0 %v11110_v26 }
  0xbc   :  { %v532_v22 = vld [vmem:[#allocation5 + $0xc00] sm:$0xff]  ;;  %v11103_v28 = vcombine.high %v404_v19, %v408_v20  ;;  %6665 = vmatprep.subr.bf16.mxu1 %v11239_v23  ;;  %v11102_v33 = vcombine.low %v404_v19, %v408_v20 }
  0xbd   :  { %v536_v24 = vld [vmem:[#allocation5 + $0xc20] sm:$0xff]  ;;  %6666 = vmatpush1.bf16.msra.mxu1 %v11238_v27 }
  0xbe   :  { %v524_v29 = vld [vmem:[#allocation5 + $0xbc0] sm:$0xff]  ;;  %v11231_v32 = vcombine.high %v532_v22, %v536_v24  ;;  %6614 = vmatprep.subr.bf16.mxu0 %v11103_v28  ;;  %v11230_v34 = vcombine.low %v532_v22, %v536_v24 }
  0xbf   :  { %v528_v30 = vld [vmem:[#allocation5 + $0xbe0] sm:$0xff]  ;;  %6615 = vmatpush1.bf16.msra.mxu0 %v11102_v33 }
  0xc0   :  { %v652_v31 = vld [vmem:[#allocation5 + $0xfc0] sm:$0xff]  ;;  %v11223_v59 = vcombine.high %v524_v29, %v528_v30  ;;  %6667 = vmatprep.subr.bf16.mxu1 %v11231_v32  ;;  %v11222_v40 = vcombine.low %v524_v29, %v528_v30 }
  0xc1   :  { %v656_v54 = vld [vmem:[#allocation5 + $0xfe0] sm:$0xff]  ;;  %6668 = vmatpush1.bf16.msra.mxu1 %v11230_v34 }
  0xc2   :  { %v516_v60 = vld [vmem:[#allocation5 + $0xb80] sm:$0xff]  ;;  %v11351_v38 = vcombine.high %v652_v31, %v656_v54  ;;  %6616 = vmatprep.subr.bf16.mxu0 %v11223_v59  ;;  %v11350_v41 = vcombine.low %v652_v31, %v656_v54 }
  0xc3   :  { %v520_v36 = vld [vmem:[#allocation5 + $0xba0] sm:$0xff]  ;;  %6617 = vmatpush2.bf16.msra.mxu0 %v11222_v40 }
  0xc4   :  { %v644_v37 = vld [vmem:[#allocation5 + $0xf80] sm:$0xff]  ;;  %v11215_v45 = vcombine.high %v516_v60, %v520_v36  ;;  %6669 = vmatprep.subr.bf16.mxu1 %v11351_v38  ;;  %v11214_v57 = vcombine.low %v516_v60, %v520_v36 }
  0xc5   :  { %v648_v39 = vld [vmem:[#allocation5 + $0xfa0] sm:$0xff]  ;;  %6670 = vmatpush2.bf16.msra.mxu1 %v11350_v41 }
  0xc6   :  { %v508_v49 = vld [vmem:[#allocation5 + $0xb40] sm:$0xff]  ;;  %v11343_v52 = vcombine.high %v644_v37, %v648_v39  ;;  %6618 = vmatprep.subr.bf16.mxu0 %v11215_v45  ;;  %v11342_v61 = vcombine.low %v644_v37, %v648_v39 }
  0xc7   :  { %v512_v50 = vld [vmem:[#allocation5 + $0xb60] sm:$0xff]  ;;  %6619 = vmatpush2.bf16.msra.mxu0 %v11214_v57 }
  0xc8   :  { %v636_v51 = vld [vmem:[#allocation5 + $0xf40] sm:$0xff]  ;;  %v11207_v0 = vcombine.high %v508_v49, %v512_v50  ;;  %6671 = vmatprep.subr.bf16.mxu1 %v11343_v52  ;;  %v11206_v6 = vcombine.low %v508_v49, %v512_v50 }
  0xc9   :  { %v640_v53 = vld [vmem:[#allocation5 + $0xf60] sm:$0xff]  ;;  %6672 = vmatpush2.bf16.msra.mxu1 %v11342_v61 }
  0xca   :  { %v500_v1 = vld [vmem:[#allocation5 + $0xb00] sm:$0xff]  ;;  %v11335_v4 = vcombine.high %v636_v51, %v640_v53  ;;  %6620 = vmatprep.subr.bf16.mxu0 %v11207_v0  ;;  %v11334_v7 = vcombine.low %v636_v51, %v640_v53 }
  0xcb   :  { %v504_v2 = vld [vmem:[#allocation5 + $0xb20] sm:$0xff]  ;;  %6621 = vmatpush2.bf16.msra.mxu0 %v11206_v6  ;;  %v13000_v6 = vcombine.low %v12976_v43, %v12978_v44 }
  0xcc   :  { %v628_v3 = vld [vmem:[#allocation5 + $0xf00] sm:$0xff]  ;;  %v11199_v8 = vcombine.high %v500_v1, %v504_v2  ;;  %6673 = vmatprep.subr.bf16.mxu1 %v11335_v4  ;;  %v11198_v14 = vcombine.low %v500_v1, %v504_v2 }
  0xcd   :  { %v632_v5 = vld [vmem:[#allocation5 + $0xf20] sm:$0xff]  ;;  %6674 = vmatpush2.bf16.msra.mxu1 %v11334_v7  ;;  %v13004_v7 = vcombine.low %v12982_v47, %v12984_v48 }
  0xce   :  { %v492_v9 = vld [vmem:[#allocation5 + $0xac0] sm:$0xff]  ;;  %v11327_v12 = vcombine.high %v628_v3, %v632_v5  ;;  %6622 = vmatprep.subr.bf16.mxu0 %v11199_v8  ;;  %v11326_v15 = vcombine.low %v628_v3, %v632_v5  ;;  %v134_v3 = vld [vmem:[#allocation2 + $0x90] sm:$0xff] }
  0xcf   :  { %v496_v10 = vld [vmem:[#allocation5 + $0xae0] sm:$0xff]  ;;  %6623 = vmatpush2.bf16.msra.mxu0 %v11198_v14  ;;  %v142_v5 = vld [vmem:[#allocation2 + $0xd0] sm:$0xff] }
  0xd0   :  { %v620_v11 = vld [vmem:[#allocation5 + $0xec0] sm:$0xff]  ;;  %v11191_v16 = vcombine.high %v492_v9, %v496_v10  ;;  %6675 = vmatprep.subr.bf16.mxu1 %v11327_v12  ;;  %v11190_v23 = vcombine.low %v492_v9, %v496_v10  ;;  %v135_v9 = vld [vmem:[#allocation2 + $0x98] sm:$0xff] }
  0xd1   :  { %v624_v13 = vld [vmem:[#allocation5 + $0xee0] sm:$0xff]  ;;  %6676 = vmatpush2.bf16.msra.mxu1 %v11326_v15  ;;  %v143_v10 = vld [vmem:[#allocation2 + $0xd8] sm:$0xff]  ;;  %v13006_v15 = vcombine.high %v134_v3, %v142_v5 }
  0xd2   :  { %v484_v17 = vld [vmem:[#allocation5 + $0xa80] sm:$0xff]  ;;  %v11319_v20 = vcombine.high %v620_v11, %v624_v13  ;;  %6624 = vmatprep.subr.bf16.mxu0 %v11191_v16  ;;  %v11318_v24 = vcombine.low %v620_v11, %v624_v13 }
  0xd3   :  { %v488_v18 = vld [vmem:[#allocation5 + $0xaa0] sm:$0xff]  ;;  %6625 = vmatpush2.bf16.msra.mxu0 %v11190_v23 }
  0xd4   :  { %v612_v19 = vld [vmem:[#allocation5 + $0xe80] sm:$0xff]  ;;  %v11183_v26 = vcombine.high %v484_v17, %v488_v18  ;;  %6677 = vmatprep.subr.bf16.mxu1 %v11319_v20  ;;  %v11182_v32 = vcombine.low %v484_v17, %v488_v18  ;;  %v13009_v17 = vcombine.high %v135_v9, %v143_v10 }
  0xd5   :  { %v616_v22 = vld [vmem:[#allocation5 + $0xea0] sm:$0xff]  ;;  %6678 = vmatpush2.bf16.msra.mxu1 %v11318_v24 }
  0xd6   :  { %v476_v27 = vld [vmem:[#allocation5 + $0xa40] sm:$0xff]  ;;  %v11311_v30 = vcombine.high %v612_v19, %v616_v22  ;;  %6626 = vmatprep.subr.bf16.mxu0 %v11183_v26  ;;  %v11310_v54 = vcombine.low %v612_v19, %v616_v22 }
  0xd7   :  { %v480_v28 = vld [vmem:[#allocation5 + $0xa60] sm:$0xff]  ;;  %6627 = vmatpush2.bf16.msra.mxu0 %v11182_v32  ;;  %v13024_v32 = vld [vmem:[#allocation2 + $0x68] sm:$0xff] }
  0xd8   :  { %v604_v29 = vld [vmem:[#allocation5 + $0xe40] sm:$0xff]  ;;  %v11175_v33 = vcombine.high %v476_v27, %v480_v28  ;;  %6679 = vmatprep.subr.bf16.mxu1 %v11311_v30  ;;  %v11174_v38 = vcombine.low %v476_v27, %v480_v28  ;;  %v13017_v28 = vcombine.low %v134_v3, %v142_v5  ;;  %v13020_v30 = vcombine.low %v135_v9, %v143_v10 }
  0xd9   :  { %v608_v31 = vld [vmem:[#allocation5 + $0xe60] sm:$0xff]  ;;  %6680 = vmatpush2.bf16.msra.mxu1 %v11310_v54 }
  0xda   :  { %v468_v34 = vld [vmem:[#allocation5 + $0xa00] sm:$0xff]  ;;  %v11303_v36 = vcombine.high %v604_v29, %v608_v31  ;;  %6628 = vmatprep.subr.bf16.mxu0 %v11175_v33  ;;  %v11302_v39 = vcombine.low %v604_v29, %v608_v31  ;;  %v13022_v31 = vld [vmem:[#allocation2 + $0x28] sm:$0xff] }
  0xdb   :  { %v472_v59 = vld [vmem:[#allocation5 + $0xa20] sm:$0xff]  ;;  %6629 = vmatpush2.bf16.msra.mxu0 %v11174_v38 }
  0xdc   :  { %v596_v60 = vld [vmem:[#allocation5 + $0xe00] sm:$0xff]  ;;  %v11167_v40 = vcombine.high %v468_v34, %v472_v59  ;;  %6681 = vmatprep.subr.bf16.mxu1 %v11303_v36  ;;  %v11166_v52 = vcombine.low %v468_v34, %v472_v59 }
  0xdd   :  { %v600_v37 = vld [vmem:[#allocation5 + $0xe20] sm:$0xff]  ;;  %6682 = vmatpush2.bf16.msra.mxu1 %v11302_v39  ;;  %v13033_v39 = vcombine.high %v13022_v31, %v13024_v32 }
  0xde   :  { %v716_v41 = vld [vmem:[#allocation5 + $0x11c0] sm:$0xff]  ;;  %v11295_v50 = vcombine.high %v596_v60, %v600_v37  ;;  %6630 = vmatprep.subr.bf16.mxu0 %v11167_v40  ;;  %v11294_v61 = vcombine.low %v596_v60, %v600_v37 }
  0xdf   :  { %v720_v45 = vld [vmem:[#allocation5 + $0x11e0] sm:$0xff]  ;;  %6631 = vmatpush2.bf16.msra.mxu0 %v11166_v52 }
  0xe0   :  { %v844_v49 = vld [vmem:[#allocation5 + $0x15c0] sm:$0xff]  ;;  %v11415_v0 = vcombine.high %v716_v41, %v720_v45  ;;  %6683 = vmatprep.subr.bf16.mxu1 %v11295_v50  ;;  %v11414_v8 = vcombine.low %v716_v41, %v720_v45 }
  0xe1   :  { %v848_v51 = vld [vmem:[#allocation5 + $0x15e0] sm:$0xff]  ;;  %6684 = vmatpush2.bf16.msra.mxu1 %v11294_v61 }
  0xe2   :  { %v708_v53 = vld [vmem:[#allocation5 + $0x1180] sm:$0xff]  ;;  %v11543_v4 = vcombine.high %v844_v49, %v848_v51  ;;  %6706 = vmatprep.subr.bf16.mxu0 %v11415_v0  ;;  %v11542_v11 = vcombine.low %v844_v49, %v848_v51  ;;  %6633 = vmatmul.mubr.bf16.vlgmr.msra.gmra.mxu0 %v13000_v6 }
  0xe3   :  { %v712_v57 = vld [vmem:[#allocation5 + $0x11a0] sm:$0xff]  ;;  %6707 = vmatpush1.bf16.msra.mxu0 %v11414_v8  ;;  %6642 = vmatprep.mubr.bf16.mxu0 %v13006_v15 }
  0xe4   :  { %v836_v1 = vld [vmem:[#allocation5 + $0x1580] sm:$0xff]  ;;  %v11407_v12 = vcombine.high %v708_v53, %v712_v57  ;;  %6759 = vmatprep.subr.bf16.mxu1 %v11543_v4  ;;  %6686 = vmatmul.mubr.bf16.vlgmr.msra.gmra.mxu1 %v13004_v7  ;;  %v11406_v47 = vcombine.low %v708_v53, %v712_v57 }
  0xe5   :  { %v840_v2 = vld [vmem:[#allocation5 + $0x15a0] sm:$0xff]  ;;  %6760 = vmatpush1.bf16.msra.mxu1 %v11542_v11  ;;  %6695 = vmatprep.mubr.bf16.mxu1 %v13009_v17 }
  0xe6   :  { %v700_v13 = vld [vmem:[#allocation5 + $0x1140] sm:$0xff]  ;;  %v11535_v14 = vcombine.high %v836_v1, %v840_v2  ;;  %6708 = vmatprep.subr.bf16.mxu0 %v11407_v12  ;;  %v11534_v19 = vcombine.low %v836_v1, %v840_v2 }
  0xe7   :  { %v704_v16 = vld [vmem:[#allocation5 + $0x1160] sm:$0xff]  ;;  %6709 = vmatpush1.bf16.msra.mxu0 %v11406_v47 }
  0xe8   :  { %v828_v43 = vld [vmem:[#allocation5 + $0x1540] sm:$0xff]  ;;  %v11399_v20 = vcombine.high %v700_v13, %v704_v16  ;;  %6761 = vmatprep.subr.bf16.mxu1 %v11535_v14  ;;  %v11398_v29 = vcombine.low %v700_v13, %v704_v16 }
  0xe9   :  { %v832_v44 = vld [vmem:[#allocation5 + $0x1560] sm:$0xff]  ;;  %6762 = vmatpush1.bf16.msra.mxu1 %v11534_v19 }
  0xea   :  { %v692_v48 = vld [vmem:[#allocation5 + $0x1100] sm:$0xff]  ;;  %v11527_v26 = vcombine.high %v828_v43, %v832_v44  ;;  %6710 = vmatprep.subr.bf16.mxu0 %v11399_v20  ;;  %v11526_v54 = vcombine.low %v828_v43, %v832_v44  ;;  %6643 = vmatmul.mubr.bf16.gmra.mxu0 %v13017_v28 }
  0xeb   :  { %v696_v18 = vld [vmem:[#allocation5 + $0x1120] sm:$0xff]  ;;  %6711 = vmatpush1.bf16.msra.mxu0 %v11398_v29 }
  0xec   :  { %v820_v22 = vld [vmem:[#allocation5 + $0x1500] sm:$0xff]  ;;  %v11391_v33 = vcombine.high %v692_v48, %v696_v18  ;;  %6763 = vmatprep.subr.bf16.mxu1 %v11527_v26  ;;  %6696 = vmatmul.mubr.bf16.gmra.mxu1 %v13020_v30  ;;  %v11390_v40 = vcombine.low %v692_v48, %v696_v18 }
  0xed   :  { %v824_v23 = vld [vmem:[#allocation5 + $0x1520] sm:$0xff]  ;;  %6764 = vmatpush1.bf16.msra.mxu1 %v11526_v54  ;;  %6791 = vmatprep.mubr.bf16.mxu1 %v13033_v39 }
  0xee   :  { %v13012_v24 = vld [vmem:[#allocation2 + $0x20] sm:$0xff]  ;;  %v11519_v59 = vcombine.high %v820_v22, %v824_v23  ;;  %6712 = vmatprep.subr.bf16.mxu0 %v11391_v33  ;;  %v11518_v41 = vcombine.low %v820_v22, %v824_v23 }
  0xef   :  { %v13015_v27 = vld [vmem:[#allocation2 + $0x60] sm:$0xff]  ;;  %6713 = vmatpush1.bf16.msra.mxu0 %v11390_v40 }
  0xf0   :  { %v684_v34 = vld [vmem:[#allocation5 + $0x10c0] sm:$0xff]  ;;  %v13028_v38 = vcombine.high %v13012_v24, %v13015_v27  ;;  %6765 = vmatprep.subr.bf16.mxu1 %v11519_v59 }
  0xf1   :  { %v688_v60 = vld [vmem:[#allocation5 + $0x10e0] sm:$0xff]  ;;  %6766 = vmatpush1.bf16.msra.mxu1 %v11518_v41 }
  0xf2   :  { %v812_v36 = vld [vmem:[#allocation5 + $0x14c0] sm:$0xff]  ;;  %v11383_v45 = vcombine.high %v684_v34, %v688_v60  ;;  %6738 = vmatprep.mubr.bf16.mxu0 %v13028_v38  ;;  %v11382_v57 = vcombine.low %v684_v34, %v688_v60 }
  0xf3   :  { %v816_v37 = vld [vmem:[#allocation5 + $0x14e0] sm:$0xff] }
  0xf4   :  { %v676_v49 = vld [vmem:[#allocation5 + $0x1080] sm:$0xff]  ;;  %v11511_v52 = vcombine.high %v812_v36, %v816_v37  ;;  %6714 = vmatprep.subr.bf16.mxu0 %v11383_v45  ;;  %v11510_v61 = vcombine.low %v812_v36, %v816_v37 }
  0xf5   :  { %v680_v50 = vld [vmem:[#allocation5 + $0x10a0] sm:$0xff]  ;;  %6715 = vmatpush1.bf16.msra.mxu0 %v11382_v57 }
  0xf6   :  { %v804_v51 = vld [vmem:[#allocation5 + $0x1480] sm:$0xff]  ;;  %v11375_v0 = vcombine.high %v676_v49, %v680_v50  ;;  %6767 = vmatprep.subr.bf16.mxu1 %v11511_v52  ;;  %v11374_v8 = vcombine.low %v676_v49, %v680_v50 }
  0xf7   :  { %v808_v53 = vld [vmem:[#allocation5 + $0x14a0] sm:$0xff]  ;;  %6768 = vmatpush1.bf16.msra.mxu1 %v11510_v61 }
  0xf8   :  { %v668_v1 = vld [vmem:[#allocation5 + $0x1040] sm:$0xff]  ;;  %v11503_v4 = vcombine.high %v804_v51, %v808_v53  ;;  %6716 = vmatprep.subr.bf16.mxu0 %v11375_v0  ;;  %v11502_v9 = vcombine.low %v804_v51, %v808_v53 }
  0xf9   :  { %v672_v2 = vld [vmem:[#allocation5 + $0x1060] sm:$0xff]  ;;  %6717 = vmatpush1.bf16.msra.mxu0 %v11374_v8 }
  0xfa   :  { %v796_v3 = vld [vmem:[#allocation5 + $0x1440] sm:$0xff]  ;;  %v11367_v10 = vcombine.high %v668_v1, %v672_v2  ;;  %6769 = vmatprep.subr.bf16.mxu1 %v11503_v4  ;;  %v11366_v43 = vcombine.low %v668_v1, %v672_v2 }
  0xfb   :  { %v800_v5 = vld [vmem:[#allocation5 + $0x1460] sm:$0xff]  ;;  %6770 = vmatpush1.bf16.msra.mxu1 %v11502_v9 }
  0xfc   :  { %v660_v11 = vld [vmem:[#allocation5 + $0x1000] sm:$0xff]  ;;  %v11495_v14 = vcombine.high %v796_v3, %v800_v5  ;;  %6718 = vmatprep.subr.bf16.mxu0 %v11367_v10  ;;  %v11494_v44 = vcombine.low %v796_v3, %v800_v5 }
  0xfd   :  { %v664_v12 = vld [vmem:[#allocation5 + $0x1020] sm:$0xff]  ;;  %6719 = vmatpush1.bf16.msra.mxu0 %v11366_v43 }
  0xfe   :  { %v788_v13 = vld [vmem:[#allocation5 + $0x1400] sm:$0xff]  ;;  %v11359_v47 = vcombine.high %v660_v11, %v664_v12  ;;  %6771 = vmatprep.subr.bf16.mxu1 %v11495_v14  ;;  %v11358_v23 = vcombine.low %v660_v11, %v664_v12 }
  0xff   :  { %v792_v16 = vld [vmem:[#allocation5 + $0x1420] sm:$0xff]  ;;  %6772 = vmatpush1.bf16.msra.mxu1 %v11494_v44 }
 0x100   :  { %v780_v48 = vld [vmem:[#allocation5 + $0x13c0] sm:$0xff]  ;;  %v11487_v20 = vcombine.high %v788_v13, %v792_v16  ;;  %6720 = vmatprep.subr.bf16.mxu0 %v11359_v47  ;;  %v11486_v26 = vcombine.low %v788_v13, %v792_v16 }
 0x101   :  { %v784_v18 = vld [vmem:[#allocation5 + $0x13e0] sm:$0xff]  ;;  %6721 = vmatpush1.bf16.msra.mxu0 %v11358_v23 }
 0x102   :  { %v908_v19 = vld [vmem:[#allocation5 + $0x17c0] sm:$0xff]  ;;  %v11479_v29 = vcombine.high %v780_v48, %v784_v18  ;;  %6773 = vmatprep.subr.bf16.mxu1 %v11487_v20  ;;  %v11478_v36 = vcombine.low %v780_v48, %v784_v18 }
 0x103   :  { %v912_v22 = vld [vmem:[#allocation5 + $0x17e0] sm:$0xff]  ;;  %6774 = vmatpush1.bf16.msra.mxu1 %v11486_v26 }
 0x104   :  { %v772_v54 = vld [vmem:[#allocation5 + $0x1380] sm:$0xff]  ;;  %v11607_v59 = vcombine.high %v908_v19, %v912_v22  ;;  %6722 = vmatprep.subr.bf16.mxu0 %v11479_v29  ;;  %v11606_v37 = vcombine.low %v908_v19, %v912_v22 }
 0x105   :  { %v776_v33 = vld [vmem:[#allocation5 + $0x13a0] sm:$0xff]  ;;  %6723 = vmatpush2.bf16.msra.mxu0 %v11478_v36 }
 0x106   :  { %v900_v34 = vld [vmem:[#allocation5 + $0x1780] sm:$0xff]  ;;  %v11471_v40 = vcombine.high %v772_v54, %v776_v33  ;;  %6775 = vmatprep.subr.bf16.mxu1 %v11607_v59  ;;  %v11470_v52 = vcombine.low %v772_v54, %v776_v33 }
 0x107   :  { %v904_v60 = vld [vmem:[#allocation5 + $0x17a0] sm:$0xff]  ;;  %6776 = vmatpush2.bf16.msra.mxu1 %v11606_v37 }
 0x108   :  { %v764_v41 = vld [vmem:[#allocation5 + $0x1340] sm:$0xff]  ;;  %v11599_v50 = vcombine.high %v900_v34, %v904_v60  ;;  %6724 = vmatprep.subr.bf16.mxu0 %v11471_v40  ;;  %v11598_v53 = vcombine.low %v900_v34, %v904_v60 }
 0x109   :  { %v768_v45 = vld [vmem:[#allocation5 + $0x1360] sm:$0xff]  ;;  %6725 = vmatpush2.bf16.msra.mxu0 %v11470_v52 }
 0x10a   :  { %v892_v49 = vld [vmem:[#allocation5 + $0x1740] sm:$0xff]  ;;  %v11463_v57 = vcombine.high %v764_v41, %v768_v45  ;;  %6777 = vmatprep.subr.bf16.mxu1 %v11599_v50  ;;  %v11462_v4 = vcombine.low %v764_v41, %v768_v45 }
 0x10b   :  { %v896_v51 = vld [vmem:[#allocation5 + $0x1760] sm:$0xff]  ;;  %6778 = vmatpush2.bf16.msra.mxu1 %v11598_v53 }
 0x10c   :  { %v756_v61 = vld [vmem:[#allocation5 + $0x1300] sm:$0xff]  ;;  %v11591_v2 = vcombine.high %v892_v49, %v896_v51  ;;  %6726 = vmatprep.subr.bf16.mxu0 %v11463_v57  ;;  %v11590_v5 = vcombine.low %v892_v49, %v896_v51 }
 0x10d   :  { %v760_v0 = vld [vmem:[#allocation5 + $0x1320] sm:$0xff]  ;;  %6727 = vmatpush2.bf16.msra.mxu0 %v11462_v4 }
 0x10e   :  { %v884_v1 = vld [vmem:[#allocation5 + $0x1700] sm:$0xff]  ;;  %v11455_v8 = vcombine.high %v756_v61, %v760_v0  ;;  %6779 = vmatprep.subr.bf16.mxu1 %v11591_v2  ;;  %v11454_v14 = vcombine.low %v756_v61, %v760_v0 }
 0x10f   :  { %v888_v3 = vld [vmem:[#allocation5 + $0x1720] sm:$0xff]  ;;  %6780 = vmatpush2.bf16.msra.mxu1 %v11590_v5 }
 0x110   :  { %v748_v9 = vld [vmem:[#allocation5 + $0x12c0] sm:$0xff]  ;;  %v11583_v12 = vcombine.high %v884_v1, %v888_v3  ;;  %6728 = vmatprep.subr.bf16.mxu0 %v11455_v8  ;;  %v11582_v16 = vcombine.low %v884_v1, %v888_v3 }
 0x111   :  { %v752_v10 = vld [vmem:[#allocation5 + $0x12e0] sm:$0xff]  ;;  %6729 = vmatpush2.bf16.msra.mxu0 %v11454_v14  ;;  %v137_v14 = vld [vmem:[#allocation2 + $0xa8] sm:$0xff] }
 0x112   :  { %v876_v11 = vld [vmem:[#allocation5 + $0x16c0] sm:$0xff]  ;;  %v11447_v43 = vcombine.high %v748_v9, %v752_v10  ;;  %6781 = vmatprep.subr.bf16.mxu1 %v11583_v12  ;;  %v11446_v20 = vcombine.low %v748_v9, %v752_v10 }
 0x113   :  { %v880_v13 = vld [vmem:[#allocation5 + $0x16e0] sm:$0xff]  ;;  %6782 = vmatpush2.bf16.msra.mxu1 %v11582_v16  ;;  %v145_v16 = vld [vmem:[#allocation2 + $0xe8] sm:$0xff] }
 0x114   :  { %v740_v44 = vld [vmem:[#allocation5 + $0x1280] sm:$0xff]  ;;  %v11575_v18 = vcombine.high %v876_v11, %v880_v13  ;;  %6730 = vmatprep.subr.bf16.mxu0 %v11447_v43  ;;  %v11574_v22 = vcombine.low %v876_v11, %v880_v13  ;;  %v13040_v43 = vcombine.low %v13012_v24, %v13015_v27  ;;  %v13049_v24 = vcombine.high %v137_v14, %v145_v16 }
 0x115   :  { %v744_v47 = vld [vmem:[#allocation5 + $0x12a0] sm:$0xff]  ;;  %6731 = vmatpush2.bf16.msra.mxu0 %v11446_v20 }
 0x116   :  { %v868_v48 = vld [vmem:[#allocation5 + $0x1680] sm:$0xff]  ;;  %v11439_v23 = vcombine.high %v740_v44, %v744_v47  ;;  %6783 = vmatprep.subr.bf16.mxu1 %v11575_v18  ;;  %v11438_v59 = vcombine.low %v740_v44, %v744_v47  ;;  %v13044_v44 = vcombine.low %v13022_v31, %v13024_v32 }
 0x117   :  { %v872_v19 = vld [vmem:[#allocation5 + $0x16a0] sm:$0xff]  ;;  %6784 = vmatpush2.bf16.msra.mxu1 %v11574_v22 }
 0x118   :  { %v732_v26 = vld [vmem:[#allocation5 + $0x1240] sm:$0xff]  ;;  %v11567_v33 = vcombine.high %v868_v48, %v872_v19  ;;  %6732 = vmatprep.subr.bf16.mxu0 %v11439_v23  ;;  %v11566_v60 = vcombine.low %v868_v48, %v872_v19 }
 0x119   :  { %v736_v29 = vld [vmem:[#allocation5 + $0x1260] sm:$0xff]  ;;  %6733 = vmatpush2.bf16.msra.mxu0 %v11438_v59 }
 0x11a   :  { %v860_v54 = vld [vmem:[#allocation5 + $0x1640] sm:$0xff]  ;;  %v11431_v36 = vcombine.high %v732_v26, %v736_v29  ;;  %6785 = vmatprep.subr.bf16.mxu1 %v11567_v33  ;;  %v11430_v50 = vcombine.low %v732_v26, %v736_v29 }
 0x11b   :  { %v864_v34 = vld [vmem:[#allocation5 + $0x1660] sm:$0xff]  ;;  %6786 = vmatpush2.bf16.msra.mxu1 %v11566_v60  ;;  %v13052_v60 = vld [vmem:[#allocation2 + $0x30] sm:$0xff] }
 0x11c   :  { %v724_v37 = vld [vmem:[#allocation5 + $0x1200] sm:$0xff]  ;;  %v11559_v45 = vcombine.high %v860_v54, %v864_v34  ;;  %6734 = vmatprep.subr.bf16.mxu0 %v11431_v36  ;;  %v11558_v51 = vcombine.low %v860_v54, %v864_v34  ;;  %v13054_v36 = vld [vmem:[#allocation2 + $0x70] sm:$0xff] }
 0x11d   :  { %v728_v40 = vld [vmem:[#allocation5 + $0x1220] sm:$0xff]  ;;  %6735 = vmatpush2.bf16.msra.mxu0 %v11430_v50  ;;  %v13064_v50 = vcombine.low %v137_v14, %v145_v16 }
 0x11e   :  { %v852_v41 = vld [vmem:[#allocation5 + $0x1600] sm:$0xff]  ;;  %v11423_v52 = vcombine.high %v724_v37, %v728_v40  ;;  %6787 = vmatprep.subr.bf16.mxu1 %v11559_v45  ;;  %v11422_v2 = vcombine.low %v724_v37, %v728_v40  ;;  %v13057_v40 = vld [vmem:[#allocation2 + $0x38] sm:$0xff] }
 0x11f   :  { %v856_v49 = vld [vmem:[#allocation5 + $0x1620] sm:$0xff]  ;;  %6788 = vmatpush2.bf16.msra.mxu1 %v11558_v51 }
 0x120   :  { %v972_v53 = vld [vmem:[#allocation5 + $0x19c0] sm:$0xff]  ;;  %v11551_v0 = vcombine.high %v852_v41, %v856_v49  ;;  %6736 = vmatprep.subr.bf16.mxu0 %v11423_v52  ;;  %v11550_v5 = vcombine.low %v852_v41, %v856_v49  ;;  %v13059_v41 = vld [vmem:[#allocation2 + $0x78] sm:$0xff] }
 0x121   :  { %v976_v57 = vld [vmem:[#allocation5 + $0x19e0] sm:$0xff]  ;;  %6737 = vmatpush2.bf16.msra.mxu0 %v11422_v2  ;;  %v13068_v2 = vcombine.high %v13052_v60, %v13054_v36 }
 0x122   :  { %v1100_v61 = vld [vmem:[#allocation5 + $0x1dc0] sm:$0xff]  ;;  %v11671_v8 = vcombine.high %v972_v53, %v976_v57  ;;  %6789 = vmatprep.subr.bf16.mxu1 %v11551_v0  ;;  %v11670_v47 = vcombine.low %v972_v53, %v976_v57 }
 0x123   :  { %v1104_v1 = vld [vmem:[#allocation5 + $0x1de0] sm:$0xff]  ;;  %6790 = vmatpush2.bf16.msra.mxu1 %v11550_v5 }
 0x124   :  { %v964_v3 = vld [vmem:[#allocation5 + $0x1980] sm:$0xff]  ;;  %v11799_v13 = vcombine.high %v1100_v61, %v1104_v1  ;;  %6812 = vmatprep.subr.bf16.mxu0 %v11671_v8  ;;  %v11798_v48 = vcombine.low %v1100_v61, %v1104_v1  ;;  %6739 = vmatmul.mubr.bf16.vlgmr.msra.gmra.mxu0 %v13040_v43 }
 0x125   :  { %v968_v4 = vld [vmem:[#allocation5 + $0x19a0] sm:$0xff]  ;;  %6813 = vmatpush1.bf16.msra.mxu0 %v11670_v47 }
 0x126   :  { %v1092_v9 = vld [vmem:[#allocation5 + $0x1d80] sm:$0xff]  ;;  %v11663_v18 = vcombine.high %v964_v3, %v968_v4  ;;  %6865 = vmatprep.subr.bf16.mxu1 %v11799_v13  ;;  %6792 = vmatmul.mubr.bf16.vlgmr.msra.gmra.mxu1 %v13044_v44  ;;  %v11662_v27 = vcombine.low %v964_v3, %v968_v4  ;;  %v13073_v3 = vcombine.high %v13057_v40, %v13059_v41 }
 0x127   :  { %v1096_v10 = vld [vmem:[#allocation5 + $0x1da0] sm:$0xff]  ;;  %6866 = vmatpush1.bf16.msra.mxu1 %v11798_v48  ;;  %6801 = vmatprep.mubr.bf16.mxu1 %v13049_v24 }
 0x128   :  { %v136_v11 = vld [vmem:[#allocation2 + $0xa0] sm:$0xff]  ;;  %v11791_v23 = vcombine.high %v1092_v9, %v1096_v10  ;;  %6814 = vmatprep.subr.bf16.mxu0 %v11663_v18  ;;  %v11790_v54 = vcombine.low %v1092_v9, %v1096_v10 }
 0x129   :  { %v144_v12 = vld [vmem:[#allocation2 + $0xe0] sm:$0xff]  ;;  %6815 = vmatpush1.bf16.msra.mxu0 %v11662_v27 }
 0x12a   :  { %v956_v19 = vld [vmem:[#allocation5 + $0x1940] sm:$0xff]  ;;  %v13046_v26 = vcombine.high %v136_v11, %v144_v12  ;;  %6867 = vmatprep.subr.bf16.mxu1 %v11791_v23  ;;  %v13061_v45 = vcombine.low %v136_v11, %v144_v12 }
 0x12b   :  { %v960_v20 = vld [vmem:[#allocation5 + $0x1960] sm:$0xff]  ;;  %6868 = vmatpush1.bf16.msra.mxu1 %v11790_v54 }
 0x12c   :  { %v1084_v22 = vld [vmem:[#allocation5 + $0x1d40] sm:$0xff]  ;;  %v11655_v33 = vcombine.high %v956_v19, %v960_v20  ;;  %6748 = vmatprep.mubr.bf16.mxu0 %v13046_v26  ;;  %v11654_v49 = vcombine.low %v956_v19, %v960_v20 }
 0x12d   :  { %v1088_v29 = vld [vmem:[#allocation5 + $0x1d60] sm:$0xff]  ;;  %6749 = vmatmul.mubr.bf16.gmra.mxu0 %v13061_v45 }
 0x12e   :  { %v948_v31 = vld [vmem:[#allocation5 + $0x1900] sm:$0xff]  ;;  %v11783_v37 = vcombine.high %v1084_v22, %v1088_v29  ;;  %6816 = vmatprep.subr.bf16.mxu0 %v11655_v33  ;;  %v11782_v51 = vcombine.low %v1084_v22, %v1088_v29  ;;  %6802 = vmatmul.mubr.bf16.gmra.mxu1 %v13064_v50 }
 0x12f   :  { %v952_v32 = vld [vmem:[#allocation5 + $0x1920] sm:$0xff]  ;;  %6817 = vmatpush1.bf16.msra.mxu0 %v11654_v49  ;;  %6844 = vmatprep.mubr.bf16.mxu0 %v13068_v2 }
 0x130   :  { %v1076_v34 = vld [vmem:[#allocation5 + $0x1d00] sm:$0xff]  ;;  %v11647_v52 = vcombine.high %v948_v31, %v952_v32  ;;  %6869 = vmatprep.subr.bf16.mxu1 %v11783_v37  ;;  %v11646_v4 = vcombine.low %v948_v31, %v952_v32  ;;  %6897 = vmatprep.mubr.bf16.mxu1 %v13073_v3 }
 0x131   :  { %v1080_v59 = vld [vmem:[#allocation5 + $0x1d20] sm:$0xff]  ;;  %6870 = vmatpush1.bf16.msra.mxu1 %v11782_v51 }
 0x132   :  { %v940_v53 = vld [vmem:[#allocation5 + $0x18c0] sm:$0xff]  ;;  %v11775_v0 = vcombine.high %v1076_v34, %v1080_v59  ;;  %6818 = vmatprep.subr.bf16.mxu0 %v11647_v52  ;;  %v11774_v5 = vcombine.low %v1076_v34, %v1080_v59 }
 0x133   :  { %v944_v57 = vld [vmem:[#allocation5 + $0x18e0] sm:$0xff]  ;;  %6819 = vmatpush1.bf16.msra.mxu0 %v11646_v4 }
 0x134   :  { %v1068_v61 = vld [vmem:[#allocation5 + $0x1cc0] sm:$0xff]  ;;  %v11639_v8 = vcombine.high %v940_v53, %v944_v57  ;;  %6871 = vmatprep.subr.bf16.mxu1 %v11775_v0  ;;  %v11638_v14 = vcombine.low %v940_v53, %v944_v57 }
 0x135   :  { %v1072_v1 = vld [vmem:[#allocation5 + $0x1ce0] sm:$0xff]  ;;  %6872 = vmatpush1.bf16.msra.mxu1 %v11774_v5 }
 0x136   :  { %v932_v9 = vld [vmem:[#allocation5 + $0x1880] sm:$0xff]  ;;  %v11767_v12 = vcombine.high %v1068_v61, %v1072_v1  ;;  %6820 = vmatprep.subr.bf16.mxu0 %v11639_v8  ;;  %v11766_v16 = vcombine.low %v1068_v61, %v1072_v1 }
 0x137   :  { %v936_v10 = vld [vmem:[#allocation5 + $0x18a0] sm:$0xff]  ;;  %6821 = vmatpush1.bf16.msra.mxu0 %v11638_v14 }
 0x138   :  { %v1060_v11 = vld [vmem:[#allocation5 + $0x1c80] sm:$0xff]  ;;  %v11631_v47 = vcombine.high %v932_v9, %v936_v10  ;;  %6873 = vmatprep.subr.bf16.mxu1 %v11767_v12  ;;  %v11630_v23 = vcombine.low %v932_v9, %v936_v10 }
 0x139   :  { %v1064_v13 = vld [vmem:[#allocation5 + $0x1ca0] sm:$0xff]  ;;  %6874 = vmatpush1.bf16.msra.mxu1 %v11766_v16 }
 0x13a   :  { %v924_v48 = vld [vmem:[#allocation5 + $0x1840] sm:$0xff]  ;;  %v11759_v20 = vcombine.high %v1060_v11, %v1064_v13  ;;  %6822 = vmatprep.subr.bf16.mxu0 %v11631_v47  ;;  %v11758_v29 = vcombine.low %v1060_v11, %v1064_v13 }
 0x13b   :  { %v928_v18 = vld [vmem:[#allocation5 + $0x1860] sm:$0xff]  ;;  %6823 = vmatpush1.bf16.msra.mxu0 %v11630_v23 }
 0x13c   :  { %v1052_v19 = vld [vmem:[#allocation5 + $0x1c40] sm:$0xff]  ;;  %v11623_v27 = vcombine.high %v924_v48, %v928_v18  ;;  %6875 = vmatprep.subr.bf16.mxu1 %v11759_v20  ;;  %v11622_v59 = vcombine.low %v924_v48, %v928_v18 }
 0x13d   :  { %v1056_v22 = vld [vmem:[#allocation5 + $0x1c60] sm:$0xff]  ;;  %6876 = vmatpush1.bf16.msra.mxu1 %v11758_v29 }
 0x13e   :  { %v916_v31 = vld [vmem:[#allocation5 + $0x1800] sm:$0xff]  ;;  %v11751_v33 = vcombine.high %v1052_v19, %v1056_v22  ;;  %6824 = vmatprep.subr.bf16.mxu0 %v11623_v27  ;;  %v11750_v37 = vcombine.low %v1052_v19, %v1056_v22 }
 0x13f   :  { %v920_v32 = vld [vmem:[#allocation5 + $0x1820] sm:$0xff]  ;;  %6825 = vmatpush1.bf16.msra.mxu0 %v11622_v59 }
 0x140   :  { %v1044_v54 = vld [vmem:[#allocation5 + $0x1c00] sm:$0xff]  ;;  %v11615_v49 = vcombine.high %v916_v31, %v920_v32  ;;  %6877 = vmatprep.subr.bf16.mxu1 %v11751_v33  ;;  %v11614_v0 = vcombine.low %v916_v31, %v920_v32 }
 0x141   :  { %v1048_v34 = vld [vmem:[#allocation5 + $0x1c20] sm:$0xff]  ;;  %6878 = vmatpush1.bf16.msra.mxu1 %v11750_v37 }
 0x142   :  { %v1036_v51 = vld [vmem:[#allocation5 + $0x1bc0] sm:$0xff]  ;;  %v11743_v57 = vcombine.high %v1044_v54, %v1048_v34  ;;  %6826 = vmatprep.subr.bf16.mxu0 %v11615_v49  ;;  %v11742_v1 = vcombine.low %v1044_v54, %v1048_v34 }
 0x143   :  { %v1040_v52 = vld [vmem:[#allocation5 + $0x1be0] sm:$0xff]  ;;  %6827 = vmatpush1.bf16.msra.mxu0 %v11614_v0 }
 0x144   :  { %v1164_v53 = vld [vmem:[#allocation5 + $0x1fc0] sm:$0xff]  ;;  %v11735_v4 = vcombine.high %v1036_v51, %v1040_v52  ;;  %6879 = vmatprep.subr.bf16.mxu1 %v11743_v57  ;;  %v11734_v12 = vcombine.low %v1036_v51, %v1040_v52 }
 0x145   :  { %v1168_v61 = vld [vmem:[#allocation5 + $0x1fe0] sm:$0xff]  ;;  %6880 = vmatpush1.bf16.msra.mxu1 %v11742_v1 }
 0x146   :  { %v1028_v5 = vld [vmem:[#allocation5 + $0x1b80] sm:$0xff]  ;;  %v11863_v10 = vcombine.high %v1164_v53, %v1168_v61  ;;  %6828 = vmatprep.subr.bf16.mxu0 %v11735_v4  ;;  %v11862_v13 = vcombine.low %v1164_v53, %v1168_v61 }
 0x147   :  { %v1032_v8 = vld [vmem:[#allocation5 + $0x1ba0] sm:$0xff]  ;;  %6829 = vmatpush2.bf16.msra.mxu0 %v11734_v12 }
 0x148   :  { %v1156_v9 = vld [vmem:[#allocation5 + $0x1f80] sm:$0xff]  ;;  %v11727_v14 = vcombine.high %v1028_v5, %v1032_v8  ;;  %6881 = vmatprep.subr.bf16.mxu1 %v11863_v10  ;;  %v11726_v20 = vcombine.low %v1028_v5, %v1032_v8 }
 0x149   :  { %v1160_v11 = vld [vmem:[#allocation5 + $0x1fa0] sm:$0xff]  ;;  %6882 = vmatpush2.bf16.msra.mxu1 %v11862_v13 }
 0x14a   :  { %v1020_v16 = vld [vmem:[#allocation5 + $0x1b40] sm:$0xff]  ;;  %v11855_v18 = vcombine.high %v1156_v9, %v1160_v11  ;;  %6830 = vmatprep.subr.bf16.mxu0 %v11727_v14  ;;  %v11854_v22 = vcombine.low %v1156_v9, %v1160_v11 }
 0x14b   :  { %v1024_v47 = vld [vmem:[#allocation5 + $0x1b60] sm:$0xff]  ;;  %6831 = vmatpush2.bf16.msra.mxu0 %v11726_v20 }
 0x14c   :  { %v1148_v48 = vld [vmem:[#allocation5 + $0x1f40] sm:$0xff]  ;;  %v11719_v23 = vcombine.high %v1020_v16, %v1024_v47  ;;  %6883 = vmatprep.subr.bf16.mxu1 %v11855_v18  ;;  %v11718_v33 = vcombine.low %v1020_v16, %v1024_v47 }
 0x14d   :  { %v1152_v19 = vld [vmem:[#allocation5 + $0x1f60] sm:$0xff]  ;;  %6884 = vmatpush2.bf16.msra.mxu1 %v11854_v22 }
 0x14e   :  { %v1012_v29 = vld [vmem:[#allocation5 + $0x1b00] sm:$0xff]  ;;  %v11847_v32 = vcombine.high %v1148_v48, %v1152_v19  ;;  %6832 = vmatprep.subr.bf16.mxu0 %v11719_v23  ;;  %v11846_v34 = vcombine.low %v1148_v48, %v1152_v19  ;;  %v13822_v19 = vlaneseq }
 0x14f   :  { %v1016_v27 = vld [vmem:[#allocation5 + $0x1b20] sm:$0xff]  ;;  %6833 = vmatpush2.bf16.msra.mxu0 %v11718_v33 }
 0x150   :  { %v1140_v31 = vld [vmem:[#allocation5 + $0x1f00] sm:$0xff]  ;;  %v11711_v59 = vcombine.high %v1012_v29, %v1016_v27  ;;  %6885 = vmatprep.subr.bf16.mxu1 %v11847_v32  ;;  %v11710_v57 = vcombine.low %v1012_v29, %v1016_v27  ;;  %v13079_v33 = vshrl.u32 %v13822_v19, 7 }
 0x151   :  { %v1144_v54 = vld [vmem:[#allocation5 + $0x1f20] sm:$0xff]  ;;  %6886 = vmatpush2.bf16.msra.mxu1 %v11846_v34 }
 0x152   :  { %v1004_v37 = vld [vmem:[#allocation5 + $0x1ac0] sm:$0xff]  ;;  %v11839_v52 = vcombine.high %v1140_v31, %v1144_v54  ;;  %6834 = vmatprep.subr.bf16.mxu0 %v11711_v59  ;;  %v11838_v61 = vcombine.low %v1140_v31, %v1144_v54  ;;  %13846 = vst [vmem:[#allocation22_spill] sm:$0xff] %v13079_v33 }
 0x153   :  { %v1008_v49 = vld [vmem:[#allocation5 + $0x1ae0] sm:$0xff]  ;;  %6835 = vmatpush2.bf16.msra.mxu0 %v11710_v57 }
 0x154   :  { %v1132_v51 = vld [vmem:[#allocation5 + $0x1ec0] sm:$0xff]  ;;  %v11703_v0 = vcombine.high %v1004_v37, %v1008_v49  ;;  %6887 = vmatprep.subr.bf16.mxu1 %v11839_v52  ;;  %v11702_v10 = vcombine.low %v1004_v37, %v1008_v49  ;;  %v205_v49 = vld [vmem:[#allocation5 + $0x1c8] sm:$0xff] }
 0x155   :  { %v1136_v53 = vld [vmem:[#allocation5 + $0x1ee0] sm:$0xff]  ;;  %6888 = vmatpush2.bf16.msra.mxu1 %v11838_v61  ;;  %v333_v52 = vld [vmem:[#allocation5 + $0x5c8] sm:$0xff]  ;;  %v13082_v61 = vsub.s32 0, %v13079_v33 }
 0x156   :  { %v996_v1 = vld [vmem:[#allocation5 + $0x1a80] sm:$0xff]  ;;  %v11831_v8 = vcombine.high %v1132_v51, %v1136_v53  ;;  %6836 = vmatprep.subr.bf16.mxu0 %v11703_v0  ;;  %v11830_v11 = vcombine.low %v1132_v51, %v1136_v53  ;;  %v209_v51 = vld [vmem:[#allocation5 + $0x1e8] sm:$0xff] }
 0x157   :  { %v1000_v4 = vld [vmem:[#allocation5 + $0x1aa0] sm:$0xff]  ;;  %6837 = vmatpush2.bf16.msra.mxu0 %v11702_v10  ;;  %v337_v53 = vld [vmem:[#allocation5 + $0x5e8] sm:$0xff]  ;;  %13847 = vst [vmem:[#allocation23_spill] sm:$0xff] %v13082_v61 }
 0x158   :  { %v1124_v5 = vld [vmem:[#allocation5 + $0x1e80] sm:$0xff]  ;;  %v11695_v12 = vcombine.high %v996_v1, %v1000_v4  ;;  %6889 = vmatprep.subr.bf16.mxu1 %v11831_v8  ;;  %v11694_v18 = vcombine.low %v996_v1, %v1000_v4  ;;  %v10905_v4 = vcombine.high %v205_v49, %v209_v51  ;;  %v13085_v8 = vsub.s32 1, %v13079_v33  ;;  %v201_v10 = vld [vmem:[#allocation5 + $0x1a8] sm:$0xff] }
 0x159   :  { %v1128_v9 = vld [vmem:[#allocation5 + $0x1ea0] sm:$0xff]  ;;  %6890 = vmatpush2.bf16.msra.mxu1 %v11830_v11  ;;  %v325_v11 = vld [vmem:[#allocation5 + $0x588] sm:$0xff] }
 0x15a   :  { %v11823_v13 = vcombine.high %v1124_v5, %v1128_v9  ;;  %v988_v14 = vld [vmem:[#allocation5 + $0x1a40] sm:$0xff]  ;;  %6838 = vmatprep.subr.bf16.mxu0 %v11695_v12  ;;  %v11822_v20 = vcombine.low %v1124_v5, %v1128_v9  ;;  %v11033_v5 = vcombine.high %v333_v52, %v337_v53  ;;  %13848 = vst [vmem:[#allocation24_spill] sm:$0xff] %v13085_v8  ;;  %v197_v9 = vld [vmem:[#allocation5 + $0x188] sm:$0xff] }
 0x15b   :  { %v992_v16 = vld [vmem:[#allocation5 + $0x1a60] sm:$0xff]  ;;  %6839 = vmatpush2.bf16.msra.mxu0 %v11694_v18  ;;  %v13089_v12 = vcombine.low %v13052_v60, %v13054_v36  ;;  %v10904_v18 = vcombine.low %v205_v49, %v209_v51  ;;  %v10896_v49 = vcombine.low %v197_v9, %v201_v10 }
 0x15c   :  { %v1116_v47 = vld [vmem:[#allocation5 + $0x1e40] sm:$0xff]  ;;  %v11687_v22 = vcombine.high %v988_v14, %v992_v16  ;;  %6891 = vmatprep.subr.bf16.mxu1 %v11823_v13  ;;  %v11686_v54 = vcombine.low %v988_v14, %v992_v16  ;;  %v329_v13 = vld [vmem:[#allocation5 + $0x5a8] sm:$0xff]  ;;  %v138_v14 = vld [vmem:[#allocation2 + $0xb0] sm:$0xff] }
 0x15d   :  { %v1120_v48 = vld [vmem:[#allocation5 + $0x1e60] sm:$0xff]  ;;  %6892 = vmatpush2.bf16.msra.mxu1 %v11822_v20  ;;  %v146_v16 = vld [vmem:[#allocation2 + $0xf0] sm:$0xff]  ;;  %v139_v20 = vld [vmem:[#allocation2 + $0xb8] sm:$0xff]  ;;  %v11025_v36 = vcombine.high %v325_v11, %v329_v13 }
 0x15e   :  { %v11815_v23 = vcombine.high %v1116_v47, %v1120_v48  ;;  %v980_v29 = vld [vmem:[#allocation5 + $0x1a00] sm:$0xff]  ;;  %6840 = vmatprep.subr.bf16.mxu0 %v11687_v22  ;;  %v11814_v34 = vcombine.low %v1116_v47, %v1120_v48  ;;  %v13093_v47 = vcombine.low %v13057_v40, %v13059_v41  ;;  %v147_v22 = vld [vmem:[#allocation2 + $0xf8] sm:$0xff]  ;;  %v193_v40 = vld [vmem:[#allocation5 + $0x168] sm:$0xff] }
 0x15f   :  { %v984_v27 = vld [vmem:[#allocation5 + $0x1a20] sm:$0xff]  ;;  %6841 = vmatpush2.bf16.msra.mxu0 %v11686_v54  ;;  %v321_v54 = vld [vmem:[#allocation5 + $0x568] sm:$0xff] }
 0x160   :  { %v1108_v31 = vld [vmem:[#allocation5 + $0x1e00] sm:$0xff]  ;;  %v11679_v59 = vcombine.high %v980_v29, %v984_v27  ;;  %6893 = vmatprep.subr.bf16.mxu1 %v11815_v23  ;;  %v11678_v57 = vcombine.low %v980_v29, %v984_v27  ;;  %v11032_v23 = vcombine.low %v333_v52, %v337_v53  ;;  %v10897_v29 = vcombine.high %v197_v9, %v201_v10  ;;  %v6528_v41 = vpop.f32.mrf.mxu0  ;;  %v309_v9 = vld [vmem:[#allocation5 + $0x508] sm:$0xff] }
 0x161   :  { %v1112_v32 = vld [vmem:[#allocation5 + $0x1e20] sm:$0xff]  ;;  %6894 = vmatpush2.bf16.msra.mxu1 %v11814_v34  ;;  %v13101_v27 = vcombine.high %v138_v14, %v146_v16  ;;  %v13104_v34 = vcombine.high %v139_v20, %v147_v22  ;;  %v11024_v52 = vcombine.low %v325_v11, %v329_v13  ;;  %v313_v10 = vld [vmem:[#allocation5 + $0x528] sm:$0xff] }
 0x162   :  { %v11807_v37 = vcombine.high %v1108_v31, %v1112_v32  ;;  %6842 = vmatprep.subr.bf16.mxu0 %v11679_v59  ;;  %v11806_v0 = vcombine.low %v1108_v31, %v1112_v32  ;;  %v1172_v1 = vld [vmem:[#allocation7] sm:$0xff]  ;;  %v189_v31 = vld [vmem:[#allocation5 + $0x148] sm:$0xff]  ;;  %v6530_v51 = vpop.f32.mrf.mxu0 }
 0x163   :  { %6843 = vmatpush2.bf16.msra.mxu0 %v11678_v57  ;;  %v13096_v48 = vrot.slane %v1172_v1, %v13082_v61  ;;  %v13099_v60 = vrot.slane %v1172_v1, %v13085_v8  ;;  %v317_v32 = vld [vmem:[#allocation5 + $0x548] sm:$0xff]  ;;  %v10889_v53 = vcombine.high %v189_v31, %v193_v40  ;;  %v13112_v61 = vcombine.low %v138_v14, %v146_v16 }
 0x164   :  { %6895 = vmatprep.subr.bf16.mxu1 %v11807_v37  ;;  %6918 = vmatprep.subr.bf16.mxu0 %v10905_v4  ;;  %v6581_v37 = vpop.f32.mrf.mxu1  ;;  %v11017_v4 = vcombine.high %v317_v32, %v321_v54  ;;  %v6532_v19 = vpop.f32.mrf.mxu0 }
 0x165   :  { %6896 = vmatpush2.bf16.msra.mxu1 %v11806_v0  ;;  %13849 = vst [vmem:[#allocation25_spill] sm:$0xff] %v13099_v60  ;;  %v6529_v59 = vadd.f32 %v6528_v41, %v13096_v48  ;;  %v6531_v0 = vadd.f32 %v6530_v51, %v13099_v60  ;;  %v185_v41 = vld [vmem:[#allocation5 + $0x128] sm:$0xff]  ;;  %v6533_v13 = vadd.f32 %v6532_v19, %v13096_v48 }
 0x166   :  { %6971 = vmatprep.subr.bf16.mxu1 %v11033_v5  ;;  %6845 = vmatmul.mubr.bf16.vlgmr.msra.gmra.mxu0 %v13089_v12  ;;  %v6583_v1 = vpop.f32.mrf.mxu1  ;;  %v181_v5 = vld [vmem:[#allocation5 + $0x108] sm:$0xff]  ;;  %v11009_v51 = vcombine.high %v309_v9, %v313_v10 }
 0x167   :  { %6919 = vmatpush1.bf16.msra.mxu0 %v10904_v18  ;;  %v13108_v57 = vadd.f32 %v6581_v37, %v6529_v59  ;;  %6854 = vmatprep.mubr.bf16.mxu0 %v13101_v27  ;;  %v13115_v11 = vadd.f32 %v6583_v1, %v6531_v0  ;;  %v11016_v59 = vcombine.low %v317_v32, %v321_v54  ;;  %v173_v0 = vld [vmem:[#allocation5 + $0xc8] sm:$0xff] }
 0x168   :  { %6898 = vmatmul.mubr.bf16.vlgmr.msra.gmra.mxu1 %v13093_v47  ;;  %6920 = vmatprep.subr.bf16.mxu0 %v10897_v29  ;;  %v6585_v18 = vpop.f32.mrf.mxu1  ;;  %v13118_v29 = vcombine.low %v139_v20, %v147_v22  ;;  %v10881_v14 = vcombine.high %v181_v5, %v185_v41  ;;  %v177_v1 = vld [vmem:[#allocation5 + $0xe8] sm:$0xff]  ;;  %v10880_v22 = vcombine.low %v181_v5, %v185_v41 }
 0x169   :  { %6972 = vmatpush1.bf16.msra.mxu1 %v11032_v23  ;;  %6907 = vmatprep.mubr.bf16.mxu1 %v13104_v34  ;;  %v10888_v23 = vcombine.low %v189_v31, %v193_v40  ;;  %v13122_v16 = vadd.f32 %v6585_v18, %v6533_v13  ;;  %v301_v19 = vld [vmem:[#allocation5 + $0x4c8] sm:$0xff]  ;;  %v11008_v54 = vcombine.low %v309_v9, %v313_v10 }
 0x16a   :  { %6973 = vmatprep.subr.bf16.mxu1 %v11025_v36  ;;  %v13120_v36 = vpop.f32.mrf.mxu0  ;;  %v13124_v37 = vpop.f32.mrf.mxu1  ;;  %v305_v31 = vld [vmem:[#allocation5 + $0x4e8] sm:$0xff]  ;;  %v10872_v9 = vcombine.low %v173_v0, %v177_v1 }
 0x16b   :  { %6921 = vmatpush1.bf16.msra.mxu0 %v10896_v49  ;;  %13850 = vst [vmem:[#allocation26_spill] sm:$0xff] %v13120_v36  ;;  %13851 = vst [vmem:[#allocation27_spill] sm:$0xff] %v13124_v37  ;;  %v10873_v49 = vcombine.high %v173_v0, %v177_v1  ;;  %v169_v13 = vld [vmem:[#allocation5 + $0xa8] sm:$0xff] }
 0x16c   :  { %6922 = vmatprep.subr.bf16.mxu0 %v10889_v53  ;;  %v6538_v20 = vpop.f32.mrf.mxu0  ;;  %v6591_v32 = vpop.f32.mrf.mxu1  ;;  %v11001_v53 = vcombine.high %v301_v19, %v305_v31  ;;  %v293_v5 = vld [vmem:[#allocation5 + $0x488] sm:$0xff] }
 0x16d   :  { %6974 = vmatpush1.bf16.msra.mxu1 %v11024_v52  ;;  %v6539_v40 = vadd.f32 %v6538_v20, %v13096_v48  ;;  %v297_v41 = vld [vmem:[#allocation5 + $0x4a8] sm:$0xff] }
 0x16e   :  { %6975 = vmatprep.subr.bf16.mxu1 %v11017_v4  ;;  %6855 = vmatmul.mubr.bf16.gmra.mxu0 %v13112_v61  ;;  %v6540_v52 = vpop.f32.mrf.mxu0  ;;  %v165_v4 = vld [vmem:[#allocation5 + $0x88] sm:$0xff] }
 0x16f   :  { %6923 = vmatpush1.bf16.msra.mxu0 %v10888_v23  ;;  %v6541_v18 = vadd.f32 %v6540_v52, %v13099_v60  ;;  %v13130_v8 = vadd.f32 %v6591_v32, %v6539_v40  ;;  %v6593_v23 = vpop.f32.mrf.mxu1  ;;  %6950 = vmatprep.mubr.bf16.mxu0 %v12946_v58  ;;  %v10993_v32 = vcombine.high %v293_v5, %v297_v41  ;;  %v157_v52 = vld [vmem:[#allocation5 + $0x48] sm:$0xff] }
 0x170   :  { %6908 = vmatmul.mubr.bf16.gmra.mxu1 %v13118_v29  ;;  %6924 = vmatprep.subr.bf16.mxu0 %v10881_v14  ;;  %v6542_v20 = vpop.f32.mrf.mxu0  ;;  %v11000_v14 = vcombine.low %v301_v19, %v305_v31  ;;  %v161_v37 = vld [vmem:[#allocation5 + $0x68] sm:$0xff] }
 0x171   :  { %6976 = vmatpush1.bf16.msra.mxu1 %v11016_v59  ;;  %7003 = vmatprep.mubr.bf16.mxu1 %v12954_v63  ;;  %v6543_v10 = vadd.f32 %v6542_v20, %v13096_v48  ;;  %v13135_v59 = vadd.f32 %v6593_v23, %v6541_v18  ;;  %v6595_v40 = vpop.f32.mrf.mxu1  ;;  %v285_v60 = vld [vmem:[#allocation5 + $0x448] sm:$0xff]  ;;  %v10992_v48 = vcombine.low %v293_v5, %v297_v41 }
 0x172   :  { %6977 = vmatprep.subr.bf16.mxu1 %v11009_v51  ;;  %v10865_v51 = vcombine.high %v165_v4, %v169_v13  ;;  %v289_v58 = vld [vmem:[#allocation5 + $0x468] sm:$0xff]  ;;  %v10857_v0 = vcombine.high %v157_v52, %v161_v37 }
 0x173   :  { %6925 = vmatpush1.bf16.msra.mxu0 %v10880_v22  ;;  %v13137_v36 = vadd.f32 %v6595_v40, %v6543_v10  ;;  %v10864_v22 = vcombine.low %v165_v4, %v169_v13  ;;  %v10985_v1 = vcombine.high %v285_v60, %v289_v58  ;;  %v153_v19 = vld [vmem:[#allocation5 + $0x28] sm:$0xff]  ;;  %v10984_v18 = vcombine.low %v285_v60, %v289_v58 }
 0x174   :  { %6926 = vmatprep.subr.bf16.mxu0 %v10873_v49  ;;  %v277_v31 = vld [vmem:[#allocation5 + $0x408] sm:$0xff] }
 0x175   :  { %6978 = vmatpush1.bf16.msra.mxu1 %v11008_v54  ;;  %v149_v54 = vld [vmem:[#allocation5 + $0x8] sm:$0xff] }
 0x176   :  { %6979 = vmatprep.subr.bf16.mxu1 %v11001_v53  ;;  %v281_v49 = vld [vmem:[#allocation5 + $0x428] sm:$0xff]  ;;  %v10856_v53 = vcombine.low %v157_v52, %v161_v37  ;;  %v10849_v23 = vcombine.high %v149_v54, %v153_v19  ;;  %v10848_v5 = vcombine.low %v149_v54, %v153_v19 }
 0x177   :  { %6927 = vmatpush1.bf16.msra.mxu0 %v10872_v9  ;;  %v10977_v20 = vcombine.high %v277_v31, %v281_v49  ;;  %v269_v9 = vld [vmem:[#allocation5 + $0x3c8] sm:$0xff]  ;;  %v10976_v41 = vcombine.low %v277_v31, %v281_v49 }
 0x178   :  { %6928 = vmatprep.subr.bf16.mxu0 %v10865_v51  ;;  %v273_v4 = vld [vmem:[#allocation5 + $0x3e8] sm:$0xff] }
 0x179   :  { %6980 = vmatpush1.bf16.msra.mxu1 %v11000_v14  ;;  %v397_v13 = vld [vmem:[#allocation5 + $0x7c8] sm:$0xff]  ;;  %v10969_v14 = vcombine.high %v269_v9, %v273_v4  ;;  %v10968_v58 = vcombine.low %v269_v9, %v273_v4 }
 0x17a   :  { %6981 = vmatprep.subr.bf16.mxu1 %v10993_v32  ;;  %v401_v10 = vld [vmem:[#allocation5 + $0x7e8] sm:$0xff] }
 0x17b   :  { %6929 = vmatpush1.bf16.msra.mxu0 %v10864_v22  ;;  %v11097_v51 = vcombine.high %v397_v13, %v401_v10  ;;  %v261_v40 = vld [vmem:[#allocation5 + $0x388] sm:$0xff]  ;;  %v11096_v60 = vcombine.low %v397_v13, %v401_v10 }
 0x17c   :  { %6930 = vmatprep.subr.bf16.mxu0 %v10857_v0  ;;  %v265_v37 = vld [vmem:[#allocation5 + $0x3a8] sm:$0xff] }
 0x17d   :  { %6982 = vmatpush1.bf16.msra.mxu1 %v10992_v48  ;;  %v389_v32 = vld [vmem:[#allocation5 + $0x788] sm:$0xff]  ;;  %v10961_v22 = vcombine.high %v261_v40, %v265_v37  ;;  %v10960_v31 = vcombine.low %v261_v40, %v265_v37 }
 0x17e   :  { %6983 = vmatprep.subr.bf16.mxu1 %v10985_v1  ;;  %v393_v52 = vld [vmem:[#allocation5 + $0x7a8] sm:$0xff] }
 0x17f   :  { %6931 = vmatpush1.bf16.msra.mxu0 %v10856_v53  ;;  %v11089_v48 = vcombine.high %v389_v32, %v393_v52  ;;  %v253_v0 = vld [vmem:[#allocation5 + $0x348] sm:$0xff]  ;;  %v11088_v49 = vcombine.low %v389_v32, %v393_v52 }
 0x180   :  { %6932 = vmatprep.subr.bf16.mxu0 %v10849_v23  ;;  %v257_v1 = vld [vmem:[#allocation5 + $0x368] sm:$0xff] }
 0x181   :  { %6984 = vmatpush1.bf16.msra.mxu1 %v10984_v18  ;;  %v381_v54 = vld [vmem:[#allocation5 + $0x748] sm:$0xff]  ;;  %v10953_v53 = vcombine.high %v253_v0, %v257_v1  ;;  %v10952_v13 = vcombine.low %v253_v0, %v257_v1 }
 0x182   :  { %6985 = vmatprep.subr.bf16.mxu1 %v10977_v20  ;;  %v385_v19 = vld [vmem:[#allocation5 + $0x768] sm:$0xff] }
 0x183   :  { %6933 = vmatpush1.bf16.msra.mxu0 %v10848_v5  ;;  %v11081_v18 = vcombine.high %v381_v54, %v385_v19  ;;  %v245_v23 = vld [vmem:[#allocation5 + $0x308] sm:$0xff]  ;;  %v11080_v10 = vcombine.low %v381_v54, %v385_v19 }
 0x184   :  { %6934 = vmatprep.subr.bf16.mxu0 %v10969_v14  ;;  %v249_v20 = vld [vmem:[#allocation5 + $0x328] sm:$0xff] }
 0x185   :  { %6986 = vmatpush1.bf16.msra.mxu1 %v10976_v41  ;;  %v373_v9 = vld [vmem:[#allocation5 + $0x708] sm:$0xff]  ;;  %v10945_v5 = vcombine.high %v245_v23, %v249_v20  ;;  %v10944_v32 = vcombine.low %v245_v23, %v249_v20 }
 0x186   :  { %6987 = vmatprep.subr.bf16.mxu1 %v11097_v51  ;;  %v377_v4 = vld [vmem:[#allocation5 + $0x728] sm:$0xff] }
 0x187   :  { %6935 = vmatpush2.bf16.msra.mxu0 %v10968_v58  ;;  %v11073_v41 = vcombine.high %v373_v9, %v377_v4  ;;  %v237_v14 = vld [vmem:[#allocation5 + $0x2c8] sm:$0xff]  ;;  %v11072_v52 = vcombine.low %v373_v9, %v377_v4 }
 0x188   :  { %6936 = vmatprep.subr.bf16.mxu0 %v10961_v22  ;;  %v241_v51 = vld [vmem:[#allocation5 + $0x2e8] sm:$0xff] }
 0x189   :  { %6988 = vmatpush2.bf16.msra.mxu1 %v11096_v60  ;;  %v365_v40 = vld [vmem:[#allocation5 + $0x6c8] sm:$0xff]  ;;  %v10937_v58 = vcombine.high %v237_v14, %v241_v51  ;;  %v10936_v54 = vcombine.low %v237_v14, %v241_v51 }
 0x18a   :  { %6989 = vmatprep.subr.bf16.mxu1 %v11089_v48  ;;  %v369_v37 = vld [vmem:[#allocation5 + $0x6e8] sm:$0xff] }
 0x18b   :  { %6937 = vmatpush2.bf16.msra.mxu0 %v10960_v31  ;;  %v11065_v60 = vcombine.high %v365_v40, %v369_v37  ;;  %v229_v22 = vld [vmem:[#allocation5 + $0x288] sm:$0xff]  ;;  %v11064_v19 = vcombine.low %v365_v40, %v369_v37 }
 0x18c   :  { %6938 = vmatprep.subr.bf16.mxu0 %v10953_v53  ;;  %v233_v48 = vld [vmem:[#allocation5 + $0x2a8] sm:$0xff] }
 0x18d   :  { %6990 = vmatpush2.bf16.msra.mxu1 %v11088_v49  ;;  %v357_v0 = vld [vmem:[#allocation5 + $0x688] sm:$0xff]  ;;  %v10929_v31 = vcombine.high %v229_v22, %v233_v48  ;;  %v10928_v9 = vcombine.low %v229_v22, %v233_v48 }
 0x18e   :  { %6991 = vmatprep.subr.bf16.mxu1 %v11081_v18  ;;  %v361_v1 = vld [vmem:[#allocation5 + $0x6a8] sm:$0xff] }
 0x18f   :  { %6939 = vmatpush2.bf16.msra.mxu0 %v10952_v13  ;;  %v11057_v49 = vcombine.high %v357_v0, %v361_v1  ;;  %v221_v53 = vld [vmem:[#allocation5 + $0x248] sm:$0xff]  ;;  %v11056_v4 = vcombine.low %v357_v0, %v361_v1 }
 0x190   :  { %6940 = vmatprep.subr.bf16.mxu0 %v10945_v5  ;;  %v225_v18 = vld [vmem:[#allocation5 + $0x268] sm:$0xff] }
 0x191   :  { %6992 = vmatpush2.bf16.msra.mxu1 %v11080_v10  ;;  %v349_v23 = vld [vmem:[#allocation5 + $0x648] sm:$0xff]  ;;  %v10921_v13 = vcombine.high %v221_v53, %v225_v18  ;;  %v10920_v40 = vcombine.low %v221_v53, %v225_v18 }
 0x192   :  { %6993 = vmatprep.subr.bf16.mxu1 %v11073_v41  ;;  %v353_v20 = vld [vmem:[#allocation5 + $0x668] sm:$0xff] }
 0x193   :  { %6941 = vmatpush2.bf16.msra.mxu0 %v10944_v32  ;;  %v11049_v10 = vcombine.high %v349_v23, %v353_v20  ;;  %v213_v5 = vld [vmem:[#allocation5 + $0x208] sm:$0xff]  ;;  %v11048_v37 = vcombine.low %v349_v23, %v353_v20  ;;  %v13139_v20 = vpop.f32.mrf.mxu0 }
 0x194   :  { %6942 = vmatprep.subr.bf16.mxu0 %v10937_v58  ;;  %v217_v41 = vld [vmem:[#allocation5 + $0x228] sm:$0xff]  ;;  %13852 = vst [vmem:[#allocation28_spill] sm:$0xff] %v13139_v20 }
 0x195   :  { %6994 = vmatpush2.bf16.msra.mxu1 %v11072_v52  ;;  %v341_v14 = vld [vmem:[#allocation5 + $0x608] sm:$0xff]  ;;  %v10913_v32 = vcombine.high %v213_v5, %v217_v41  ;;  %v10912_v0 = vcombine.low %v213_v5, %v217_v41 }
 0x196   :  { %6995 = vmatprep.subr.bf16.mxu1 %v11065_v60  ;;  %v345_v51 = vld [vmem:[#allocation5 + $0x628] sm:$0xff] }
 0x197   :  { %6943 = vmatpush2.bf16.msra.mxu0 %v10936_v54  ;;  %v11041_v52 = vcombine.high %v341_v14, %v345_v51  ;;  %v461_v58 = vld [vmem:[#allocation5 + $0x9c8] sm:$0xff]  ;;  %v11040_v1 = vcombine.low %v341_v14, %v345_v51 }
 0x198   :  { %6944 = vmatprep.subr.bf16.mxu0 %v10929_v31  ;;  %v465_v60 = vld [vmem:[#allocation5 + $0x9e8] sm:$0xff] }
 0x199   :  { %6996 = vmatpush2.bf16.msra.mxu1 %v11064_v19  ;;  %v589_v22 = vld [vmem:[#allocation5 + $0xdc8] sm:$0xff]  ;;  %v11161_v54 = vcombine.high %v461_v58, %v465_v60  ;;  %v11160_v23 = vcombine.low %v461_v58, %v465_v60 }
 0x19a   :  { %6997 = vmatprep.subr.bf16.mxu1 %v11057_v49  ;;  %v593_v48 = vld [vmem:[#allocation5 + $0xde8] sm:$0xff] }
 0x19b   :  { %6945 = vmatpush2.bf16.msra.mxu0 %v10928_v9  ;;  %v11289_v19 = vcombine.high %v589_v22, %v593_v48  ;;  %v453_v31 = vld [vmem:[#allocation5 + $0x988] sm:$0xff]  ;;  %v11288_v9 = vcombine.low %v589_v22, %v593_v48 }
 0x19c   :  { %6946 = vmatprep.subr.bf16.mxu0 %v10921_v13  ;;  %v457_v49 = vld [vmem:[#allocation5 + $0x9a8] sm:$0xff]  ;;  %v13141_v13 = vpop.f32.mrf.mxu1 }
 0x19d   :  { %6998 = vmatpush2.bf16.msra.mxu1 %v11056_v4  ;;  %v581_v53 = vld [vmem:[#allocation5 + $0xd88] sm:$0xff]  ;;  %v11153_v4 = vcombine.high %v453_v31, %v457_v49  ;;  %13853 = vst [vmem:[#allocation29_spill] sm:$0xff] %v13141_v13 }
 0x19e   :  { %6999 = vmatprep.subr.bf16.mxu1 %v11049_v10  ;;  %v585_v18 = vld [vmem:[#allocation5 + $0xda8] sm:$0xff] }
 0x19f   :  { %6947 = vmatpush2.bf16.msra.mxu0 %v10920_v40  ;;  %v11281_v10 = vcombine.high %v581_v53, %v585_v18  ;;  %v445_v5 = vld [vmem:[#allocation5 + $0x948] sm:$0xff]  ;;  %v11280_v60 = vcombine.low %v581_v53, %v585_v18 }
 0x1a0   :  { %6948 = vmatprep.subr.bf16.mxu0 %v10913_v32  ;;  %v449_v41 = vld [vmem:[#allocation5 + $0x968] sm:$0xff] }
 0x1a1   :  { %7000 = vmatpush2.bf16.msra.mxu1 %v11048_v37  ;;  %v573_v51 = vld [vmem:[#allocation5 + $0xd48] sm:$0xff]  ;;  %v11145_v22 = vcombine.high %v445_v5, %v449_v41  ;;  %v11144_v18 = vcombine.low %v445_v5, %v449_v41 }
 0x1a2   :  { %7001 = vmatprep.subr.bf16.mxu1 %v11041_v52  ;;  %v6634_v14 = vpop.f32.mrf.mxu0  ;;  %v577_v40 = vld [vmem:[#allocation5 + $0xd68] sm:$0xff]  ;;  %v11152_v52 = vcombine.low %v453_v31, %v457_v49 }
 0x1a3   :  { %6949 = vmatpush2.bf16.msra.mxu0 %v10912_v0  ;;  %v6635_v37 = vadd.f32 %v6634_v14, %v13108_v57  ;;  %v441_v13 = vld [vmem:[#allocation5 + $0x928] sm:$0xff] }
 0x1a4   :  { %7024 = vmatprep.subr.bf16.mxu0 %v11161_v54  ;;  %v6687_v32 = vpop.f32.mrf.mxu1  ;;  %v6636_v58 = vpop.f32.mrf.mxu0  ;;  %v11273_v54 = vcombine.high %v573_v51, %v577_v40  ;;  %v565_v14 = vld [vmem:[#allocation5 + $0xd08] sm:$0xff] }
 0x1a5   :  { %7002 = vmatpush2.bf16.msra.mxu1 %v11040_v1  ;;  %v13146_v48 = vadd.f32 %v6687_v32, %v6635_v37  ;;  %v6637_v0 = vadd.f32 %v6636_v58, %v13115_v11  ;;  %v429_v58 = vld [vmem:[#allocation5 + $0x8c8] sm:$0xff] }
 0x1a6   :  { %7077 = vmatprep.subr.bf16.mxu1 %v11289_v19  ;;  %6951 = vmatmul.mubr.bf16.vlgmr.msra.gmra.mxu0 %v12960_v21  ;;  %v6689_v1 = vpop.f32.mrf.mxu1  ;;  %v437_v19 = vld [vmem:[#allocation5 + $0x908] sm:$0xff]  ;;  %v6638_v57 = vpop.f32.mrf.mxu0 }
 0x1a7   :  { %7025 = vmatpush1.bf16.msra.mxu0 %v11160_v23  ;;  %6960 = vmatprep.mubr.bf16.mxu0 %v12966_v55  ;;  %v569_v23 = vld [vmem:[#allocation5 + $0xd28] sm:$0xff]  ;;  %v13151_v31 = vadd.f32 %v6689_v1, %v6637_v0  ;;  %v6639_v49 = vadd.f32 %v6638_v57, %v13122_v16 }
 0x1a8   :  { %7004 = vmatmul.mubr.bf16.vlgmr.msra.gmra.mxu1 %v12964_v25  ;;  %7026 = vmatprep.subr.bf16.mxu0 %v11153_v4  ;;  %v6691_v53 = vpop.f32.mrf.mxu1  ;;  %v13154_v11 = vpop.f32.mrf.mxu0  ;;  %v11137_v4 = vcombine.high %v437_v19, %v441_v13  ;;  %v11265_v32 = vcombine.high %v565_v14, %v569_v23  ;;  %v433_v0 = vld [vmem:[#allocation5 + $0x8e8] sm:$0xff] }
 0x1a9   :  { %7078 = vmatpush1.bf16.msra.mxu1 %v11288_v9  ;;  %7013 = vmatprep.mubr.bf16.mxu1 %v12969_v35  ;;  %13854 = vst [vmem:[#allocation30_spill] sm:$0xff] %v13154_v11  ;;  %v11272_v9 = vcombine.low %v573_v51, %v577_v40  ;;  %v557_v20 = vld [vmem:[#allocation5 + $0xcc8] sm:$0xff]  ;;  %v11264_v40 = vcombine.low %v565_v14, %v569_v23 }
 0x1aa   :  { %7079 = vmatprep.subr.bf16.mxu1 %v11281_v10  ;;  %v13156_v10 = vadd.f32 %v6691_v53, %v6639_v49  ;;  %v13158_v37 = vpop.f32.mrf.mxu1  ;;  %v6644_v1 = vpop.f32.mrf.mxu0  ;;  %v561_v16 = vld [vmem:[#allocation5 + $0xce8] sm:$0xff]  ;;  %v11128_v23 = vcombine.low %v429_v58, %v433_v0 }
 0x1ab   :  { %7027 = vmatpush1.bf16.msra.mxu0 %v11152_v52  ;;  %13855 = vst [vmem:[#allocation31_spill] sm:$0xff] %v13158_v37  ;;  %v6645_v5 = vadd.f32 %v6644_v1, %v13130_v8  ;;  %v11136_v52 = vcombine.low %v437_v19, %v441_v13  ;;  %v11257_v49 = vcombine.high %v557_v20, %v561_v16  ;;  %v421_v53 = vld [vmem:[#allocation5 + $0x888] sm:$0xff] }
 0x1ac   :  { %7028 = vmatprep.subr.bf16.mxu0 %v11145_v22  ;;  %v6697_v41 = vpop.f32.mrf.mxu1  ;;  %v6646_v51 = vpop.f32.mrf.mxu0  ;;  %v425_v37 = vld [vmem:[#allocation5 + $0x8a8] sm:$0xff] }
 0x1ad   :  { %7080 = vmatpush1.bf16.msra.mxu1 %v11280_v60  ;;  %v11129_v60 = vcombine.high %v429_v58, %v433_v0  ;;  %v6647_v22 = vadd.f32 %v6646_v51, %v13135_v59  ;;  %v549_v13 = vld [vmem:[#allocation5 + $0xc88] sm:$0xff] }
 0x1ae   :  { %7081 = vmatprep.subr.bf16.mxu1 %v11273_v54  ;;  %6961 = vmatmul.mubr.bf16.gmra.mxu0 %v12973_v42  ;;  %v13164_v54 = vadd.f32 %v6697_v41, %v6645_v5  ;;  %v6699_v57 = vpop.f32.mrf.mxu1  ;;  %v6648_v8 = vpop.f32.mrf.mxu0  ;;  %v553_v19 = vld [vmem:[#allocation5 + $0xca8] sm:$0xff] }
 0x1af   :  { %7029 = vmatpush1.bf16.msra.mxu0 %v11144_v18  ;;  %7056 = vmatprep.mubr.bf16.mxu0 %v12988_v56  ;;  %v6649_v18 = vadd.f32 %v6648_v8, %v13137_v36  ;;  %v13169_v14 = vadd.f32 %v6699_v57, %v6647_v22  ;;  %v11249_v1 = vcombine.high %v549_v13, %v553_v19  ;;  %v413_v5 = vld [vmem:[#allocation5 + $0x848] sm:$0xff] }
 0x1b0   :  { %7014 = vmatmul.mubr.bf16.gmra.mxu1 %v12980_v46  ;;  %7030 = vmatprep.subr.bf16.mxu0 %v11137_v4  ;;  %v6701_v59 = vpop.f32.mrf.mxu1  ;;  %v11121_v4 = vcombine.high %v421_v53, %v425_v37  ;;  %v417_v41 = vld [vmem:[#allocation5 + $0x868] sm:$0xff]  ;;  %v11248_v36 = vcombine.low %v549_v13, %v553_v19 }
 0x1b1   :  { %7082 = vmatpush1.bf16.msra.mxu1 %v11272_v9  ;;  %7109 = vmatprep.mubr.bf16.mxu1 %v12993_v62  ;;  %v11256_v9 = vcombine.low %v557_v20, %v561_v16  ;;  %v541_v51 = vld [vmem:[#allocation5 + $0xc48] sm:$0xff]  ;;  %v11120_v62 = vcombine.low %v421_v53, %v425_v37 }
 0x1b2   :  { %7083 = vmatprep.subr.bf16.mxu1 %v11265_v32  ;;  %v13171_v32 = vadd.f32 %v6701_v59, %v6649_v18  ;;  %v545_v11 = vld [vmem:[#allocation5 + $0xc68] sm:$0xff] }
 0x1b3   :  { %7031 = vmatpush1.bf16.msra.mxu0 %v11136_v52  ;;  %v11113_v52 = vcombine.high %v413_v5, %v417_v41  ;;  %v11241_v58 = vcombine.high %v541_v51, %v545_v11  ;;  %v405_v0 = vld [vmem:[#allocation5 + $0x808] sm:$0xff]  ;;  %v11240_v22 = vcombine.low %v541_v51, %v545_v11 }
 0x1b4   :  { %7032 = vmatprep.subr.bf16.mxu0 %v11129_v60  ;;  %v533_v20 = vld [vmem:[#allocation5 + $0xc08] sm:$0xff]  ;;  %v11112_v60 = vcombine.low %v413_v5, %v417_v41 }
 0x1b5   :  { %7084 = vmatpush1.bf16.msra.mxu1 %v11264_v40  ;;  %v409_v40 = vld [vmem:[#allocation5 + $0x828] sm:$0xff] }
 0x1b6   :  { %7085 = vmatprep.subr.bf16.mxu1 %v11257_v49  ;;  %v537_v16 = vld [vmem:[#allocation5 + $0xc28] sm:$0xff]  ;;  %v11105_v57 = vcombine.high %v405_v0, %v409_v40  ;;  %v11104_v13 = vcombine.low %v405_v0, %v409_v40 }
 0x1b7   :  { %7033 = vmatpush1.bf16.msra.mxu0 %v11128_v23  ;;  %v11233_v49 = vcombine.high %v533_v20, %v537_v16  ;;  %v525_v8 = vld [vmem:[#allocation5 + $0xbc8] sm:$0xff]  ;;  %v11232_v19 = vcombine.low %v533_v20, %v537_v16 }
 0x1b8   :  { %7034 = vmatprep.subr.bf16.mxu0 %v11121_v4  ;;  %v529_v37 = vld [vmem:[#allocation5 + $0xbe8] sm:$0xff] }
 0x1b9   :  { %7086 = vmatpush1.bf16.msra.mxu1 %v11256_v9  ;;  %v653_v53 = vld [vmem:[#allocation5 + $0xfc8] sm:$0xff]  ;;  %v11225_v59 = vcombine.high %v525_v8, %v529_v37  ;;  %v11224_v11 = vcombine.low %v525_v8, %v529_v37 }
 0x1ba   :  { %7087 = vmatprep.subr.bf16.mxu1 %v11249_v1  ;;  %v657_v18 = vld [vmem:[#allocation5 + $0xfe8] sm:$0xff] }
 0x1bb   :  { %7035 = vmatpush1.bf16.msra.mxu0 %v11120_v62  ;;  %v11353_v23 = vcombine.high %v653_v53, %v657_v18  ;;  %v517_v62 = vld [vmem:[#allocation5 + $0xb88] sm:$0xff]  ;;  %v11352_v5 = vcombine.low %v653_v53, %v657_v18 }
 0x1bc   :  { %7036 = vmatprep.subr.bf16.mxu0 %v11113_v52  ;;  %v521_v9 = vld [vmem:[#allocation5 + $0xba8] sm:$0xff] }
 0x1bd   :  { %7088 = vmatpush1.bf16.msra.mxu1 %v11248_v36  ;;  %v645_v4 = vld [vmem:[#allocation5 + $0xf88] sm:$0xff]  ;;  %v11217_v41 = vcombine.high %v517_v62, %v521_v9  ;;  %v11216_v40 = vcombine.low %v517_v62, %v521_v9 }
 0x1be   :  { %7089 = vmatprep.subr.bf16.mxu1 %v11241_v58  ;;  %v649_v1 = vld [vmem:[#allocation5 + $0xfa8] sm:$0xff] }
 0x1bf   :  { %7037 = vmatpush1.bf16.msra.mxu0 %v11112_v60  ;;  %v11345_v51 = vcombine.high %v645_v4, %v649_v1  ;;  %v509_v36 = vld [vmem:[#allocation5 + $0xb48] sm:$0xff]  ;;  %v11344_v20 = vcombine.low %v645_v4, %v649_v1 }
 0x1c0   :  { %7038 = vmatprep.subr.bf16.mxu0 %v11105_v57  ;;  %v513_v52 = vld [vmem:[#allocation5 + $0xb68] sm:$0xff] }
 0x1c1   :  { %7090 = vmatpush1.bf16.msra.mxu1 %v11240_v22  ;;  %v637_v58 = vld [vmem:[#allocation5 + $0xf48] sm:$0xff]  ;;  %v11209_v16 = vcombine.high %v509_v36, %v513_v52  ;;  %v11208_v37 = vcombine.low %v509_v36, %v513_v52 }
 0x1c2   :  { %7091 = vmatprep.subr.bf16.mxu1 %v11233_v49  ;;  %v641_v0 = vld [vmem:[#allocation5 + $0xf68] sm:$0xff] }
 0x1c3   :  { %7039 = vmatpush1.bf16.msra.mxu0 %v11104_v13  ;;  %v11337_v60 = vcombine.high %v637_v58, %v641_v0  ;;  %v501_v22 = vld [vmem:[#allocation5 + $0xb08] sm:$0xff]  ;;  %v11336_v53 = vcombine.low %v637_v58, %v641_v0 }
 0x1c4   :  { %7040 = vmatprep.subr.bf16.mxu0 %v11225_v59  ;;  %v505_v57 = vld [vmem:[#allocation5 + $0xb28] sm:$0xff] }
 0x1c5   :  { %7092 = vmatpush1.bf16.msra.mxu1 %v11232_v19  ;;  %v629_v49 = vld [vmem:[#allocation5 + $0xf08] sm:$0xff]  ;;  %v11201_v18 = vcombine.high %v501_v22, %v505_v57  ;;  %v11200_v9 = vcombine.low %v501_v22, %v505_v57 }
 0x1c6   :  { %7093 = vmatprep.subr.bf16.mxu1 %v11353_v23  ;;  %v633_v8 = vld [vmem:[#allocation5 + $0xf28] sm:$0xff] }
 0x1c7   :  { %7041 = vmatpush2.bf16.msra.mxu0 %v11224_v11  ;;  %v11329_v13 = vcombine.high %v629_v49, %v633_v8  ;;  %v493_v19 = vld [vmem:[#allocation5 + $0xac8] sm:$0xff]  ;;  %v11328_v4 = vcombine.low %v629_v49, %v633_v8 }
 0x1c8   :  { %7042 = vmatprep.subr.bf16.mxu0 %v11217_v41  ;;  %v497_v59 = vld [vmem:[#allocation5 + $0xae8] sm:$0xff] }
 0x1c9   :  { %7094 = vmatpush2.bf16.msra.mxu1 %v11352_v5  ;;  %v621_v23 = vld [vmem:[#allocation5 + $0xec8] sm:$0xff]  ;;  %v11193_v1 = vcombine.high %v493_v19, %v497_v59  ;;  %v11192_v52 = vcombine.low %v493_v19, %v497_v59 }
 0x1ca   :  { %7095 = vmatprep.subr.bf16.mxu1 %v11345_v51  ;;  %v625_v62 = vld [vmem:[#allocation5 + $0xee8] sm:$0xff] }
 0x1cb   :  { %7043 = vmatpush2.bf16.msra.mxu0 %v11216_v40  ;;  %v11321_v11 = vcombine.high %v621_v23, %v625_v62  ;;  %v485_v5 = vld [vmem:[#allocation5 + $0xa88] sm:$0xff]  ;;  %v11320_v58 = vcombine.low %v621_v23, %v625_v62 }
 0x1cc   :  { %7044 = vmatprep.subr.bf16.mxu0 %v11209_v16  ;;  %v489_v41 = vld [vmem:[#allocation5 + $0xaa8] sm:$0xff] }
 0x1cd   :  { %7096 = vmatpush2.bf16.msra.mxu1 %v11344_v20  ;;  %v613_v51 = vld [vmem:[#allocation5 + $0xe88] sm:$0xff]  ;;  %v11185_v0 = vcombine.high %v485_v5, %v489_v41  ;;  %v11184_v57 = vcombine.low %v485_v5, %v489_v41 }
 0x1ce   :  { %7097 = vmatprep.subr.bf16.mxu1 %v11337_v60  ;;  %v617_v36 = vld [vmem:[#allocation5 + $0xea8] sm:$0xff] }
 0x1cf   :  { %7045 = vmatpush2.bf16.msra.mxu0 %v11208_v37  ;;  %v11313_v40 = vcombine.high %v613_v51, %v617_v36  ;;  %v477_v20 = vld [vmem:[#allocation5 + $0xa48] sm:$0xff]  ;;  %v11312_v49 = vcombine.low %v613_v51, %v617_v36 }
 0x1d0   :  { %7046 = vmatprep.subr.bf16.mxu0 %v11201_v18  ;;  %v481_v16 = vld [vmem:[#allocation5 + $0xa68] sm:$0xff] }
 0x1d1   :  { %7098 = vmatpush2.bf16.msra.mxu1 %v11336_v53  ;;  %v605_v60 = vld [vmem:[#allocation5 + $0xe48] sm:$0xff]  ;;  %v11177_v8 = vcombine.high %v477_v20, %v481_v16  ;;  %v11176_v59 = vcombine.low %v477_v20, %v481_v16 }
 0x1d2   :  { %7099 = vmatprep.subr.bf16.mxu1 %v11329_v13  ;;  %v609_v22 = vld [vmem:[#allocation5 + $0xe68] sm:$0xff] }
 0x1d3   :  { %7047 = vmatpush2.bf16.msra.mxu0 %v11200_v9  ;;  %v11305_v37 = vcombine.high %v605_v60, %v609_v22  ;;  %v469_v53 = vld [vmem:[#allocation5 + $0xa08] sm:$0xff]  ;;  %v11304_v23 = vcombine.low %v605_v60, %v609_v22  ;;  %v13173_v60 = vpop.f32.mrf.mxu0 }
 0x1d4   :  { %7048 = vmatprep.subr.bf16.mxu0 %v11193_v1  ;;  %v473_v18 = vld [vmem:[#allocation5 + $0xa28] sm:$0xff]  ;;  %13856 = vst [vmem:[#allocation32_spill] sm:$0xff] %v13173_v60 }
 0x1d5   :  { %7100 = vmatpush2.bf16.msra.mxu1 %v11328_v4  ;;  %v597_v13 = vld [vmem:[#allocation5 + $0xe08] sm:$0xff]  ;;  %v11169_v62 = vcombine.high %v469_v53, %v473_v18  ;;  %v11168_v41 = vcombine.low %v469_v53, %v473_v18 }
 0x1d6   :  { %7101 = vmatprep.subr.bf16.mxu1 %v11321_v11  ;;  %v601_v19 = vld [vmem:[#allocation5 + $0xe28] sm:$0xff] }
 0x1d7   :  { %7049 = vmatpush2.bf16.msra.mxu0 %v11192_v52  ;;  %v11297_v9 = vcombine.high %v597_v13, %v601_v19  ;;  %v717_v4 = vld [vmem:[#allocation5 + $0x11c8] sm:$0xff]  ;;  %v11296_v51 = vcombine.low %v597_v13, %v601_v19 }
 0x1d8   :  { %7050 = vmatprep.subr.bf16.mxu0 %v11185_v0  ;;  %v721_v1 = vld [vmem:[#allocation5 + $0x11e8] sm:$0xff] }
 0x1d9   :  { %7102 = vmatpush2.bf16.msra.mxu1 %v11320_v58  ;;  %v845_v11 = vld [vmem:[#allocation5 + $0x15c8] sm:$0xff]  ;;  %v11417_v36 = vcombine.high %v717_v4, %v721_v1  ;;  %v11416_v16 = vcombine.low %v717_v4, %v721_v1 }
 0x1da   :  { %7103 = vmatprep.subr.bf16.mxu1 %v11313_v40  ;;  %v849_v5 = vld [vmem:[#allocation5 + $0x15e8] sm:$0xff] }
 0x1db   :  { %7051 = vmatpush2.bf16.msra.mxu0 %v11184_v57  ;;  %v11545_v52 = vcombine.high %v845_v11, %v849_v5  ;;  %v709_v58 = vld [vmem:[#allocation5 + $0x1188] sm:$0xff]  ;;  %v11544_v22 = vcombine.low %v845_v11, %v849_v5 }
 0x1dc   :  { %7052 = vmatprep.subr.bf16.mxu0 %v11177_v8  ;;  %v713_v0 = vld [vmem:[#allocation5 + $0x11a8] sm:$0xff] }
 0x1dd   :  { %7104 = vmatpush2.bf16.msra.mxu1 %v11312_v49  ;;  %v837_v40 = vld [vmem:[#allocation5 + $0x1588] sm:$0xff]  ;;  %v11409_v57 = vcombine.high %v709_v58, %v713_v0  ;;  %v13175_v49 = vpop.f32.mrf.mxu1 }
 0x1de   :  { %7105 = vmatprep.subr.bf16.mxu1 %v11305_v37  ;;  %v841_v20 = vld [vmem:[#allocation5 + $0x15a8] sm:$0xff]  ;;  %13857 = vst [vmem:[#allocation33_spill] sm:$0xff] %v13175_v49 }
 0x1df   :  { %7053 = vmatpush2.bf16.msra.mxu0 %v11176_v59  ;;  %v11537_v8 = vcombine.high %v837_v40, %v841_v20  ;;  %v701_v37 = vld [vmem:[#allocation5 + $0x1148] sm:$0xff]  ;;  %v11536_v4 = vcombine.low %v837_v40, %v841_v20 }
 0x1e0   :  { %7054 = vmatprep.subr.bf16.mxu0 %v11169_v62  ;;  %v705_v53 = vld [vmem:[#allocation5 + $0x1168] sm:$0xff]  ;;  %v11408_v62 = vcombine.low %v709_v58, %v713_v0 }
 0x1e1   :  { %7106 = vmatpush2.bf16.msra.mxu1 %v11304_v23  ;;  %v829_v13 = vld [vmem:[#allocation5 + $0x1548] sm:$0xff]  ;;  %v11401_v1 = vcombine.high %v701_v37, %v705_v53 }
 0x1e2   :  { %7107 = vmatprep.subr.bf16.mxu1 %v11297_v9  ;;  %v833_v19 = vld [vmem:[#allocation5 + $0x1568] sm:$0xff] }
 0x1e3   :  { %7055 = vmatpush2.bf16.msra.mxu0 %v11168_v41  ;;  %v821_v58 = vld [vmem:[#allocation5 + $0x1508] sm:$0xff] }
 0x1e4   :  { %7130 = vmatprep.subr.bf16.mxu0 %v11417_v36  ;;  %v6740_v18 = vpop.f32.mrf.mxu0  ;;  %v697_v36 = vld [vmem:[#allocation5 + $0x1128] sm:$0xff] }
 0x1e5   :  { %7108 = vmatpush2.bf16.msra.mxu1 %v11296_v51  ;;  %v6741_v59 = vadd.f32 %v6740_v18, %v13146_v48  ;;  %v11529_v51 = vcombine.high %v829_v13, %v833_v19  ;;  %v693_v48 = vld [vmem:[#allocation5 + $0x1108] sm:$0xff] }
 0x1e6   :  { %7183 = vmatprep.subr.bf16.mxu1 %v11545_v52  ;;  %7057 = vmatmul.mubr.bf16.vlgmr.msra.gmra.mxu0 %v13000_v6  ;;  %v6793_v23 = vpop.f32.mrf.mxu1  ;;  %v6742_v9 = vpop.f32.mrf.mxu0  ;;  %v825_v0 = vld [vmem:[#allocation5 + $0x1528] sm:$0xff] }
 0x1e7   :  { %7131 = vmatpush1.bf16.msra.mxu0 %v11416_v16  ;;  %v13180_v11 = vadd.f32 %v6793_v23, %v6741_v59  ;;  %v6743_v5 = vadd.f32 %v6742_v9, %v13151_v31  ;;  %7066 = vmatprep.mubr.bf16.mxu0 %v13006_v15  ;;  %v11521_v23 = vcombine.high %v821_v58, %v825_v0  ;;  %v685_v9 = vld [vmem:[#allocation5 + $0x10c8] sm:$0xff] }
 0x1e8   :  { %7110 = vmatmul.mubr.bf16.vlgmr.msra.gmra.mxu1 %v13004_v7  ;;  %7132 = vmatprep.subr.bf16.mxu0 %v11409_v57  ;;  %v6795_v41 = vpop.f32.mrf.mxu1  ;;  %v6744_v52 = vpop.f32.mrf.mxu0  ;;  %v11528_v57 = vcombine.low %v829_v13, %v833_v19  ;;  %v11392_v13 = vcombine.low %v693_v48, %v697_v36  ;;  %v677_v49 = vld [vmem:[#allocation5 + $0x1088] sm:$0xff] }
 0x1e9   :  { %7184 = vmatpush1.bf16.msra.mxu1 %v11544_v22  ;;  %7119 = vmatprep.mubr.bf16.mxu1 %v13009_v17  ;;  %v13185_v16 = vadd.f32 %v6795_v41, %v6743_v5  ;;  %v6745_v40 = vadd.f32 %v6744_v52, %v13156_v10  ;;  %v11400_v22 = vcombine.low %v701_v37, %v705_v53  ;;  %v689_v5 = vld [vmem:[#allocation5 + $0x10e8] sm:$0xff] }
 0x1ea   :  { %7185 = vmatprep.subr.bf16.mxu1 %v11537_v8  ;;  %v6797_v20 = vpop.f32.mrf.mxu1  ;;  %v13188_v31 = vpop.f32.mrf.mxu0  ;;  %v11393_v8 = vcombine.high %v693_v48, %v697_v36  ;;  %v813_v10 = vld [vmem:[#allocation5 + $0x14c8] sm:$0xff] }
 0x1eb   :  { %7133 = vmatpush1.bf16.msra.mxu0 %v11408_v62  ;;  %13858 = vst [vmem:[#allocation34_spill] sm:$0xff] %v13188_v31  ;;  %v13190_v18 = vadd.f32 %v6797_v20, %v6745_v40  ;;  %v817_v62 = vld [vmem:[#allocation5 + $0x14e8] sm:$0xff] }
 0x1ec   :  { %7134 = vmatprep.subr.bf16.mxu0 %v11401_v1  ;;  %v13192_v59 = vpop.f32.mrf.mxu1  ;;  %v11385_v1 = vcombine.high %v685_v9, %v689_v5  ;;  %v11513_v20 = vcombine.high %v813_v10, %v817_v62  ;;  %v681_v60 = vld [vmem:[#allocation5 + $0x10a8] sm:$0xff] }
 0x1ed   :  { %7186 = vmatpush1.bf16.msra.mxu1 %v11536_v4  ;;  %13859 = vst [vmem:[#allocation35_spill] sm:$0xff] %v13192_v59  ;;  %v6750_v41 = vpop.f32.mrf.mxu0  ;;  %v11520_v4 = vcombine.low %v821_v58, %v825_v0  ;;  %v11384_v58 = vcombine.low %v685_v9, %v689_v5  ;;  %v11512_v0 = vcombine.low %v813_v10, %v817_v62  ;;  %v801_v59 = vld [vmem:[#allocation5 + $0x1468] sm:$0xff] }
 0x1ee   :  { %7187 = vmatprep.subr.bf16.mxu1 %v11529_v51  ;;  %7067 = vmatmul.mubr.bf16.gmra.mxu0 %v13017_v28  ;;  %v6751_v37 = vadd.f32 %v6750_v41, %v13164_v54  ;;  %v6803_v53 = vpop.f32.mrf.mxu1  ;;  %v809_v41 = vld [vmem:[#allocation5 + $0x14a8] sm:$0xff]  ;;  %v11376_v31 = vcombine.low %v677_v49, %v681_v60 }
 0x1ef   :  { %7135 = vmatpush1.bf16.msra.mxu0 %v11400_v22  ;;  %v6752_v19 = vpop.f32.mrf.mxu0  ;;  %7162 = vmatprep.mubr.bf16.mxu0 %v13028_v38  ;;  %v805_v22 = vld [vmem:[#allocation5 + $0x1488] sm:$0xff] }
 0x1f0   :  { %7120 = vmatmul.mubr.bf16.gmra.mxu1 %v13020_v30  ;;  %7136 = vmatprep.subr.bf16.mxu0 %v11393_v8  ;;  %v6753_v51 = vadd.f32 %v6752_v19, %v13169_v14  ;;  %v13198_v52 = vadd.f32 %v6803_v53, %v6751_v37  ;;  %v6805_v40 = vpop.f32.mrf.mxu1  ;;  %v669_v37 = vld [vmem:[#allocation5 + $0x1048] sm:$0xff] }
 0x1f1   :  { %7188 = vmatpush1.bf16.msra.mxu1 %v11528_v57  ;;  %v6754_v54 = vpop.f32.mrf.mxu0  ;;  %7215 = vmatprep.mubr.bf16.mxu1 %v13033_v39  ;;  %v11377_v57 = vcombine.high %v677_v49, %v681_v60  ;;  %v673_v53 = vld [vmem:[#allocation5 + $0x1068] sm:$0xff] }
 0x1f2   :  { %7189 = vmatprep.subr.bf16.mxu1 %v11521_v23  ;;  %v6755_v48 = vadd.f32 %v6754_v54, %v13171_v32  ;;  %v13203_v36 = vadd.f32 %v6805_v40, %v6753_v51  ;;  %v6807_v14 = vpop.f32.mrf.mxu1  ;;  %v11505_v23 = vcombine.high %v805_v22, %v809_v41  ;;  %v797_v19 = vld [vmem:[#allocation5 + $0x1448] sm:$0xff]  ;;  %v11504_v32 = vcombine.low %v805_v22, %v809_v41 }
 0x1f3   :  { %7137 = vmatpush1.bf16.msra.mxu0 %v11392_v13  ;;  %v11369_v13 = vcombine.high %v669_v37, %v673_v53  ;;  %v11497_v9 = vcombine.high %v797_v19, %v801_v59  ;;  %v661_v5 = vld [vmem:[#allocation5 + $0x1008] sm:$0xff]  ;;  %v11496_v51 = vcombine.low %v797_v19, %v801_v59 }
 0x1f4   :  { %7138 = vmatprep.subr.bf16.mxu0 %v11385_v1  ;;  %v13205_v8 = vadd.f32 %v6807_v14, %v6755_v48  ;;  %v789_v10 = vld [vmem:[#allocation5 + $0x1408] sm:$0xff]  ;;  %v11368_v1 = vcombine.low %v669_v37, %v673_v53 }
 0x1f5   :  { %7190 = vmatpush1.bf16.msra.mxu1 %v11520_v4  ;;  %v665_v4 = vld [vmem:[#allocation5 + $0x1028] sm:$0xff] }
 0x1f6   :  { %7191 = vmatprep.subr.bf16.mxu1 %v11513_v20  ;;  %v793_v62 = vld [vmem:[#allocation5 + $0x1428] sm:$0xff]  ;;  %v11361_v40 = vcombine.high %v661_v5, %v665_v4  ;;  %v11360_v22 = vcombine.low %v661_v5, %v665_v4 }
 0x1f7   :  { %7139 = vmatpush1.bf16.msra.mxu0 %v11384_v58  ;;  %v11489_v20 = vcombine.high %v789_v10, %v793_v62  ;;  %v781_v54 = vld [vmem:[#allocation5 + $0x13c8] sm:$0xff]  ;;  %v11488_v41 = vcombine.low %v789_v10, %v793_v62 }
 0x1f8   :  { %7140 = vmatprep.subr.bf16.mxu0 %v11377_v57  ;;  %v785_v60 = vld [vmem:[#allocation5 + $0x13e8] sm:$0xff] }
 0x1f9   :  { %7192 = vmatpush1.bf16.msra.mxu1 %v11512_v0  ;;  %v909_v49 = vld [vmem:[#allocation5 + $0x17c8] sm:$0xff]  ;;  %v11481_v14 = vcombine.high %v781_v54, %v785_v60  ;;  %v11480_v59 = vcombine.low %v781_v54, %v785_v60 }
 0x1fa   :  { %7193 = vmatprep.subr.bf16.mxu1 %v11505_v23  ;;  %v913_v48 = vld [vmem:[#allocation5 + $0x17e8] sm:$0xff] }
 0x1fb   :  { %7141 = vmatpush1.bf16.msra.mxu0 %v11376_v31  ;;  %v11609_v58 = vcombine.high %v909_v49, %v913_v48  ;;  %v773_v31 = vld [vmem:[#allocation5 + $0x1388] sm:$0xff]  ;;  %v11608_v37 = vcombine.low %v909_v49, %v913_v48 }
 0x1fc   :  { %7142 = vmatprep.subr.bf16.mxu0 %v11369_v13  ;;  %v777_v0 = vld [vmem:[#allocation5 + $0x13a8] sm:$0xff] }
 0x1fd   :  { %7194 = vmatpush1.bf16.msra.mxu1 %v11504_v32  ;;  %v901_v57 = vld [vmem:[#allocation5 + $0x1788] sm:$0xff]  ;;  %v11473_v53 = vcombine.high %v773_v31, %v777_v0  ;;  %v11472_v4 = vcombine.low %v773_v31, %v777_v0 }
 0x1fe   :  { %7195 = vmatprep.subr.bf16.mxu1 %v11497_v9  ;;  %v905_v23 = vld [vmem:[#allocation5 + $0x17a8] sm:$0xff] }
 0x1ff   :  { %7143 = vmatpush1.bf16.msra.mxu0 %v11368_v1  ;;  %v11601_v19 = vcombine.high %v901_v57, %v905_v23  ;;  %v765_v32 = vld [vmem:[#allocation5 + $0x1348] sm:$0xff]  ;;  %v11600_v10 = vcombine.low %v901_v57, %v905_v23 }
 0x200   :  { %7144 = vmatprep.subr.bf16.mxu0 %v11361_v40  ;;  %v769_v13 = vld [vmem:[#allocation5 + $0x1368] sm:$0xff] }
 0x201   :  { %7196 = vmatpush1.bf16.msra.mxu1 %v11496_v51  ;;  %v893_v9 = vld [vmem:[#allocation5 + $0x1748] sm:$0xff]  ;;  %v11465_v62 = vcombine.high %v765_v32, %v769_v13  ;;  %v11464_v60 = vcombine.low %v765_v32, %v769_v13 }
 0x202   :  { %7197 = vmatprep.subr.bf16.mxu1 %v11489_v20  ;;  %v897_v5 = vld [vmem:[#allocation5 + $0x1768] sm:$0xff] }
 0x203   :  { %7145 = vmatpush1.bf16.msra.mxu0 %v11360_v22  ;;  %v11593_v1 = vcombine.high %v893_v9, %v897_v5  ;;  %v757_v51 = vld [vmem:[#allocation5 + $0x1308] sm:$0xff]  ;;  %v11592_v49 = vcombine.low %v893_v9, %v897_v5 }
 0x204   :  { %7146 = vmatprep.subr.bf16.mxu0 %v11481_v14  ;;  %v761_v40 = vld [vmem:[#allocation5 + $0x1328] sm:$0xff] }
 0x205   :  { %7198 = vmatpush1.bf16.msra.mxu1 %v11488_v41  ;;  %v885_v20 = vld [vmem:[#allocation5 + $0x1708] sm:$0xff]  ;;  %v11457_v48 = vcombine.high %v757_v51, %v761_v40  ;;  %v11456_v0 = vcombine.low %v757_v51, %v761_v40 }
 0x206   :  { %7199 = vmatprep.subr.bf16.mxu1 %v11609_v58  ;;  %v889_v54 = vld [vmem:[#allocation5 + $0x1728] sm:$0xff] }
 0x207   :  { %7147 = vmatpush2.bf16.msra.mxu0 %v11480_v59  ;;  %v11585_v22 = vcombine.high %v885_v20, %v889_v54  ;;  %v749_v41 = vld [vmem:[#allocation5 + $0x12c8] sm:$0xff]  ;;  %v11584_v57 = vcombine.low %v885_v20, %v889_v54 }
 0x208   :  { %7148 = vmatprep.subr.bf16.mxu0 %v11473_v53  ;;  %v753_v14 = vld [vmem:[#allocation5 + $0x12e8] sm:$0xff] }
 0x209   :  { %7200 = vmatpush2.bf16.msra.mxu1 %v11608_v37  ;;  %v877_v58 = vld [vmem:[#allocation5 + $0x16c8] sm:$0xff]  ;;  %v11449_v23 = vcombine.high %v749_v41, %v753_v14  ;;  %v11448_v13 = vcombine.low %v749_v41, %v753_v14 }
 0x20a   :  { %7201 = vmatprep.subr.bf16.mxu1 %v11601_v19  ;;  %v881_v31 = vld [vmem:[#allocation5 + $0x16e8] sm:$0xff] }
 0x20b   :  { %7149 = vmatpush2.bf16.msra.mxu0 %v11472_v4  ;;  %v11577_v59 = vcombine.high %v877_v58, %v881_v31  ;;  %v741_v37 = vld [vmem:[#allocation5 + $0x1288] sm:$0xff]  ;;  %v11576_v9 = vcombine.low %v877_v58, %v881_v31 }
 0x20c   :  { %7150 = vmatprep.subr.bf16.mxu0 %v11465_v62  ;;  %v745_v53 = vld [vmem:[#allocation5 + $0x12a8] sm:$0xff] }
 0x20d   :  { %7202 = vmatpush2.bf16.msra.mxu1 %v11600_v10  ;;  %v869_v19 = vld [vmem:[#allocation5 + $0x1688] sm:$0xff]  ;;  %v11441_v5 = vcombine.high %v741_v37, %v745_v53  ;;  %v11440_v40 = vcombine.low %v741_v37, %v745_v53 }
 0x20e   :  { %7203 = vmatprep.subr.bf16.mxu1 %v11593_v1  ;;  %v873_v32 = vld [vmem:[#allocation5 + $0x16a8] sm:$0xff] }
 0x20f   :  { %7151 = vmatpush2.bf16.msra.mxu0 %v11464_v60  ;;  %v11569_v4 = vcombine.high %v869_v19, %v873_v32  ;;  %v733_v10 = vld [vmem:[#allocation5 + $0x1248] sm:$0xff]  ;;  %v11568_v20 = vcombine.low %v869_v19, %v873_v32 }
 0x210   :  { %7152 = vmatprep.subr.bf16.mxu0 %v11457_v48  ;;  %v737_v62 = vld [vmem:[#allocation5 + $0x1268] sm:$0xff] }
 0x211   :  { %7204 = vmatpush2.bf16.msra.mxu1 %v11592_v49  ;;  %v861_v1 = vld [vmem:[#allocation5 + $0x1648] sm:$0xff]  ;;  %v11433_v54 = vcombine.high %v733_v10, %v737_v62  ;;  %v11432_v14 = vcombine.low %v733_v10, %v737_v62 }
 0x212   :  { %7205 = vmatprep.subr.bf16.mxu1 %v11585_v22  ;;  %v865_v51 = vld [vmem:[#allocation5 + $0x1668] sm:$0xff] }
 0x213   :  { %7153 = vmatpush2.bf16.msra.mxu0 %v11456_v0  ;;  %v11561_v60 = vcombine.high %v861_v1, %v865_v51  ;;  %v725_v49 = vld [vmem:[#allocation5 + $0x1208] sm:$0xff]  ;;  %v11560_v58 = vcombine.low %v861_v1, %v865_v51  ;;  %v13207_v1 = vpop.f32.mrf.mxu0 }
 0x214   :  { %7154 = vmatprep.subr.bf16.mxu0 %v11449_v23  ;;  %v729_v48 = vld [vmem:[#allocation5 + $0x1228] sm:$0xff]  ;;  %13860 = vst [vmem:[#allocation36_spill] sm:$0xff] %v13207_v1 }
 0x215   :  { %7206 = vmatpush2.bf16.msra.mxu1 %v11584_v57  ;;  %v853_v22 = vld [vmem:[#allocation5 + $0x1608] sm:$0xff]  ;;  %v11425_v31 = vcombine.high %v725_v49, %v729_v48  ;;  %v11424_v53 = vcombine.low %v725_v49, %v729_v48 }
 0x216   :  { %7207 = vmatprep.subr.bf16.mxu1 %v11577_v59  ;;  %v857_v41 = vld [vmem:[#allocation5 + $0x1628] sm:$0xff] }
 0x217   :  { %7155 = vmatpush2.bf16.msra.mxu0 %v11448_v13  ;;  %v11553_v0 = vcombine.high %v853_v22, %v857_v41  ;;  %v973_v57 = vld [vmem:[#allocation5 + $0x19c8] sm:$0xff]  ;;  %v11552_v19 = vcombine.low %v853_v22, %v857_v41 }
 0x218   :  { %7156 = vmatprep.subr.bf16.mxu0 %v11441_v5  ;;  %v977_v23 = vld [vmem:[#allocation5 + $0x19e8] sm:$0xff] }
 0x219   :  { %7208 = vmatpush2.bf16.msra.mxu1 %v11576_v9  ;;  %v1101_v59 = vld [vmem:[#allocation5 + $0x1dc8] sm:$0xff]  ;;  %v11673_v32 = vcombine.high %v973_v57, %v977_v23  ;;  %v11672_v62 = vcombine.low %v973_v57, %v977_v23 }
 0x21a   :  { %7209 = vmatprep.subr.bf16.mxu1 %v11569_v4  ;;  %v1105_v37 = vld [vmem:[#allocation5 + $0x1de8] sm:$0xff] }
 0x21b   :  { %7157 = vmatpush2.bf16.msra.mxu0 %v11440_v40  ;;  %v11801_v13 = vcombine.high %v1101_v59, %v1105_v37  ;;  %v965_v9 = vld [vmem:[#allocation5 + $0x1988] sm:$0xff]  ;;  %v11800_v51 = vcombine.low %v1101_v59, %v1105_v37 }
 0x21c   :  { %7158 = vmatprep.subr.bf16.mxu0 %v11433_v54  ;;  %v969_v5 = vld [vmem:[#allocation5 + $0x19a8] sm:$0xff] }
 0x21d   :  { %7210 = vmatpush2.bf16.msra.mxu1 %v11568_v20  ;;  %v1093_v4 = vld [vmem:[#allocation5 + $0x1d88] sm:$0xff]  ;;  %v11665_v40 = vcombine.high %v965_v9, %v969_v5  ;;  %v13209_v20 = vpop.f32.mrf.mxu1 }
 0x21e   :  { %7211 = vmatprep.subr.bf16.mxu1 %v11561_v60  ;;  %v1097_v10 = vld [vmem:[#allocation5 + $0x1da8] sm:$0xff]  ;;  %13861 = vst [vmem:[#allocation37_spill] sm:$0xff] %v13209_v20 }
 0x21f   :  { %7159 = vmatpush2.bf16.msra.mxu0 %v11432_v14  ;;  %v11793_v54 = vcombine.high %v1093_v4, %v1097_v10  ;;  %v957_v60 = vld [vmem:[#allocation5 + $0x1948] sm:$0xff]  ;;  %v11792_v57 = vcombine.low %v1093_v4, %v1097_v10 }
 0x220   :  { %7160 = vmatprep.subr.bf16.mxu0 %v11425_v31  ;;  %v961_v49 = vld [vmem:[#allocation5 + $0x1968] sm:$0xff]  ;;  %v11664_v31 = vcombine.low %v965_v9, %v969_v5 }
 0x221   :  { %7212 = vmatpush2.bf16.msra.mxu1 %v11560_v58  ;;  %v1085_v22 = vld [vmem:[#allocation5 + $0x1d48] sm:$0xff]  ;;  %v11657_v23 = vcombine.high %v957_v60, %v961_v49 }
 0x222   :  { %7213 = vmatprep.subr.bf16.mxu1 %v11553_v0  ;;  %v1089_v41 = vld [vmem:[#allocation5 + $0x1d68] sm:$0xff] }
 0x223   :  { %7161 = vmatpush2.bf16.msra.mxu0 %v11424_v53  ;;  %v1081_v9 = vld [vmem:[#allocation5 + $0x1d28] sm:$0xff] }
 0x224   :  { %7236 = vmatprep.subr.bf16.mxu0 %v11673_v32  ;;  %v949_v32 = vld [vmem:[#allocation5 + $0x1908] sm:$0xff] }
 0x225   :  { %7214 = vmatpush2.bf16.msra.mxu1 %v11552_v19  ;;  %v11785_v19 = vcombine.high %v1085_v22, %v1089_v41  ;;  %v945_v20 = vld [vmem:[#allocation5 + $0x18e8] sm:$0xff] }
 0x226   :  { %7289 = vmatprep.subr.bf16.mxu1 %v11801_v13  ;;  %v6846_v48 = vpop.f32.mrf.mxu0  ;;  %7163 = vmatmul.mubr.bf16.vlgmr.msra.gmra.mxu0 %v13040_v43 }
 0x227   :  { %v6847_v14 = vadd.f32 %v6846_v48, %v13180_v11  ;;  %7237 = vmatpush1.bf16.msra.mxu0 %v11672_v62  ;;  %7172 = vmatprep.mubr.bf16.mxu0 %v13046_v26  ;;  %v953_v11 = vld [vmem:[#allocation5 + $0x1928] sm:$0xff] }
 0x228   :  { %v6899_v58 = vpop.f32.mrf.mxu1  ;;  %7216 = vmatmul.mubr.bf16.vlgmr.msra.gmra.mxu1 %v13044_v44  ;;  %v6848_v0 = vpop.f32.mrf.mxu0  ;;  %7238 = vmatprep.subr.bf16.mxu0 %v11665_v40  ;;  %v1077_v62 = vld [vmem:[#allocation5 + $0x1d08] sm:$0xff]  ;;  %v11784_v40 = vcombine.low %v1085_v22, %v1089_v41  ;;  %v11648_v22 = vcombine.low %v949_v32, %v953_v11 }
 0x229   :  { %7290 = vmatpush1.bf16.msra.mxu1 %v11800_v51  ;;  %v6900_v59 = vadd.f32 %v6899_v58, %v6847_v14  ;;  %v6849_v37 = vadd.f32 %v6848_v0, %v13185_v16  ;;  %7225 = vmatprep.mubr.bf16.mxu1 %v13049_v24  ;;  %v11656_v51 = vcombine.low %v957_v60, %v961_v49  ;;  %v941_v48 = vld [vmem:[#allocation5 + $0x18c8] sm:$0xff] }
 0x22a   :  { %v6901_v53 = vpop.f32.mrf.mxu1  ;;  %7291 = vmatprep.subr.bf16.mxu1 %v11793_v54  ;;  %v6850_v13 = vpop.f32.mrf.mxu0  ;;  %v11649_v54 = vcombine.high %v949_v32, %v953_v11  ;;  %v11777_v0 = vcombine.high %v1077_v62, %v1081_v9  ;;  %v1065_v32 = vld [vmem:[#allocation5 + $0x1ca8] sm:$0xff] }
 0x22b   :  { %v13217_v5 = vadd.f32 %v6901_v53, %v6849_v37  ;;  %v6851_v4 = vadd.f32 %v6850_v13, %v13190_v18  ;;  %7239 = vmatpush1.bf16.msra.mxu0 %v11664_v31  ;;  %v1069_v37 = vld [vmem:[#allocation5 + $0x1cc8] sm:$0xff]  ;;  %v8190_v18 = vmax.f32 %v6900_v59, 0.0 }
 0x22c   :  { %v6903_v10 = vpop.f32.mrf.mxu1  ;;  %v13220_v16 = vpop.f32.mrf.mxu0  ;;  %7240 = vmatprep.subr.bf16.mxu0 %v11657_v23  ;;  %v1073_v53 = vld [vmem:[#allocation5 + $0x1ce8] sm:$0xff]  ;;  %v11641_v23 = vcombine.high %v941_v48, %v945_v20 }
 0x22d   :  { %13862 = vst [vmem:[#allocation38_spill] sm:$0xff] %v13217_v5  ;;  %7292 = vmatpush1.bf16.msra.mxu1 %v11792_v57  ;;  %13863 = vst [vmem:[#allocation39_spill] sm:$0xff] %v13220_v16  ;;  %v6904_v14 = vadd.f32 %v6903_v10, %v6851_v4  ;;  %v11776_v57 = vcombine.low %v1077_v62, %v1081_v9 }
 0x22e   :  { %v13222_v58 = vpop.f32.mrf.mxu1  ;;  %7293 = vmatprep.subr.bf16.mxu1 %v11785_v19  ;;  %v6856_v1 = vpop.f32.mrf.mxu0  ;;  %7173 = vmatmul.mubr.bf16.gmra.mxu0 %v13061_v45  ;;  %v11769_v19 = vcombine.high %v1069_v37, %v1073_v53 }
 0x22f   :  { %13864 = vst [vmem:[#allocation40_spill] sm:$0xff] %v13222_v58  ;;  %v8198_v60 = vmax.f32 %v6904_v14, 0.0  ;;  %v6857_v49 = vadd.f32 %v6856_v1, %v13198_v52  ;;  %7241 = vmatpush1.bf16.msra.mxu0 %v11656_v51  ;;  %v933_v14 = vld [vmem:[#allocation5 + $0x1888] sm:$0xff]  ;;  %7268 = vmatprep.mubr.bf16.mxu0 %v13068_v2  ;;  %v170_v58 = vld [vmem:[#allocation5 + $0xb0] sm:$0xff] }
 0x230   :  { %v6909_v31 = vpop.f32.mrf.mxu1  ;;  %7226 = vmatmul.mubr.bf16.gmra.mxu1 %v13064_v50  ;;  %v6858_v41 = vpop.f32.mrf.mxu0  ;;  %7242 = vmatprep.subr.bf16.mxu0 %v11649_v54  ;;  %v937_v52 = vld [vmem:[#allocation5 + $0x18a8] sm:$0xff] }
 0x231   :  { %7294 = vmatpush1.bf16.msra.mxu1 %v11784_v40  ;;  %v13227_v13 = vpack.c.bf16 %v8198_v60, %v8190_v18  ;;  %v6859_v4 = vadd.f32 %v6858_v41, %v13203_v36  ;;  %v6910_v10 = vadd.f32 %v6909_v31, %v6857_v49  ;;  %v1061_v51 = vld [vmem:[#allocation5 + $0x1c88] sm:$0xff]  ;;  %7321 = vmatprep.mubr.bf16.mxu1 %v13073_v3 }
 0x232   :  { %v6911_v59 = vpop.f32.mrf.mxu1  ;;  %7295 = vmatprep.subr.bf16.mxu1 %v11777_v0  ;;  %v6860_v1 = vpop.f32.mrf.mxu0  ;;  %v11640_v40 = vcombine.low %v941_v48, %v945_v20  ;;  %v11768_v36 = vcombine.low %v1069_v37, %v1073_v53  ;;  %v11633_v54 = vcombine.high %v933_v14, %v937_v52  ;;  %v11761_v18 = vcombine.high %v1061_v51, %v1065_v32  ;;  %v925_v60 = vld [vmem:[#allocation5 + $0x1848] sm:$0xff] }
 0x233   :  { %13865 = vst [vmem:[#allocation41_spill] sm:$0xff] %v13227_v13  ;;  %v6861_v11 = vadd.f32 %v6860_v1, %v13205_v8  ;;  %v13233_v62 = vadd.f32 %v6911_v59, %v6859_v4  ;;  %7243 = vmatpush1.bf16.msra.mxu0 %v11648_v22  ;;  %v929_v49 = vld [vmem:[#allocation5 + $0x1868] sm:$0xff]  ;;  %v8206_v13 = vmax.f32 %v6910_v10, 0.0  ;;  %v11632_v8 = vcombine.low %v933_v14, %v937_v52 }
 0x234   :  { %v6913_v9 = vpop.f32.mrf.mxu1  ;;  %7244 = vmatprep.subr.bf16.mxu0 %v11641_v23  ;;  %v1053_v31 = vld [vmem:[#allocation5 + $0x1c48] sm:$0xff]  ;;  %v11760_v22 = vcombine.low %v1061_v51, %v1065_v32  ;;  %v11625_v4 = vcombine.high %v925_v60, %v929_v49 }
 0x235   :  { %13866 = vst [vmem:[#allocation42_spill] sm:$0xff] %v13233_v62  ;;  %7296 = vmatpush1.bf16.msra.mxu1 %v11776_v57  ;;  %v6914_v0 = vadd.f32 %v6913_v9, %v6861_v11  ;;  %v1057_v41 = vld [vmem:[#allocation5 + $0x1c68] sm:$0xff]  ;;  %v174_v62 = vld [vmem:[#allocation5 + $0xd0] sm:$0xff] }
 0x236   :  { %7297 = vmatprep.subr.bf16.mxu1 %v11769_v19  ;;  %v11753_v48 = vcombine.high %v1053_v31, %v1057_v41  ;;  %v917_v37 = vld [vmem:[#allocation5 + $0x1808] sm:$0xff]  ;;  %v11624_v19 = vcombine.low %v925_v60, %v929_v49  ;;  %v11752_v10 = vcombine.low %v1053_v31, %v1057_v41 }
 0x237   :  { %v8214_v5 = vmax.f32 %v6914_v0, 0.0  ;;  %7245 = vmatpush1.bf16.msra.mxu0 %v11640_v40  ;;  %v921_v53 = vld [vmem:[#allocation5 + $0x1828] sm:$0xff] }
 0x238   :  { %7246 = vmatprep.subr.bf16.mxu0 %v11633_v54  ;;  %v1045_v57 = vld [vmem:[#allocation5 + $0x1c08] sm:$0xff]  ;;  %v11617_v59 = vcombine.high %v917_v37, %v921_v53 }
 0x239   :  { %7298 = vmatpush1.bf16.msra.mxu1 %v11768_v36  ;;  %v13235_v20 = vpack.c.bf16 %v8214_v5, %v8206_v13  ;;  %v1049_v23 = vld [vmem:[#allocation5 + $0x1c28] sm:$0xff]  ;;  %v11616_v5 = vcombine.low %v917_v37, %v921_v53 }
 0x23a   :  { %7299 = vmatprep.subr.bf16.mxu1 %v11761_v18  ;;  %v11745_v14 = vcombine.high %v1045_v57, %v1049_v23  ;;  %v1037_v52 = vld [vmem:[#allocation5 + $0x1bc8] sm:$0xff]  ;;  %v11744_v13 = vcombine.low %v1045_v57, %v1049_v23 }
 0x23b   :  { %13867 = vst [vmem:[#allocation43_spill] sm:$0xff] %v13235_v20  ;;  %7247 = vmatpush1.bf16.msra.mxu0 %v11632_v8  ;;  %v1041_v1 = vld [vmem:[#allocation5 + $0x1be8] sm:$0xff] }
 0x23c   :  { %7248 = vmatprep.subr.bf16.mxu0 %v11625_v4  ;;  %v1165_v51 = vld [vmem:[#allocation5 + $0x1fc8] sm:$0xff]  ;;  %v11737_v11 = vcombine.high %v1037_v52, %v1041_v1  ;;  %v11736_v18 = vcombine.low %v1037_v52, %v1041_v1 }
 0x23d   :  { %7300 = vmatpush1.bf16.msra.mxu1 %v11760_v22  ;;  %v1169_v32 = vld [vmem:[#allocation5 + $0x1fe8] sm:$0xff] }
 0x23e   :  { %7301 = vmatprep.subr.bf16.mxu1 %v11753_v48  ;;  %v11865_v9 = vcombine.high %v1165_v51, %v1169_v32  ;;  %v1029_v40 = vld [vmem:[#allocation5 + $0x1b88] sm:$0xff]  ;;  %v11864_v60 = vcombine.low %v1165_v51, %v1169_v32 }
 0x23f   :  { %7249 = vmatpush1.bf16.msra.mxu0 %v11624_v19  ;;  %v1033_v36 = vld [vmem:[#allocation5 + $0x1ba8] sm:$0xff] }
 0x240   :  { %7250 = vmatprep.subr.bf16.mxu0 %v11617_v59  ;;  %v1157_v54 = vld [vmem:[#allocation5 + $0x1f88] sm:$0xff]  ;;  %v11729_v49 = vcombine.high %v1029_v40, %v1033_v36  ;;  %v11728_v48 = vcombine.low %v1029_v40, %v1033_v36 }
 0x241   :  { %7302 = vmatpush1.bf16.msra.mxu1 %v11752_v10  ;;  %v1161_v0 = vld [vmem:[#allocation5 + $0x1fa8] sm:$0xff] }
 0x242   :  { %7303 = vmatprep.subr.bf16.mxu1 %v11745_v14  ;;  %v11857_v31 = vcombine.high %v1157_v54, %v1161_v0  ;;  %v1021_v41 = vld [vmem:[#allocation5 + $0x1b48] sm:$0xff]  ;;  %v11856_v37 = vcombine.low %v1157_v54, %v1161_v0 }
 0x243   :  { %7251 = vmatpush1.bf16.msra.mxu0 %v11616_v5  ;;  %v1025_v8 = vld [vmem:[#allocation5 + $0x1b68] sm:$0xff] }
 0x244   :  { %7252 = vmatprep.subr.bf16.mxu0 %v11737_v11  ;;  %v1149_v22 = vld [vmem:[#allocation5 + $0x1f48] sm:$0xff]  ;;  %v11721_v53 = vcombine.high %v1021_v41, %v1025_v8  ;;  %v11720_v14 = vcombine.low %v1021_v41, %v1025_v8 }
 0x245   :  { %7304 = vmatpush1.bf16.msra.mxu1 %v11744_v13  ;;  %v1153_v4 = vld [vmem:[#allocation5 + $0x1f68] sm:$0xff] }
 0x246   :  { %7305 = vmatprep.subr.bf16.mxu1 %v11865_v9  ;;  %v11849_v57 = vcombine.high %v1149_v22, %v1153_v4  ;;  %v1013_v23 = vld [vmem:[#allocation5 + $0x1b08] sm:$0xff]  ;;  %v11848_v52 = vcombine.low %v1149_v22, %v1153_v4 }
 0x247   :  { %7253 = vmatpush2.bf16.msra.mxu0 %v11736_v18  ;;  %v1017_v19 = vld [vmem:[#allocation5 + $0x1b28] sm:$0xff] }
 0x248   :  { %7254 = vmatprep.subr.bf16.mxu0 %v11729_v49  ;;  %v1141_v10 = vld [vmem:[#allocation5 + $0x1f08] sm:$0xff]  ;;  %v11713_v1 = vcombine.high %v1013_v23, %v1017_v19  ;;  %v11712_v9 = vcombine.low %v1013_v23, %v1017_v19 }
 0x249   :  { %7306 = vmatpush2.bf16.msra.mxu1 %v11864_v60  ;;  %v1145_v59 = vld [vmem:[#allocation5 + $0x1f28] sm:$0xff] }
 0x24a   :  { %7307 = vmatprep.subr.bf16.mxu1 %v11857_v31  ;;  %v11841_v51 = vcombine.high %v1141_v10, %v1145_v59  ;;  %v1005_v32 = vld [vmem:[#allocation5 + $0x1ac8] sm:$0xff]  ;;  %v11840_v40 = vcombine.low %v1141_v10, %v1145_v59 }
 0x24b   :  { %7255 = vmatpush2.bf16.msra.mxu0 %v11728_v48  ;;  %v1009_v5 = vld [vmem:[#allocation5 + $0x1ae8] sm:$0xff] }
 0x24c   :  { %7256 = vmatprep.subr.bf16.mxu0 %v11721_v53  ;;  %v1133_v13 = vld [vmem:[#allocation5 + $0x1ec8] sm:$0xff]  ;;  %v11705_v36 = vcombine.high %v1005_v32, %v1009_v5  ;;  %v11704_v31 = vcombine.low %v1005_v32, %v1009_v5 }
 0x24d   :  { %7308 = vmatpush2.bf16.msra.mxu1 %v11856_v37  ;;  %v1137_v11 = vld [vmem:[#allocation5 + $0x1ee8] sm:$0xff] }
 0x24e   :  { %7309 = vmatprep.subr.bf16.mxu1 %v11849_v57  ;;  %v11833_v54 = vcombine.high %v1133_v13, %v1137_v11  ;;  %v997_v0 = vld [vmem:[#allocation5 + $0x1a88] sm:$0xff]  ;;  %v11832_v41 = vcombine.low %v1133_v13, %v1137_v11  ;;  %v206_v11 = vld [vmem:[#allocation5 + $0x1d0] sm:$0xff] }
 0x24f   :  { %7257 = vmatpush2.bf16.msra.mxu0 %v11720_v14  ;;  %v1001_v18 = vld [vmem:[#allocation5 + $0x1aa8] sm:$0xff] }
 0x250   :  { %7258 = vmatprep.subr.bf16.mxu0 %v11713_v1  ;;  %v1125_v60 = vld [vmem:[#allocation5 + $0x1e88] sm:$0xff]  ;;  %v11697_v8 = vcombine.high %v997_v0, %v1001_v18  ;;  %v11696_v57 = vcombine.low %v997_v0, %v1001_v18  ;;  %v13834_v0 = vsub.s32 2, %v13079_v33 }
 0x251   :  { %7310 = vmatpush2.bf16.msra.mxu1 %v11848_v52  ;;  %v1129_v49 = vld [vmem:[#allocation5 + $0x1ea8] sm:$0xff] }
 0x252   :  { %7311 = vmatprep.subr.bf16.mxu1 %v11841_v51  ;;  %v11825_v22 = vcombine.high %v1125_v60, %v1129_v49  ;;  %v989_v4 = vld [vmem:[#allocation5 + $0x1a48] sm:$0xff]  ;;  %v11824_v23 = vcombine.low %v1125_v60, %v1129_v49 }
 0x253   :  { %7259 = vmatpush2.bf16.msra.mxu0 %v11712_v9  ;;  %v993_v48 = vld [vmem:[#allocation5 + $0x1a68] sm:$0xff]  ;;  %v210_v9 = vld [vmem:[#allocation5 + $0x1f0] sm:$0xff] }
 0x254   :  { %7260 = vmatprep.subr.bf16.mxu0 %v11705_v36  ;;  %v1117_v37 = vld [vmem:[#allocation5 + $0x1e48] sm:$0xff]  ;;  %v11689_v19 = vcombine.high %v989_v4, %v993_v48  ;;  %v11688_v51 = vcombine.low %v989_v4, %v993_v48  ;;  %v338_v36 = vld [vmem:[#allocation5 + $0x5f0] sm:$0xff]  ;;  %v10907_v60 = vcombine.high %v206_v11, %v210_v9  ;;  %v12690_v4 = vld [vmem:[#allocation7] sm:$0xff] }
 0x255   :  { %7312 = vmatpush2.bf16.msra.mxu1 %v11840_v40  ;;  %v1121_v53 = vld [vmem:[#allocation5 + $0x1e68] sm:$0xff]  ;;  %v334_v40 = vld [vmem:[#allocation5 + $0x5d0] sm:$0xff]  ;;  %v13240_v48 = vrot.slane %v12690_v4, %v13834_v0 }
 0x256   :  { %7313 = vmatprep.subr.bf16.mxu1 %v11833_v54  ;;  %v11817_v10 = vcombine.high %v1117_v37, %v1121_v53  ;;  %v981_v59 = vld [vmem:[#allocation5 + $0x1a08] sm:$0xff]  ;;  %v11816_v32 = vcombine.low %v1117_v37, %v1121_v53  ;;  %v11035_v49 = vcombine.high %v334_v40, %v338_v36  ;;  %v10906_v37 = vcombine.low %v206_v11, %v210_v9  ;;  %v13242_v53 = vpop.f32.mrf.mxu0 }
 0x257   :  { %7261 = vmatpush2.bf16.msra.mxu0 %v11704_v31  ;;  %v985_v14 = vld [vmem:[#allocation5 + $0x1a28] sm:$0xff]  ;;  %v198_v31 = vld [vmem:[#allocation5 + $0x190] sm:$0xff]  ;;  %13868 = vst [vmem:[#allocation44_spill] sm:$0xff] %v13242_v53 }
 0x258   :  { %7262 = vmatprep.subr.bf16.mxu0 %v11697_v8  ;;  %v1109_v52 = vld [vmem:[#allocation5 + $0x1e08] sm:$0xff]  ;;  %v11681_v5 = vcombine.high %v981_v59, %v985_v14  ;;  %v11680_v54 = vcombine.low %v981_v59, %v985_v14  ;;  %v326_v8 = vld [vmem:[#allocation5 + $0x590] sm:$0xff] }
 0x259   :  { %7314 = vmatpush2.bf16.msra.mxu1 %v11832_v41  ;;  %v1113_v1 = vld [vmem:[#allocation5 + $0x1e28] sm:$0xff]  ;;  %v202_v41 = vld [vmem:[#allocation5 + $0x1b0] sm:$0xff] }
 0x25a   :  { %7315 = vmatprep.subr.bf16.mxu1 %v11825_v22  ;;  %v11809_v13 = vcombine.high %v1109_v52, %v1113_v1  ;;  %v11808_v18 = vcombine.low %v1109_v52, %v1113_v1  ;;  %v330_v22 = vld [vmem:[#allocation5 + $0x5b0] sm:$0xff] }
 0x25b   :  { %7263 = vmatpush2.bf16.msra.mxu0 %v11696_v57  ;;  %v11034_v57 = vcombine.low %v334_v40, %v338_v36  ;;  %v190_v59 = vld [vmem:[#allocation5 + $0x150] sm:$0xff]  ;;  %v11026_v9 = vcombine.low %v326_v8, %v330_v22 }
 0x25c   :  { %7264 = vmatprep.subr.bf16.mxu0 %v11689_v19  ;;  %v13244_v19 = vpop.f32.mrf.mxu1  ;;  %v194_v14 = vld [vmem:[#allocation5 + $0x170] sm:$0xff] }
 0x25d   :  { %7316 = vmatpush2.bf16.msra.mxu1 %v11824_v23  ;;  %v10899_v23 = vcombine.high %v198_v31, %v202_v41  ;;  %13869 = vst [vmem:[#allocation45_spill] sm:$0xff] %v13244_v19  ;;  %v318_v1 = vld [vmem:[#allocation5 + $0x550] sm:$0xff]  ;;  %v10891_v40 = vcombine.high %v190_v59, %v194_v14 }
 0x25e   :  { %7317 = vmatprep.subr.bf16.mxu1 %v11817_v10  ;;  %v11027_v10 = vcombine.high %v326_v8, %v330_v22  ;;  %v178_v19 = vld [vmem:[#allocation5 + $0xf0] sm:$0xff] }
 0x25f   :  { %7265 = vmatpush2.bf16.msra.mxu0 %v11688_v51  ;;  %v322_v51 = vld [vmem:[#allocation5 + $0x570] sm:$0xff] }
 0x260   :  { %7266 = vmatprep.subr.bf16.mxu0 %v11681_v5  ;;  %v166_v53 = vld [vmem:[#allocation5 + $0x90] sm:$0xff] }
 0x261   :  { %7318 = vmatpush2.bf16.msra.mxu1 %v11816_v32 }
 0x262   :  { %7319 = vmatprep.subr.bf16.mxu1 %v11809_v13  ;;  %v10898_v13 = vcombine.low %v198_v31, %v202_v41  ;;  %v310_v31 = vld [vmem:[#allocation5 + $0x510] sm:$0xff] }
 0x263   :  { %7267 = vmatpush2.bf16.msra.mxu0 %v11680_v54  ;;  %v314_v41 = vld [vmem:[#allocation5 + $0x530] sm:$0xff] }
 0x264   :  { %7342 = vmatprep.subr.bf16.mxu0 %v10907_v60  ;;  %v182_v60 = vld [vmem:[#allocation5 + $0x110] sm:$0xff]  ;;  %v11011_v20 = vcombine.high %v310_v31, %v314_v41 }
 0x265   :  { %7320 = vmatpush2.bf16.msra.mxu1 %v11808_v18  ;;  %v11019_v18 = vcombine.high %v318_v1, %v322_v51 }
 0x266   :  { %7395 = vmatprep.subr.bf16.mxu1 %v11035_v49  ;;  %v6952_v52 = vpop.f32.mrf.mxu0  ;;  %7269 = vmatmul.mubr.bf16.vlgmr.msra.gmra.mxu0 %v13089_v12  ;;  %v186_v49 = vld [vmem:[#allocation5 + $0x130] sm:$0xff] }
 0x267   :  { %v6953_v32 = vadd.f32 %v6952_v52, %v13240_v48  ;;  %7343 = vmatpush1.bf16.msra.mxu0 %v10906_v37  ;;  %7278 = vmatprep.mubr.bf16.mxu0 %v13101_v27  ;;  %v306_v37 = vld [vmem:[#allocation5 + $0x4f0] sm:$0xff] }
 0x268   :  { %v7005_v5 = vpop.f32.mrf.mxu1  ;;  %7322 = vmatmul.mubr.bf16.vlgmr.msra.gmra.mxu1 %v13093_v47  ;;  %v13249_v11 = vpop.f32.mrf.mxu0  ;;  %7344 = vmatprep.subr.bf16.mxu0 %v10899_v23 }
 0x269   :  { %7396 = vmatpush1.bf16.msra.mxu1 %v11034_v57  ;;  %13870 = vst [vmem:[#allocation46_spill] sm:$0xff] %v13249_v11  ;;  %v13251_v36 = vadd.f32 %v7005_v5, %v6953_v32  ;;  %7331 = vmatprep.mubr.bf16.mxu1 %v13104_v34  ;;  %v10890_v57 = vcombine.low %v190_v59, %v194_v14  ;;  %v13874_v59 = vsub.s32 3, %v13079_v33  ;;  %v286_v11 = vld [vmem:[#allocation5 + $0x450] sm:$0xff] }
 0x26a   :  { %v13253_v54 = vpop.f32.mrf.mxu1  ;;  %7397 = vmatprep.subr.bf16.mxu1 %v11027_v10  ;;  %v6956_v52 = vpop.f32.mrf.mxu0  ;;  %v11018_v10 = vcombine.low %v318_v1, %v322_v51  ;;  %v10883_v32 = vcombine.high %v182_v60, %v186_v49  ;;  %v10882_v1 = vcombine.low %v182_v60, %v186_v49  ;;  %v294_v60 = vld [vmem:[#allocation5 + $0x490] sm:$0xff] }
 0x26b   :  { %13871 = vst [vmem:[#allocation47_spill] sm:$0xff] %v13253_v54  ;;  %v6957_v8 = vadd.f32 %v6956_v52, %v13240_v48  ;;  %7345 = vmatpush1.bf16.msra.mxu0 %v10898_v13  ;;  %v302_v52 = vld [vmem:[#allocation5 + $0x4d0] sm:$0xff]  ;;  %v13268_v14 = vrot.slane %v12690_v4, %v13874_v59 }
 0x26c   :  { %v7009_v22 = vpop.f32.mrf.mxu1  ;;  %v13259_v23 = vpop.f32.mrf.mxu0  ;;  %7346 = vmatprep.subr.bf16.mxu0 %v10891_v40  ;;  %v11010_v40 = vcombine.low %v310_v31, %v314_v41  ;;  %v13876_v59 = vld [vmem:[#allocation20_spill] sm:$0xff]  ;;  %v10874_v31 = vcombine.low %v174_v62, %v178_v19 }
 0x26d   :  { %7398 = vmatpush1.bf16.msra.mxu1 %v11026_v9  ;;  %13872 = vst [vmem:[#allocation48_spill] sm:$0xff] %v13259_v23  ;;  %v13261_v5 = vadd.f32 %v7009_v22, %v6957_v8  ;;  %13875 = vst [vmem:[#allocation50_spill] sm:$0xff] %v13268_v14  ;;  %v11003_v22 = vcombine.high %v302_v52, %v306_v37  ;;  %v298_v49 = vld [vmem:[#allocation5 + $0x4b0] sm:$0xff] }
 0x26e   :  { %v13263_v0 = vpop.f32.mrf.mxu1  ;;  %7399 = vmatprep.subr.bf16.mxu1 %v11019_v18  ;;  %7279 = vmatmul.mubr.bf16.gmra.mxu0 %v13112_v61  ;;  %v6962_v13 = vpop.f32.mrf.mxu0  ;;  %v10875_v18 = vcombine.high %v174_v62, %v178_v19  ;;  %v162_v54 = vld [vmem:[#allocation5 + $0x70] sm:$0xff]  ;;  %v10994_v62 = vcombine.low %v294_v60, %v298_v49 }
 0x26f   :  { %13873 = vst [vmem:[#allocation49_spill] sm:$0xff] %v13263_v0  ;;  %7347 = vmatpush1.bf16.msra.mxu0 %v10890_v57  ;;  %v6963_v51 = vadd.f32 %v6962_v13, %v13240_v48  ;;  %7374 = vmatprep.mubr.bf16.mxu0 %v13876_v59  ;;  %v290_v23 = vld [vmem:[#allocation5 + $0x470] sm:$0xff] }
 0x270   :  { %7332 = vmatmul.mubr.bf16.gmra.mxu1 %v13118_v29  ;;  %v7015_v9 = vpop.f32.mrf.mxu1  ;;  %7348 = vmatprep.subr.bf16.mxu0 %v10883_v32  ;;  %v6964_v8 = vpop.f32.mrf.mxu0  ;;  %v10867_v32 = vcombine.high %v166_v53, %v170_v58  ;;  %v150_v19 = vld [vmem:[#allocation5 + $0x10] sm:$0xff] }
 0x271   :  { %7400 = vmatpush1.bf16.msra.mxu1 %v11018_v10  ;;  %v6965_v16 = vadd.f32 %v6964_v8, %v13268_v14  ;;  %v13273_v4 = vadd.f32 %v7015_v9, %v6963_v51  ;;  %7427 = vmatprep.mubr.bf16.mxu1 %v12954_v63  ;;  %v11002_v10 = vcombine.low %v302_v52, %v306_v37  ;;  %v158_v8 = vld [vmem:[#allocation5 + $0x50] sm:$0xff] }
 0x272   :  { %7401 = vmatprep.subr.bf16.mxu1 %v11011_v20  ;;  %v7017_v57 = vpop.f32.mrf.mxu1  ;;  %v6966_v13 = vpop.f32.mrf.mxu0  ;;  %v10995_v9 = vcombine.high %v294_v60, %v298_v49  ;;  %v154_v37 = vld [vmem:[#allocation5 + $0x30] sm:$0xff] }
 0x273   :  { %7349 = vmatpush1.bf16.msra.mxu0 %v10882_v1  ;;  %v6967_v41 = vadd.f32 %v6966_v13, %v13240_v48  ;;  %v13278_v20 = vadd.f32 %v7017_v57, %v6965_v16  ;;  %v10866_v1 = vcombine.low %v166_v53, %v170_v58  ;;  %v10859_v16 = vcombine.high %v158_v8, %v162_v54  ;;  %v278_v52 = vld [vmem:[#allocation5 + $0x410] sm:$0xff] }
 0x274   :  { %7350 = vmatprep.subr.bf16.mxu0 %v10875_v18  ;;  %v7019_v51 = vpop.f32.mrf.mxu1  ;;  %v10987_v48 = vcombine.high %v286_v11, %v290_v23  ;;  %v10858_v18 = vcombine.low %v158_v8, %v162_v54  ;;  %v10851_v57 = vcombine.high %v150_v19, %v154_v37  ;;  %v274_v58 = vld [vmem:[#allocation5 + $0x3f0] sm:$0xff]  ;;  %v10850_v60 = vcombine.low %v150_v19, %v154_v37 }
 0x275   :  { %7402 = vmatpush1.bf16.msra.mxu1 %v11010_v40  ;;  %v13280_v0 = vadd.f32 %v7019_v51, %v6967_v41  ;;  %v282_v40 = vld [vmem:[#allocation5 + $0x430] sm:$0xff] }
 0x276   :  { %7403 = vmatprep.subr.bf16.mxu1 %v11003_v22  ;;  %v10986_v22 = vcombine.low %v286_v11, %v290_v23  ;;  %v10979_v13 = vcombine.high %v278_v52, %v282_v40  ;;  %v398_v53 = vld [vmem:[#allocation5 + $0x7d0] sm:$0xff]  ;;  %v10978_v49 = vcombine.low %v278_v52, %v282_v40 }
 0x277   :  { %7351 = vmatpush1.bf16.msra.mxu0 %v10874_v31  ;;  %v270_v31 = vld [vmem:[#allocation5 + $0x3d0] sm:$0xff] }
 0x278   :  { %7352 = vmatprep.subr.bf16.mxu0 %v10867_v32  ;;  %v402_v41 = vld [vmem:[#allocation5 + $0x7f0] sm:$0xff]  ;;  %v10970_v11 = vcombine.low %v270_v31, %v274_v58 }
 0x279   :  { %7404 = vmatpush1.bf16.msra.mxu1 %v11002_v10  ;;  %v10971_v10 = vcombine.high %v270_v31, %v274_v58  ;;  %v11099_v32 = vcombine.high %v398_v53, %v402_v41  ;;  %v262_v51 = vld [vmem:[#allocation5 + $0x390] sm:$0xff]  ;;  %v11098_v23 = vcombine.low %v398_v53, %v402_v41 }
 0x27a   :  { %7405 = vmatprep.subr.bf16.mxu1 %v10995_v9  ;;  %v266_v54 = vld [vmem:[#allocation5 + $0x3b0] sm:$0xff] }
 0x27b   :  { %7353 = vmatpush1.bf16.msra.mxu0 %v10866_v1  ;;  %v390_v9 = vld [vmem:[#allocation5 + $0x790] sm:$0xff]  ;;  %v10963_v1 = vcombine.high %v262_v51, %v266_v54  ;;  %v10962_v52 = vcombine.low %v262_v51, %v266_v54 }
 0x27c   :  { %7354 = vmatprep.subr.bf16.mxu0 %v10859_v16  ;;  %v394_v8 = vld [vmem:[#allocation5 + $0x7b0] sm:$0xff] }
 0x27d   :  { %7406 = vmatpush1.bf16.msra.mxu1 %v10994_v62  ;;  %v11091_v62 = vcombine.high %v390_v9, %v394_v8  ;;  %v254_v16 = vld [vmem:[#allocation5 + $0x350] sm:$0xff]  ;;  %v11090_v40 = vcombine.low %v390_v9, %v394_v8 }
 0x27e   :  { %7407 = vmatprep.subr.bf16.mxu1 %v10987_v48  ;;  %v258_v48 = vld [vmem:[#allocation5 + $0x370] sm:$0xff] }
 0x27f   :  { %7355 = vmatpush1.bf16.msra.mxu0 %v10858_v18  ;;  %v382_v19 = vld [vmem:[#allocation5 + $0x750] sm:$0xff]  ;;  %v10955_v18 = vcombine.high %v254_v16, %v258_v48  ;;  %v10954_v53 = vcombine.low %v254_v16, %v258_v48 }
 0x280   :  { %7356 = vmatprep.subr.bf16.mxu0 %v10851_v57  ;;  %v386_v37 = vld [vmem:[#allocation5 + $0x770] sm:$0xff] }
 0x281   :  { %7408 = vmatpush1.bf16.msra.mxu1 %v10986_v22  ;;  %v11083_v22 = vcombine.high %v382_v19, %v386_v37  ;;  %v246_v57 = vld [vmem:[#allocation5 + $0x310] sm:$0xff]  ;;  %v11082_v41 = vcombine.low %v382_v19, %v386_v37 }
 0x282   :  { %7409 = vmatprep.subr.bf16.mxu1 %v10979_v13  ;;  %v250_v13 = vld [vmem:[#allocation5 + $0x330] sm:$0xff] }
 0x283   :  { %7357 = vmatpush1.bf16.msra.mxu0 %v10850_v60  ;;  %v374_v31 = vld [vmem:[#allocation5 + $0x710] sm:$0xff]  ;;  %v10947_v60 = vcombine.high %v246_v57, %v250_v13  ;;  %v10946_v9 = vcombine.low %v246_v57, %v250_v13 }
 0x284   :  { %7358 = vmatprep.subr.bf16.mxu0 %v10971_v10  ;;  %v378_v58 = vld [vmem:[#allocation5 + $0x730] sm:$0xff] }
 0x285   :  { %7410 = vmatpush1.bf16.msra.mxu1 %v10978_v49  ;;  %v11075_v49 = vcombine.high %v374_v31, %v378_v58  ;;  %v238_v10 = vld [vmem:[#allocation5 + $0x2d0] sm:$0xff]  ;;  %v11074_v8 = vcombine.low %v374_v31, %v378_v58 }
 0x286   :  { %7411 = vmatprep.subr.bf16.mxu1 %v11099_v32  ;;  %v242_v32 = vld [vmem:[#allocation5 + $0x2f0] sm:$0xff] }
 0x287   :  { %7359 = vmatpush2.bf16.msra.mxu0 %v10970_v11  ;;  %v366_v51 = vld [vmem:[#allocation5 + $0x6d0] sm:$0xff]  ;;  %v10939_v11 = vcombine.high %v238_v10, %v242_v32  ;;  %v10938_v19 = vcombine.low %v238_v10, %v242_v32 }
 0x288   :  { %7360 = vmatprep.subr.bf16.mxu0 %v10963_v1  ;;  %v370_v54 = vld [vmem:[#allocation5 + $0x6f0] sm:$0xff] }
 0x289   :  { %7412 = vmatpush2.bf16.msra.mxu1 %v11098_v23  ;;  %v11067_v23 = vcombine.high %v366_v51, %v370_v54  ;;  %v230_v1 = vld [vmem:[#allocation5 + $0x290] sm:$0xff]  ;;  %v11066_v37 = vcombine.low %v366_v51, %v370_v54 }
 0x28a   :  { %7413 = vmatprep.subr.bf16.mxu1 %v11091_v62  ;;  %v234_v62 = vld [vmem:[#allocation5 + $0x2b0] sm:$0xff] }
 0x28b   :  { %7361 = vmatpush2.bf16.msra.mxu0 %v10962_v52  ;;  %v358_v16 = vld [vmem:[#allocation5 + $0x690] sm:$0xff]  ;;  %v10931_v52 = vcombine.high %v230_v1, %v234_v62  ;;  %v10930_v31 = vcombine.low %v230_v1, %v234_v62 }
 0x28c   :  { %7362 = vmatprep.subr.bf16.mxu0 %v10955_v18  ;;  %v362_v48 = vld [vmem:[#allocation5 + $0x6b0] sm:$0xff] }
 0x28d   :  { %7414 = vmatpush2.bf16.msra.mxu1 %v11090_v40  ;;  %v11059_v40 = vcombine.high %v358_v16, %v362_v48  ;;  %v222_v18 = vld [vmem:[#allocation5 + $0x250] sm:$0xff]  ;;  %v11058_v58 = vcombine.low %v358_v16, %v362_v48 }
 0x28e   :  { %7415 = vmatprep.subr.bf16.mxu1 %v11083_v22  ;;  %v226_v22 = vld [vmem:[#allocation5 + $0x270] sm:$0xff] }
 0x28f   :  { %7363 = vmatpush2.bf16.msra.mxu0 %v10954_v53  ;;  %v350_v57 = vld [vmem:[#allocation5 + $0x650] sm:$0xff]  ;;  %v10923_v53 = vcombine.high %v222_v18, %v226_v22  ;;  %v10922_v51 = vcombine.low %v222_v18, %v226_v22 }
 0x290   :  { %7364 = vmatprep.subr.bf16.mxu0 %v10947_v60  ;;  %v354_v13 = vld [vmem:[#allocation5 + $0x670] sm:$0xff] }
 0x291   :  { %7416 = vmatpush2.bf16.msra.mxu1 %v11082_v41  ;;  %v11051_v41 = vcombine.high %v350_v57, %v354_v13  ;;  %v214_v60 = vld [vmem:[#allocation5 + $0x210] sm:$0xff]  ;;  %v11050_v54 = vcombine.low %v350_v57, %v354_v13  ;;  %v13282_v13 = vpop.f32.mrf.mxu0 }
 0x292   :  { %7417 = vmatprep.subr.bf16.mxu1 %v11075_v49  ;;  %v218_v49 = vld [vmem:[#allocation5 + $0x230] sm:$0xff]  ;;  %13877 = vst [vmem:[#allocation20_spill] sm:$0xff] %v13282_v13 }
 0x293   :  { %7365 = vmatpush2.bf16.msra.mxu0 %v10946_v9  ;;  %v342_v10 = vld [vmem:[#allocation5 + $0x610] sm:$0xff]  ;;  %v10915_v9 = vcombine.high %v214_v60, %v218_v49  ;;  %v10914_v16 = vcombine.low %v214_v60, %v218_v49 }
 0x294   :  { %7366 = vmatprep.subr.bf16.mxu0 %v10939_v11  ;;  %v346_v32 = vld [vmem:[#allocation5 + $0x630] sm:$0xff] }
 0x295   :  { %7418 = vmatpush2.bf16.msra.mxu1 %v11074_v8  ;;  %v11043_v8 = vcombine.high %v342_v10, %v346_v32  ;;  %v462_v11 = vld [vmem:[#allocation5 + $0x9d0] sm:$0xff]  ;;  %v11042_v48 = vcombine.low %v342_v10, %v346_v32 }
 0x296   :  { %7419 = vmatprep.subr.bf16.mxu1 %v11067_v23  ;;  %v466_v23 = vld [vmem:[#allocation5 + $0x9f0] sm:$0xff] }
 0x297   :  { %7367 = vmatpush2.bf16.msra.mxu0 %v10938_v19  ;;  %v590_v1 = vld [vmem:[#allocation5 + $0xdd0] sm:$0xff]  ;;  %v11163_v19 = vcombine.high %v462_v11, %v466_v23  ;;  %v11162_v57 = vcombine.low %v462_v11, %v466_v23 }
 0x298   :  { %7368 = vmatprep.subr.bf16.mxu0 %v10931_v52  ;;  %v594_v62 = vld [vmem:[#allocation5 + $0xdf0] sm:$0xff] }
 0x299   :  { %7420 = vmatpush2.bf16.msra.mxu1 %v11066_v37  ;;  %v11291_v37 = vcombine.high %v590_v1, %v594_v62  ;;  %v454_v52 = vld [vmem:[#allocation5 + $0x990] sm:$0xff] }
 0x29a   :  { %7421 = vmatprep.subr.bf16.mxu1 %v11059_v40  ;;  %v458_v40 = vld [vmem:[#allocation5 + $0x9b0] sm:$0xff] }
 0x29b   :  { %7369 = vmatpush2.bf16.msra.mxu0 %v10930_v31  ;;  %v582_v18 = vld [vmem:[#allocation5 + $0xd90] sm:$0xff]  ;;  %v11290_v31 = vcombine.low %v590_v1, %v594_v62 }
 0x29c   :  { %7370 = vmatprep.subr.bf16.mxu0 %v10923_v53  ;;  %v586_v22 = vld [vmem:[#allocation5 + $0xdb0] sm:$0xff]  ;;  %v13284_v53 = vpop.f32.mrf.mxu1 }
 0x29d   :  { %7422 = vmatpush2.bf16.msra.mxu1 %v11058_v58  ;;  %v11155_v58 = vcombine.high %v454_v52, %v458_v40  ;;  %13878 = vst [vmem:[#allocation51_spill] sm:$0xff] %v13284_v53  ;;  %v446_v60 = vld [vmem:[#allocation5 + $0x950] sm:$0xff]  ;;  %v11282_v23 = vcombine.low %v582_v18, %v586_v22 }
 0x29e   :  { %7423 = vmatprep.subr.bf16.mxu1 %v11051_v41  ;;  %v11283_v41 = vcombine.high %v582_v18, %v586_v22  ;;  %v450_v49 = vld [vmem:[#allocation5 + $0x970] sm:$0xff] }
 0x29f   :  { %7371 = vmatpush2.bf16.msra.mxu0 %v10922_v51  ;;  %v574_v32 = vld [vmem:[#allocation5 + $0xd50] sm:$0xff]  ;;  %v11147_v1 = vcombine.high %v446_v60, %v450_v49  ;;  %v11146_v18 = vcombine.low %v446_v60, %v450_v49 }
 0x2a0   :  { %7372 = vmatprep.subr.bf16.mxu0 %v10915_v9  ;;  %v578_v51 = vld [vmem:[#allocation5 + $0xd70] sm:$0xff] }
 0x2a1   :  { %7424 = vmatpush2.bf16.msra.mxu1 %v11050_v54  ;;  %v430_v53 = vld [vmem:[#allocation5 + $0x8d0] sm:$0xff] }
 0x2a2   :  { %7425 = vmatprep.subr.bf16.mxu1 %v11043_v8  ;;  %v11154_v8 = vcombine.low %v454_v52, %v458_v40  ;;  %v434_v13 = vld [vmem:[#allocation5 + $0x8f0] sm:$0xff] }
 0x2a3   :  { %7373 = vmatpush2.bf16.msra.mxu0 %v10914_v16  ;;  %v546_v14 = vld [vmem:[#allocation5 + $0xc70] sm:$0xff] }
 0x2a4   :  { %7448 = vmatprep.subr.bf16.mxu0 %v11163_v19  ;;  %v438_v19 = vld [vmem:[#allocation5 + $0x910] sm:$0xff] }
 0x2a5   :  { %7426 = vmatpush2.bf16.msra.mxu1 %v11042_v48  ;;  %v11275_v48 = vcombine.high %v574_v32, %v578_v51 }
 0x2a6   :  { %7501 = vmatprep.subr.bf16.mxu1 %v11291_v37  ;;  %v7058_v10 = vpop.f32.mrf.mxu0  ;;  %7375 = vmatmul.mubr.bf16.vlgmr.msra.gmra.mxu0 %v12960_v21  ;;  %v442_v37 = vld [vmem:[#allocation5 + $0x930] sm:$0xff] }
 0x2a7   :  { %v7059_v54 = vadd.f32 %v7058_v10, %v13251_v36  ;;  %7449 = vmatpush1.bf16.msra.mxu0 %v11162_v57  ;;  %7384 = vmatprep.mubr.bf16.mxu0 %v12966_v55  ;;  %v566_v10 = vld [vmem:[#allocation5 + $0xd10] sm:$0xff] }
 0x2a8   :  { %v7111_v9 = vpop.f32.mrf.mxu1  ;;  %7428 = vmatmul.mubr.bf16.vlgmr.msra.gmra.mxu1 %v12964_v25  ;;  %v13289_v11 = vpop.f32.mrf.mxu0  ;;  %7450 = vmatprep.subr.bf16.mxu0 %v11155_v58  ;;  %v570_v57 = vld [vmem:[#allocation5 + $0xd30] sm:$0xff]  ;;  %v11139_v58 = vcombine.high %v438_v19, %v442_v37 }
 0x2a9   :  { %7502 = vmatpush1.bf16.msra.mxu1 %v11290_v31  ;;  %13879 = vst [vmem:[#allocation52_spill] sm:$0xff] %v13289_v11  ;;  %v13291_v62 = vadd.f32 %v7111_v9, %v7059_v54  ;;  %7437 = vmatprep.mubr.bf16.mxu1 %v12969_v35  ;;  %v11274_v31 = vcombine.low %v574_v32, %v578_v51  ;;  %v558_v11 = vld [vmem:[#allocation5 + $0xcd0] sm:$0xff] }
 0x2aa   :  { %v13293_v16 = vpop.f32.mrf.mxu1  ;;  %7503 = vmatprep.subr.bf16.mxu1 %v11283_v41  ;;  %v7062_v36 = vpop.f32.mrf.mxu0  ;;  %v11267_v9 = vcombine.high %v566_v10, %v570_v57  ;;  %v11266_v51 = vcombine.low %v566_v10, %v570_v57  ;;  %v11130_v57 = vcombine.low %v430_v53, %v434_v13 }
 0x2ab   :  { %13880 = vst [vmem:[#allocation53_spill] sm:$0xff] %v13293_v16  ;;  %v7063_v52 = vadd.f32 %v7062_v36, %v13261_v5  ;;  %7451 = vmatpush1.bf16.msra.mxu0 %v11154_v8  ;;  %v562_v5 = vld [vmem:[#allocation5 + $0xcf0] sm:$0xff]  ;;  %v11138_v8 = vcombine.low %v438_v19, %v442_v37  ;;  %v13883_v37 = vld [vmem:[#allocation21_spill] sm:$0xff] }
 0x2ac   :  { %v7115_v40 = vpop.f32.mrf.mxu1  ;;  %v13298_v22 = vpop.f32.mrf.mxu0  ;;  %7452 = vmatprep.subr.bf16.mxu0 %v11147_v1  ;;  %v554_v19 = vld [vmem:[#allocation5 + $0xcb0] sm:$0xff] }
 0x2ad   :  { %7504 = vmatpush1.bf16.msra.mxu1 %v11282_v23  ;;  %13881 = vst [vmem:[#allocation54_spill] sm:$0xff] %v13298_v22  ;;  %v13300_v41 = vadd.f32 %v7115_v40, %v7063_v52  ;;  %v11131_v23 = vcombine.high %v430_v53, %v434_v13  ;;  %v11259_v52 = vcombine.high %v558_v11, %v562_v5  ;;  %v422_v40 = vld [vmem:[#allocation5 + $0x890] sm:$0xff] }
 0x2ae   :  { %v13302_v54 = vpop.f32.mrf.mxu1  ;;  %7505 = vmatprep.subr.bf16.mxu1 %v11275_v48  ;;  %v7068_v16 = vpop.f32.mrf.mxu0  ;;  %7385 = vmatmul.mubr.bf16.gmra.mxu0 %v12973_v42  ;;  %v542_v22 = vld [vmem:[#allocation5 + $0xc50] sm:$0xff] }
 0x2af   :  { %13882 = vst [vmem:[#allocation55_spill] sm:$0xff] %v13302_v54  ;;  %v7069_v60 = vadd.f32 %v7068_v16, %v13273_v4  ;;  %7453 = vmatpush1.bf16.msra.mxu0 %v11146_v18  ;;  %v426_v54 = vld [vmem:[#allocation5 + $0x8b0] sm:$0xff]  ;;  %7480 = vmatprep.mubr.bf16.mxu0 %v12988_v56  ;;  %v11243_v13 = vcombine.high %v542_v22, %v546_v14 }
 0x2b0   :  { %v7121_v49 = vpop.f32.mrf.mxu1  ;;  %7438 = vmatmul.mubr.bf16.gmra.mxu1 %v12980_v46  ;;  %v7070_v32 = vpop.f32.mrf.mxu0  ;;  %7454 = vmatprep.subr.bf16.mxu0 %v11139_v58  ;;  %v550_v16 = vld [vmem:[#allocation5 + $0xc90] sm:$0xff]  ;;  %v11123_v58 = vcombine.high %v422_v40, %v426_v54 }
 0x2b1   :  { %7506 = vmatpush1.bf16.msra.mxu1 %v11274_v31  ;;  %v7071_v1 = vadd.f32 %v7070_v32, %v13278_v20  ;;  %v13308_v48 = vadd.f32 %v7121_v49, %v7069_v60  ;;  %7533 = vmatprep.mubr.bf16.mxu1 %v13883_v37  ;;  %v11258_v31 = vcombine.low %v558_v11, %v562_v5  ;;  %v414_v49 = vld [vmem:[#allocation5 + $0x850] sm:$0xff] }
 0x2b2   :  { %v7123_v36 = vpop.f32.mrf.mxu1  ;;  %7507 = vmatprep.subr.bf16.mxu1 %v11267_v9  ;;  %v7072_v4 = vpop.f32.mrf.mxu0  ;;  %v11251_v60 = vcombine.high %v550_v16, %v554_v19  ;;  %v418_v32 = vld [vmem:[#allocation5 + $0x870] sm:$0xff]  ;;  %v11122_v37 = vcombine.low %v422_v40, %v426_v54 }
 0x2b3   :  { %v7073_v18 = vadd.f32 %v7072_v4, %v13280_v0  ;;  %v13313_v10 = vadd.f32 %v7123_v36, %v7071_v1  ;;  %7455 = vmatpush1.bf16.msra.mxu0 %v11138_v8  ;;  %v11250_v0 = vcombine.low %v550_v16, %v554_v19  ;;  %v11115_v8 = vcombine.high %v414_v49, %v418_v32  ;;  %v406_v53 = vld [vmem:[#allocation5 + $0x810] sm:$0xff] }
 0x2b4   :  { %v7125_v20 = vpop.f32.mrf.mxu1  ;;  %7456 = vmatprep.subr.bf16.mxu0 %v11131_v23  ;;  %v534_v11 = vld [vmem:[#allocation5 + $0xc10] sm:$0xff]  ;;  %v11114_v23 = vcombine.low %v414_v49, %v418_v32  ;;  %v11242_v1 = vcombine.low %v542_v22, %v546_v14 }
 0x2b5   :  { %7508 = vmatpush1.bf16.msra.mxu1 %v11266_v51  ;;  %v13315_v9 = vadd.f32 %v7125_v20, %v7073_v18  ;;  %v410_v51 = vld [vmem:[#allocation5 + $0x830] sm:$0xff] }
 0x2b6   :  { %7509 = vmatprep.subr.bf16.mxu1 %v11259_v52  ;;  %v538_v5 = vld [vmem:[#allocation5 + $0xc30] sm:$0xff]  ;;  %v11107_v36 = vcombine.high %v406_v53, %v410_v51  ;;  %v11106_v16 = vcombine.low %v406_v53, %v410_v51 }
 0x2b7   :  { %7457 = vmatpush1.bf16.msra.mxu0 %v11130_v57  ;;  %v11235_v52 = vcombine.high %v534_v11, %v538_v5  ;;  %v526_v4 = vld [vmem:[#allocation5 + $0xbd0] sm:$0xff]  ;;  %v11234_v19 = vcombine.low %v534_v11, %v538_v5 }
 0x2b8   :  { %7458 = vmatprep.subr.bf16.mxu0 %v11123_v58  ;;  %v530_v54 = vld [vmem:[#allocation5 + $0xbf0] sm:$0xff] }
 0x2b9   :  { %7510 = vmatpush1.bf16.msra.mxu1 %v11258_v31  ;;  %v654_v40 = vld [vmem:[#allocation5 + $0xfd0] sm:$0xff]  ;;  %v11227_v20 = vcombine.high %v526_v4, %v530_v54  ;;  %v11226_v14 = vcombine.low %v526_v4, %v530_v54 }
 0x2ba   :  { %7511 = vmatprep.subr.bf16.mxu1 %v11251_v60  ;;  %v658_v18 = vld [vmem:[#allocation5 + $0xff0] sm:$0xff] }
 0x2bb   :  { %7459 = vmatpush1.bf16.msra.mxu0 %v11122_v37  ;;  %v11355_v57 = vcombine.high %v654_v40, %v658_v18  ;;  %v518_v37 = vld [vmem:[#allocation5 + $0xb90] sm:$0xff]  ;;  %v11354_v22 = vcombine.low %v654_v40, %v658_v18 }
 0x2bc   :  { %7460 = vmatprep.subr.bf16.mxu0 %v11115_v8  ;;  %v522_v31 = vld [vmem:[#allocation5 + $0xbb0] sm:$0xff] }
 0x2bd   :  { %7512 = vmatpush1.bf16.msra.mxu1 %v11250_v0  ;;  %v646_v58 = vld [vmem:[#allocation5 + $0xf90] sm:$0xff]  ;;  %v11219_v49 = vcombine.high %v518_v37, %v522_v31  ;;  %v11218_v51 = vcombine.low %v518_v37, %v522_v31 }
 0x2be   :  { %7513 = vmatprep.subr.bf16.mxu1 %v11243_v13  ;;  %v650_v60 = vld [vmem:[#allocation5 + $0xfb0] sm:$0xff] }
 0x2bf   :  { %7461 = vmatpush1.bf16.msra.mxu0 %v11114_v23  ;;  %v11347_v32 = vcombine.high %v646_v58, %v650_v60  ;;  %v510_v0 = vld [vmem:[#allocation5 + $0xb50] sm:$0xff]  ;;  %v11346_v11 = vcombine.low %v646_v58, %v650_v60 }
 0x2c0   :  { %7462 = vmatprep.subr.bf16.mxu0 %v11107_v36  ;;  %v514_v8 = vld [vmem:[#allocation5 + $0xb70] sm:$0xff] }
 0x2c1   :  { %7514 = vmatpush1.bf16.msra.mxu1 %v11242_v1  ;;  %v638_v13 = vld [vmem:[#allocation5 + $0xf50] sm:$0xff]  ;;  %v11211_v5 = vcombine.high %v510_v0, %v514_v8  ;;  %v11210_v54 = vcombine.low %v510_v0, %v514_v8 }
 0x2c2   :  { %7515 = vmatprep.subr.bf16.mxu1 %v11235_v52  ;;  %v642_v53 = vld [vmem:[#allocation5 + $0xf70] sm:$0xff] }
 0x2c3   :  { %7463 = vmatpush1.bf16.msra.mxu0 %v11106_v16  ;;  %v11339_v23 = vcombine.high %v638_v13, %v642_v53  ;;  %v502_v1 = vld [vmem:[#allocation5 + $0xb10] sm:$0xff]  ;;  %v11338_v40 = vcombine.low %v638_v13, %v642_v53 }
 0x2c4   :  { %7464 = vmatprep.subr.bf16.mxu0 %v11227_v20  ;;  %v506_v36 = vld [vmem:[#allocation5 + $0xb30] sm:$0xff] }
 0x2c5   :  { %7516 = vmatpush1.bf16.msra.mxu1 %v11234_v19  ;;  %v630_v52 = vld [vmem:[#allocation5 + $0xf10] sm:$0xff]  ;;  %v11203_v18 = vcombine.high %v502_v1, %v506_v36  ;;  %v11202_v31 = vcombine.low %v502_v1, %v506_v36 }
 0x2c6   :  { %7517 = vmatprep.subr.bf16.mxu1 %v11355_v57  ;;  %v634_v4 = vld [vmem:[#allocation5 + $0xf30] sm:$0xff] }
 0x2c7   :  { %7465 = vmatpush2.bf16.msra.mxu0 %v11226_v14  ;;  %v11331_v16 = vcombine.high %v630_v52, %v634_v4  ;;  %v494_v19 = vld [vmem:[#allocation5 + $0xad0] sm:$0xff]  ;;  %v11330_v58 = vcombine.low %v630_v52, %v634_v4 }
 0x2c8   :  { %7466 = vmatprep.subr.bf16.mxu0 %v11219_v49  ;;  %v498_v20 = vld [vmem:[#allocation5 + $0xaf0] sm:$0xff] }
 0x2c9   :  { %7518 = vmatpush2.bf16.msra.mxu1 %v11354_v22  ;;  %v622_v57 = vld [vmem:[#allocation5 + $0xed0] sm:$0xff]  ;;  %v11195_v60 = vcombine.high %v494_v19, %v498_v20  ;;  %v11194_v8 = vcombine.low %v494_v19, %v498_v20 }
 0x2ca   :  { %7519 = vmatprep.subr.bf16.mxu1 %v11347_v32  ;;  %v626_v37 = vld [vmem:[#allocation5 + $0xef0] sm:$0xff] }
 0x2cb   :  { %7467 = vmatpush2.bf16.msra.mxu0 %v11218_v51  ;;  %v11323_v14 = vcombine.high %v622_v57, %v626_v37  ;;  %v486_v22 = vld [vmem:[#allocation5 + $0xa90] sm:$0xff]  ;;  %v11322_v13 = vcombine.low %v622_v57, %v626_v37 }
 0x2cc   :  { %7468 = vmatprep.subr.bf16.mxu0 %v11211_v5  ;;  %v490_v49 = vld [vmem:[#allocation5 + $0xab0] sm:$0xff] }
 0x2cd   :  { %7520 = vmatpush2.bf16.msra.mxu1 %v11346_v11  ;;  %v614_v32 = vld [vmem:[#allocation5 + $0xe90] sm:$0xff]  ;;  %v11187_v53 = vcombine.high %v486_v22, %v490_v49  ;;  %v11186_v36 = vcombine.low %v486_v22, %v490_v49 }
 0x2ce   :  { %7521 = vmatprep.subr.bf16.mxu1 %v11339_v23  ;;  %v618_v0 = vld [vmem:[#allocation5 + $0xeb0] sm:$0xff] }
 0x2cf   :  { %7469 = vmatpush2.bf16.msra.mxu0 %v11210_v54  ;;  %v11315_v51 = vcombine.high %v614_v32, %v618_v0  ;;  %v478_v11 = vld [vmem:[#allocation5 + $0xa50] sm:$0xff]  ;;  %v11314_v52 = vcombine.low %v614_v32, %v618_v0 }
 0x2d0   :  { %7470 = vmatprep.subr.bf16.mxu0 %v11203_v18  ;;  %v482_v5 = vld [vmem:[#allocation5 + $0xa70] sm:$0xff] }
 0x2d1   :  { %7522 = vmatpush2.bf16.msra.mxu1 %v11338_v40  ;;  %v606_v23 = vld [vmem:[#allocation5 + $0xe50] sm:$0xff]  ;;  %v11179_v4 = vcombine.high %v478_v11, %v482_v5  ;;  %v11178_v20 = vcombine.low %v478_v11, %v482_v5 }
 0x2d2   :  { %7523 = vmatprep.subr.bf16.mxu1 %v11331_v16  ;;  %v610_v1 = vld [vmem:[#allocation5 + $0xe70] sm:$0xff] }
 0x2d3   :  { %7471 = vmatpush2.bf16.msra.mxu0 %v11202_v31  ;;  %v11307_v54 = vcombine.high %v606_v23, %v610_v1  ;;  %v470_v40 = vld [vmem:[#allocation5 + $0xa10] sm:$0xff]  ;;  %v11306_v57 = vcombine.low %v606_v23, %v610_v1  ;;  %v13317_v23 = vpop.f32.mrf.mxu0 }
 0x2d4   :  { %7472 = vmatprep.subr.bf16.mxu0 %v11195_v60  ;;  %v474_v18 = vld [vmem:[#allocation5 + $0xa30] sm:$0xff]  ;;  %13884 = vst [vmem:[#allocation56_spill] sm:$0xff] %v13317_v23 }
 0x2d5   :  { %7524 = vmatpush2.bf16.msra.mxu1 %v11330_v58  ;;  %v598_v16 = vld [vmem:[#allocation5 + $0xe10] sm:$0xff]  ;;  %v11171_v37 = vcombine.high %v470_v40, %v474_v18  ;;  %v11170_v49 = vcombine.low %v470_v40, %v474_v18 }
 0x2d6   :  { %7525 = vmatprep.subr.bf16.mxu1 %v11323_v14  ;;  %v602_v19 = vld [vmem:[#allocation5 + $0xe30] sm:$0xff] }
 0x2d7   :  { %7473 = vmatpush2.bf16.msra.mxu0 %v11194_v8  ;;  %v11299_v31 = vcombine.high %v598_v16, %v602_v19  ;;  %v718_v58 = vld [vmem:[#allocation5 + $0x11d0] sm:$0xff]  ;;  %v11298_v32 = vcombine.low %v598_v16, %v602_v19 }
 0x2d8   :  { %7474 = vmatprep.subr.bf16.mxu0 %v11187_v53  ;;  %v722_v60 = vld [vmem:[#allocation5 + $0x11f0] sm:$0xff] }
 0x2d9   :  { %7526 = vmatpush2.bf16.msra.mxu1 %v11322_v13  ;;  %v846_v14 = vld [vmem:[#allocation5 + $0x15d0] sm:$0xff]  ;;  %v11419_v0 = vcombine.high %v718_v58, %v722_v60  ;;  %v11418_v5 = vcombine.low %v718_v58, %v722_v60 }
 0x2da   :  { %7527 = vmatprep.subr.bf16.mxu1 %v11315_v51  ;;  %v850_v22 = vld [vmem:[#allocation5 + $0x15f0] sm:$0xff] }
 0x2db   :  { %7475 = vmatpush2.bf16.msra.mxu0 %v11186_v36  ;;  %v11547_v8 = vcombine.high %v846_v14, %v850_v22  ;;  %v710_v13 = vld [vmem:[#allocation5 + $0x1190] sm:$0xff]  ;;  %v11546_v1 = vcombine.low %v846_v14, %v850_v22 }
 0x2dc   :  { %7476 = vmatprep.subr.bf16.mxu0 %v11179_v4  ;;  %v714_v53 = vld [vmem:[#allocation5 + $0x11b0] sm:$0xff] }
 0x2dd   :  { %7528 = vmatpush2.bf16.msra.mxu1 %v11314_v52  ;;  %v838_v51 = vld [vmem:[#allocation5 + $0x1590] sm:$0xff]  ;;  %v11411_v36 = vcombine.high %v710_v13, %v714_v53  ;;  %v13319_v52 = vpop.f32.mrf.mxu1 }
 0x2de   :  { %7529 = vmatprep.subr.bf16.mxu1 %v11307_v54  ;;  %v842_v11 = vld [vmem:[#allocation5 + $0x15b0] sm:$0xff]  ;;  %13885 = vst [vmem:[#allocation57_spill] sm:$0xff] %v13319_v52 }
 0x2df   :  { %7477 = vmatpush2.bf16.msra.mxu0 %v11178_v20  ;;  %v11539_v4 = vcombine.high %v838_v51, %v842_v11  ;;  %v702_v54 = vld [vmem:[#allocation5 + $0x1150] sm:$0xff]  ;;  %v11538_v58 = vcombine.low %v838_v51, %v842_v11 }
 0x2e0   :  { %7478 = vmatprep.subr.bf16.mxu0 %v11171_v37  ;;  %v706_v40 = vld [vmem:[#allocation5 + $0x1170] sm:$0xff]  ;;  %v11410_v37 = vcombine.low %v710_v13, %v714_v53 }
 0x2e1   :  { %7530 = vmatpush2.bf16.msra.mxu1 %v11306_v57  ;;  %v830_v16 = vld [vmem:[#allocation5 + $0x1550] sm:$0xff]  ;;  %v11403_v60 = vcombine.high %v702_v54, %v706_v40  ;;  %v11402_v51 = vcombine.low %v702_v54, %v706_v40 }
 0x2e2   :  { %7531 = vmatprep.subr.bf16.mxu1 %v11299_v31  ;;  %v834_v19 = vld [vmem:[#allocation5 + $0x1570] sm:$0xff] }
 0x2e3   :  { %7479 = vmatpush2.bf16.msra.mxu0 %v11170_v49  ;;  %v11531_v49 = vcombine.high %v830_v16, %v834_v19  ;;  %v826_v13 = vld [vmem:[#allocation5 + $0x1530] sm:$0xff] }
 0x2e4   :  { %7554 = vmatprep.subr.bf16.mxu0 %v11419_v0  ;;  %v690_v52 = vld [vmem:[#allocation5 + $0x10f0] sm:$0xff] }
 0x2e5   :  { %7532 = vmatpush2.bf16.msra.mxu1 %v11298_v32  ;;  %v698_v32 = vld [vmem:[#allocation5 + $0x1130] sm:$0xff] }
 0x2e6   :  { %7607 = vmatprep.subr.bf16.mxu1 %v11547_v8  ;;  %v7164_v18 = vpop.f32.mrf.mxu0  ;;  %7481 = vmatmul.mubr.bf16.vlgmr.msra.gmra.mxu0 %v13000_v6  ;;  %v822_v8 = vld [vmem:[#allocation5 + $0x1510] sm:$0xff] }
 0x2e7   :  { %v7165_v20 = vadd.f32 %v7164_v18, %v13291_v62  ;;  %7555 = vmatpush1.bf16.msra.mxu0 %v11418_v5  ;;  %7490 = vmatprep.mubr.bf16.mxu0 %v13006_v15  ;;  %v694_v62 = vld [vmem:[#allocation5 + $0x1110] sm:$0xff] }
 0x2e8   :  { %v7217_v57 = vpop.f32.mrf.mxu1  ;;  %7534 = vmatmul.mubr.bf16.vlgmr.msra.gmra.mxu1 %v13004_v7  ;;  %v13324_v31 = vpop.f32.mrf.mxu0  ;;  %7556 = vmatprep.subr.bf16.mxu0 %v11411_v36  ;;  %v11395_v36 = vcombine.high %v694_v62, %v698_v32 }
 0x2e9   :  { %7608 = vmatpush1.bf16.msra.mxu1 %v11546_v1  ;;  %13886 = vst [vmem:[#allocation58_spill] sm:$0xff] %v13324_v31  ;;  %v13326_v14 = vadd.f32 %v7217_v57, %v7165_v20  ;;  %7543 = vmatprep.mubr.bf16.mxu1 %v13009_v17  ;;  %v11530_v1 = vcombine.low %v830_v16, %v834_v19  ;;  %v686_v57 = vld [vmem:[#allocation5 + $0x10d0] sm:$0xff] }
 0x2ea   :  { %v13328_v22 = vpop.f32.mrf.mxu1  ;;  %7609 = vmatprep.subr.bf16.mxu1 %v11539_v4  ;;  %v7168_v0 = vpop.f32.mrf.mxu0  ;;  %v11523_v20 = vcombine.high %v822_v8, %v826_v13  ;;  %v11394_v16 = vcombine.low %v694_v62, %v698_v32  ;;  %v802_v31 = vld [vmem:[#allocation5 + $0x1470] sm:$0xff] }
 0x2eb   :  { %13887 = vst [vmem:[#allocation59_spill] sm:$0xff] %v13328_v22  ;;  %v7169_v53 = vadd.f32 %v7168_v0, %v13300_v41  ;;  %7557 = vmatpush1.bf16.msra.mxu0 %v11410_v37  ;;  %v814_v41 = vld [vmem:[#allocation5 + $0x14d0] sm:$0xff] }
 0x2ec   :  { %v7221_v5 = vpop.f32.mrf.mxu1  ;;  %v13333_v11 = vpop.f32.mrf.mxu0  ;;  %7558 = vmatprep.subr.bf16.mxu0 %v11403_v60  ;;  %v818_v37 = vld [vmem:[#allocation5 + $0x14f0] sm:$0xff]  ;;  %v11387_v60 = vcombine.high %v686_v57, %v690_v52 }
 0x2ed   :  { %7610 = vmatpush1.bf16.msra.mxu1 %v11538_v58  ;;  %13888 = vst [vmem:[#allocation60_spill] sm:$0xff] %v13333_v11  ;;  %v13335_v4 = vadd.f32 %v7221_v5, %v7169_v53  ;;  %v11522_v58 = vcombine.low %v822_v8, %v826_v13  ;;  %v11515_v5 = vcombine.high %v814_v41, %v818_v37  ;;  %v678_v22 = vld [vmem:[#allocation5 + $0x1090] sm:$0xff] }
 0x2ee   :  { %v13337_v18 = vpop.f32.mrf.mxu1  ;;  %7611 = vmatprep.subr.bf16.mxu1 %v11531_v49  ;;  %v7174_v23 = vpop.f32.mrf.mxu0  ;;  %7491 = vmatmul.mubr.bf16.gmra.mxu0 %v13017_v28  ;;  %v11386_v8 = vcombine.low %v686_v57, %v690_v52  ;;  %v11514_v13 = vcombine.low %v814_v41, %v818_v37  ;;  %v662_v57 = vld [vmem:[#allocation5 + $0x1010] sm:$0xff] }
 0x2ef   :  { %13889 = vst [vmem:[#allocation61_spill] sm:$0xff] %v13337_v18  ;;  %v7175_v54 = vadd.f32 %v7174_v23, %v13308_v48  ;;  %7559 = vmatpush1.bf16.msra.mxu0 %v11402_v51  ;;  %v682_v18 = vld [vmem:[#allocation5 + $0x10b0] sm:$0xff]  ;;  %7586 = vmatprep.mubr.bf16.mxu0 %v13028_v38 }
 0x2f0   :  { %v7227_v40 = vpop.f32.mrf.mxu1  ;;  %7544 = vmatmul.mubr.bf16.gmra.mxu1 %v13020_v30  ;;  %v7176_v19 = vpop.f32.mrf.mxu0  ;;  %7560 = vmatprep.subr.bf16.mxu0 %v11395_v36  ;;  %v806_v23 = vld [vmem:[#allocation5 + $0x1490] sm:$0xff]  ;;  %v11378_v11 = vcombine.low %v678_v22, %v682_v18 }
 0x2f1   :  { %7612 = vmatpush1.bf16.msra.mxu1 %v11530_v1  ;;  %v7177_v49 = vadd.f32 %v7176_v19, %v13313_v10  ;;  %v13343_v0 = vadd.f32 %v7227_v40, %v7175_v54  ;;  %v810_v51 = vld [vmem:[#allocation5 + $0x14b0] sm:$0xff]  ;;  %7639 = vmatprep.mubr.bf16.mxu1 %v13033_v39  ;;  %v11379_v1 = vcombine.high %v678_v22, %v682_v18 }
 0x2f2   :  { %v7229_v53 = vpop.f32.mrf.mxu1  ;;  %7613 = vmatprep.subr.bf16.mxu1 %v11523_v20  ;;  %v7178_v48 = vpop.f32.mrf.mxu0  ;;  %v11507_v20 = vcombine.high %v806_v23, %v810_v51  ;;  %v670_v54 = vld [vmem:[#allocation5 + $0x1050] sm:$0xff] }
 0x2f3   :  { %v7179_v62 = vadd.f32 %v7178_v48, %v13315_v9  ;;  %v13348_v32 = vadd.f32 %v7229_v53, %v7177_v49  ;;  %7561 = vmatpush1.bf16.msra.mxu0 %v11394_v16  ;;  %v674_v40 = vld [vmem:[#allocation5 + $0x1070] sm:$0xff]  ;;  %v11506_v9 = vcombine.low %v806_v23, %v810_v51 }
 0x2f4   :  { %v7231_v10 = vpop.f32.mrf.mxu1  ;;  %7562 = vmatprep.subr.bf16.mxu0 %v11387_v60  ;;  %v798_v19 = vld [vmem:[#allocation5 + $0x1450] sm:$0xff]  ;;  %v11371_v16 = vcombine.high %v670_v54, %v674_v40  ;;  %v11370_v60 = vcombine.low %v670_v54, %v674_v40 }
 0x2f5   :  { %13890 = vst [vmem:[#allocation62_spill] sm:$0xff] %v13348_v32  ;;  %7614 = vmatpush1.bf16.msra.mxu1 %v11522_v58  ;;  %v13350_v36 = vadd.f32 %v7231_v10, %v7179_v62  ;;  %v11499_v52 = vcombine.high %v798_v19, %v802_v31  ;;  %v666_v58 = vld [vmem:[#allocation5 + $0x1030] sm:$0xff]  ;;  %v11498_v49 = vcombine.low %v798_v19, %v802_v31 }
 0x2f6   :  { %7615 = vmatprep.subr.bf16.mxu1 %v11515_v5  ;;  %v790_v41 = vld [vmem:[#allocation5 + $0x1410] sm:$0xff]  ;;  %v11363_v53 = vcombine.high %v662_v57, %v666_v58  ;;  %v11362_v23 = vcombine.low %v662_v57, %v666_v58 }
 0x2f7   :  { %7563 = vmatpush1.bf16.msra.mxu0 %v11386_v8  ;;  %v794_v37 = vld [vmem:[#allocation5 + $0x1430] sm:$0xff] }
 0x2f8   :  { %7564 = vmatprep.subr.bf16.mxu0 %v11379_v1  ;;  %v11491_v5 = vcombine.high %v790_v41, %v794_v37  ;;  %v782_v48 = vld [vmem:[#allocation5 + $0x13d0] sm:$0xff]  ;;  %v11490_v51 = vcombine.low %v790_v41, %v794_v37 }
 0x2f9   :  { %7616 = vmatpush1.bf16.msra.mxu1 %v11514_v13  ;;  %v786_v22 = vld [vmem:[#allocation5 + $0x13f0] sm:$0xff] }
 0x2fa   :  { %7617 = vmatprep.subr.bf16.mxu1 %v11507_v20  ;;  %v910_v18 = vld [vmem:[#allocation5 + $0x17d0] sm:$0xff]  ;;  %v11483_v10 = vcombine.high %v782_v48, %v786_v22  ;;  %v11482_v31 = vcombine.low %v782_v48, %v786_v22 }
 0x2fb   :  { %7565 = vmatpush1.bf16.msra.mxu0 %v11378_v11  ;;  %v914_v62 = vld [vmem:[#allocation5 + $0x17f0] sm:$0xff] }
 0x2fc   :  { %7566 = vmatprep.subr.bf16.mxu0 %v11371_v16  ;;  %v11611_v8 = vcombine.high %v910_v18, %v914_v62  ;;  %v774_v11 = vld [vmem:[#allocation5 + $0x1390] sm:$0xff]  ;;  %v11610_v54 = vcombine.low %v910_v18, %v914_v62 }
 0x2fd   :  { %7618 = vmatpush1.bf16.msra.mxu1 %v11506_v9  ;;  %v778_v13 = vld [vmem:[#allocation5 + $0x13b0] sm:$0xff] }
 0x2fe   :  { %7619 = vmatprep.subr.bf16.mxu1 %v11499_v52  ;;  %v902_v1 = vld [vmem:[#allocation5 + $0x1790] sm:$0xff]  ;;  %v11475_v40 = vcombine.high %v774_v11, %v778_v13  ;;  %v11474_v58 = vcombine.low %v774_v11, %v778_v13 }
 0x2ff   :  { %7567 = vmatpush1.bf16.msra.mxu0 %v11370_v60  ;;  %v906_v20 = vld [vmem:[#allocation5 + $0x17b0] sm:$0xff] }
 0x300   :  { %7568 = vmatprep.subr.bf16.mxu0 %v11363_v53  ;;  %v11603_v19 = vcombine.high %v902_v1, %v906_v20  ;;  %v766_v9 = vld [vmem:[#allocation5 + $0x1350] sm:$0xff]  ;;  %v11602_v41 = vcombine.low %v902_v1, %v906_v20 }
 0x301   :  { %7620 = vmatpush1.bf16.msra.mxu1 %v11498_v49  ;;  %v770_v16 = vld [vmem:[#allocation5 + $0x1370] sm:$0xff] }
 0x302   :  { %7621 = vmatprep.subr.bf16.mxu1 %v11491_v5  ;;  %v894_v52 = vld [vmem:[#allocation5 + $0x1750] sm:$0xff]  ;;  %v11467_v37 = vcombine.high %v766_v9, %v770_v16  ;;  %v11466_v22 = vcombine.low %v766_v9, %v770_v16 }
 0x303   :  { %7569 = vmatpush1.bf16.msra.mxu0 %v11362_v23  ;;  %v898_v57 = vld [vmem:[#allocation5 + $0x1770] sm:$0xff] }
 0x304   :  { %7570 = vmatprep.subr.bf16.mxu0 %v11483_v10  ;;  %v11595_v60 = vcombine.high %v894_v52, %v898_v57  ;;  %v758_v49 = vld [vmem:[#allocation5 + $0x1310] sm:$0xff]  ;;  %v11594_v18 = vcombine.low %v894_v52, %v898_v57 }
 0x305   :  { %7622 = vmatpush1.bf16.msra.mxu1 %v11490_v51  ;;  %v762_v53 = vld [vmem:[#allocation5 + $0x1330] sm:$0xff] }
 0x306   :  { %7623 = vmatprep.subr.bf16.mxu1 %v11611_v8  ;;  %v886_v5 = vld [vmem:[#allocation5 + $0x1710] sm:$0xff]  ;;  %v11459_v62 = vcombine.high %v758_v49, %v762_v53  ;;  %v11458_v13 = vcombine.low %v758_v49, %v762_v53 }
 0x307   :  { %7571 = vmatpush2.bf16.msra.mxu0 %v11482_v31  ;;  %v890_v48 = vld [vmem:[#allocation5 + $0x1730] sm:$0xff] }
 0x308   :  { %7572 = vmatprep.subr.bf16.mxu0 %v11475_v40  ;;  %v11587_v23 = vcombine.high %v886_v5, %v890_v48  ;;  %v750_v51 = vld [vmem:[#allocation5 + $0x12d0] sm:$0xff]  ;;  %v11586_v1 = vcombine.low %v886_v5, %v890_v48 }
 0x309   :  { %7624 = vmatpush2.bf16.msra.mxu1 %v11610_v54  ;;  %v754_v10 = vld [vmem:[#allocation5 + $0x12f0] sm:$0xff] }
 0x30a   :  { %7625 = vmatprep.subr.bf16.mxu1 %v11603_v19  ;;  %v878_v8 = vld [vmem:[#allocation5 + $0x16d0] sm:$0xff]  ;;  %v11451_v20 = vcombine.high %v750_v51, %v754_v10  ;;  %v11450_v16 = vcombine.low %v750_v51, %v754_v10 }
 0x30b   :  { %7573 = vmatpush2.bf16.msra.mxu0 %v11474_v58  ;;  %v882_v11 = vld [vmem:[#allocation5 + $0x16f0] sm:$0xff] }
 0x30c   :  { %7574 = vmatprep.subr.bf16.mxu0 %v11467_v37  ;;  %v11579_v31 = vcombine.high %v878_v8, %v882_v11  ;;  %v742_v54 = vld [vmem:[#allocation5 + $0x1290] sm:$0xff]  ;;  %v11578_v52 = vcombine.low %v878_v8, %v882_v11 }
 0x30d   :  { %7626 = vmatpush2.bf16.msra.mxu1 %v11602_v41  ;;  %v746_v40 = vld [vmem:[#allocation5 + $0x12b0] sm:$0xff] }
 0x30e   :  { %7627 = vmatprep.subr.bf16.mxu1 %v11595_v60  ;;  %v870_v19 = vld [vmem:[#allocation5 + $0x1690] sm:$0xff]  ;;  %v11443_v57 = vcombine.high %v742_v54, %v746_v40  ;;  %v11442_v53 = vcombine.low %v742_v54, %v746_v40 }
 0x30f   :  { %7575 = vmatpush2.bf16.msra.mxu0 %v11466_v22  ;;  %v874_v9 = vld [vmem:[#allocation5 + $0x16b0] sm:$0xff] }
 0x310   :  { %7576 = vmatprep.subr.bf16.mxu0 %v11459_v62  ;;  %v11571_v58 = vcombine.high %v870_v19, %v874_v9  ;;  %v734_v41 = vld [vmem:[#allocation5 + $0x1250] sm:$0xff]  ;;  %v11570_v5 = vcombine.low %v870_v19, %v874_v9 }
 0x311   :  { %7628 = vmatpush2.bf16.msra.mxu1 %v11594_v18  ;;  %v738_v37 = vld [vmem:[#allocation5 + $0x1270] sm:$0xff] }
 0x312   :  { %7629 = vmatprep.subr.bf16.mxu1 %v11587_v23  ;;  %v862_v60 = vld [vmem:[#allocation5 + $0x1650] sm:$0xff]  ;;  %v11435_v48 = vcombine.high %v734_v41, %v738_v37  ;;  %v11434_v10 = vcombine.low %v734_v41, %v738_v37 }
 0x313   :  { %7577 = vmatpush2.bf16.msra.mxu0 %v11458_v13  ;;  %v866_v49 = vld [vmem:[#allocation5 + $0x1670] sm:$0xff] }
 0x314   :  { %7578 = vmatprep.subr.bf16.mxu0 %v11451_v20  ;;  %v11563_v22 = vcombine.high %v862_v60, %v866_v49  ;;  %v726_v18 = vld [vmem:[#allocation5 + $0x1210] sm:$0xff]  ;;  %v11562_v8 = vcombine.low %v862_v60, %v866_v49  ;;  %v13352_v60 = vpop.f32.mrf.mxu0 }
 0x315   :  { %7630 = vmatpush2.bf16.msra.mxu1 %v11586_v1  ;;  %v730_v62 = vld [vmem:[#allocation5 + $0x1230] sm:$0xff]  ;;  %13891 = vst [vmem:[#allocation63_spill] sm:$0xff] %v13352_v60 }
 0x316   :  { %7631 = vmatprep.subr.bf16.mxu1 %v11579_v31  ;;  %v854_v23 = vld [vmem:[#allocation5 + $0x1610] sm:$0xff]  ;;  %v11427_v11 = vcombine.high %v726_v18, %v730_v62  ;;  %v11426_v40 = vcombine.low %v726_v18, %v730_v62 }
 0x317   :  { %7579 = vmatpush2.bf16.msra.mxu0 %v11450_v16  ;;  %v858_v51 = vld [vmem:[#allocation5 + $0x1630] sm:$0xff] }
 0x318   :  { %7580 = vmatprep.subr.bf16.mxu0 %v11443_v57  ;;  %v11555_v13 = vcombine.high %v854_v23, %v858_v51  ;;  %v974_v1 = vld [vmem:[#allocation5 + $0x19d0] sm:$0xff]  ;;  %v11554_v19 = vcombine.low %v854_v23, %v858_v51 }
 0x319   :  { %7632 = vmatpush2.bf16.msra.mxu1 %v11578_v52  ;;  %v978_v20 = vld [vmem:[#allocation5 + $0x19f0] sm:$0xff] }
 0x31a   :  { %7633 = vmatprep.subr.bf16.mxu1 %v11571_v58  ;;  %v1102_v31 = vld [vmem:[#allocation5 + $0x1dd0] sm:$0xff]  ;;  %v11675_v9 = vcombine.high %v974_v1, %v978_v20  ;;  %v11674_v37 = vcombine.low %v974_v1, %v978_v20 }
 0x31b   :  { %7581 = vmatpush2.bf16.msra.mxu0 %v11442_v53  ;;  %v1106_v54 = vld [vmem:[#allocation5 + $0x1df0] sm:$0xff] }
 0x31c   :  { %7582 = vmatprep.subr.bf16.mxu0 %v11435_v48  ;;  %v11803_v16 = vcombine.high %v1102_v31, %v1106_v54  ;;  %v966_v52 = vld [vmem:[#allocation5 + $0x1990] sm:$0xff]  ;;  %v11802_v49 = vcombine.low %v1102_v31, %v1106_v54 }
 0x31d   :  { %7634 = vmatpush2.bf16.msra.mxu1 %v11570_v5  ;;  %v970_v57 = vld [vmem:[#allocation5 + $0x19b0] sm:$0xff]  ;;  %v13354_v5 = vpop.f32.mrf.mxu1 }
 0x31e   :  { %7635 = vmatprep.subr.bf16.mxu1 %v11563_v22  ;;  %v1094_v58 = vld [vmem:[#allocation5 + $0x1d90] sm:$0xff]  ;;  %v11667_v53 = vcombine.high %v966_v52, %v970_v57  ;;  %13892 = vst [vmem:[#allocation64_spill] sm:$0xff] %v13354_v5 }
 0x31f   :  { %7583 = vmatpush2.bf16.msra.mxu0 %v11434_v10  ;;  %v1098_v41 = vld [vmem:[#allocation5 + $0x1db0] sm:$0xff] }
 0x320   :  { %7584 = vmatprep.subr.bf16.mxu0 %v11427_v11  ;;  %v11795_v48 = vcombine.high %v1094_v58, %v1098_v41  ;;  %v958_v22 = vld [vmem:[#allocation5 + $0x1950] sm:$0xff]  ;;  %v11666_v11 = vcombine.low %v966_v52, %v970_v57  ;;  %v11794_v1 = vcombine.low %v1094_v58, %v1098_v41 }
 0x321   :  { %7636 = vmatpush2.bf16.msra.mxu1 %v11562_v8  ;;  %v962_v18 = vld [vmem:[#allocation5 + $0x1970] sm:$0xff] }
 0x322   :  { %7637 = vmatprep.subr.bf16.mxu1 %v11555_v13  ;;  %v1086_v23 = vld [vmem:[#allocation5 + $0x1d50] sm:$0xff]  ;;  %v11659_v20 = vcombine.high %v958_v22, %v962_v18  ;;  %v11658_v58 = vcombine.low %v958_v22, %v962_v18 }
 0x323   :  { %7585 = vmatpush2.bf16.msra.mxu0 %v11426_v40  ;;  %v1090_v51 = vld [vmem:[#allocation5 + $0x1d70] sm:$0xff] }
 0x324   :  { %7660 = vmatprep.subr.bf16.mxu0 %v11675_v9  ;;  %v11787_v54 = vcombine.high %v1086_v23, %v1090_v51  ;;  %v950_v40 = vld [vmem:[#allocation5 + $0x1910] sm:$0xff] }
 0x325   :  { %7638 = vmatpush2.bf16.msra.mxu1 %v11554_v19  ;;  %v954_v19 = vld [vmem:[#allocation5 + $0x1930] sm:$0xff] }
 0x326   :  { %7713 = vmatprep.subr.bf16.mxu1 %v11803_v16  ;;  %v7270_v62 = vpop.f32.mrf.mxu0  ;;  %7587 = vmatmul.mubr.bf16.vlgmr.msra.gmra.mxu0 %v13040_v43  ;;  %v1078_v9 = vld [vmem:[#allocation5 + $0x1d10] sm:$0xff] }
 0x327   :  { %v7271_v10 = vadd.f32 %v7270_v62, %v13326_v14  ;;  %7661 = vmatpush1.bf16.msra.mxu0 %v11674_v37  ;;  %7596 = vmatprep.mubr.bf16.mxu0 %v13046_v26  ;;  %v1082_v16 = vld [vmem:[#allocation5 + $0x1d30] sm:$0xff] }
 0x328   :  { %v7323_v8 = vpop.f32.mrf.mxu1  ;;  %7640 = vmatmul.mubr.bf16.vlgmr.msra.gmra.mxu1 %v13044_v44  ;;  %v13359_v13 = vpop.f32.mrf.mxu0  ;;  %7662 = vmatprep.subr.bf16.mxu0 %v11667_v53  ;;  %v11651_v53 = vcombine.high %v950_v40, %v954_v19  ;;  %v11779_v32 = vcombine.high %v1078_v9, %v1082_v16  ;;  %v942_v5 = vld [vmem:[#allocation5 + $0x18d0] sm:$0xff] }
 0x329   :  { %7714 = vmatpush1.bf16.msra.mxu1 %v11802_v49  ;;  %7649 = vmatprep.mubr.bf16.mxu1 %v13049_v24  ;;  %v7324_v52 = vadd.f32 %v7323_v8, %v7271_v10  ;;  %v11786_v49 = vcombine.low %v1086_v23, %v1090_v51  ;;  %v946_v60 = vld [vmem:[#allocation5 + $0x18f0] sm:$0xff]  ;;  %v11650_v23 = vcombine.low %v950_v40, %v954_v19 }
 0x32a   :  { %v13361_v31 = vpop.f32.mrf.mxu1  ;;  %7715 = vmatprep.subr.bf16.mxu1 %v11795_v48  ;;  %v7274_v14 = vpop.f32.mrf.mxu0  ;;  %v1074_v10 = vld [vmem:[#allocation5 + $0x1cf0] sm:$0xff] }
 0x32b   :  { %13893 = vst [vmem:[#allocation65_spill] sm:$0xff] %v13361_v31  ;;  %v7275_v57 = vadd.f32 %v7274_v14, %v13335_v4  ;;  %7663 = vmatpush1.bf16.msra.mxu0 %v11666_v11  ;;  %v1070_v4 = vld [vmem:[#allocation5 + $0x1cd0] sm:$0xff]  ;;  %v8192_v8 = vmax.f32 %v7324_v52, 0.0 }
 0x32c   :  { %v7327_v37 = vpop.f32.mrf.mxu1  ;;  %v13366_v41 = vpop.f32.mrf.mxu0  ;;  %7664 = vmatprep.subr.bf16.mxu0 %v11659_v20  ;;  %v11643_v20 = vcombine.high %v942_v5, %v946_v60  ;;  %v11771_v52 = vcombine.high %v1070_v4, %v1074_v10 }
 0x32d   :  { %7716 = vmatpush1.bf16.msra.mxu1 %v11794_v1  ;;  %v7328_v48 = vadd.f32 %v7327_v37, %v7275_v57  ;;  %v11778_v1 = vcombine.low %v1078_v9, %v1082_v16  ;;  %v934_v57 = vld [vmem:[#allocation5 + $0x1890] sm:$0xff]  ;;  %v11642_v16 = vcombine.low %v942_v5, %v946_v60 }
 0x32e   :  { %v13368_v62 = vpop.f32.mrf.mxu1  ;;  %7717 = vmatprep.subr.bf16.mxu1 %v11787_v54  ;;  %v7280_v31 = vpop.f32.mrf.mxu0  ;;  %7597 = vmatmul.mubr.bf16.gmra.mxu0 %v13061_v45  ;;  %v938_v37 = vld [vmem:[#allocation5 + $0x18b0] sm:$0xff] }
 0x32f   :  { %13894 = vst [vmem:[#allocation66_spill] sm:$0xff] %v13368_v62  ;;  %v8200_v22 = vmax.f32 %v7328_v48, 0.0  ;;  %v7281_v18 = vadd.f32 %v7280_v31, %v13343_v0  ;;  %7665 = vmatpush1.bf16.msra.mxu0 %v11658_v58  ;;  %7692 = vmatprep.mubr.bf16.mxu0 %v13068_v2  ;;  %v1062_v31 = vld [vmem:[#allocation5 + $0x1c90] sm:$0xff] }
 0x330   :  { %v7333_v11 = vpop.f32.mrf.mxu1  ;;  %7650 = vmatmul.mubr.bf16.gmra.mxu1 %v13064_v50  ;;  %v13373_v51 = vpop.f32.mrf.mxu0  ;;  %7666 = vmatprep.subr.bf16.mxu0 %v11651_v53  ;;  %v1066_v58 = vld [vmem:[#allocation5 + $0x1cb0] sm:$0xff] }
 0x331   :  { %7718 = vmatpush1.bf16.msra.mxu1 %v11786_v49  ;;  %13895 = vst [vmem:[#allocation67_spill] sm:$0xff] %v13373_v51  ;;  %v13375_v54 = vpack.c.bf16 %v8200_v22, %v8192_v8  ;;  %7745 = vmatprep.mubr.bf16.mxu1 %v13073_v3  ;;  %v7334_v40 = vadd.f32 %v7333_v11, %v7281_v18  ;;  %v926_v8 = vld [vmem:[#allocation5 + $0x1850] sm:$0xff] }
 0x332   :  { %v13377_v14 = vpop.f32.mrf.mxu1  ;;  %7719 = vmatprep.subr.bf16.mxu1 %v11779_v32  ;;  %v7284_v0 = vpop.f32.mrf.mxu0  ;;  %v11770_v49 = vcombine.low %v1070_v4, %v1074_v10  ;;  %v11635_v32 = vcombine.high %v934_v57, %v938_v37  ;;  %v11763_v48 = vcombine.high %v1062_v31, %v1066_v58  ;;  %v930_v22 = vld [vmem:[#allocation5 + $0x1870] sm:$0xff]  ;;  %v11634_v18 = vcombine.low %v934_v57, %v938_v37 }
 0x333   :  { %13896 = vst [vmem:[#allocation68_spill] sm:$0xff] %v13375_v54  ;;  %13897 = vst [vmem:[#allocation69_spill] sm:$0xff] %v13377_v14  ;;  %v7285_v19 = vadd.f32 %v7284_v0, %v13350_v36  ;;  %7667 = vmatpush1.bf16.msra.mxu0 %v11650_v23  ;;  %v1054_v54 = vld [vmem:[#allocation5 + $0x1c50] sm:$0xff]  ;;  %v8208_v51 = vmax.f32 %v7334_v40, 0.0  ;;  %v11762_v36 = vcombine.low %v1062_v31, %v1066_v58 }
 0x334   :  { %v7337_v9 = vpop.f32.mrf.mxu1  ;;  %7668 = vmatprep.subr.bf16.mxu0 %v11643_v20  ;;  %v1058_v14 = vld [vmem:[#allocation5 + $0x1c70] sm:$0xff]  ;;  %v11627_v11 = vcombine.high %v926_v8, %v930_v22  ;;  %v11626_v20 = vcombine.low %v926_v8, %v930_v22 }
 0x335   :  { %7720 = vmatpush1.bf16.msra.mxu1 %v11778_v1  ;;  %v7338_v53 = vadd.f32 %v7337_v9, %v7285_v19  ;;  %v11755_v5 = vcombine.high %v1054_v54, %v1058_v14  ;;  %v918_v4 = vld [vmem:[#allocation5 + $0x1810] sm:$0xff] }
 0x336   :  { %7721 = vmatprep.subr.bf16.mxu1 %v11771_v52  ;;  %v922_v10 = vld [vmem:[#allocation5 + $0x1830] sm:$0xff]  ;;  %v11754_v52 = vcombine.low %v1054_v54, %v1058_v14 }
 0x337   :  { %v8216_v62 = vmax.f32 %v7338_v53, 0.0  ;;  %7669 = vmatpush1.bf16.msra.mxu0 %v11642_v16  ;;  %v1046_v23 = vld [vmem:[#allocation5 + $0x1c10] sm:$0xff]  ;;  %v11619_v0 = vcombine.high %v918_v4, %v922_v10 }
 0x338   :  { %7670 = vmatprep.subr.bf16.mxu0 %v11635_v32  ;;  %v1050_v1 = vld [vmem:[#allocation5 + $0x1c30] sm:$0xff] }
 0x339   :  { %7722 = vmatpush1.bf16.msra.mxu1 %v11770_v49  ;;  %v13382_v60 = vpack.c.bf16 %v8216_v62, %v8208_v51  ;;  %v11747_v57 = vcombine.high %v1046_v23, %v1050_v1  ;;  %v1038_v37 = vld [vmem:[#allocation5 + $0x1bd0] sm:$0xff]  ;;  %v11618_v62 = vcombine.low %v918_v4, %v922_v10  ;;  %v11746_v51 = vcombine.low %v1046_v23, %v1050_v1 }
 0x33a   :  { %7723 = vmatprep.subr.bf16.mxu1 %v11763_v48  ;;  %v1042_v40 = vld [vmem:[#allocation5 + $0x1bf0] sm:$0xff] }
 0x33b   :  { %13898 = vst [vmem:[#allocation70_spill] sm:$0xff] %v13382_v60  ;;  %7671 = vmatpush1.bf16.msra.mxu0 %v11634_v18  ;;  %v1166_v31 = vld [vmem:[#allocation5 + $0x1fd0] sm:$0xff]  ;;  %v11739_v19 = vcombine.high %v1038_v37, %v1042_v40  ;;  %v11738_v54 = vcombine.low %v1038_v37, %v1042_v40 }
 0x33c   :  { %7672 = vmatprep.subr.bf16.mxu0 %v11627_v11  ;;  %v1170_v58 = vld [vmem:[#allocation5 + $0x1ff0] sm:$0xff] }
 0x33d   :  { %7724 = vmatpush1.bf16.msra.mxu1 %v11762_v36  ;;  %v11867_v9 = vcombine.high %v1166_v31, %v1170_v58  ;;  %v1030_v16 = vld [vmem:[#allocation5 + $0x1b90] sm:$0xff]  ;;  %v11866_v14 = vcombine.low %v1166_v31, %v1170_v58 }
 0x33e   :  { %7725 = vmatprep.subr.bf16.mxu1 %v11755_v5  ;;  %v1034_v49 = vld [vmem:[#allocation5 + $0x1bb0] sm:$0xff] }
 0x33f   :  { %7673 = vmatpush1.bf16.msra.mxu0 %v11626_v20  ;;  %v1158_v32 = vld [vmem:[#allocation5 + $0x1f90] sm:$0xff]  ;;  %v11731_v48 = vcombine.high %v1030_v16, %v1034_v49  ;;  %v11730_v5 = vcombine.low %v1030_v16, %v1034_v49 }
 0x340   :  { %7674 = vmatprep.subr.bf16.mxu0 %v11619_v0  ;;  %v1162_v53 = vld [vmem:[#allocation5 + $0x1fb0] sm:$0xff] }
 0x341   :  { %7726 = vmatpush1.bf16.msra.mxu1 %v11754_v52  ;;  %v11859_v8 = vcombine.high %v1158_v32, %v1162_v53  ;;  %v1022_v22 = vld [vmem:[#allocation5 + $0x1b50] sm:$0xff]  ;;  %v11858_v4 = vcombine.low %v1158_v32, %v1162_v53 }
 0x342   :  { %7727 = vmatprep.subr.bf16.mxu1 %v11747_v57  ;;  %v1026_v18 = vld [vmem:[#allocation5 + $0x1b70] sm:$0xff] }
 0x343   :  { %7675 = vmatpush1.bf16.msra.mxu0 %v11618_v62  ;;  %v1150_v36 = vld [vmem:[#allocation5 + $0x1f50] sm:$0xff]  ;;  %v11723_v10 = vcombine.high %v1022_v22, %v1026_v18  ;;  %v11722_v57 = vcombine.low %v1022_v22, %v1026_v18 }
 0x344   :  { %7676 = vmatprep.subr.bf16.mxu0 %v11739_v19  ;;  %v1154_v11 = vld [vmem:[#allocation5 + $0x1f70] sm:$0xff] }
 0x345   :  { %7728 = vmatpush1.bf16.msra.mxu1 %v11746_v51  ;;  %v11851_v23 = vcombine.high %v1150_v36, %v1154_v11  ;;  %v1014_v1 = vld [vmem:[#allocation5 + $0x1b10] sm:$0xff]  ;;  %v11850_v37 = vcombine.low %v1150_v36, %v1154_v11 }
 0x346   :  { %7729 = vmatprep.subr.bf16.mxu1 %v11867_v9  ;;  %v1018_v20 = vld [vmem:[#allocation5 + $0x1b30] sm:$0xff] }
 0x347   :  { %7677 = vmatpush2.bf16.msra.mxu0 %v11738_v54  ;;  %v1142_v52 = vld [vmem:[#allocation5 + $0x1f10] sm:$0xff]  ;;  %v11715_v40 = vcombine.high %v1014_v1, %v1018_v20  ;;  %v11714_v9 = vcombine.low %v1014_v1, %v1018_v20 }
 0x348   :  { %7678 = vmatprep.subr.bf16.mxu0 %v11731_v48  ;;  %v1146_v0 = vld [vmem:[#allocation5 + $0x1f30] sm:$0xff] }
 0x349   :  { %7730 = vmatpush2.bf16.msra.mxu1 %v11866_v14  ;;  %v11843_v31 = vcombine.high %v1142_v52, %v1146_v0  ;;  %v1006_v58 = vld [vmem:[#allocation5 + $0x1ad0] sm:$0xff]  ;;  %v11842_v16 = vcombine.low %v1142_v52, %v1146_v0 }
 0x34a   :  { %7731 = vmatprep.subr.bf16.mxu1 %v11859_v8  ;;  %v1010_v62 = vld [vmem:[#allocation5 + $0x1af0] sm:$0xff] }
 0x34b   :  { %7679 = vmatpush2.bf16.msra.mxu0 %v11730_v5  ;;  %v1134_v51 = vld [vmem:[#allocation5 + $0x1ed0] sm:$0xff]  ;;  %v11707_v49 = vcombine.high %v1006_v58, %v1010_v62  ;;  %v11706_v8 = vcombine.low %v1006_v58, %v1010_v62 }
 0x34c   :  { %7680 = vmatprep.subr.bf16.mxu0 %v11723_v10  ;;  %v1138_v19 = vld [vmem:[#allocation5 + $0x1ef0] sm:$0xff] }
 0x34d   :  { %7732 = vmatpush2.bf16.msra.mxu1 %v11858_v4  ;;  %v11835_v32 = vcombine.high %v1134_v51, %v1138_v19  ;;  %v998_v53 = vld [vmem:[#allocation5 + $0x1a90] sm:$0xff]  ;;  %v11834_v22 = vcombine.low %v1134_v51, %v1138_v19  ;;  %v207_v19 = vld [vmem:[#allocation5 + $0x1d8] sm:$0xff] }
 0x34e   :  { %7733 = vmatprep.subr.bf16.mxu1 %v11851_v23  ;;  %v1002_v54 = vld [vmem:[#allocation5 + $0x1ab0] sm:$0xff] }
 0x34f   :  { %7681 = vmatpush2.bf16.msra.mxu0 %v11722_v57  ;;  %v1126_v14 = vld [vmem:[#allocation5 + $0x1e90] sm:$0xff]  ;;  %v11699_v18 = vcombine.high %v998_v53, %v1002_v54  ;;  %v11698_v23 = vcombine.low %v998_v53, %v1002_v54  ;;  %v1192_v53 = vsub.s32 4, %v13079_v33 }
 0x350   :  { %7682 = vmatprep.subr.bf16.mxu0 %v11715_v40  ;;  %v1130_v48 = vld [vmem:[#allocation5 + $0x1eb0] sm:$0xff] }
 0x351   :  { %7734 = vmatpush2.bf16.msra.mxu1 %v11850_v37  ;;  %v11827_v36 = vcombine.high %v1126_v14, %v1130_v48  ;;  %v990_v11 = vld [vmem:[#allocation5 + $0x1a50] sm:$0xff]  ;;  %v11826_v1 = vcombine.low %v1126_v14, %v1130_v48 }
 0x352   :  { %7735 = vmatprep.subr.bf16.mxu1 %v11843_v31  ;;  %v994_v5 = vld [vmem:[#allocation5 + $0x1a70] sm:$0xff] }
 0x353   :  { %7683 = vmatpush2.bf16.msra.mxu0 %v11714_v9  ;;  %v1118_v4 = vld [vmem:[#allocation5 + $0x1e50] sm:$0xff]  ;;  %v11691_v20 = vcombine.high %v990_v11, %v994_v5  ;;  %v11690_v31 = vcombine.low %v990_v11, %v994_v5  ;;  %v211_v9 = vld [vmem:[#allocation5 + $0x1f8] sm:$0xff]  ;;  %v12691_v11 = vld [vmem:[#allocation7] sm:$0xff] }
 0x354   :  { %7684 = vmatprep.subr.bf16.mxu0 %v11707_v49  ;;  %v1122_v10 = vld [vmem:[#allocation5 + $0x1e70] sm:$0xff]  ;;  %v339_v49 = vld [vmem:[#allocation5 + $0x5f8] sm:$0xff]  ;;  %v10909_v14 = vcombine.high %v207_v19, %v211_v9  ;;  %v13385_v5 = vrot.slane %v12691_v11, %v1192_v53 }
 0x355   :  { %7736 = vmatpush2.bf16.msra.mxu1 %v11842_v16  ;;  %v11819_v52 = vcombine.high %v1118_v4, %v1122_v10  ;;  %v982_v0 = vld [vmem:[#allocation5 + $0x1a10] sm:$0xff]  ;;  %v11818_v58 = vcombine.low %v1118_v4, %v1122_v10  ;;  %v335_v16 = vld [vmem:[#allocation5 + $0x5d8] sm:$0xff]  ;;  %v10908_v4 = vcombine.low %v207_v19, %v211_v9  ;;  %v13387_v10 = vpop.f32.mrf.mxu0 }
 0x356   :  { %7737 = vmatprep.subr.bf16.mxu1 %v11835_v32  ;;  %v986_v57 = vld [vmem:[#allocation5 + $0x1a30] sm:$0xff]  ;;  %v11037_v48 = vcombine.high %v335_v16, %v339_v49  ;;  %13899 = vst [vmem:[#allocation71_spill] sm:$0xff] %v13387_v10  ;;  %v179_v10 = vld [vmem:[#allocation5 + $0xf8] sm:$0xff] }
 0x357   :  { %7685 = vmatpush2.bf16.msra.mxu0 %v11706_v8  ;;  %v1110_v37 = vld [vmem:[#allocation5 + $0x1e10] sm:$0xff]  ;;  %v11683_v62 = vcombine.high %v982_v0, %v986_v57  ;;  %v11682_v32 = vcombine.low %v982_v0, %v986_v57  ;;  %v199_v8 = vld [vmem:[#allocation5 + $0x198] sm:$0xff] }
 0x358   :  { %7686 = vmatprep.subr.bf16.mxu0 %v11699_v18  ;;  %v1114_v40 = vld [vmem:[#allocation5 + $0x1e30] sm:$0xff]  ;;  %v327_v18 = vld [vmem:[#allocation5 + $0x598] sm:$0xff] }
 0x359   :  { %7738 = vmatpush2.bf16.msra.mxu1 %v11834_v22  ;;  %v11811_v51 = vcombine.high %v1110_v37, %v1114_v40  ;;  %v11810_v54 = vcombine.low %v1110_v37, %v1114_v40  ;;  %v203_v22 = vld [vmem:[#allocation5 + $0x1b8] sm:$0xff] }
 0x35a   :  { %7739 = vmatprep.subr.bf16.mxu1 %v11827_v36  ;;  %v331_v36 = vld [vmem:[#allocation5 + $0x5b8] sm:$0xff] }
 0x35b   :  { %7687 = vmatpush2.bf16.msra.mxu0 %v11698_v23  ;;  %v11036_v23 = vcombine.low %v335_v16, %v339_v49  ;;  %v191_v0 = vld [vmem:[#allocation5 + $0x158] sm:$0xff]  ;;  %v11028_v9 = vcombine.low %v327_v18, %v331_v36 }
 0x35c   :  { %7688 = vmatprep.subr.bf16.mxu0 %v11691_v20  ;;  %v13389_v20 = vpop.f32.mrf.mxu1  ;;  %v195_v57 = vld [vmem:[#allocation5 + $0x178] sm:$0xff] }
 0x35d   :  { %7740 = vmatpush2.bf16.msra.mxu1 %v11826_v1  ;;  %v10901_v1 = vcombine.high %v199_v8, %v203_v22  ;;  %13900 = vst [vmem:[#allocation72_spill] sm:$0xff] %v13389_v20  ;;  %v319_v40 = vld [vmem:[#allocation5 + $0x558] sm:$0xff]  ;;  %v10893_v16 = vcombine.high %v191_v0, %v195_v57 }
 0x35e   :  { %7741 = vmatprep.subr.bf16.mxu1 %v11819_v52  ;;  %v11029_v52 = vcombine.high %v327_v18, %v331_v36  ;;  %v175_v20 = vld [vmem:[#allocation5 + $0xd8] sm:$0xff] }
 0x35f   :  { %7689 = vmatpush2.bf16.msra.mxu0 %v11690_v31  ;;  %v323_v31 = vld [vmem:[#allocation5 + $0x578] sm:$0xff] }
 0x360   :  { %7690 = vmatprep.subr.bf16.mxu0 %v11683_v62  ;;  %v11021_v53 = vcombine.high %v319_v40, %v323_v31 }
 0x361   :  { %7742 = vmatpush2.bf16.msra.mxu1 %v11818_v58 }
 0x362   :  { %7743 = vmatprep.subr.bf16.mxu1 %v11811_v51  ;;  %v10900_v51 = vcombine.low %v199_v8, %v203_v22  ;;  %v311_v8 = vld [vmem:[#allocation5 + $0x518] sm:$0xff] }
 0x363   :  { %7691 = vmatpush2.bf16.msra.mxu0 %v11682_v32  ;;  %v315_v22 = vld [vmem:[#allocation5 + $0x538] sm:$0xff] }
 0x364   :  { %7766 = vmatprep.subr.bf16.mxu0 %v10909_v14  ;;  %v187_v14 = vld [vmem:[#allocation5 + $0x138] sm:$0xff]  ;;  %v11013_v60 = vcombine.high %v311_v8, %v315_v22 }
 0x365   :  { %7744 = vmatpush2.bf16.msra.mxu1 %v11810_v54  ;;  %v183_v54 = vld [vmem:[#allocation5 + $0x118] sm:$0xff] }
 0x366   :  { %7819 = vmatprep.subr.bf16.mxu1 %v11037_v48  ;;  %v7376_v37 = vpop.f32.mrf.mxu0  ;;  %7693 = vmatmul.mubr.bf16.vlgmr.msra.gmra.mxu0 %v13089_v12 }
 0x367   :  { %v7377_v58 = vadd.f32 %v7376_v37, %v13385_v5  ;;  %7767 = vmatpush1.bf16.msra.mxu0 %v10908_v4  ;;  %7702 = vmatprep.mubr.bf16.mxu0 %v13101_v27  ;;  %v1196_v4 = vsub.s32 5, %v13079_v33  ;;  %v10885_v37 = vcombine.high %v183_v54, %v187_v14  ;;  %v307_v33 = vld [vmem:[#allocation5 + $0x4f8] sm:$0xff] }
 0x368   :  { %v7429_v62 = vpop.f32.mrf.mxu1  ;;  %7746 = vmatmul.mubr.bf16.vlgmr.msra.gmra.mxu1 %v13093_v47  ;;  %v13394_v19 = vpop.f32.mrf.mxu0  ;;  %7768 = vmatprep.subr.bf16.mxu0 %v10901_v1 }
 0x369   :  { %7820 = vmatpush1.bf16.msra.mxu1 %v11036_v23  ;;  %13901 = vst [vmem:[#allocation73_spill] sm:$0xff] %v13394_v19  ;;  %v13396_v49 = vadd.f32 %v7429_v62, %v7377_v58  ;;  %7755 = vmatprep.mubr.bf16.mxu1 %v13104_v34  ;;  %v10892_v23 = vcombine.low %v191_v0, %v195_v57 }
 0x36a   :  { %v13398_v32 = vpop.f32.mrf.mxu1  ;;  %7821 = vmatprep.subr.bf16.mxu1 %v11029_v52  ;;  %v7380_v48 = vpop.f32.mrf.mxu0  ;;  %v11020_v52 = vcombine.low %v319_v40, %v323_v31  ;;  %v13411_v0 = vrot.slane %v12691_v11, %v1196_v4  ;;  %v10884_v57 = vcombine.low %v183_v54, %v187_v14  ;;  %v295_v54 = vld [vmem:[#allocation5 + $0x498] sm:$0xff] }
 0x36b   :  { %13902 = vst [vmem:[#allocation74_spill] sm:$0xff] %v13398_v32  ;;  %v7381_v18 = vadd.f32 %v7380_v48, %v13385_v5  ;;  %7769 = vmatpush1.bf16.msra.mxu0 %v10900_v51  ;;  %v303_v48 = vld [vmem:[#allocation5 + $0x4d8] sm:$0xff] }
 0x36c   :  { %v7433_v36 = vpop.f32.mrf.mxu1  ;;  %v13404_v1 = vpop.f32.mrf.mxu0  ;;  %7770 = vmatprep.subr.bf16.mxu0 %v10893_v16  ;;  %v10877_v16 = vcombine.high %v175_v20, %v179_v10  ;;  %v171_v32 = vld [vmem:[#allocation5 + $0xb8] sm:$0xff] }
 0x36d   :  { %7822 = vmatpush1.bf16.msra.mxu1 %v11028_v9  ;;  %13903 = vst [vmem:[#allocation75_spill] sm:$0xff] %v13404_v1  ;;  %v13406_v58 = vadd.f32 %v7433_v36, %v7381_v18  ;;  %v11012_v9 = vcombine.low %v311_v8, %v315_v22  ;;  %v11005_v18 = vcombine.high %v303_v48, %v307_v33  ;;  %v167_v36 = vld [vmem:[#allocation5 + $0x98] sm:$0xff] }
 0x36e   :  { %v13408_v62 = vpop.f32.mrf.mxu1  ;;  %7823 = vmatprep.subr.bf16.mxu1 %v11021_v53  ;;  %7703 = vmatmul.mubr.bf16.gmra.mxu0 %v13112_v61  ;;  %v7386_v51 = vpop.f32.mrf.mxu0  ;;  %v299_v14 = vld [vmem:[#allocation5 + $0x4b8] sm:$0xff]  ;;  %v10876_v8 = vcombine.low %v175_v20, %v179_v10 }
 0x36f   :  { %13904 = vst [vmem:[#allocation76_spill] sm:$0xff] %v13408_v62  ;;  %7771 = vmatpush1.bf16.msra.mxu0 %v10892_v23  ;;  %v7387_v40 = vadd.f32 %v7386_v51, %v13385_v5  ;;  %7798 = vmatprep.mubr.bf16.mxu0 %v13876_v59  ;;  %v10869_v51 = vcombine.high %v167_v36, %v171_v32  ;;  %v159_v59 = vld [vmem:[#allocation5 + $0x58] sm:$0xff] }
 0x370   :  { %7756 = vmatmul.mubr.bf16.gmra.mxu1 %v13118_v29  ;;  %v7439_v31 = vpop.f32.mrf.mxu1  ;;  %7772 = vmatprep.subr.bf16.mxu0 %v10885_v37  ;;  %v7388_v53 = vpop.f32.mrf.mxu0  ;;  %v11004_v37 = vcombine.low %v303_v48, %v307_v33  ;;  %v287_v10 = vld [vmem:[#allocation5 + $0x458] sm:$0xff]  ;;  %v10996_v33 = vcombine.low %v295_v54, %v299_v14 }
 0x371   :  { %7824 = vmatpush1.bf16.msra.mxu1 %v11020_v52  ;;  %v7389_v62 = vadd.f32 %v7388_v53, %v13411_v0  ;;  %v13416_v11 = vadd.f32 %v7439_v31, %v7387_v40  ;;  %7851 = vmatprep.mubr.bf16.mxu1 %v12954_v63  ;;  %v10997_v31 = vcombine.high %v295_v54, %v299_v14  ;;  %v163_v53 = vld [vmem:[#allocation5 + $0x78] sm:$0xff] }
 0x372   :  { %7825 = vmatprep.subr.bf16.mxu1 %v11013_v60  ;;  %v7441_v4 = vpop.f32.mrf.mxu1  ;;  %v7390_v23 = vpop.f32.mrf.mxu0  ;;  %v291_v20 = vld [vmem:[#allocation5 + $0x478] sm:$0xff]  ;;  %v10861_v48 = vcombine.high %v159_v59, %v163_v53 }
 0x373   :  { %7773 = vmatpush1.bf16.msra.mxu0 %v10884_v57  ;;  %v7391_v22 = vadd.f32 %v7390_v23, %v13385_v5  ;;  %v13421_v60 = vadd.f32 %v7441_v4, %v7389_v62  ;;  %v10868_v5 = vcombine.low %v167_v36, %v171_v32  ;;  %v10989_v57 = vcombine.high %v287_v10, %v291_v20  ;;  %v283_v4 = vld [vmem:[#allocation5 + $0x438] sm:$0xff] }
 0x374   :  { %v7443_v52 = vpop.f32.mrf.mxu1  ;;  %7774 = vmatprep.subr.bf16.mxu0 %v10877_v16  ;;  %v7392_v40 = vpop.f32.mrf.mxu0  ;;  %v155_v16 = vld [vmem:[#allocation5 + $0x38] sm:$0xff]  ;;  %v10860_v23 = vcombine.low %v159_v59, %v163_v53 }
 0x375   :  { %7826 = vmatpush1.bf16.msra.mxu1 %v11012_v9  ;;  %v7393_v19 = vadd.f32 %v7392_v40, %v13411_v0  ;;  %v13424_v1 = vadd.f32 %v7443_v52, %v7391_v22  ;;  %v151_v9 = vld [vmem:[#allocation5 + $0x18] sm:$0xff]  ;;  %v10988_v22 = vcombine.low %v287_v10, %v291_v20 }
 0x376   :  { %7827 = vmatprep.subr.bf16.mxu1 %v11005_v18  ;;  %v7445_v63 = vpop.f32.mrf.mxu1  ;;  %v279_v18 = vld [vmem:[#allocation5 + $0x418] sm:$0xff]  ;;  %v10853_v52 = vcombine.high %v151_v9, %v155_v16  ;;  %v10852_v54 = vcombine.low %v151_v9, %v155_v16 }
 0x377   :  { %7775 = vmatpush1.bf16.msra.mxu0 %v10876_v8  ;;  %v13426_v62 = vadd.f32 %v7445_v63, %v7393_v19  ;;  %v10981_v32 = vcombine.high %v279_v18, %v283_v4  ;;  %v271_v19 = vld [vmem:[#allocation5 + $0x3d8] sm:$0xff]  ;;  %v10980_v14 = vcombine.low %v279_v18, %v283_v4 }
 0x378   :  { %7776 = vmatprep.subr.bf16.mxu0 %v10869_v51  ;;  %v275_v36 = vld [vmem:[#allocation5 + $0x3f8] sm:$0xff] }
 0x379   :  { %7828 = vmatpush1.bf16.msra.mxu1 %v11004_v37  ;;  %v399_v8 = vld [vmem:[#allocation5 + $0x7d8] sm:$0xff]  ;;  %v10973_v51 = vcombine.high %v271_v19, %v275_v36  ;;  %v10972_v10 = vcombine.low %v271_v19, %v275_v36 }
 0x37a   :  { %7829 = vmatprep.subr.bf16.mxu1 %v10997_v31  ;;  %v403_v37 = vld [vmem:[#allocation5 + $0x7f8] sm:$0xff] }
 0x37b   :  { %7777 = vmatpush1.bf16.msra.mxu0 %v10868_v5  ;;  %v11101_v40 = vcombine.high %v399_v8, %v403_v37  ;;  %v263_v31 = vld [vmem:[#allocation5 + $0x398] sm:$0xff]  ;;  %v11100_v20 = vcombine.low %v399_v8, %v403_v37 }
 0x37c   :  { %7778 = vmatprep.subr.bf16.mxu0 %v10861_v48  ;;  %v267_v59 = vld [vmem:[#allocation5 + $0x3b8] sm:$0xff] }
 0x37d   :  { %7830 = vmatpush1.bf16.msra.mxu1 %v10996_v33  ;;  %v391_v53 = vld [vmem:[#allocation5 + $0x798] sm:$0xff]  ;;  %v10965_v5 = vcombine.high %v263_v31, %v267_v59  ;;  %v10964_v18 = vcombine.low %v263_v31, %v267_v59 }
 0x37e   :  { %7831 = vmatprep.subr.bf16.mxu1 %v10989_v57  ;;  %v395_v63 = vld [vmem:[#allocation5 + $0x7b8] sm:$0xff] }
 0x37f   :  { %7779 = vmatpush1.bf16.msra.mxu0 %v10860_v23  ;;  %v11093_v33 = vcombine.high %v391_v53, %v395_v63  ;;  %v255_v48 = vld [vmem:[#allocation5 + $0x358] sm:$0xff]  ;;  %v11092_v4 = vcombine.low %v391_v53, %v395_v63 }
 0x380   :  { %7780 = vmatprep.subr.bf16.mxu0 %v10853_v52  ;;  %v259_v57 = vld [vmem:[#allocation5 + $0x378] sm:$0xff] }
 0x381   :  { %7832 = vmatpush1.bf16.msra.mxu1 %v10988_v22  ;;  %v383_v9 = vld [vmem:[#allocation5 + $0x758] sm:$0xff]  ;;  %v10957_v23 = vcombine.high %v255_v48, %v259_v57  ;;  %v10956_v8 = vcombine.low %v255_v48, %v259_v57 }
 0x382   :  { %7833 = vmatprep.subr.bf16.mxu1 %v10981_v32  ;;  %v387_v16 = vld [vmem:[#allocation5 + $0x778] sm:$0xff] }
 0x383   :  { %7781 = vmatpush1.bf16.msra.mxu0 %v10852_v54  ;;  %v11085_v22 = vcombine.high %v383_v9, %v387_v16  ;;  %v247_v52 = vld [vmem:[#allocation5 + $0x318] sm:$0xff]  ;;  %v11084_v37 = vcombine.low %v383_v9, %v387_v16 }
 0x384   :  { %7782 = vmatprep.subr.bf16.mxu0 %v10973_v51  ;;  %v251_v32 = vld [vmem:[#allocation5 + $0x338] sm:$0xff] }
 0x385   :  { %7834 = vmatpush1.bf16.msra.mxu1 %v10980_v14  ;;  %v375_v19 = vld [vmem:[#allocation5 + $0x718] sm:$0xff]  ;;  %v10949_v54 = vcombine.high %v247_v52, %v251_v32  ;;  %v10948_v53 = vcombine.low %v247_v52, %v251_v32 }
 0x386   :  { %7835 = vmatprep.subr.bf16.mxu1 %v11101_v40  ;;  %v379_v36 = vld [vmem:[#allocation5 + $0x738] sm:$0xff] }
 0x387   :  { %7783 = vmatpush2.bf16.msra.mxu0 %v10972_v10  ;;  %v11077_v14 = vcombine.high %v375_v19, %v379_v36  ;;  %v239_v51 = vld [vmem:[#allocation5 + $0x2d8] sm:$0xff]  ;;  %v11076_v63 = vcombine.low %v375_v19, %v379_v36 }
 0x388   :  { %7784 = vmatprep.subr.bf16.mxu0 %v10965_v5  ;;  %v243_v40 = vld [vmem:[#allocation5 + $0x2f8] sm:$0xff] }
 0x389   :  { %7836 = vmatpush2.bf16.msra.mxu1 %v11100_v20  ;;  %v367_v31 = vld [vmem:[#allocation5 + $0x6d8] sm:$0xff]  ;;  %v10941_v10 = vcombine.high %v239_v51, %v243_v40  ;;  %v10940_v9 = vcombine.low %v239_v51, %v243_v40 }
 0x38a   :  { %7837 = vmatprep.subr.bf16.mxu1 %v11093_v33  ;;  %v371_v59 = vld [vmem:[#allocation5 + $0x6f8] sm:$0xff] }
 0x38b   :  { %7785 = vmatpush2.bf16.msra.mxu0 %v10964_v18  ;;  %v11069_v20 = vcombine.high %v367_v31, %v371_v59  ;;  %v231_v5 = vld [vmem:[#allocation5 + $0x298] sm:$0xff]  ;;  %v11068_v16 = vcombine.low %v367_v31, %v371_v59 }
 0x38c   :  { %7786 = vmatprep.subr.bf16.mxu0 %v10957_v23  ;;  %v235_v33 = vld [vmem:[#allocation5 + $0x2b8] sm:$0xff] }
 0x38d   :  { %7838 = vmatpush2.bf16.msra.mxu1 %v11092_v4  ;;  %v359_v48 = vld [vmem:[#allocation5 + $0x698] sm:$0xff]  ;;  %v10933_v18 = vcombine.high %v231_v5, %v235_v33  ;;  %v10932_v19 = vcombine.low %v231_v5, %v235_v33 }
 0x38e   :  { %7839 = vmatprep.subr.bf16.mxu1 %v11085_v22  ;;  %v363_v57 = vld [vmem:[#allocation5 + $0x6b8] sm:$0xff] }
 0x38f   :  { %7787 = vmatpush2.bf16.msra.mxu0 %v10956_v8  ;;  %v11061_v4 = vcombine.high %v359_v48, %v363_v57  ;;  %v223_v23 = vld [vmem:[#allocation5 + $0x258] sm:$0xff]  ;;  %v11060_v36 = vcombine.low %v359_v48, %v363_v57 }
 0x390   :  { %7788 = vmatprep.subr.bf16.mxu0 %v10949_v54  ;;  %v227_v22 = vld [vmem:[#allocation5 + $0x278] sm:$0xff] }
 0x391   :  { %7840 = vmatpush2.bf16.msra.mxu1 %v11084_v37  ;;  %v351_v52 = vld [vmem:[#allocation5 + $0x658] sm:$0xff]  ;;  %v10925_v8 = vcombine.high %v223_v23, %v227_v22  ;;  %v10924_v31 = vcombine.low %v223_v23, %v227_v22 }
 0x392   :  { %7841 = vmatprep.subr.bf16.mxu1 %v11077_v14  ;;  %v355_v32 = vld [vmem:[#allocation5 + $0x678] sm:$0xff] }
 0x393   :  { %7789 = vmatpush2.bf16.msra.mxu0 %v10948_v53  ;;  %v11053_v37 = vcombine.high %v351_v52, %v355_v32  ;;  %v215_v54 = vld [vmem:[#allocation5 + $0x218] sm:$0xff]  ;;  %v11052_v59 = vcombine.low %v351_v52, %v355_v32 }
 0x394   :  { %7790 = vmatprep.subr.bf16.mxu0 %v10941_v10  ;;  %v219_v14 = vld [vmem:[#allocation5 + $0x238] sm:$0xff] }
 0x395   :  { %7842 = vmatpush2.bf16.msra.mxu1 %v11076_v63  ;;  %v343_v51 = vld [vmem:[#allocation5 + $0x618] sm:$0xff]  ;;  %v10917_v53 = vcombine.high %v215_v54, %v219_v14  ;;  %v10916_v48 = vcombine.low %v215_v54, %v219_v14 }
 0x396   :  { %7843 = vmatprep.subr.bf16.mxu1 %v11069_v20  ;;  %v347_v40 = vld [vmem:[#allocation5 + $0x638] sm:$0xff] }
 0x397   :  { %7791 = vmatpush2.bf16.msra.mxu0 %v10940_v9  ;;  %v11045_v63 = vcombine.high %v343_v51, %v347_v40  ;;  %v463_v10 = vld [vmem:[#allocation5 + $0x9d8] sm:$0xff]  ;;  %v11044_v57 = vcombine.low %v343_v51, %v347_v40 }
 0x398   :  { %7792 = vmatprep.subr.bf16.mxu0 %v10933_v18  ;;  %v467_v20 = vld [vmem:[#allocation5 + $0x9f8] sm:$0xff] }
 0x399   :  { %7844 = vmatpush2.bf16.msra.mxu1 %v11068_v16  ;;  %v591_v5 = vld [vmem:[#allocation5 + $0xdd8] sm:$0xff]  ;;  %v11165_v9 = vcombine.high %v463_v10, %v467_v20  ;;  %v11164_v52 = vcombine.low %v463_v10, %v467_v20 }
 0x39a   :  { %7845 = vmatprep.subr.bf16.mxu1 %v11061_v4  ;;  %v595_v33 = vld [vmem:[#allocation5 + $0xdf8] sm:$0xff] }
 0x39b   :  { %7793 = vmatpush2.bf16.msra.mxu0 %v10932_v19  ;;  %v11293_v16 = vcombine.high %v591_v5, %v595_v33  ;;  %v455_v18 = vld [vmem:[#allocation5 + $0x998] sm:$0xff]  ;;  %v11292_v32 = vcombine.low %v591_v5, %v595_v33 }
 0x39c   :  { %7794 = vmatprep.subr.bf16.mxu0 %v10925_v8  ;;  %v459_v4 = vld [vmem:[#allocation5 + $0x9b8] sm:$0xff] }
 0x39d   :  { %7846 = vmatpush2.bf16.msra.mxu1 %v11060_v36  ;;  %v583_v23 = vld [vmem:[#allocation5 + $0xd98] sm:$0xff]  ;;  %v11157_v19 = vcombine.high %v455_v18, %v459_v4 }
 0x39e   :  { %7847 = vmatprep.subr.bf16.mxu1 %v11053_v37  ;;  %v587_v22 = vld [vmem:[#allocation5 + $0xdb8] sm:$0xff] }
 0x39f   :  { %7795 = vmatpush2.bf16.msra.mxu0 %v10924_v31  ;;  %v11285_v36 = vcombine.high %v583_v23, %v587_v22  ;;  %v447_v8 = vld [vmem:[#allocation5 + $0x958] sm:$0xff] }
 0x3a0   :  { %7796 = vmatprep.subr.bf16.mxu0 %v10917_v53  ;;  %v451_v37 = vld [vmem:[#allocation5 + $0x978] sm:$0xff] }
 0x3a1   :  { %7848 = vmatpush2.bf16.msra.mxu1 %v11052_v59  ;;  %v575_v14 = vld [vmem:[#allocation5 + $0xd58] sm:$0xff]  ;;  %v11156_v59 = vcombine.low %v455_v18, %v459_v4  ;;  %v11149_v10 = vcombine.high %v447_v8, %v451_v37  ;;  %v11148_v18 = vcombine.low %v447_v8, %v451_v37 }
 0x3a2   :  { %7849 = vmatprep.subr.bf16.mxu1 %v11045_v63  ;;  %v579_v51 = vld [vmem:[#allocation5 + $0xd78] sm:$0xff]  ;;  %v11284_v63 = vcombine.low %v583_v23, %v587_v22 }
 0x3a3   :  { %7797 = vmatpush2.bf16.msra.mxu0 %v10916_v48  ;;  %v439_v33 = vld [vmem:[#allocation5 + $0x918] sm:$0xff]  ;;  %v11276_v23 = vcombine.low %v575_v14, %v579_v51 }
 0x3a4   :  { %7872 = vmatprep.subr.bf16.mxu0 %v11165_v9  ;;  %v443_v48 = vld [vmem:[#allocation5 + $0x938] sm:$0xff] }
 0x3a5   :  { %7850 = vmatpush2.bf16.msra.mxu1 %v11044_v57  ;;  %v571_v57 = vld [vmem:[#allocation5 + $0xd38] sm:$0xff]  ;;  %v11141_v22 = vcombine.high %v439_v33, %v443_v48 }
 0x3a6   :  { %7925 = vmatprep.subr.bf16.mxu1 %v11293_v16  ;;  %v7482_v54 = vpop.f32.mrf.mxu0  ;;  %7799 = vmatmul.mubr.bf16.vlgmr.msra.gmra.mxu0 %v12960_v21  ;;  %v11277_v21 = vcombine.high %v575_v14, %v579_v51 }
 0x3a7   :  { %v7483_v40 = vadd.f32 %v7482_v54, %v13396_v49  ;;  %7873 = vmatpush1.bf16.msra.mxu0 %v11164_v52  ;;  %7808 = vmatprep.mubr.bf16.mxu0 %v12966_v55  ;;  %v559_v54 = vld [vmem:[#allocation5 + $0xcd8] sm:$0xff] }
 0x3a8   :  { %v7535_v31 = vpop.f32.mrf.mxu1  ;;  %7852 = vmatmul.mubr.bf16.vlgmr.msra.gmra.mxu1 %v12964_v25  ;;  %v13431_v53 = vpop.f32.mrf.mxu0  ;;  %7874 = vmatprep.subr.bf16.mxu0 %v11157_v19  ;;  %v567_v25 = vld [vmem:[#allocation5 + $0xd18] sm:$0xff] }
 0x3a9   :  { %7926 = vmatpush1.bf16.msra.mxu1 %v11292_v32  ;;  %v13433_v20 = vadd.f32 %v7535_v31, %v7483_v40  ;;  %7861 = vmatprep.mubr.bf16.mxu1 %v12969_v35  ;;  %v11269_v55 = vcombine.high %v567_v25, %v571_v57  ;;  %v431_v19 = vld [vmem:[#allocation5 + $0x8d8] sm:$0xff]  ;;  %v11140_v40 = vcombine.low %v439_v33, %v443_v48 }
 0x3aa   :  { %v13435_v5 = vpop.f32.mrf.mxu1  ;;  %7927 = vmatprep.subr.bf16.mxu1 %v11285_v36  ;;  %v7486_v49 = vpop.f32.mrf.mxu0  ;;  %v435_v36 = vld [vmem:[#allocation5 + $0x8f8] sm:$0xff]  ;;  %v11268_v51 = vcombine.low %v567_v25, %v571_v57 }
 0x3ab   :  { %v7487_v9 = vadd.f32 %v7486_v49, %v13406_v58  ;;  %7875 = vmatpush1.bf16.msra.mxu0 %v11156_v59  ;;  %v563_v58 = vld [vmem:[#allocation5 + $0xcf8] sm:$0xff]  ;;  %v11133_v31 = vcombine.high %v431_v19, %v435_v36  ;;  %v11132_v57 = vcombine.low %v431_v19, %v435_v36 }
 0x3ac   :  { %v7539_v16 = vpop.f32.mrf.mxu1  ;;  %v13440_v4 = vpop.f32.mrf.mxu0  ;;  %7876 = vmatprep.subr.bf16.mxu0 %v11149_v10  ;;  %v427_v49 = vld [vmem:[#allocation5 + $0x8b8] sm:$0xff] }
 0x3ad   :  { %7928 = vmatpush1.bf16.msra.mxu1 %v11284_v63  ;;  %v13442_v52 = vadd.f32 %v7539_v16, %v7487_v9  ;;  %v551_v33 = vld [vmem:[#allocation5 + $0xc98] sm:$0xff] }
 0x3ae   :  { %v13444_v32 = vpop.f32.mrf.mxu1  ;;  %7929 = vmatprep.subr.bf16.mxu1 %v11277_v21  ;;  %v7492_v35 = vpop.f32.mrf.mxu0  ;;  %7809 = vmatmul.mubr.bf16.gmra.mxu0 %v12973_v42  ;;  %v11261_v21 = vcombine.high %v559_v54, %v563_v58  ;;  %v423_v42 = vld [vmem:[#allocation5 + $0x898] sm:$0xff] }
 0x3af   :  { %v7493_v8 = vadd.f32 %v7492_v35, %v13416_v11  ;;  %7877 = vmatpush1.bf16.msra.mxu0 %v11148_v18  ;;  %7904 = vmatprep.mubr.bf16.mxu0 %v12988_v56  ;;  %v555_v48 = vld [vmem:[#allocation5 + $0xcb8] sm:$0xff]  ;;  %v11260_v18 = vcombine.low %v559_v54, %v563_v58  ;;  %v11124_v19 = vcombine.low %v423_v42, %v427_v49 }
 0x3b0   :  { %v7545_v37 = vpop.f32.mrf.mxu1  ;;  %7862 = vmatmul.mubr.bf16.gmra.mxu1 %v12980_v46  ;;  %v7494_v14 = vpop.f32.mrf.mxu0  ;;  %7878 = vmatprep.subr.bf16.mxu0 %v11141_v22  ;;  %v13905_v46 = vld [vmem:[#allocation21_spill] sm:$0xff]  ;;  %v11253_v35 = vcombine.high %v551_v33, %v555_v48  ;;  %v11252_v36 = vcombine.low %v551_v33, %v555_v48 }
 0x3b1   :  { %7930 = vmatpush1.bf16.msra.mxu1 %v11276_v23  ;;  %v7495_v59 = vadd.f32 %v7494_v14, %v13421_v60  ;;  %v13450_v63 = vadd.f32 %v7545_v37, %v7493_v8  ;;  %7957 = vmatprep.mubr.bf16.mxu1 %v13905_v46  ;;  %v11125_v23 = vcombine.high %v423_v42, %v427_v49  ;;  %v415_v8 = vld [vmem:[#allocation5 + $0x858] sm:$0xff] }
 0x3b2   :  { %v7547_v10 = vpop.f32.mrf.mxu1  ;;  %7931 = vmatprep.subr.bf16.mxu1 %v11269_v55  ;;  %v7496_v11 = vpop.f32.mrf.mxu0  ;;  %v419_v37 = vld [vmem:[#allocation5 + $0x878] sm:$0xff] }
 0x3b3   :  { %v7497_v9 = vadd.f32 %v7496_v11, %v13424_v1  ;;  %v13455_v25 = vadd.f32 %v7547_v10, %v7495_v59  ;;  %7879 = vmatpush1.bf16.msra.mxu0 %v11140_v40  ;;  %v543_v1 = vld [vmem:[#allocation5 + $0xc58] sm:$0xff]  ;;  %v11117_v54 = vcombine.high %v415_v8, %v419_v37  ;;  %v11116_v10 = vcombine.low %v415_v8, %v419_v37 }
 0x3b4   :  { %v7549_v60 = vpop.f32.mrf.mxu1  ;;  %v7498_v16 = vpop.f32.mrf.mxu0  ;;  %7880 = vmatprep.subr.bf16.mxu0 %v11133_v31  ;;  %v547_v14 = vld [vmem:[#allocation5 + $0xc78] sm:$0xff] }
 0x3b5   :  { %7932 = vmatpush1.bf16.msra.mxu1 %v11268_v51  ;;  %v7499_v22 = vadd.f32 %v7498_v16, %v13426_v62  ;;  %v13458_v56 = vadd.f32 %v7549_v60, %v7497_v9  ;;  %v11245_v58 = vcombine.high %v543_v1, %v547_v14  ;;  %v407_v62 = vld [vmem:[#allocation5 + $0x818] sm:$0xff] }
 0x3b6   :  { %v7551_v55 = vpop.f32.mrf.mxu1  ;;  %7933 = vmatprep.subr.bf16.mxu1 %v11261_v21  ;;  %v411_v40 = vld [vmem:[#allocation5 + $0x838] sm:$0xff]  ;;  %v11244_v21 = vcombine.low %v543_v1, %v547_v14 }
 0x3b7   :  { %v13460_v59 = vadd.f32 %v7551_v55, %v7499_v22  ;;  %7881 = vmatpush1.bf16.msra.mxu0 %v11132_v57  ;;  %v535_v51 = vld [vmem:[#allocation5 + $0xc18] sm:$0xff]  ;;  %v11109_v11 = vcombine.high %v407_v62, %v411_v40  ;;  %v11108_v33 = vcombine.low %v407_v62, %v411_v40 }
 0x3b8   :  { %7882 = vmatprep.subr.bf16.mxu0 %v11125_v23  ;;  %v539_v31 = vld [vmem:[#allocation5 + $0xc38] sm:$0xff] }
 0x3b9   :  { %7934 = vmatpush1.bf16.msra.mxu1 %v11260_v18  ;;  %v11237_v46 = vcombine.high %v535_v51, %v539_v31  ;;  %v527_v9 = vld [vmem:[#allocation5 + $0xbd8] sm:$0xff]  ;;  %v11236_v48 = vcombine.low %v535_v51, %v539_v31 }
 0x3ba   :  { %7935 = vmatprep.subr.bf16.mxu1 %v11253_v35  ;;  %v531_v42 = vld [vmem:[#allocation5 + $0xbf8] sm:$0xff] }
 0x3bb   :  { %7883 = vmatpush1.bf16.msra.mxu0 %v11124_v19  ;;  %v655_v49 = vld [vmem:[#allocation5 + $0xfd8] sm:$0xff]  ;;  %v11229_v57 = vcombine.high %v527_v9, %v531_v42  ;;  %v11228_v35 = vcombine.low %v527_v9, %v531_v42 }
 0x3bc   :  { %7884 = vmatprep.subr.bf16.mxu0 %v11117_v54  ;;  %v659_v60 = vld [vmem:[#allocation5 + $0xff8] sm:$0xff] }
 0x3bd   :  { %7936 = vmatpush1.bf16.msra.mxu1 %v11252_v36  ;;  %v11357_v16 = vcombine.high %v655_v49, %v659_v60  ;;  %v519_v18 = vld [vmem:[#allocation5 + $0xb98] sm:$0xff]  ;;  %v11356_v8 = vcombine.low %v655_v49, %v659_v60 }
 0x3be   :  { %7937 = vmatprep.subr.bf16.mxu1 %v11245_v58  ;;  %v523_v23 = vld [vmem:[#allocation5 + $0xbb8] sm:$0xff] }
 0x3bf   :  { %7885 = vmatpush1.bf16.msra.mxu0 %v11116_v10  ;;  %v647_v22 = vld [vmem:[#allocation5 + $0xf98] sm:$0xff]  ;;  %v11221_v37 = vcombine.high %v519_v18, %v523_v23  ;;  %v11220_v58 = vcombine.low %v519_v18, %v523_v23 }
 0x3c0   :  { %7886 = vmatprep.subr.bf16.mxu0 %v11109_v11  ;;  %v651_v55 = vld [vmem:[#allocation5 + $0xfb8] sm:$0xff] }
 0x3c1   :  { %7938 = vmatpush1.bf16.msra.mxu1 %v11244_v21  ;;  %v11349_v1 = vcombine.high %v647_v22, %v651_v55  ;;  %v511_v14 = vld [vmem:[#allocation5 + $0xb58] sm:$0xff]  ;;  %v11348_v62 = vcombine.low %v647_v22, %v651_v55 }
 0x3c2   :  { %7939 = vmatprep.subr.bf16.mxu1 %v11237_v46  ;;  %v515_v19 = vld [vmem:[#allocation5 + $0xb78] sm:$0xff] }
 0x3c3   :  { %7887 = vmatpush1.bf16.msra.mxu0 %v11108_v33  ;;  %v639_v36 = vld [vmem:[#allocation5 + $0xf58] sm:$0xff]  ;;  %v11213_v40 = vcombine.high %v511_v14, %v515_v19  ;;  %v11212_v46 = vcombine.low %v511_v14, %v515_v19 }
 0x3c4   :  { %7888 = vmatprep.subr.bf16.mxu0 %v11229_v57  ;;  %v643_v54 = vld [vmem:[#allocation5 + $0xf78] sm:$0xff] }
 0x3c5   :  { %7940 = vmatpush1.bf16.msra.mxu1 %v11236_v48  ;;  %v11341_v51 = vcombine.high %v639_v36, %v643_v54  ;;  %v503_v31 = vld [vmem:[#allocation5 + $0xb18] sm:$0xff]  ;;  %v11340_v9 = vcombine.low %v639_v36, %v643_v54 }
 0x3c6   :  { %7941 = vmatprep.subr.bf16.mxu1 %v11357_v16  ;;  %v507_v10 = vld [vmem:[#allocation5 + $0xb38] sm:$0xff] }
 0x3c7   :  { %7889 = vmatpush2.bf16.msra.mxu0 %v11228_v35  ;;  %v631_v21 = vld [vmem:[#allocation5 + $0xf18] sm:$0xff]  ;;  %v11205_v42 = vcombine.high %v503_v31, %v507_v10  ;;  %v11204_v16 = vcombine.low %v503_v31, %v507_v10 }
 0x3c8   :  { %7890 = vmatprep.subr.bf16.mxu0 %v11221_v37  ;;  %v635_v11 = vld [vmem:[#allocation5 + $0xf38] sm:$0xff] }
 0x3c9   :  { %7942 = vmatpush2.bf16.msra.mxu1 %v11356_v8  ;;  %v11333_v49 = vcombine.high %v631_v21, %v635_v11  ;;  %v495_v60 = vld [vmem:[#allocation5 + $0xad8] sm:$0xff]  ;;  %v11332_v18 = vcombine.low %v631_v21, %v635_v11 }
 0x3ca   :  { %7943 = vmatprep.subr.bf16.mxu1 %v11349_v1  ;;  %v499_v33 = vld [vmem:[#allocation5 + $0xaf8] sm:$0xff] }
 0x3cb   :  { %7891 = vmatpush2.bf16.msra.mxu0 %v11220_v58  ;;  %v623_v48 = vld [vmem:[#allocation5 + $0xed8] sm:$0xff]  ;;  %v11197_v23 = vcombine.high %v495_v60, %v499_v33  ;;  %v11196_v1 = vcombine.low %v495_v60, %v499_v33 }
 0x3cc   :  { %7892 = vmatprep.subr.bf16.mxu0 %v11213_v40  ;;  %v627_v57 = vld [vmem:[#allocation5 + $0xef8] sm:$0xff] }
 0x3cd   :  { %7944 = vmatpush2.bf16.msra.mxu1 %v11348_v62  ;;  %v11325_v22 = vcombine.high %v623_v48, %v627_v57  ;;  %v487_v55 = vld [vmem:[#allocation5 + $0xa98] sm:$0xff]  ;;  %v11324_v14 = vcombine.low %v623_v48, %v627_v57 }
 0x3ce   :  { %7945 = vmatprep.subr.bf16.mxu1 %v11341_v51  ;;  %v491_v35 = vld [vmem:[#allocation5 + $0xab8] sm:$0xff] }
 0x3cf   :  { %7893 = vmatpush2.bf16.msra.mxu0 %v11212_v46  ;;  %v615_v8 = vld [vmem:[#allocation5 + $0xe98] sm:$0xff]  ;;  %v11189_v19 = vcombine.high %v487_v55, %v491_v35  ;;  %v11188_v51 = vcombine.low %v487_v55, %v491_v35 }
 0x3d0   :  { %7894 = vmatprep.subr.bf16.mxu0 %v11205_v42  ;;  %v619_v37 = vld [vmem:[#allocation5 + $0xeb8] sm:$0xff] }
 0x3d1   :  { %7946 = vmatpush2.bf16.msra.mxu1 %v11340_v9  ;;  %v11317_v36 = vcombine.high %v615_v8, %v619_v37  ;;  %v479_v54 = vld [vmem:[#allocation5 + $0xa58] sm:$0xff]  ;;  %v11316_v31 = vcombine.low %v615_v8, %v619_v37 }
 0x3d2   :  { %7947 = vmatprep.subr.bf16.mxu1 %v11333_v49  ;;  %v483_v58 = vld [vmem:[#allocation5 + $0xa78] sm:$0xff] }
 0x3d3   :  { %7895 = vmatpush2.bf16.msra.mxu0 %v11204_v16  ;;  %v607_v62 = vld [vmem:[#allocation5 + $0xe58] sm:$0xff]  ;;  %v11181_v10 = vcombine.high %v479_v54, %v483_v58  ;;  %v11180_v49 = vcombine.low %v479_v54, %v483_v58 }
 0x3d4   :  { %7896 = vmatprep.subr.bf16.mxu0 %v11197_v23  ;;  %v611_v40 = vld [vmem:[#allocation5 + $0xe78] sm:$0xff] }
 0x3d5   :  { %7948 = vmatpush2.bf16.msra.mxu1 %v11332_v18  ;;  %v11309_v21 = vcombine.high %v607_v62, %v611_v40  ;;  %v471_v11 = vld [vmem:[#allocation5 + $0xa18] sm:$0xff]  ;;  %v11308_v60 = vcombine.low %v607_v62, %v611_v40 }
 0x3d6   :  { %7949 = vmatprep.subr.bf16.mxu1 %v11325_v22  ;;  %v475_v46 = vld [vmem:[#allocation5 + $0xa38] sm:$0xff] }
 0x3d7   :  { %7897 = vmatpush2.bf16.msra.mxu0 %v11196_v1  ;;  %v599_v9 = vld [vmem:[#allocation5 + $0xe18] sm:$0xff]  ;;  %v11173_v33 = vcombine.high %v471_v11, %v475_v46  ;;  %v11172_v22 = vcombine.low %v471_v11, %v475_v46 }
 0x3d8   :  { %7898 = vmatprep.subr.bf16.mxu0 %v11189_v19  ;;  %v603_v42 = vld [vmem:[#allocation5 + $0xe38] sm:$0xff] }
 0x3d9   :  { %7950 = vmatpush2.bf16.msra.mxu1 %v11324_v14  ;;  %v11301_v48 = vcombine.high %v599_v9, %v603_v42  ;;  %v719_v57 = vld [vmem:[#allocation5 + $0x11d8] sm:$0xff]  ;;  %v11300_v55 = vcombine.low %v599_v9, %v603_v42 }
 0x3da   :  { %7951 = vmatprep.subr.bf16.mxu1 %v11317_v36  ;;  %v723_v16 = vld [vmem:[#allocation5 + $0x11f8] sm:$0xff] }
 0x3db   :  { %7899 = vmatpush2.bf16.msra.mxu0 %v11188_v51  ;;  %v847_v18 = vld [vmem:[#allocation5 + $0x15d8] sm:$0xff]  ;;  %v11421_v35 = vcombine.high %v719_v57, %v723_v16  ;;  %v11420_v36 = vcombine.low %v719_v57, %v723_v16 }
 0x3dc   :  { %7900 = vmatprep.subr.bf16.mxu0 %v11181_v10  ;;  %v851_v23 = vld [vmem:[#allocation5 + $0x15f8] sm:$0xff] }
 0x3dd   :  { %7952 = vmatpush2.bf16.msra.mxu1 %v11316_v31  ;;  %v11549_v8 = vcombine.high %v847_v18, %v851_v23  ;;  %v711_v37 = vld [vmem:[#allocation5 + $0x1198] sm:$0xff]  ;;  %v11548_v54 = vcombine.low %v847_v18, %v851_v23 }
 0x3de   :  { %7953 = vmatprep.subr.bf16.mxu1 %v11309_v21  ;;  %v715_v1 = vld [vmem:[#allocation5 + $0x11b8] sm:$0xff] }
 0x3df   :  { %7901 = vmatpush2.bf16.msra.mxu0 %v11180_v49  ;;  %v839_v14 = vld [vmem:[#allocation5 + $0x1598] sm:$0xff]  ;;  %v11413_v58 = vcombine.high %v711_v37, %v715_v1  ;;  %v11412_v9 = vcombine.low %v711_v37, %v715_v1 }
 0x3e0   :  { %7902 = vmatprep.subr.bf16.mxu0 %v11173_v33  ;;  %v843_v19 = vld [vmem:[#allocation5 + $0x15b8] sm:$0xff] }
 0x3e1   :  { %7954 = vmatpush2.bf16.msra.mxu1 %v11308_v60  ;;  %v11541_v62 = vcombine.high %v839_v14, %v843_v19  ;;  %v703_v40 = vld [vmem:[#allocation5 + $0x1158] sm:$0xff]  ;;  %v11540_v49 = vcombine.low %v839_v14, %v843_v19 }
 0x3e2   :  { %7955 = vmatprep.subr.bf16.mxu1 %v11301_v48  ;;  %v707_v51 = vld [vmem:[#allocation5 + $0x1178] sm:$0xff] }
 0x3e3   :  { %7903 = vmatpush2.bf16.msra.mxu0 %v11172_v22  ;;  %v831_v10 = vld [vmem:[#allocation5 + $0x1558] sm:$0xff]  ;;  %v11405_v60 = vcombine.high %v703_v40, %v707_v51 }
 0x3e4   :  { %7978 = vmatprep.subr.bf16.mxu0 %v11421_v35  ;;  %v835_v21 = vld [vmem:[#allocation5 + $0x1578] sm:$0xff] }
 0x3e5   :  { %7956 = vmatpush2.bf16.msra.mxu1 %v11300_v55  ;;  %v699_v57 = vld [vmem:[#allocation5 + $0x1138] sm:$0xff]  ;;  %v11404_v55 = vcombine.low %v703_v40, %v707_v51 }
 0x3e6   :  { %8031 = vmatprep.subr.bf16.mxu1 %v11549_v8  ;;  %v7588_v31 = vpop.f32.mrf.mxu0  ;;  %7905 = vmatmul.mubr.bf16.vlgmr.msra.gmra.mxu0 %v13000_v6  ;;  %v11533_v6 = vcombine.high %v831_v10, %v835_v21  ;;  %v827_v18 = vld [vmem:[#allocation5 + $0x1538] sm:$0xff]  ;;  %v11532_v8 = vcombine.low %v831_v10, %v835_v21 }
 0x3e7   :  { %v7589_v11 = vadd.f32 %v7588_v31, %v13433_v20  ;;  %7979 = vmatpush1.bf16.msra.mxu0 %v11420_v36  ;;  %7914 = vmatprep.mubr.bf16.mxu0 %v13006_v15  ;;  %v695_v20 = vld [vmem:[#allocation5 + $0x1118] sm:$0xff] }
 0x3e8   :  { %v7641_v46 = vpop.f32.mrf.mxu1  ;;  %7958 = vmatmul.mubr.bf16.vlgmr.msra.gmra.mxu1 %v13004_v7  ;;  %v13465_v42 = vpop.f32.mrf.mxu0  ;;  %7980 = vmatprep.subr.bf16.mxu0 %v11413_v58  ;;  %v823_v7 = vld [vmem:[#allocation5 + $0x1518] sm:$0xff]  ;;  %v11397_v37 = vcombine.high %v695_v20, %v699_v57  ;;  %v11396_v40 = vcombine.low %v695_v20, %v699_v57 }
 0x3e9   :  { %8032 = vmatpush1.bf16.msra.mxu1 %v11548_v54  ;;  %v13467_v33 = vadd.f32 %v7641_v46, %v7589_v11  ;;  %7967 = vmatprep.mubr.bf16.mxu1 %v13009_v17  ;;  %v11525_v14 = vcombine.high %v823_v7, %v827_v18  ;;  %v687_v17 = vld [vmem:[#allocation5 + $0x10d8] sm:$0xff]  ;;  %v11524_v31 = vcombine.low %v823_v7, %v827_v18 }
 0x3ea   :  { %v13469_v48 = vpop.f32.mrf.mxu1  ;;  %8033 = vmatprep.subr.bf16.mxu1 %v11541_v62  ;;  %v7592_v16 = vpop.f32.mrf.mxu0  ;;  %v691_v19 = vld [vmem:[#allocation5 + $0x10f8] sm:$0xff] }
 0x3eb   :  { %v7593_v23 = vadd.f32 %v7592_v16, %v13442_v52  ;;  %7981 = vmatpush1.bf16.msra.mxu0 %v11412_v9  ;;  %v815_v52 = vld [vmem:[#allocation5 + $0x14d8] sm:$0xff]  ;;  %v11389_v10 = vcombine.high %v687_v17, %v691_v19  ;;  %v11388_v57 = vcombine.low %v687_v17, %v691_v19 }
 0x3ec   :  { %v7645_v22 = vpop.f32.mrf.mxu1  ;;  %v13474_v35 = vpop.f32.mrf.mxu0  ;;  %7982 = vmatprep.subr.bf16.mxu0 %v11405_v60  ;;  %v819_v54 = vld [vmem:[#allocation5 + $0x14f8] sm:$0xff] }
 0x3ed   :  { %8034 = vmatpush1.bf16.msra.mxu1 %v11540_v49  ;;  %v13476_v15 = vadd.f32 %v7645_v22, %v7593_v23  ;;  %v679_v9 = vld [vmem:[#allocation5 + $0x1098] sm:$0xff]  ;;  %v11516_v16 = vcombine.low %v815_v52, %v819_v54 }
 0x3ee   :  { %v13478_v1 = vpop.f32.mrf.mxu1  ;;  %8035 = vmatprep.subr.bf16.mxu1 %v11533_v6  ;;  %v7598_v36 = vpop.f32.mrf.mxu0  ;;  %7915 = vmatmul.mubr.bf16.gmra.mxu0 %v13017_v28  ;;  %v11517_v28 = vcombine.high %v815_v52, %v819_v54  ;;  %v683_v49 = vld [vmem:[#allocation5 + $0x10b8] sm:$0xff] }
 0x3ef   :  { %v7599_v58 = vadd.f32 %v7598_v36, %v13450_v63  ;;  %7983 = vmatpush1.bf16.msra.mxu0 %v11404_v55  ;;  %8010 = vmatprep.mubr.bf16.mxu0 %v13028_v38  ;;  %v807_v60 = vld [vmem:[#allocation5 + $0x1498] sm:$0xff]  ;;  %v11381_v7 = vcombine.high %v679_v9, %v683_v49 }
 0x3f0   :  { %v7651_v62 = vpop.f32.mrf.mxu1  ;;  %7968 = vmatmul.mubr.bf16.gmra.mxu1 %v13020_v30  ;;  %v7600_v51 = vpop.f32.mrf.mxu0  ;;  %7984 = vmatprep.subr.bf16.mxu0 %v11397_v37  ;;  %v811_v30 = vld [vmem:[#allocation5 + $0x14b8] sm:$0xff] }
 0x3f1   :  { %8036 = vmatpush1.bf16.msra.mxu1 %v11532_v8  ;;  %v7601_v21 = vadd.f32 %v7600_v51, %v13455_v25  ;;  %v13484_v11 = vadd.f32 %v7651_v62, %v7599_v58  ;;  %8063 = vmatprep.mubr.bf16.mxu1 %v13033_v39  ;;  %v11509_v38 = vcombine.high %v807_v60, %v811_v30  ;;  %v671_v23 = vld [vmem:[#allocation5 + $0x1058] sm:$0xff] }
 0x3f2   :  { %v7653_v46 = vpop.f32.mrf.mxu1  ;;  %8037 = vmatprep.subr.bf16.mxu1 %v11525_v14  ;;  %v7602_v63 = vpop.f32.mrf.mxu0  ;;  %v675_v22 = vld [vmem:[#allocation5 + $0x1078] sm:$0xff]  ;;  %v11380_v39 = vcombine.low %v679_v9, %v683_v49 }
 0x3f3   :  { %v7603_v6 = vadd.f32 %v7602_v63, %v13458_v56  ;;  %v13489_v20 = vadd.f32 %v7653_v46, %v7601_v21  ;;  %7985 = vmatpush1.bf16.msra.mxu0 %v11396_v40  ;;  %v799_v55 = vld [vmem:[#allocation5 + $0x1458] sm:$0xff]  ;;  %v11508_v56 = vcombine.low %v807_v60, %v811_v30  ;;  %v11373_v37 = vcombine.high %v671_v23, %v675_v22 }
 0x3f4   :  { %v7655_v25 = vpop.f32.mrf.mxu1  ;;  %7986 = vmatprep.subr.bf16.mxu0 %v11389_v10  ;;  %v803_v8 = vld [vmem:[#allocation5 + $0x1478] sm:$0xff]  ;;  %v11372_v54 = vcombine.low %v671_v23, %v675_v22 }
 0x3f5   :  { %8038 = vmatpush1.bf16.msra.mxu1 %v11524_v31  ;;  %v13491_v18 = vadd.f32 %v7655_v25, %v7603_v6  ;;  %v11501_v14 = vcombine.high %v799_v55, %v803_v8  ;;  %v663_v17 = vld [vmem:[#allocation5 + $0x1018] sm:$0xff]  ;;  %v11500_v58 = vcombine.low %v799_v55, %v803_v8 }
 0x3f6   :  { %8039 = vmatprep.subr.bf16.mxu1 %v11517_v28  ;;  %v667_v19 = vld [vmem:[#allocation5 + $0x1038] sm:$0xff] }
 0x3f7   :  { %7987 = vmatpush1.bf16.msra.mxu0 %v11388_v57  ;;  %v791_v36 = vld [vmem:[#allocation5 + $0x1418] sm:$0xff]  ;;  %v11365_v62 = vcombine.high %v663_v17, %v667_v19  ;;  %v11364_v46 = vcombine.low %v663_v17, %v667_v19 }
 0x3f8   :  { %7988 = vmatprep.subr.bf16.mxu0 %v11381_v7  ;;  %v795_v52 = vld [vmem:[#allocation5 + $0x1438] sm:$0xff] }
 0x3f9   :  { %8040 = vmatpush1.bf16.msra.mxu1 %v11516_v16  ;;  %v11493_v40 = vcombine.high %v791_v36, %v795_v52  ;;  %v783_v51 = vld [vmem:[#allocation5 + $0x13d8] sm:$0xff]  ;;  %v11492_v28 = vcombine.low %v791_v36, %v795_v52 }
 0x3fa   :  { %8041 = vmatprep.subr.bf16.mxu1 %v11509_v38  ;;  %v787_v31 = vld [vmem:[#allocation5 + $0x13f8] sm:$0xff] }
 0x3fb   :  { %7989 = vmatpush1.bf16.msra.mxu0 %v11380_v39  ;;  %v911_v10 = vld [vmem:[#allocation5 + $0x17d8] sm:$0xff]  ;;  %v11485_v9 = vcombine.high %v783_v51, %v787_v31  ;;  %v11484_v25 = vcombine.low %v783_v51, %v787_v31 }
 0x3fc   :  { %7990 = vmatprep.subr.bf16.mxu0 %v11373_v37  ;;  %v915_v21 = vld [vmem:[#allocation5 + $0x17f8] sm:$0xff] }
 0x3fd   :  { %8042 = vmatpush1.bf16.msra.mxu1 %v11508_v56  ;;  %v11613_v49 = vcombine.high %v911_v10, %v915_v21  ;;  %v775_v63 = vld [vmem:[#allocation5 + $0x1398] sm:$0xff]  ;;  %v11612_v57 = vcombine.low %v911_v10, %v915_v21 }
 0x3fe   :  { %8043 = vmatprep.subr.bf16.mxu1 %v11501_v14  ;;  %v779_v60 = vld [vmem:[#allocation5 + $0x13b8] sm:$0xff] }
 0x3ff   :  { %7991 = vmatpush1.bf16.msra.mxu0 %v11372_v54  ;;  %v903_v30 = vld [vmem:[#allocation5 + $0x1798] sm:$0xff]  ;;  %v11477_v16 = vcombine.high %v775_v63, %v779_v60  ;;  %v11476_v8 = vcombine.low %v775_v63, %v779_v60 }
 0x400   :  { %7992 = vmatprep.subr.bf16.mxu0 %v11365_v62  ;;  %v907_v6 = vld [vmem:[#allocation5 + $0x17b8] sm:$0xff] }
 0x401   :  { %8044 = vmatpush1.bf16.msra.mxu1 %v11500_v58  ;;  %v11605_v7 = vcombine.high %v903_v30, %v907_v6  ;;  %v767_v38 = vld [vmem:[#allocation5 + $0x1358] sm:$0xff]  ;;  %v11604_v39 = vcombine.low %v903_v30, %v907_v6 }
 0x402   :  { %8045 = vmatprep.subr.bf16.mxu1 %v11493_v40  ;;  %v771_v23 = vld [vmem:[#allocation5 + $0x1378] sm:$0xff] }
 0x403   :  { %7993 = vmatpush1.bf16.msra.mxu0 %v11364_v46  ;;  %v895_v22 = vld [vmem:[#allocation5 + $0x1758] sm:$0xff]  ;;  %v11469_v56 = vcombine.high %v767_v38, %v771_v23  ;;  %v11468_v52 = vcombine.low %v767_v38, %v771_v23 }
 0x404   :  { %7994 = vmatprep.subr.bf16.mxu0 %v11485_v9  ;;  %v899_v55 = vld [vmem:[#allocation5 + $0x1778] sm:$0xff] }
 0x405   :  { %8046 = vmatpush1.bf16.msra.mxu1 %v11492_v28  ;;  %v11597_v37 = vcombine.high %v895_v22, %v899_v55  ;;  %v759_v14 = vld [vmem:[#allocation5 + $0x1318] sm:$0xff]  ;;  %v11596_v54 = vcombine.low %v895_v22, %v899_v55 }
 0x406   :  { %8047 = vmatprep.subr.bf16.mxu1 %v11613_v49  ;;  %v763_v17 = vld [vmem:[#allocation5 + $0x1338] sm:$0xff] }
 0x407   :  { %7995 = vmatpush2.bf16.msra.mxu0 %v11484_v25  ;;  %v887_v19 = vld [vmem:[#allocation5 + $0x1718] sm:$0xff]  ;;  %v11461_v58 = vcombine.high %v759_v14, %v763_v17  ;;  %v11460_v21 = vcombine.low %v759_v14, %v763_v17 }
 0x408   :  { %7996 = vmatprep.subr.bf16.mxu0 %v11477_v16  ;;  %v891_v36 = vld [vmem:[#allocation5 + $0x1738] sm:$0xff] }
 0x409   :  { %8048 = vmatpush2.bf16.msra.mxu1 %v11612_v57  ;;  %v11589_v62 = vcombine.high %v887_v19, %v891_v36  ;;  %v751_v40 = vld [vmem:[#allocation5 + $0x12d8] sm:$0xff]  ;;  %v11588_v46 = vcombine.low %v887_v19, %v891_v36 }
 0x40a   :  { %8049 = vmatprep.subr.bf16.mxu1 %v11605_v7  ;;  %v755_v51 = vld [vmem:[#allocation5 + $0x12f8] sm:$0xff] }
 0x40b   :  { %7997 = vmatpush2.bf16.msra.mxu0 %v11476_v8  ;;  %v879_v31 = vld [vmem:[#allocation5 + $0x16d8] sm:$0xff]  ;;  %v11453_v28 = vcombine.high %v751_v40, %v755_v51  ;;  %v11452_v6 = vcombine.low %v751_v40, %v755_v51 }
 0x40c   :  { %7998 = vmatprep.subr.bf16.mxu0 %v11469_v56  ;;  %v883_v10 = vld [vmem:[#allocation5 + $0x16f8] sm:$0xff] }
 0x40d   :  { %8050 = vmatpush2.bf16.msra.mxu1 %v11604_v39  ;;  %v11581_v9 = vcombine.high %v879_v31, %v883_v10  ;;  %v743_v49 = vld [vmem:[#allocation5 + $0x1298] sm:$0xff]  ;;  %v11580_v25 = vcombine.low %v879_v31, %v883_v10 }
 0x40e   :  { %8051 = vmatprep.subr.bf16.mxu1 %v11597_v37  ;;  %v747_v63 = vld [vmem:[#allocation5 + $0x12b8] sm:$0xff] }
 0x40f   :  { %7999 = vmatpush2.bf16.msra.mxu0 %v11468_v52  ;;  %v871_v60 = vld [vmem:[#allocation5 + $0x1698] sm:$0xff]  ;;  %v11445_v57 = vcombine.high %v743_v49, %v747_v63  ;;  %v11444_v55 = vcombine.low %v743_v49, %v747_v63 }
 0x410   :  { %8000 = vmatprep.subr.bf16.mxu0 %v11461_v58  ;;  %v875_v30 = vld [vmem:[#allocation5 + $0x16b8] sm:$0xff] }
 0x411   :  { %8052 = vmatpush2.bf16.msra.mxu1 %v11596_v54  ;;  %v11573_v16 = vcombine.high %v871_v60, %v875_v30  ;;  %v735_v7 = vld [vmem:[#allocation5 + $0x1258] sm:$0xff]  ;;  %v11572_v8 = vcombine.low %v871_v60, %v875_v30 }
 0x412   :  { %8053 = vmatprep.subr.bf16.mxu1 %v11589_v62  ;;  %v739_v38 = vld [vmem:[#allocation5 + $0x1278] sm:$0xff] }
 0x413   :  { %8001 = vmatpush2.bf16.msra.mxu0 %v11460_v21  ;;  %v863_v23 = vld [vmem:[#allocation5 + $0x1658] sm:$0xff]  ;;  %v11437_v39 = vcombine.high %v735_v7, %v739_v38  ;;  %v11436_v36 = vcombine.low %v735_v7, %v739_v38 }
 0x414   :  { %8002 = vmatprep.subr.bf16.mxu0 %v11453_v28  ;;  %v867_v22 = vld [vmem:[#allocation5 + $0x1678] sm:$0xff] }
 0x415   :  { %8054 = vmatpush2.bf16.msra.mxu1 %v11588_v46  ;;  %v11565_v56 = vcombine.high %v863_v23, %v867_v22  ;;  %v727_v37 = vld [vmem:[#allocation5 + $0x1218] sm:$0xff]  ;;  %v11564_v52 = vcombine.low %v863_v23, %v867_v22 }
 0x416   :  { %8055 = vmatprep.subr.bf16.mxu1 %v11581_v9  ;;  %v731_v14 = vld [vmem:[#allocation5 + $0x1238] sm:$0xff] }
 0x417   :  { %8003 = vmatpush2.bf16.msra.mxu0 %v11452_v6  ;;  %v855_v17 = vld [vmem:[#allocation5 + $0x1618] sm:$0xff]  ;;  %v11429_v54 = vcombine.high %v727_v37, %v731_v14  ;;  %v11428_v10 = vcombine.low %v727_v37, %v731_v14  ;;  %v7604_v6 = vpop.f32.mrf.mxu0 }
 0x418   :  { %8004 = vmatprep.subr.bf16.mxu0 %v11445_v57  ;;  %v859_v19 = vld [vmem:[#allocation5 + $0x1638] sm:$0xff] }
 0x419   :  { %8056 = vmatpush2.bf16.msra.mxu1 %v11580_v25  ;;  %v11557_v58 = vcombine.high %v855_v17, %v859_v19  ;;  %v975_v62 = vld [vmem:[#allocation5 + $0x19d8] sm:$0xff]  ;;  %v11556_v21 = vcombine.low %v855_v17, %v859_v19 }
 0x41a   :  { %8057 = vmatprep.subr.bf16.mxu1 %v11573_v16  ;;  %v979_v40 = vld [vmem:[#allocation5 + $0x19f8] sm:$0xff]  ;;  %v13493_v16 = vpop.f32.mrf.mxu1 }
 0x41b   :  { %8005 = vmatpush2.bf16.msra.mxu0 %v11444_v55  ;;  %v1103_v51 = vld [vmem:[#allocation5 + $0x1dd8] sm:$0xff]  ;;  %v11677_v46 = vcombine.high %v975_v62, %v979_v40  ;;  %v11676_v30 = vcombine.low %v975_v62, %v979_v40 }
 0x41c   :  { %8006 = vmatprep.subr.bf16.mxu0 %v11437_v39  ;;  %v1107_v31 = vld [vmem:[#allocation5 + $0x1df8] sm:$0xff] }
 0x41d   :  { %8058 = vmatpush2.bf16.msra.mxu1 %v11572_v8  ;;  %v11805_v28 = vcombine.high %v1103_v51, %v1107_v31  ;;  %v967_v9 = vld [vmem:[#allocation5 + $0x1998] sm:$0xff]  ;;  %v11804_v25 = vcombine.low %v1103_v51, %v1107_v31 }
 0x41e   :  { %8059 = vmatprep.subr.bf16.mxu1 %v11565_v56  ;;  %v971_v49 = vld [vmem:[#allocation5 + $0x19b8] sm:$0xff] }
 0x41f   :  { %8007 = vmatpush2.bf16.msra.mxu0 %v11436_v36  ;;  %v1095_v63 = vld [vmem:[#allocation5 + $0x1d98] sm:$0xff]  ;;  %v11669_v57 = vcombine.high %v967_v9, %v971_v49  ;;  %v11668_v37 = vcombine.low %v967_v9, %v971_v49 }
 0x420   :  { %8008 = vmatprep.subr.bf16.mxu0 %v11429_v54  ;;  %v1099_v60 = vld [vmem:[#allocation5 + $0x1db8] sm:$0xff] }
 0x421   :  { %8060 = vmatpush2.bf16.msra.mxu1 %v11564_v52  ;;  %v11797_v7 = vcombine.high %v1095_v63, %v1099_v60  ;;  %v959_v38 = vld [vmem:[#allocation5 + $0x1958] sm:$0xff]  ;;  %v11796_v17 = vcombine.low %v1095_v63, %v1099_v60 }
 0x422   :  { %8061 = vmatprep.subr.bf16.mxu1 %v11557_v58  ;;  %v963_v23 = vld [vmem:[#allocation5 + $0x1978] sm:$0xff] }
 0x423   :  { %8009 = vmatpush2.bf16.msra.mxu0 %v11428_v10  ;;  %v1087_v55 = vld [vmem:[#allocation5 + $0x1d58] sm:$0xff]  ;;  %v11661_v19 = vcombine.high %v959_v38, %v963_v23  ;;  %v11660_v31 = vcombine.low %v959_v38, %v963_v23 }
 0x424   :  { %8084 = vmatprep.subr.bf16.mxu0 %v11677_v46  ;;  %v1091_v8 = vld [vmem:[#allocation5 + $0x1d78] sm:$0xff] }
 0x425   :  { %8062 = vmatpush2.bf16.msra.mxu1 %v11556_v21  ;;  %v951_v52 = vld [vmem:[#allocation5 + $0x1918] sm:$0xff]  ;;  %v11788_v21 = vcombine.low %v1087_v55, %v1091_v8 }
 0x426   :  { %8137 = vmatprep.subr.bf16.mxu1 %v11805_v28  ;;  %v7694_v22 = vpop.f32.mrf.mxu0  ;;  %8011 = vmatmul.mubr.bf16.vlgmr.msra.gmra.mxu0 %v13040_v43  ;;  %v11789_v43 = vcombine.high %v1087_v55, %v1091_v8  ;;  %v955_v54 = vld [vmem:[#allocation5 + $0x1938] sm:$0xff] }
 0x427   :  { %v7695_v39 = vadd.f32 %v7694_v22, %v13467_v33  ;;  %8085 = vmatpush1.bf16.msra.mxu0 %v11676_v30  ;;  %8020 = vmatprep.mubr.bf16.mxu0 %v13046_v26  ;;  %v1083_v58 = vld [vmem:[#allocation5 + $0x1d38] sm:$0xff]  ;;  %v11653_v26 = vcombine.high %v951_v52, %v955_v54 }
 0x428   :  { %v7747_v56 = vpop.f32.mrf.mxu1  ;;  %8064 = vmatmul.mubr.bf16.vlgmr.msra.gmra.mxu1 %v13044_v44  ;;  %v13498_v14 = vpop.f32.mrf.mxu0  ;;  %8086 = vmatprep.subr.bf16.mxu0 %v11669_v57  ;;  %v1079_v44 = vld [vmem:[#allocation5 + $0x1d18] sm:$0xff] }
 0x429   :  { %8138 = vmatpush1.bf16.msra.mxu1 %v11804_v25  ;;  %8073 = vmatprep.mubr.bf16.mxu1 %v13049_v24  ;;  %v7748_v62 = vadd.f32 %v7747_v56, %v7695_v39  ;;  %v11781_v9 = vcombine.high %v1079_v44, %v1083_v58  ;;  %v943_v24 = vld [vmem:[#allocation5 + $0x18d8] sm:$0xff]  ;;  %v7605_v25 = vadd.f32 %v7604_v6, %v13460_v59 }
 0x42a   :  { %v13500_v36 = vpop.f32.mrf.mxu1  ;;  %8139 = vmatprep.subr.bf16.mxu1 %v11797_v7  ;;  %v7698_v33 = vpop.f32.mrf.mxu0  ;;  %v947_v49 = vld [vmem:[#allocation5 + $0x18f8] sm:$0xff]  ;;  %v11780_v55 = vcombine.low %v1079_v44, %v1083_v58 }
 0x42b   :  { %v7699_v40 = vadd.f32 %v7698_v33, %v13476_v15  ;;  %8087 = vmatpush1.bf16.msra.mxu0 %v11668_v37  ;;  %v11652_v15 = vcombine.low %v951_v52, %v955_v54  ;;  %v1071_v60 = vld [vmem:[#allocation5 + $0x1cd8] sm:$0xff]  ;;  %v8194_v57 = vmax.f32 %v7748_v62, 0.0  ;;  %v11645_v8 = vcombine.high %v943_v24, %v947_v49 }
 0x42c   :  { %v7751_v51 = vpop.f32.mrf.mxu1  ;;  %v13505_v10 = vpop.f32.mrf.mxu0  ;;  %8088 = vmatprep.subr.bf16.mxu0 %v11661_v19  ;;  %v1075_v30 = vld [vmem:[#allocation5 + $0x1cf8] sm:$0xff] }
 0x42d   :  { %8140 = vmatpush1.bf16.msra.mxu1 %v11796_v17  ;;  %v7752_v46 = vadd.f32 %v7751_v51, %v7699_v40  ;;  %v11773_v59 = vcombine.high %v1071_v60, %v1075_v30  ;;  %v935_v6 = vld [vmem:[#allocation5 + $0x1898] sm:$0xff]  ;;  %v11772_v44 = vcombine.low %v1071_v60, %v1075_v30 }
 0x42e   :  { %v13507_v28 = vpop.f32.mrf.mxu1  ;;  %8141 = vmatprep.subr.bf16.mxu1 %v11789_v43  ;;  %v7704_v63 = vpop.f32.mrf.mxu0  ;;  %8021 = vmatmul.mubr.bf16.gmra.mxu0 %v13061_v45  ;;  %v939_v37 = vld [vmem:[#allocation5 + $0x18b8] sm:$0xff] }
 0x42f   :  { %v8202_v7 = vmax.f32 %v7752_v46, 0.0  ;;  %v7705_v38 = vadd.f32 %v7704_v63, %v13484_v11  ;;  %8089 = vmatpush1.bf16.msra.mxu0 %v11660_v31  ;;  %8116 = vmatprep.mubr.bf16.mxu0 %v13068_v2  ;;  %v1063_v17 = vld [vmem:[#allocation5 + $0x1c98] sm:$0xff]  ;;  %v11637_v58 = vcombine.high %v935_v6, %v939_v37 }
 0x430   :  { %v7757_v23 = vpop.f32.mrf.mxu1  ;;  %8074 = vmatmul.mubr.bf16.gmra.mxu1 %v13064_v50  ;;  %v7706_v22 = vpop.f32.mrf.mxu0  ;;  %8090 = vmatprep.subr.bf16.mxu0 %v11653_v26  ;;  %v1067_v19 = vld [vmem:[#allocation5 + $0x1cb8] sm:$0xff]  ;;  %v7658_v50 = vadd.f32 %v13493_v16, %v7605_v25 }
 0x431   :  { %8142 = vmatpush1.bf16.msra.mxu1 %v11788_v21  ;;  %v13513_v39 = vpack.c.bf16 %v8202_v7, %v8194_v57  ;;  %v7707_v45 = vadd.f32 %v7706_v22, %v13489_v20  ;;  %8169 = vmatprep.mubr.bf16.mxu1 %v13073_v3  ;;  %v7758_v43 = vadd.f32 %v7757_v23, %v7705_v38  ;;  %v927_v3 = vld [vmem:[#allocation5 + $0x1858] sm:$0xff] }
 0x432   :  { %v7759_v56 = vpop.f32.mrf.mxu1  ;;  %8143 = vmatprep.subr.bf16.mxu1 %v11781_v9  ;;  %v7708_v11 = vpop.f32.mrf.mxu0  ;;  %v11644_v20 = vcombine.low %v943_v24, %v947_v49  ;;  %v11765_v31 = vcombine.high %v1063_v17, %v1067_v19  ;;  %v931_v21 = vld [vmem:[#allocation5 + $0x1878] sm:$0xff]  ;;  %v11636_v24 = vcombine.low %v935_v6, %v939_v37  ;;  %v11764_v49 = vcombine.low %v1063_v17, %v1067_v19 }
 0x433   :  { %v7709_v52 = vadd.f32 %v7708_v11, %v13491_v18  ;;  %8091 = vmatpush1.bf16.msra.mxu0 %v11652_v15  ;;  %v7760_v62 = vadd.f32 %v7759_v56, %v7707_v45  ;;  %v1055_v16 = vld [vmem:[#allocation5 + $0x1c58] sm:$0xff]  ;;  %v8210_v46 = vmax.f32 %v7758_v43, 0.0  ;;  %v11629_v63 = vcombine.high %v927_v3, %v931_v21 }
 0x434   :  { %v7761_v54 = vpop.f32.mrf.mxu1  ;;  %v7710_v33 = vpop.f32.mrf.mxu0  ;;  %8092 = vmatprep.subr.bf16.mxu0 %v11645_v8  ;;  %v1059_v26 = vld [vmem:[#allocation5 + $0x1c78] sm:$0xff] }
 0x435   :  { %8144 = vmatpush1.bf16.msra.mxu1 %v11780_v55  ;;  %v7711_v2 = vadd.f32 %v7710_v33, %v7658_v50  ;;  %v7762_v40 = vadd.f32 %v7761_v54, %v7709_v52  ;;  %v8211_v15 = vmax.f32 %v7760_v62, 0.0  ;;  %v11757_v25 = vcombine.high %v1055_v16, %v1059_v26  ;;  %v919_v57 = vld [vmem:[#allocation5 + $0x1818] sm:$0xff] }
 0x436   :  { %v7763_v51 = vpop.f32.mrf.mxu1  ;;  %8145 = vmatprep.subr.bf16.mxu1 %v11773_v59  ;;  %v923_v7 = vld [vmem:[#allocation5 + $0x1838] sm:$0xff]  ;;  %v11628_v55 = vcombine.low %v927_v3, %v931_v21  ;;  %v11756_v8 = vcombine.low %v1055_v16, %v1059_v26 }
 0x437   :  { %v8218_v18 = vmax.f32 %v7762_v40, 0.0  ;;  %v7764_v9 = vadd.f32 %v7763_v51, %v7711_v2  ;;  %8093 = vmatpush1.bf16.msra.mxu0 %v11644_v20  ;;  %v1047_v38 = vld [vmem:[#allocation5 + $0x1c18] sm:$0xff]  ;;  %v11621_v45 = vcombine.high %v919_v57, %v923_v7  ;;  %v11620_v17 = vcombine.low %v919_v57, %v923_v7 }
 0x438   :  { %8094 = vmatprep.subr.bf16.mxu0 %v11637_v58  ;;  %v1051_v23 = vld [vmem:[#allocation5 + $0x1c38] sm:$0xff] }
 0x439   :  { %8146 = vmatpush1.bf16.msra.mxu1 %v11772_v44  ;;  %v13520_v60 = vpack.c.bf16 %v8218_v18, %v8210_v46  ;;  %v8219_v30 = vmax.f32 %v7764_v9, 0.0  ;;  %v11749_v56 = vcombine.high %v1047_v38, %v1051_v23  ;;  %v1039_v59 = vld [vmem:[#allocation5 + $0x1bd8] sm:$0xff]  ;;  %v11748_v19 = vcombine.low %v1047_v38, %v1051_v23 }
 0x43a   :  { %8147 = vmatprep.subr.bf16.mxu1 %v11765_v31  ;;  %v1043_v6 = vld [vmem:[#allocation5 + $0x1bf8] sm:$0xff] }
 0x43b   :  { %v13522_v22 = vpack.c.bf16 %v8219_v30, %v8211_v15  ;;  %8095 = vmatpush1.bf16.msra.mxu0 %v11636_v24  ;;  %v1167_v37 = vld [vmem:[#allocation5 + $0x1fd8] sm:$0xff]  ;;  %v11741_v50 = vcombine.high %v1039_v59, %v1043_v6  ;;  %v11740_v44 = vcombine.low %v1039_v59, %v1043_v6 }
 0x43c   :  { %8096 = vmatprep.subr.bf16.mxu0 %v11629_v63  ;;  %v1171_v11 = vld [vmem:[#allocation5 + $0x1ff8] sm:$0xff] }
 0x43d   :  { %8148 = vmatpush1.bf16.msra.mxu1 %v11764_v49  ;;  %v11869_v43 = vcombine.high %v1167_v37, %v1171_v11  ;;  %v1031_v52 = vld [vmem:[#allocation5 + $0x1b98] sm:$0xff]  ;;  %v11868_v58 = vcombine.low %v1167_v37, %v1171_v11  ;;  %v13908_v37 = vld [vmem:[#allocation50_spill] sm:$0xff]  ;;  %v13909_v11 = vld [vmem:[#allocation48_spill] sm:$0xff] }
 0x43e   :  { %8149 = vmatprep.subr.bf16.mxu1 %v11757_v25  ;;  %v1035_v54 = vld [vmem:[#allocation5 + $0x1bb8] sm:$0xff] }
 0x43f   :  { %8097 = vmatpush1.bf16.msra.mxu0 %v11628_v55  ;;  %v1159_v20 = vld [vmem:[#allocation5 + $0x1f98] sm:$0xff]  ;;  %v11733_v62 = vcombine.high %v1031_v52, %v1035_v54  ;;  %v11732_v21 = vcombine.low %v1031_v52, %v1035_v54 }
 0x440   :  { %8098 = vmatprep.subr.bf16.mxu0 %v11621_v45  ;;  %v1163_v33 = vld [vmem:[#allocation5 + $0x1fb8] sm:$0xff]  ;;  %v13907_v45 = vld [vmem:[#allocation26_spill] sm:$0xff] }
 0x441   :  { %8150 = vmatpush1.bf16.msra.mxu1 %v11756_v8  ;;  %v11861_v2 = vcombine.high %v1159_v20, %v1163_v33  ;;  %v1023_v40 = vld [vmem:[#allocation5 + $0x1b58] sm:$0xff]  ;;  %v11860_v16 = vcombine.low %v1159_v20, %v1163_v33  ;;  %v13910_v20 = vld [vmem:[#allocation46_spill] sm:$0xff] }
 0x442   :  { %8151 = vmatprep.subr.bf16.mxu1 %v11749_v56  ;;  %v1027_v51 = vld [vmem:[#allocation5 + $0x1b78] sm:$0xff]  ;;  %v6955_v33 = vadd.f32 %v13910_v20, %v13908_v37 }
 0x443   :  { %8099 = vmatpush1.bf16.msra.mxu0 %v11620_v17  ;;  %v1151_v31 = vld [vmem:[#allocation5 + $0x1f58] sm:$0xff]  ;;  %v11725_v26 = vcombine.high %v1023_v40, %v1027_v51  ;;  %v11724_v63 = vcombine.low %v1023_v40, %v1027_v51  ;;  %v6959_v17 = vadd.f32 %v13909_v11, %v13908_v37 }
 0x444   :  { %8100 = vmatprep.subr.bf16.mxu0 %v11741_v50  ;;  %v1155_v3 = vld [vmem:[#allocation5 + $0x1f78] sm:$0xff] }
 0x445   :  { %8152 = vmatpush1.bf16.msra.mxu1 %v11748_v19  ;;  %v11853_v46 = vcombine.high %v1151_v31, %v1155_v3  ;;  %v1015_v18 = vld [vmem:[#allocation5 + $0x1b18] sm:$0xff]  ;;  %v11852_v15 = vcombine.low %v1151_v31, %v1155_v3 }
 0x446   :  { %8153 = vmatprep.subr.bf16.mxu1 %v11869_v43  ;;  %v1019_v9 = vld [vmem:[#allocation5 + $0x1b38] sm:$0xff] }
 0x447   :  { %8101 = vmatpush2.bf16.msra.mxu0 %v11740_v44  ;;  %v1143_v24 = vld [vmem:[#allocation5 + $0x1f18] sm:$0xff]  ;;  %v11717_v30 = vcombine.high %v1015_v18, %v1019_v9  ;;  %v11716_v55 = vcombine.low %v1015_v18, %v1019_v9 }
 0x448   :  { %8102 = vmatprep.subr.bf16.mxu0 %v11733_v62  ;;  %v1147_v49 = vld [vmem:[#allocation5 + $0x1f38] sm:$0xff] }
 0x449   :  { %8154 = vmatpush2.bf16.msra.mxu1 %v11868_v58  ;;  %v11845_v25 = vcombine.high %v1143_v24, %v1147_v49  ;;  %v1007_v57 = vld [vmem:[#allocation5 + $0x1ad8] sm:$0xff]  ;;  %v11844_v59 = vcombine.low %v1143_v24, %v1147_v49  ;;  %v13911_v58 = vld [vmem:[#allocation27_spill] sm:$0xff] }
 0x44a   :  { %8155 = vmatprep.subr.bf16.mxu1 %v11861_v2  ;;  %v1011_v7 = vld [vmem:[#allocation5 + $0x1af8] sm:$0xff]  ;;  %v13914_v24 = vld [vmem:[#allocation47_spill] sm:$0xff] }
 0x44b   :  { %8103 = vmatpush2.bf16.msra.mxu0 %v11732_v21  ;;  %v1135_v38 = vld [vmem:[#allocation5 + $0x1ed8] sm:$0xff]  ;;  %v11709_v6 = vcombine.high %v1007_v57, %v1011_v7  ;;  %v11708_v44 = vcombine.low %v1007_v57, %v1011_v7  ;;  %v7008_v49 = vadd.f32 %v13914_v24, %v6955_v33  ;;  %v13916_v7 = vld [vmem:[#allocation52_spill] sm:$0xff]  ;;  %v13919_v33 = vld [vmem:[#allocation34_spill] sm:$0xff] }
 0x44c   :  { %8104 = vmatprep.subr.bf16.mxu0 %v11725_v26  ;;  %v1139_v23 = vld [vmem:[#allocation5 + $0x1ef8] sm:$0xff]  ;;  %v13913_v26 = vld [vmem:[#allocation30_spill] sm:$0xff] }
 0x44d   :  { %8156 = vmatpush2.bf16.msra.mxu1 %v11860_v16  ;;  %v13906_v8 = vld [vmem:[#allocation25_spill] sm:$0xff]  ;;  %v11837_v19 = vcombine.high %v1135_v38, %v1139_v23  ;;  %v11836_v2 = vcombine.low %v1135_v38, %v1139_v23  ;;  %v7061_v38 = vadd.f32 %v13916_v7, %v7008_v49 }
 0x44e   :  { %8157 = vmatprep.subr.bf16.mxu1 %v11853_v46  ;;  %v6535_v56 = vadd.f32 %v13907_v45, %v13906_v8  ;;  %v999_v50 = vld [vmem:[#allocation5 + $0x1a98] sm:$0xff] }
 0x44f   :  { %8105 = vmatpush2.bf16.msra.mxu0 %v11724_v63  ;;  %v1003_v43 = vld [vmem:[#allocation5 + $0x1ab8] sm:$0xff]  ;;  %v13915_v63 = vld [vmem:[#allocation54_spill] sm:$0xff] }
 0x450   :  { %8106 = vmatprep.subr.bf16.mxu0 %v11717_v30  ;;  %v1127_v52 = vld [vmem:[#allocation5 + $0x1e98] sm:$0xff]  ;;  %v6588_v62 = vadd.f32 %v13911_v58, %v6535_v56  ;;  %v11701_v40 = vcombine.high %v999_v50, %v1003_v43  ;;  %v11700_v30 = vcombine.low %v999_v50, %v1003_v43  ;;  %v13917_v56 = vld [vmem:[#allocation31_spill] sm:$0xff]  ;;  %v13921_v58 = vld [vmem:[#allocation60_spill] sm:$0xff] }
 0x451   :  { %8158 = vmatpush2.bf16.msra.mxu1 %v11852_v15  ;;  %v1131_v54 = vld [vmem:[#allocation5 + $0x1eb8] sm:$0xff] }
 0x452   :  { %8159 = vmatprep.subr.bf16.mxu1 %v11845_v25  ;;  %v13912_v51 = vld [vmem:[#allocation49_spill] sm:$0xff]  ;;  %v11829_v3 = vcombine.high %v1127_v52, %v1131_v54  ;;  %v6641_v46 = vadd.f32 %v13913_v26, %v6588_v62  ;;  %v11828_v25 = vcombine.low %v1127_v52, %v1131_v54 }
 0x453   :  { %8107 = vmatpush2.bf16.msra.mxu0 %v11716_v55  ;;  %v7012_v31 = vadd.f32 %v13912_v51, %v6959_v17  ;;  %v991_v21 = vld [vmem:[#allocation5 + $0x1a58] sm:$0xff]  ;;  %v13918_v17 = vld [vmem:[#allocation55_spill] sm:$0xff] }
 0x454   :  { %8108 = vmatprep.subr.bf16.mxu0 %v11709_v6  ;;  %v995_v16 = vld [vmem:[#allocation5 + $0x1a78] sm:$0xff] }
 0x455   :  { %8160 = vmatpush2.bf16.msra.mxu1 %v11844_v59  ;;  %v1119_v18 = vld [vmem:[#allocation5 + $0x1e58] sm:$0xff]  ;;  %v7065_v15 = vadd.f32 %v13915_v63, %v7012_v31  ;;  %v11693_v57 = vcombine.high %v991_v21, %v995_v16  ;;  %v6694_v59 = vadd.f32 %v13917_v56, %v6641_v46  ;;  %v11692_v20 = vcombine.low %v991_v21, %v995_v16  ;;  %v13926_v63 = vld [vmem:[#allocation59_spill] sm:$0xff]  ;;  %v13928_v56 = vld [vmem:[#allocation66_spill] sm:$0xff] }
 0x456   :  { %8161 = vmatprep.subr.bf16.mxu1 %v11837_v19  ;;  %v1123_v9 = vld [vmem:[#allocation5 + $0x1e78] sm:$0xff] }
 0x457   :  { %8109 = vmatpush2.bf16.msra.mxu0 %v11708_v44  ;;  %v11821_v23 = vcombine.high %v1119_v18, %v1123_v9  ;;  %v983_v55 = vld [vmem:[#allocation5 + $0x1a18] sm:$0xff]  ;;  %v7118_v19 = vadd.f32 %v13918_v17, %v7065_v15  ;;  %v6747_v50 = vadd.f32 %v13919_v33, %v6694_v59  ;;  %v11820_v43 = vcombine.low %v1119_v18, %v1123_v9  ;;  %v13925_v9 = vld [vmem:[#allocation39_spill] sm:$0xff] }
 0x458   :  { %8110 = vmatprep.subr.bf16.mxu0 %v11701_v40  ;;  %v987_v45 = vld [vmem:[#allocation5 + $0x1a38] sm:$0xff]  ;;  %v13922_v40 = vld [vmem:[#allocation58_spill] sm:$0xff] }
 0x459   :  { %8162 = vmatpush2.bf16.msra.mxu1 %v11836_v2  ;;  %v1111_v6 = vld [vmem:[#allocation5 + $0x1e18] sm:$0xff]  ;;  %v11685_v52 = vcombine.high %v983_v55, %v987_v45  ;;  %v7171_v62 = vadd.f32 %v13921_v58, %v7118_v19  ;;  %v11684_v31 = vcombine.low %v983_v55, %v987_v45  ;;  %v13927_v55 = vld [vmem:[#allocation40_spill] sm:$0xff] }
 0x45a   :  { %8163 = vmatprep.subr.bf16.mxu1 %v11829_v3  ;;  %v1115_v11 = vld [vmem:[#allocation5 + $0x1e38] sm:$0xff]  ;;  %v13923_v3 = vld [vmem:[#allocation35_spill] sm:$0xff] }
 0x45b   :  { %8111 = vmatpush2.bf16.msra.mxu0 %v11700_v30  ;;  %v13920_v54 = vld [vmem:[#allocation53_spill] sm:$0xff]  ;;  %v11813_v2 = vcombine.high %v1111_v6, %v1115_v11  ;;  %v6800_v26 = vadd.f32 %v13923_v3, %v6747_v50  ;;  %v11812_v21 = vcombine.low %v1111_v6, %v1115_v11  ;;  %v13930_v50 = vld [vmem:[#allocation38_spill] sm:$0xff] }
 0x45c   :  { %8112 = vmatprep.subr.bf16.mxu0 %v11693_v57  ;;  %v7114_v44 = vadd.f32 %v13920_v54, %v7061_v38  ;;  %v12208_v16 = vld [vmem:[#allocation8 + $0xe4] ss:$16 sps:$4 sm:$0xff]   ;;  %v12209_v57 = vld [vmem:[#allocation8 + $0x2e0] ss:$16 sps:$4 sm:$0xff]  }
 0x45d   :  { %8164 = vmatpush2.bf16.msra.mxu1 %v11828_v25  ;;  %v13924_v46 = vld [vmem:[#allocation61_spill] sm:$0xff]  ;;  %v6853_v49 = vadd.f32 %v13925_v9, %v6800_v26 }
 0x45e   :  { %8165 = vmatprep.subr.bf16.mxu1 %v11821_v23  ;;  %v7167_v51 = vadd.f32 %v13922_v40, %v7114_v44  ;;  %v7224_v24 = vadd.f32 %v13924_v46, %v7171_v62  ;;  %v12211_v18 = vld [vmem:[#allocation8 + $0x2e4] ss:$16 sps:$4 sm:$0xff]   ;;  %v12206_v25 = vld [vmem:[#allocation8 + $0xe0] ss:$16 sps:$4 sm:$0xff]  }
 0x45f   :  { %8113 = vmatpush2.bf16.msra.mxu0 %v11692_v20  ;;  %v12214_v7 = vld [vmem:[#allocation8 + $0xc4] ss:$16 sps:$4 sm:$0xff]   ;;  %v6906_v45 = vadd.f32 %v13927_v55, %v6853_v49  ;;  %v12215_v6 = vld [vmem:[#allocation8 + $0x2c0] ss:$16 sps:$4 sm:$0xff]  }
 0x460   :  { %8114 = vmatprep.subr.bf16.mxu0 %v11685_v52  ;;  %v7220_v15 = vadd.f32 %v13926_v63, %v7167_v51  ;;  %v7277_v30 = vadd.f32 %v13366_v41, %v7224_v24  ;;  %v12217_v23 = vld [vmem:[#allocation8 + $0x2c4] ss:$16 sps:$4 sm:$0xff]   ;;  %v12212_v41 = vld [vmem:[#allocation8 + $0xc0] ss:$16 sps:$4 sm:$0xff]  }
 0x461   :  { %8166 = vmatpush2.bf16.msra.mxu1 %v11820_v43  ;;  %v12220_v11 = vld [vmem:[#allocation8 + $0xa4] ss:$16 sps:$4 sm:$0xff]   ;;  %v8199_v20 = vmax.f32 %v6906_v45, 0.0  ;;  %v12218_v33 = vld [vmem:[#allocation8 + $0xa0] ss:$16 sps:$4 sm:$0xff]  }
 0x462   :  { %8167 = vmatprep.subr.bf16.mxu1 %v11813_v2  ;;  %v7273_v38 = vadd.f32 %v13359_v13, %v7220_v15  ;;  %v7330_v59 = vadd.f32 %v13928_v56, %v7277_v30  ;;  %v13929_v17 = vld [vmem:[#allocation65_spill] sm:$0xff]  ;;  %v13932_v56 = vld [vmem:[#allocation20_spill] sm:$0xff] }
 0x463   :  { %8115 = vmatpush2.bf16.msra.mxu0 %v11684_v31  ;;  %v12223_v13 = vld [vmem:[#allocation8 + $0x2a4] ss:$16 sps:$4 sm:$0xff]   ;;  %v12221_v43 = vld [vmem:[#allocation8 + $0x2a0] ss:$16 sps:$4 sm:$0xff]  }
 0x464   :  { %9796 = vmatprep.subr.bf16.mxu0 %v12208_v16  ;;  %v7326_v19 = vadd.f32 %v13929_v17, %v7273_v38  ;;  %v12226_v54 = vld [vmem:[#allocation8 + $0x84] ss:$16 sps:$4 sm:$0xff]   ;;  %v12227_v62 = vld [vmem:[#allocation8 + $0x280] ss:$16 sps:$4 sm:$0xff]  }
 0x465   :  { %8168 = vmatpush2.bf16.msra.mxu1 %v11812_v21  ;;  %v12232_v2 = vld [vmem:[#allocation8 + $0x64] ss:$16 sps:$4 sm:$0xff]   ;;  %v12233_v51 = vld [vmem:[#allocation8 + $0x260] ss:$16 sps:$4 sm:$0xff]  }
 0x466   :  { %9849 = vmatprep.subr.bf16.mxu1 %v12211_v18  ;;  %8117 = vmatmul.mubr.bf16.vlgmr.msra.gmra.mxu0 %v13089_v12  ;;  %v8201_v12 = vmax.f32 %v7330_v59, 0.0  ;;  %v8193_v52 = vmax.f32 %v7326_v19, 0.0  ;;  %v12235_v40 = vld [vmem:[#allocation8 + $0x264] ss:$16 sps:$4 sm:$0xff]   ;;  %v12236_v3 = vld [vmem:[#allocation8 + $0x40] ss:$16 sps:$4 sm:$0xff]   ;;  %v6969_v59 = vadd.f32 %v13932_v56, %v13908_v37 }
 0x467   :  { %9797 = vmatpush1.bf16.msra.mxu0 %v12206_v25  ;;  %8126 = vmatprep.mubr.bf16.mxu0 %v13101_v27  ;;  %v12229_v27 = vld [vmem:[#allocation8 + $0x284] ss:$16 sps:$4 sm:$0xff]   ;;  %v12239_v26 = vld [vmem:[#allocation8 + $0x240] ss:$16 sps:$4 sm:$0xff]  }
 0x468   :  { %8170 = vmatmul.mubr.bf16.vlgmr.msra.gmra.mxu1 %v13093_v47  ;;  %9798 = vmatprep.subr.bf16.mxu0 %v12214_v7  ;;  %v8191_v47 = vmax.f32 %v13930_v50, 0.0  ;;  %v13559_v58 = vpack.c.bf16 %v8201_v12, %v8193_v52  ;;  %v12238_v31 = vld [vmem:[#allocation8 + $0x44] ss:$16 sps:$4 sm:$0xff]   ;;  %v12242_v46 = vld [vmem:[#allocation8 + $0x20] ss:$16 sps:$4 sm:$0xff]   ;;  %v13935_v50 = vld [vmem:[#allocation32_spill] sm:$0xff] }
 0x469   :  { %9850 = vmatpush1.bf16.msra.mxu1 %v12209_v57  ;;  %8179 = vmatprep.mubr.bf16.mxu1 %v13104_v34  ;;  %v12224_v34 = vld [vmem:[#allocation8 + $0x80] ss:$16 sps:$4 sm:$0xff]   ;;  %v12244_v21 = vld [vmem:[#allocation8 + $0x24] ss:$16 sps:$4 sm:$0xff]  }
 0x46a   :  { %9851 = vmatprep.subr.bf16.mxu1 %v12217_v23  ;;  %v13557_v44 = vpack.c.bf16 %v8199_v20, %v8191_v47  ;;  %v12247_v16 = vld [vmem:[#allocation8 + $0x224] ss:$16 sps:$4 sm:$0xff]   ;;  %v12245_v24 = vld [vmem:[#allocation8 + $0x220] ss:$16 sps:$4 sm:$0xff]   ;;  %v13931_v23 = vld [vmem:[#allocation28_spill] sm:$0xff] }
 0x46b   :  { %9799 = vmatpush1.bf16.msra.mxu0 %v12212_v41  ;;  %v12250_v18 = vld [vmem:[#allocation8 + $0x4] ss:$16 sps:$4 sm:$0xff]   ;;  %v12248_v49 = vld [vmem:[#allocation8] ss:$16 sps:$4 sm:$0xff]   ;;  %v6545_v55 = vadd.f32 %v13931_v23, %v13906_v8 }
 0x46c   :  { %9800 = vmatprep.subr.bf16.mxu0 %v12220_v11  ;;  %v12253_v9 = vld [vmem:[#allocation8 + $0x204] ss:$16 sps:$4 sm:$0xff]   ;;  %v12251_v63 = vld [vmem:[#allocation8 + $0x200] ss:$16 sps:$4 sm:$0xff]  }
 0x46d   :  { %9852 = vmatpush1.bf16.msra.mxu1 %v12215_v6  ;;  %v12256_v15 = vld [vmem:[#allocation8 + $0x1e4] ss:$16 sps:$4 sm:$0xff]   ;;  %v12254_v25 = vld [vmem:[#allocation8 + $0x1e0] ss:$16 sps:$4 sm:$0xff]  }
 0x46e   :  { %9853 = vmatprep.subr.bf16.mxu1 %v12223_v13  ;;  %8127 = vmatmul.mubr.bf16.gmra.mxu0 %v13112_v61  ;;  %v12230_v61 = vld [vmem:[#allocation8 + $0x60] ss:$16 sps:$4 sm:$0xff]   ;;  %v12259_v30 = vld [vmem:[#allocation8 + $0x3e4] ss:$16 sps:$4 sm:$0xff]  }
 0x46f   :  { %9801 = vmatpush1.bf16.msra.mxu0 %v12218_v33  ;;  %9828 = vmatprep.mubr.bf16.mxu0 %v13557_v44  ;;  %v12257_v57 = vld [vmem:[#allocation8 + $0x3e0] ss:$16 sps:$4 sm:$0xff]   ;;  %v12262_v7 = vld [vmem:[#allocation8 + $0x1c4] ss:$16 sps:$4 sm:$0xff]  }
 0x470   :  { %8180 = vmatmul.mubr.bf16.gmra.mxu1 %v13118_v29  ;;  %9802 = vmatprep.subr.bf16.mxu0 %v12226_v54  ;;  %v12241_v29 = vld [vmem:[#allocation8 + $0x244] ss:$16 sps:$4 sm:$0xff]   ;;  %v12260_v45 = vld [vmem:[#allocation8 + $0x1c0] ss:$16 sps:$4 sm:$0xff]  }
 0x471   :  { %9854 = vmatpush1.bf16.msra.mxu1 %v12221_v43  ;;  %9881 = vmatprep.mubr.bf16.mxu1 %v13559_v58  ;;  %v12265_v38 = vld [vmem:[#allocation8 + $0x3c4] ss:$16 sps:$4 sm:$0xff]   ;;  %v12263_v41 = vld [vmem:[#allocation8 + $0x3c0] ss:$16 sps:$4 sm:$0xff]   ;;  %v13936_v43 = vld [vmem:[#allocation56_spill] sm:$0xff] }
 0x472   :  { %9855 = vmatprep.subr.bf16.mxu1 %v12229_v27  ;;  %v12268_v6 = vld [vmem:[#allocation8 + $0x1a4] ss:$16 sps:$4 sm:$0xff]   ;;  %v12266_v13 = vld [vmem:[#allocation8 + $0x1a0] ss:$16 sps:$4 sm:$0xff]  }
 0x473   :  { %9803 = vmatpush1.bf16.msra.mxu0 %v12224_v34  ;;  %v12271_v11 = vld [vmem:[#allocation8 + $0x3a4] ss:$16 sps:$4 sm:$0xff]   ;;  %v12269_v8 = vld [vmem:[#allocation8 + $0x3a0] ss:$16 sps:$4 sm:$0xff]  }
 0x474   :  { %9804 = vmatprep.subr.bf16.mxu0 %v12232_v2  ;;  %v13933_v17 = vld [vmem:[#allocation29_spill] sm:$0xff]  ;;  %v13934_v20 = vld [vmem:[#allocation51_spill] sm:$0xff] }
 0x475   :  { %9856 = vmatpush1.bf16.msra.mxu1 %v12227_v62  ;;  %v6598_v19 = vadd.f32 %v13933_v17, %v6545_v55  ;;  %v7022_v12 = vadd.f32 %v13934_v20, %v6969_v59  ;;  %v12274_v33 = vld [vmem:[#allocation8 + $0x184] ss:$16 sps:$4 sm:$0xff]   ;;  %v12272_v34 = vld [vmem:[#allocation8 + $0x180] ss:$16 sps:$4 sm:$0xff]  }
 0x476   :  { %9857 = vmatprep.subr.bf16.mxu1 %v12235_v40  ;;  %v12277_v37 = vld [vmem:[#allocation8 + $0x384] ss:$16 sps:$4 sm:$0xff]   ;;  %v12275_v62 = vld [vmem:[#allocation8 + $0x380] ss:$16 sps:$4 sm:$0xff]  }
 0x477   :  { %9805 = vmatpush1.bf16.msra.mxu0 %v12230_v61  ;;  %v6651_v47 = vadd.f32 %v13935_v50, %v6598_v19  ;;  %v7075_v52 = vadd.f32 %v13936_v43, %v7022_v12  ;;  %v13937_v54 = vld [vmem:[#allocation75_spill] sm:$0xff]  ;;  %v13938_v40 = vld [vmem:[#allocation33_spill] sm:$0xff] }
 0x478   :  { %9806 = vmatprep.subr.bf16.mxu0 %v12238_v31  ;;  %v7383_v27 = vadd.f32 %v13937_v54, %v13411_v0  ;;  %v12280_v2 = vld [vmem:[#allocation8 + $0x164] ss:$16 sps:$4 sm:$0xff]   ;;  %v12284_v55 = vld [vmem:[#allocation8 + $0x140] ss:$16 sps:$4 sm:$0xff]  }
 0x479   :  { %9858 = vmatpush1.bf16.msra.mxu1 %v12233_v51  ;;  %v6704_v61 = vadd.f32 %v13938_v40, %v6651_v47  ;;  %v13939_v51 = vld [vmem:[#allocation73_spill] sm:$0xff]  ;;  %v13948_v19 = vld [vmem:[#allocation71_spill] sm:$0xff] }
 0x47a   :  { %9859 = vmatprep.subr.bf16.mxu1 %v12241_v29  ;;  %v7379_v31 = vadd.f32 %v13939_v51, %v13411_v0  ;;  %v12283_v29 = vld [vmem:[#allocation8 + $0x364] ss:$16 sps:$4 sm:$0xff]   ;;  %v12287_v59 = vld [vmem:[#allocation8 + $0x340] ss:$16 sps:$4 sm:$0xff]  }
 0x47b   :  { %9807 = vmatpush1.bf16.msra.mxu0 %v12236_v3  ;;  %v13940_v3 = vld [vmem:[#allocation57_spill] sm:$0xff] }
 0x47c   :  { %9808 = vmatprep.subr.bf16.mxu0 %v12244_v21  ;;  %v13941_v21 = vld [vmem:[#allocation36_spill] sm:$0xff]  ;;  %v12290_v12 = vld [vmem:[#allocation8 + $0x120] ss:$16 sps:$4 sm:$0xff]   ;;  %v12301_v54 = vld [vmem:[#allocation8 + $0x304] ss:$16 sps:$4 sm:$0xff]  }
 0x47d   :  { %9860 = vmatpush1.bf16.msra.mxu1 %v12239_v26  ;;  %v7128_v26 = vadd.f32 %v13940_v3, %v7075_v52  ;;  %v12293_v47 = vld [vmem:[#allocation8 + $0x320] ss:$16 sps:$4 sm:$0xff]  }
 0x47e   :  { %9861 = vmatprep.subr.bf16.mxu1 %v12247_v16  ;;  %v6757_v16 = vadd.f32 %v13941_v21, %v6704_v61  ;;  %v13951_v43 = vld [vmem:[#allocation45_spill] sm:$0xff] }
 0x47f   :  { %9809 = vmatpush1.bf16.msra.mxu0 %v12242_v46  ;;  %v13942_v46 = vld [vmem:[#allocation76_spill] sm:$0xff]  ;;  %v12299_v40 = vld [vmem:[#allocation8 + $0x300] ss:$16 sps:$4 sm:$0xff]   ;;  %v12304_v61 = vld [vmem:[#allocation8 + $0x4e4] ss:$16 sps:$4 sm:$0xff]  }
 0x480   :  { %9810 = vmatprep.subr.bf16.mxu0 %v12250_v18  ;;  %v12278_v18 = vld [vmem:[#allocation8 + $0x160] ss:$16 sps:$4 sm:$0xff]  }
 0x481   :  { %9862 = vmatpush1.bf16.msra.mxu1 %v12245_v24  ;;  %v7436_v24 = vadd.f32 %v13942_v46, %v7383_v27  ;;  %v13952_v27 = vld [vmem:[#allocation72_spill] sm:$0xff]  ;;  %v12302_v46 = vld [vmem:[#allocation8 + $0x4e0] ss:$16 sps:$4 sm:$0xff]  }
 0x482   :  { %9863 = vmatprep.subr.bf16.mxu1 %v12253_v9  ;;  %v13943_v9 = vld [vmem:[#allocation63_spill] sm:$0xff] }
 0x483   :  { %9811 = vmatpush1.bf16.msra.mxu0 %v12248_v49  ;;  %v7181_v49 = vadd.f32 %v13943_v9, %v7128_v26  ;;  %v7489_v0 = vadd.f32 %v13440_v4, %v7436_v24  ;;  %v12295_v4 = vld [vmem:[#allocation8 + $0x324] ss:$16 sps:$4 sm:$0xff]   ;;  %v13954_v26 = vld [vmem:[#allocation42_spill] sm:$0xff] }
 0x484   :  { %9812 = vmatprep.subr.bf16.mxu0 %v12256_v15  ;;  %v12286_v15 = vld [vmem:[#allocation8 + $0x144] ss:$16 sps:$4 sm:$0xff]   ;;  %v8207_v21 = vmax.f32 %v13954_v26, 0.0 }
 0x485   :  { %9864 = vmatpush1.bf16.msra.mxu1 %v12251_v63  ;;  %v12281_v63 = vld [vmem:[#allocation8 + $0x360] ss:$16 sps:$4 sm:$0xff]   ;;  %v7542_v17 = vadd.f32 %v13444_v32, %v7489_v0  ;;  %v12307_v9 = vld [vmem:[#allocation8 + $0x4c4] ss:$16 sps:$4 sm:$0xff]  }
 0x486   :  { %9865 = vmatprep.subr.bf16.mxu1 %v12259_v30  ;;  %v13944_v30 = vld [vmem:[#allocation74_spill] sm:$0xff]  ;;  %v12368_v0 = vld [vmem:[#allocation8 + $0x6c0] ss:$16 sps:$4 sm:$0xff]   ;;  %v12430_v26 = vld [vmem:[#allocation8 + $0x784] ss:$16 sps:$4 sm:$0xff]  }
 0x487   :  { %9813 = vmatpush2.bf16.msra.mxu0 %v12254_v25  ;;  %v7432_v25 = vadd.f32 %v13944_v30, %v7379_v31 }
 0x488   :  { %9814 = vmatprep.subr.bf16.mxu0 %v12262_v7  ;;  %v13945_v7 = vld [vmem:[#allocation37_spill] sm:$0xff] }
 0x489   :  { %9866 = vmatpush2.bf16.msra.mxu1 %v12257_v57  ;;  %v12289_v57 = vld [vmem:[#allocation8 + $0x344] ss:$16 sps:$4 sm:$0xff]   ;;  %v7485_v23 = vadd.f32 %v13431_v53, %v7432_v25  ;;  %v7595_v53 = vadd.f32 %v13474_v35, %v7542_v17  ;;  %v12296_v35 = vld [vmem:[#allocation8 + $0x100] ss:$16 sps:$4 sm:$0xff]  }
 0x48a   :  { %9867 = vmatprep.subr.bf16.mxu1 %v12265_v38  ;;  %v6810_v38 = vadd.f32 %v13945_v7, %v6757_v16  ;;  %v12310_v25 = vld [vmem:[#allocation8 + $0x4a4] ss:$16 sps:$4 sm:$0xff]  }
 0x48b   :  { %9815 = vmatpush2.bf16.msra.mxu0 %v12260_v45  ;;  %v13946_v45 = vld [vmem:[#allocation64_spill] sm:$0xff]  ;;  %v7538_v20 = vadd.f32 %v13435_v5, %v7485_v23  ;;  %v7648_v5 = vadd.f32 %v13478_v1, %v7595_v53  ;;  %v12388_v17 = vld [vmem:[#allocation8 + $0x664] ss:$16 sps:$4 sm:$0xff]   ;;  %v12317_v53 = vld [vmem:[#allocation8 + $0x440] ss:$16 sps:$4 sm:$0xff]  }
 0x48c   :  { %9816 = vmatprep.subr.bf16.mxu0 %v12268_v6  ;;  %v7234_v56 = vadd.f32 %v13946_v45, %v7181_v49  ;;  %v13947_v6 = vld [vmem:[#allocation44_spill] sm:$0xff]  ;;  %v13956_v49 = vld [vmem:[#allocation41_spill] sm:$0xff]  ;;  %v13958_v45 = vld [vmem:[#allocation43_spill] sm:$0xff] }
 0x48d   :  { %9868 = vmatpush2.bf16.msra.mxu1 %v12263_v41  ;;  %v12292_v41 = vld [vmem:[#allocation8 + $0x124] ss:$16 sps:$4 sm:$0xff]   ;;  %v7591_v32 = vadd.f32 %v13465_v42, %v7538_v20 }
 0x48e   :  { %9869 = vmatprep.subr.bf16.mxu1 %v12271_v11  ;;  %v6863_v11 = vadd.f32 %v13947_v6, %v6810_v38  ;;  %v12364_v42 = vld [vmem:[#allocation8 + $0x6e4] ss:$16 sps:$4 sm:$0xff]   ;;  %v12308_v38 = vld [vmem:[#allocation8 + $0x4a0] ss:$16 sps:$4 sm:$0xff]  }
 0x48f   :  { %9817 = vmatpush2.bf16.msra.mxu0 %v12266_v13  ;;  %v7287_v13 = vadd.f32 %v13948_v19, %v7234_v56  ;;  %v7644_v31 = vadd.f32 %v13469_v48, %v7591_v32  ;;  %v12362_v48 = vld [vmem:[#allocation8 + $0x6e0] ss:$16 sps:$4 sm:$0xff]   ;;  %v12382_v56 = vld [vmem:[#allocation8 + $0x684] ss:$16 sps:$4 sm:$0xff]  }
 0x490   :  { %9818 = vmatprep.subr.bf16.mxu0 %v12274_v33  ;;  %v13950_v33 = vld [vmem:[#allocation67_spill] sm:$0xff]  ;;  %v6916_v52 = vadd.f32 %v13951_v43, %v6863_v11 }
 0x491   :  { %9870 = vmatpush2.bf16.msra.mxu1 %v12269_v8  ;;  %v13949_v8 = vld [vmem:[#allocation62_spill] sm:$0xff]  ;;  %v7697_v1 = vadd.f32 %v13498_v14, %v7644_v31  ;;  %v13957_v14 = vld [vmem:[#allocation68_spill] sm:$0xff]  ;;  %v12316_v6 = vld [vmem:[#allocation8 + $0x464] ss:$16 sps:$4 sm:$0xff]  }
 0x492   :  { %9871 = vmatprep.subr.bf16.mxu1 %v12277_v37  ;;  %v7283_v50 = vadd.f32 %v13950_v33, %v13949_v8  ;;  %v12298_v37 = vld [vmem:[#allocation8 + $0x104] ss:$16 sps:$4 sm:$0xff]   ;;  %v8215_v51 = vmax.f32 %v6916_v52, 0.0  ;;  %v12380_v11 = vld [vmem:[#allocation8 + $0x680] ss:$16 sps:$4 sm:$0xff]  }
 0x493   :  { %9819 = vmatpush2.bf16.msra.mxu0 %v12272_v34  ;;  %v7340_v34 = vadd.f32 %v13952_v27, %v7287_v13  ;;  %v12319_v19 = vld [vmem:[#allocation8 + $0x444] ss:$16 sps:$4 sm:$0xff]   ;;  %v12386_v13 = vld [vmem:[#allocation8 + $0x660] ss:$16 sps:$4 sm:$0xff]  }
 0x494   :  { %9820 = vmatprep.subr.bf16.mxu0 %v12280_v2  ;;  %v12394_v20 = vld [vmem:[#allocation8 + $0x644] ss:$16 sps:$4 sm:$0xff]   ;;  %v12392_v8 = vld [vmem:[#allocation8 + $0x640] ss:$16 sps:$4 sm:$0xff]  }
 0x495   :  { %9872 = vmatpush2.bf16.msra.mxu1 %v12275_v62  ;;  %v13953_v62 = vld [vmem:[#allocation69_spill] sm:$0xff]  ;;  %v8217_v3 = vmax.f32 %v7340_v34, 0.0 }
 0x496   :  { %9873 = vmatprep.subr.bf16.mxu1 %v12283_v29  ;;  %v7336_v2 = vadd.f32 %v13953_v62, %v7283_v50  ;;  %v7701_v29 = vadd.f32 %v13505_v10, %v7648_v5  ;;  %v12400_v33 = vld [vmem:[#allocation8 + $0x624] ss:$16 sps:$4 sm:$0xff]   ;;  %v12320_v50 = vld [vmem:[#allocation8 + $0x420] ss:$16 sps:$4 sm:$0xff]  }
 0x497   :  { %9821 = vmatpush2.bf16.msra.mxu0 %v12278_v18  ;;  %v13603_v18 = vpack.c.bf16 %v8215_v51, %v8207_v21  ;;  %v12406_v43 = vld [vmem:[#allocation8 + $0x604] ss:$16 sps:$4 sm:$0xff]   ;;  %v12323_v52 = vld [vmem:[#allocation8 + $0x400] ss:$16 sps:$4 sm:$0xff]  }
 0x498   :  { %9822 = vmatprep.subr.bf16.mxu0 %v12286_v15  ;;  %v8209_v16 = vmax.f32 %v7336_v2, 0.0  ;;  %v7754_v24 = vadd.f32 %v13507_v28, %v7701_v29  ;;  %v7750_v15 = vadd.f32 %v13500_v36, %v7697_v1  ;;  %v12305_v28 = vld [vmem:[#allocation8 + $0x4c0] ss:$16 sps:$4 sm:$0xff]   ;;  %v12313_v36 = vld [vmem:[#allocation8 + $0x484] ss:$16 sps:$4 sm:$0xff]  }
 0x499   :  { %9874 = vmatpush2.bf16.msra.mxu1 %v12281_v63  ;;  %v12370_v63 = vld [vmem:[#allocation8 + $0x6c4] ss:$16 sps:$4 sm:$0xff]   ;;  %v12326_v34 = vld [vmem:[#allocation8 + $0x5e0] ss:$16 sps:$4 sm:$0xff]  }
 0x49a   :  { %9875 = vmatprep.subr.bf16.mxu1 %v12289_v57  ;;  %v13605_v10 = vpack.c.bf16 %v8217_v3, %v8209_v16  ;;  %v8203_v30 = vmax.f32 %v7754_v24, 0.0  ;;  %v12376_v57 = vld [vmem:[#allocation8 + $0x6a4] ss:$16 sps:$4 sm:$0xff]   ;;  %v8195_v7 = vmax.f32 %v7750_v15, 0.0  ;;  %v12329_v2 = vld [vmem:[#allocation8 + $0x5c0] ss:$16 sps:$4 sm:$0xff]   ;;  %v13617_v3 = vpop.f32.mrf.mxu0 }
 0x49b   :  { %9823 = vmatpush2.bf16.msra.mxu0 %v12284_v55  ;;  %v12374_v55 = vld [vmem:[#allocation8 + $0x6a0] ss:$16 sps:$4 sm:$0xff]   ;;  %v12328_v32 = vld [vmem:[#allocation8 + $0x5e4] ss:$16 sps:$4 sm:$0xff]  }
 0x49c   :  { %9824 = vmatprep.subr.bf16.mxu0 %v12292_v41  ;;  %13955 = vst [vmem:[#allocation21_spill] sm:$0xff] %v13605_v10  ;;  %v13612_v23 = vpack.c.bf16 %v8203_v30, %v8195_v7  ;;  %v12311_v41 = vld [vmem:[#allocation8 + $0x480] ss:$16 sps:$4 sm:$0xff]   ;;  %v12412_v27 = vld [vmem:[#allocation8 + $0x7e4] ss:$16 sps:$4 sm:$0xff]  }
 0x49d   :  { %9876 = vmatpush2.bf16.msra.mxu1 %v12287_v59  ;;  %v13959_v59 = vld [vmem:[#allocation70_spill] sm:$0xff]  ;;  %v12331_v5 = vld [vmem:[#allocation8 + $0x5c4] ss:$16 sps:$4 sm:$0xff]   ;;  %v12332_v31 = vld [vmem:[#allocation8 + $0x5a0] ss:$16 sps:$4 sm:$0xff]  }
 0x49e   :  { %9877 = vmatprep.subr.bf16.mxu1 %v12295_v4  ;;  %v12314_v4 = vld [vmem:[#allocation8 + $0x460] ss:$16 sps:$4 sm:$0xff]   ;;  %v12418_v62 = vld [vmem:[#allocation8 + $0x7c4] ss:$16 sps:$4 sm:$0xff]  }
 0x49f   :  { %9825 = vmatpush2.bf16.msra.mxu0 %v12290_v12  ;;  %v12322_v12 = vld [vmem:[#allocation8 + $0x424] ss:$16 sps:$4 sm:$0xff]   ;;  %v12335_v21 = vld [vmem:[#allocation8 + $0x580] ss:$16 sps:$4 sm:$0xff]  }
 0x4a0   :  { %9826 = vmatprep.subr.bf16.mxu0 %v12298_v37  ;;  %v12398_v37 = vld [vmem:[#allocation8 + $0x620] ss:$16 sps:$4 sm:$0xff]   ;;  %v12424_v51 = vld [vmem:[#allocation8 + $0x7a4] ss:$16 sps:$4 sm:$0xff]  }
 0x4a1   :  { %9878 = vmatpush2.bf16.msra.mxu1 %v12293_v47  ;;  %v12325_v47 = vld [vmem:[#allocation8 + $0x404] ss:$16 sps:$4 sm:$0xff]   ;;  %v12428_v16 = vld [vmem:[#allocation8 + $0x780] ss:$16 sps:$4 sm:$0xff]  }
 0x4a2   :  { %9879 = vmatprep.subr.bf16.mxu1 %v12301_v54  ;;  %v12404_v54 = vld [vmem:[#allocation8 + $0x600] ss:$16 sps:$4 sm:$0xff]   ;;  %v12337_v29 = vld [vmem:[#allocation8 + $0x584] ss:$16 sps:$4 sm:$0xff]  }
 0x4a3   :  { %9827 = vmatpush2.bf16.msra.mxu0 %v12296_v35  ;;  %v12410_v35 = vld [vmem:[#allocation8 + $0x7e0] ss:$16 sps:$4 sm:$0xff]   ;;  %v12340_v1 = vld [vmem:[#allocation8 + $0x564] ss:$16 sps:$4 sm:$0xff]  }
 0x4a4   :  { %9902 = vmatprep.subr.bf16.mxu0 %v12304_v61  ;;  %v12416_v61 = vld [vmem:[#allocation8 + $0x7c0] ss:$16 sps:$4 sm:$0xff]   ;;  %v12436_v24 = vld [vmem:[#allocation8 + $0x764] ss:$16 sps:$4 sm:$0xff]  }
 0x4a5   :  { %9880 = vmatpush2.bf16.msra.mxu1 %v12299_v40  ;;  %v12334_v40 = vld [vmem:[#allocation8 + $0x5a4] ss:$16 sps:$4 sm:$0xff]   ;;  %v12434_v15 = vld [vmem:[#allocation8 + $0x760] ss:$16 sps:$4 sm:$0xff]  }
 0x4a6   :  { %9955 = vmatprep.subr.bf16.mxu1 %v12364_v42  ;;  %9829 = vmatmul.mubr.bf16.vlgmr.msra.gmra.mxu0 %v13956_v49  ;;  %v12422_v42 = vld [vmem:[#allocation8 + $0x7a0] ss:$16 sps:$4 sm:$0xff]   ;;  %v12442_v30 = vld [vmem:[#allocation8 + $0x744] ss:$16 sps:$4 sm:$0xff]  }
 0x4a7   :  { %9838 = vmatprep.mubr.bf16.mxu0 %v13603_v18  ;;  %9903 = vmatpush1.bf16.msra.mxu0 %v12302_v46  ;;  %v13619_v46 = vpop.f32.mrf.mxu0  ;;  %v12440_v7 = vld [vmem:[#allocation8 + $0x740] ss:$16 sps:$4 sm:$0xff]  }
 0x4a8   :  { %9882 = vmatmul.mubr.bf16.vlgmr.msra.gmra.mxu1 %v13957_v14  ;;  %9904 = vmatprep.subr.bf16.mxu0 %v12307_v9  ;;  %v13621_v9 = vpop.f32.mrf.mxu1 }
 0x4a9   :  { %9891 = vmatprep.mubr.bf16.mxu1 %v13605_v10  ;;  %9956 = vmatpush1.bf16.msra.mxu1 %v12362_v48  ;;  %v12338_v48 = vld [vmem:[#allocation8 + $0x560] ss:$16 sps:$4 sm:$0xff]  }
 0x4aa   :  { %9957 = vmatprep.subr.bf16.mxu1 %v12370_v63  ;;  %v12343_v63 = vld [vmem:[#allocation8 + $0x544] ss:$16 sps:$4 sm:$0xff]  }
 0x4ab   :  { %9905 = vmatpush1.bf16.msra.mxu0 %v12305_v28  ;;  %v13623_v28 = vpop.f32.mrf.mxu0 }
 0x4ac   :  { %9906 = vmatprep.subr.bf16.mxu0 %v12310_v25  ;;  %v13625_v25 = vpop.f32.mrf.mxu1 }
 0x4ad   :  { %9958 = vmatpush1.bf16.msra.mxu1 %v12368_v0  ;;  %v12341_v0 = vld [vmem:[#allocation8 + $0x540] ss:$16 sps:$4 sm:$0xff]  }
 0x4ae   :  { %9839 = vmatmul.mubr.bf16.gmra.mxu0 %v13958_v45  ;;  %9959 = vmatprep.subr.bf16.mxu1 %v12376_v57  ;;  %v12346_v57 = vld [vmem:[#allocation8 + $0x524] ss:$16 sps:$4 sm:$0xff]  }
 0x4af   :  { %9934 = vmatprep.mubr.bf16.mxu0 %v13612_v23  ;;  %9907 = vmatpush1.bf16.msra.mxu0 %v12308_v38  ;;  %v13627_v38 = vpop.f32.mrf.mxu0 }
 0x4b0   :  { %9892 = vmatmul.mubr.bf16.gmra.mxu1 %v13959_v59  ;;  %9908 = vmatprep.subr.bf16.mxu0 %v12313_v36  ;;  %v12448_v36 = vld [vmem:[#allocation8 + $0x724] ss:$16 sps:$4 sm:$0xff]  }
 0x4b1   :  { %9960 = vmatpush1.bf16.msra.mxu1 %v12374_v55  ;;  %v13629_v55 = vpop.f32.mrf.mxu1 }
 0x4b2   :  { %9961 = vmatprep.subr.bf16.mxu1 %v12382_v56  ;;  %v13631_v56 = vpop.f32.mrf.mxu0 }
 0x4b3   :  { %9909 = vmatpush1.bf16.msra.mxu0 %v12311_v41  ;;  %v12344_v41 = vld [vmem:[#allocation8 + $0x520] ss:$16 sps:$4 sm:$0xff]  }
 0x4b4   :  { %9910 = vmatprep.subr.bf16.mxu0 %v12316_v6  ;;  %v12349_v6 = vld [vmem:[#allocation8 + $0x504] ss:$16 sps:$4 sm:$0xff]  }
 0x4b5   :  { %9962 = vmatpush1.bf16.msra.mxu1 %v12380_v11  ;;  %v12446_v11 = vld [vmem:[#allocation8 + $0x720] ss:$16 sps:$4 sm:$0xff]  }
 0x4b6   :  { %9963 = vmatprep.subr.bf16.mxu1 %v12388_v17  ;;  %v12454_v17 = vld [vmem:[#allocation8 + $0x704] ss:$16 sps:$4 sm:$0xff]  }
 0x4b7   :  { %9911 = vmatpush1.bf16.msra.mxu0 %v12314_v4  ;;  %v13633_v4 = vpop.f32.mrf.mxu1 }
 0x4b8   :  { %9912 = vmatprep.subr.bf16.mxu0 %v12319_v19  ;;  %v13635_v19 = vpop.f32.mrf.mxu0 }
 0x4b9   :  { %9964 = vmatpush1.bf16.msra.mxu1 %v12386_v13  ;;  %v12347_v13 = vld [vmem:[#allocation8 + $0x500] ss:$16 sps:$4 sm:$0xff]  }
 0x4ba   :  { %9965 = vmatprep.subr.bf16.mxu1 %v12394_v20  ;;  %v13637_v20 = vpop.f32.mrf.mxu1 }
 0x4bb   :  { %9913 = vmatpush1.bf16.msra.mxu0 %v12317_v53  ;;  %v12352_v53 = vld [vmem:[#allocation8 + $0xec] ss:$16 sps:$4 sm:$0xff]  }
 0x4bc   :  { %9914 = vmatprep.subr.bf16.mxu0 %v12322_v12  ;;  %v12452_v12 = vld [vmem:[#allocation8 + $0x700] ss:$16 sps:$4 sm:$0xff]  }
 0x4bd   :  { %9966 = vmatpush1.bf16.msra.mxu1 %v12392_v8  ;;  %v12460_v8 = vld [vmem:[#allocation8 + $0x2ec] ss:$16 sps:$4 sm:$0xff]  }
 0x4be   :  { %9967 = vmatprep.subr.bf16.mxu1 %v12400_v33  ;;  %v13639_v33 = vpop.f32.mrf.mxu0 }
 0x4bf   :  { %9915 = vmatpush1.bf16.msra.mxu0 %v12320_v50  ;;  %v12350_v50 = vld [vmem:[#allocation8 + $0xe8] ss:$16 sps:$4 sm:$0xff]  }
 0x4c0   :  { %9916 = vmatprep.subr.bf16.mxu0 %v12325_v47  ;;  %v13641_v47 = vpop.f32.mrf.mxu1 }
 0x4c1   :  { %9968 = vmatpush1.bf16.msra.mxu1 %v12398_v37  ;;  %v12355_v37 = vld [vmem:[#allocation8 + $0xcc] ss:$16 sps:$4 sm:$0xff]  }
 0x4c2   :  { %9969 = vmatprep.subr.bf16.mxu1 %v12406_v43  ;;  %v13644_v43 = vpop.f32.mrf.mxu0 }
 0x4c3   :  { %9917 = vmatpush1.bf16.msra.mxu0 %v12323_v52  ;;  %v12353_v52 = vld [vmem:[#allocation8 + $0xc8] ss:$16 sps:$4 sm:$0xff]  }
 0x4c4   :  { %9918 = vmatprep.subr.bf16.mxu0 %v12328_v32  ;;  %v13647_v32 = vpop.f32.mrf.mxu1 }
 0x4c5   :  { %9970 = vmatpush1.bf16.msra.mxu1 %v12404_v54  ;;  %v12358_v54 = vld [vmem:[#allocation8 + $0xac] ss:$16 sps:$4 sm:$0xff]  }
 0x4c6   :  { %9971 = vmatprep.subr.bf16.mxu1 %v12412_v27  ;;  %v13649_v27 = vpop.f32.mrf.mxu0 }
 0x4c7   :  { %9919 = vmatpush2.bf16.msra.mxu0 %v12326_v34  ;;  %v12356_v34 = vld [vmem:[#allocation8 + $0xa8] ss:$16 sps:$4 sm:$0xff]  }
 0x4c8   :  { %9920 = vmatprep.subr.bf16.mxu0 %v12331_v5  ;;  %v13651_v5 = vpop.f32.mrf.mxu1 }
 0x4c9   :  { %9972 = vmatpush2.bf16.msra.mxu1 %v12410_v35  ;;  %v12361_v35 = vld [vmem:[#allocation8 + $0x8c] ss:$16 sps:$4 sm:$0xff]  }
 0x4ca   :  { %9973 = vmatprep.subr.bf16.mxu1 %v12418_v62  ;;  %v13653_v62 = vpop.f32.mrf.mxu0 }
 0x4cb   :  { %9921 = vmatpush2.bf16.msra.mxu0 %v12329_v2  ;;  %v13655_v2 = vpop.f32.mrf.mxu1 }
 0x4cc   :  { %9922 = vmatprep.subr.bf16.mxu0 %v12334_v40  ;;  %v12359_v40 = vld [vmem:[#allocation8 + $0x88] ss:$16 sps:$4 sm:$0xff]  }
 0x4cd   :  { %9974 = vmatpush2.bf16.msra.mxu1 %v12416_v61  ;;  %v12367_v61 = vld [vmem:[#allocation8 + $0x6c] ss:$16 sps:$4 sm:$0xff]  }
 0x4ce   :  { %9975 = vmatprep.subr.bf16.mxu1 %v12424_v51  ;;  %v13659_v51 = vpop.f32.mrf.mxu0 }
 0x4cf   :  { %9923 = vmatpush2.bf16.msra.mxu0 %v12332_v31  ;;  %v13661_v31 = vpop.f32.mrf.mxu1 }
 0x4d0   :  { %9924 = vmatprep.subr.bf16.mxu0 %v12337_v29  ;;  %v12365_v29 = vld [vmem:[#allocation8 + $0x68] ss:$16 sps:$4 sm:$0xff]  }
 0x4d1   :  { %9976 = vmatpush2.bf16.msra.mxu1 %v12422_v42  ;;  %v12373_v42 = vld [vmem:[#allocation8 + $0x4c] ss:$16 sps:$4 sm:$0xff]  }
 0x4d2   :  { %9977 = vmatprep.subr.bf16.mxu1 %v12430_v26  ;;  %v13663_v26 = vpop.f32.mrf.mxu0 }
 0x4d3   :  { %9925 = vmatpush2.bf16.msra.mxu0 %v12335_v21  ;;  %v13665_v21 = vpop.f32.mrf.mxu1 }
 0x4d4   :  { %9926 = vmatprep.subr.bf16.mxu0 %v12340_v1  ;;  %v12371_v1 = vld [vmem:[#allocation8 + $0x48] ss:$16 sps:$4 sm:$0xff]  }
 0x4d5   :  { %9978 = vmatpush2.bf16.msra.mxu1 %v12428_v16  ;;  %v12379_v16 = vld [vmem:[#allocation8 + $0x2c] ss:$16 sps:$4 sm:$0xff]  }
 0x4d6   :  { %9979 = vmatprep.subr.bf16.mxu1 %v12436_v24  ;;  %v13669_v24 = vpop.f32.mrf.mxu1 }
 0x4d7   :  { %9927 = vmatpush2.bf16.msra.mxu0 %v12338_v48  ;;  %v12377_v48 = vld [vmem:[#allocation8 + $0x28] ss:$16 sps:$4 sm:$0xff]  }
 0x4d8   :  { %9928 = vmatprep.subr.bf16.mxu0 %v12343_v63  ;;  %v13671_v63 = vpop.f32.mrf.mxu1 }
 0x4d9   :  { %9980 = vmatpush2.bf16.msra.mxu1 %v12434_v15  ;;  %v12385_v15 = vld [vmem:[#allocation8 + $0xc] ss:$16 sps:$4 sm:$0xff]  }
 0x4da   :  { %9981 = vmatprep.subr.bf16.mxu1 %v12442_v30 }
 0x4db   :  { %9929 = vmatpush2.bf16.msra.mxu0 %v12341_v0  ;;  %v12383_v0 = vld [vmem:[#allocation8 + $0x8] ss:$16 sps:$4 sm:$0xff]  }
 0x4dc   :  { %9930 = vmatprep.subr.bf16.mxu0 %v12346_v57  ;;  %v13675_v57 = vpop.f32.mrf.mxu1 }
 0x4dd   :  { %9982 = vmatpush2.bf16.msra.mxu1 %v12440_v7  ;;  %v12391_v7 = vld [vmem:[#allocation8 + $0x1ec] ss:$16 sps:$4 sm:$0xff]  }
 0x4de   :  { %9983 = vmatprep.subr.bf16.mxu1 %v12448_v36 }
 0x4df   :  { %9931 = vmatpush2.bf16.msra.mxu0 %v12344_v41  ;;  %v12389_v41 = vld [vmem:[#allocation8 + $0x1e8] ss:$16 sps:$4 sm:$0xff]  }
 0x4e0   :  { %9932 = vmatprep.subr.bf16.mxu0 %v12349_v6  ;;  %v13679_v6 = vpop.f32.mrf.mxu1 }
 0x4e1   :  { %9984 = vmatpush2.bf16.msra.mxu1 %v12446_v11  ;;  %v12397_v11 = vld [vmem:[#allocation8 + $0x1cc] ss:$16 sps:$4 sm:$0xff]  }
 0x4e2   :  { %9985 = vmatprep.subr.bf16.mxu1 %v12454_v17 }
 0x4e3   :  { %9933 = vmatpush2.bf16.msra.mxu0 %v12347_v13 }
 0x4e4   :  { %10008 = vmatprep.subr.bf16.mxu0 %v12352_v53  ;;  %v12395_v53 = vld [vmem:[#allocation8 + $0x1c8] ss:$16 sps:$4 sm:$0xff]  }
 0x4e5   :  { %9986 = vmatpush2.bf16.msra.mxu1 %v12452_v12  ;;  %v13685_v12 = vpop.f32.mrf.mxu1 }
 0x4e6   :  { %10061 = vmatprep.subr.bf16.mxu1 %v12460_v8  ;;  %9935 = vmatmul.mubr.bf16.vlgmr.msra.gmra.mxu0 %v13513_v39  ;;  %v12403_v8 = vld [vmem:[#allocation8 + $0x1ac] ss:$16 sps:$4 sm:$0xff]  }
 0x4e7   :  { %9944 = vmatprep.mubr.bf16.mxu0 %v13522_v22  ;;  %10009 = vmatpush1.bf16.msra.mxu0 %v12350_v50 }
 0x4e8   :  { %10010 = vmatprep.subr.bf16.mxu0 %v12355_v37  ;;  %v13687_v50 = vpop.f32.mrf.mxu1 }
 0x4eb   :  { %10011 = vmatpush1.bf16.msra.mxu0 %v12353_v52  ;;  %v12401_v52 = vld [vmem:[#allocation8 + $0x1a8] ss:$16 sps:$4 sm:$0xff]  }
 0x4ec   :  { %10012 = vmatprep.subr.bf16.mxu0 %v12358_v54  ;;  %v12409_v54 = vld [vmem:[#allocation8 + $0x18c] ss:$16 sps:$4 sm:$0xff]  }
 0x4ee   :  { %9945 = vmatmul.mubr.bf16.gmra.mxu0 %v13520_v60 }
 0x4ef   :  { %10013 = vmatpush1.bf16.msra.mxu0 %v12356_v34  ;;  %10040 = vmatprep.mubr.bf16.mxu0 %v13557_v44  ;;  %v13667_v44 = vpop.f32.mrf.mxu0  ;;  %v13960_v34 = vld [vmem:[#allocation22_spill] sm:$0xff] }
 0x4f0   :  { %10014 = vmatprep.subr.bf16.mxu0 %v12361_v35  ;;  %v1204_v35 = vsub.s32 7, %v13960_v34 }
 0x4f1   :  { %v13673_v30 = vpop.f32.mrf.mxu0 }
 0x4f3   :  { %10015 = vmatpush1.bf16.msra.mxu0 %v12359_v40  ;;  %v13677_v36 = vpop.f32.mrf.mxu0  ;;  %v13690_v40 = vpop.f32.mrf.mxu1 }
 0x4f4   :  { %10016 = vmatprep.subr.bf16.mxu0 %v12367_v61  ;;  %v1200_v61 = vsub.s32 6, %v13960_v34 }
 0x4f5   :  { %v13681_v17 = vpop.f32.mrf.mxu0 }
 0x4f7   :  { %10017 = vmatpush1.bf16.msra.mxu0 %v12365_v29  ;;  %v13683_v13 = vpop.f32.mrf.mxu0 }
 0x4f8   :  { %10018 = vmatprep.subr.bf16.mxu0 %v12373_v42  ;;  %v12407_v42 = vld [vmem:[#allocation8 + $0x188] ss:$16 sps:$4 sm:$0xff]  }
 0x4f9   :  { %v8014_v37 = vpop.f32.mrf.mxu0 }
 0x4fb   :  { %10019 = vmatpush1.bf16.msra.mxu0 %v12371_v1  ;;  %v8016_v29 = vpop.f32.mrf.mxu0  ;;  %v12415_v1 = vld [vmem:[#allocation8 + $0x16c] ss:$16 sps:$4 sm:$0xff]  }
 0x4fc   :  { %10020 = vmatprep.subr.bf16.mxu0 %v12379_v16  ;;  %v12692_v16 = vld [vmem:[#allocation7] sm:$0xff] }
 0x4ff   :  { %10021 = vmatpush1.bf16.msra.mxu0 %v12377_v48  ;;  %v1205_v48 = vrot.slane %v12692_v16, %v1204_v35 }
 0x500   :  { %10022 = vmatprep.subr.bf16.mxu0 %v12385_v15  ;;  %v13693_v15 = vpop.f32.mrf.mxu1 }
 0x503   :  { %10023 = vmatpush1.bf16.msra.mxu0 %v12383_v0  ;;  %v1201_v0 = vrot.slane %v12692_v16, %v1200_v61  ;;  %v12427_v61 = vld [vmem:[#allocation8 + $0x12c] ss:$16 sps:$4 sm:$0xff]  }
 0x504   :  { %10024 = vmatprep.subr.bf16.mxu0 %v12391_v7  ;;  %v8018_v7 = vpop.f32.mrf.mxu0 }
 0x505   :  { %v7801_v34 = vadd.f32 %v13617_v3, %v1201_v0  ;;  %v7805_v35 = vadd.f32 %v13623_v28, %v1201_v0  ;;  %v12425_v3 = vld [vmem:[#allocation8 + $0x128] ss:$16 sps:$4 sm:$0xff]   ;;  %v12433_v28 = vld [vmem:[#allocation8 + $0x10c] ss:$16 sps:$4 sm:$0xff]  }
 0x507   :  { %10025 = vmatpush2.bf16.msra.mxu0 %v12389_v41  ;;  %v12413_v41 = vld [vmem:[#allocation8 + $0x168] ss:$16 sps:$4 sm:$0xff]   ;;  %v7858_v10 = vadd.f32 %v13629_v55, %v7805_v35  ;;  %v7815_v55 = vadd.f32 %v13639_v33, %v1201_v0 }
 0x508   :  { %10026 = vmatprep.subr.bf16.mxu0 %v12397_v11  ;;  %v12421_v11 = vld [vmem:[#allocation8 + $0x14c] ss:$16 sps:$4 sm:$0xff]  }
 0x50b   :  { %10027 = vmatpush2.bf16.msra.mxu0 %v12395_v53  ;;  %v7803_v53 = vadd.f32 %v13619_v46, %v1205_v48  ;;  %v7854_v46 = vadd.f32 %v13621_v9, %v7801_v34  ;;  %v7911_v9 = vadd.f32 %v13659_v51, %v7858_v10  ;;  %v7811_v34 = vadd.f32 %v13631_v56, %v1201_v0 }
 0x50c   :  { %10028 = vmatprep.subr.bf16.mxu0 %v12403_v8  ;;  %v13696_v8 = vpop.f32.mrf.mxu1  ;;  %v7868_v0 = vadd.f32 %v13647_v32, %v7815_v55 }
 0x50d   :  { %v7964_v56 = vadd.f32 %v13665_v21, %v7911_v9 }
 0x50e   :  { %v13702_v59 = vpop.f32.mrf.mxu1 }
 0x50f   :  { %10029 = vmatpush2.bf16.msra.mxu0 %v12401_v52  ;;  %v13699_v52 = vpop.f32.mrf.mxu0 }
 0x510   :  { %10030 = vmatprep.subr.bf16.mxu0 %v12409_v54  ;;  %v12419_v54 = vld [vmem:[#allocation8 + $0x148] ss:$16 sps:$4 sm:$0xff]   ;;  %v13711_v14 = vpop.f32.mrf.mxu1 }
 0x511   :  { %v13707_v16 = vpop.f32.mrf.mxu0 }
 0x513   :  { %10031 = vmatpush2.bf16.msra.mxu0 %v12407_v42  ;;  %v7856_v42 = vadd.f32 %v13625_v25, %v7803_v53  ;;  %v8026_v53 = vpop.f32.mrf.mxu0 }
 0x514   :  { %10032 = vmatprep.subr.bf16.mxu0 %v12415_v1  ;;  %v7807_v1 = vadd.f32 %v13627_v38, %v1205_v48  ;;  %v7813_v38 = vadd.f32 %v13635_v19, %v1205_v48 }
 0x516   :  { %v7860_v25 = vadd.f32 %v13633_v4, %v7807_v1  ;;  %v7817_v4 = vadd.f32 %v13644_v43, %v1205_v48  ;;  %v7866_v10 = vadd.f32 %v13641_v47, %v7813_v38  ;;  %v8017_v48 = vadd.f32 %v8016_v29, %v7964_v56  ;;  %v12445_v47 = vld [vmem:[#allocation8 + $0x4cc] ss:$16 sps:$4 sm:$0xff]   ;;  %v12455_v56 = vld [vmem:[#allocation8 + $0x488] ss:$16 sps:$4 sm:$0xff]  }
 0x517   :  { %10033 = vmatpush2.bf16.msra.mxu0 %v12413_v41  ;;  %v7909_v41 = vadd.f32 %v13653_v62, %v7856_v42  ;;  %v7864_v42 = vadd.f32 %v13637_v20, %v7811_v34  ;;  %v12449_v34 = vld [vmem:[#allocation8 + $0x4a8] ss:$16 sps:$4 sm:$0xff]  }
 0x518   :  { %10034 = vmatprep.subr.bf16.mxu0 %v12421_v11  ;;  %v7907_v11 = vadd.f32 %v13649_v27, %v7854_v46  ;;  %v7913_v35 = vadd.f32 %v13663_v26, %v7860_v25  ;;  %v12439_v27 = vld [vmem:[#allocation8 + $0x4ec] ss:$16 sps:$4 sm:$0xff]   ;;  %v12437_v26 = vld [vmem:[#allocation8 + $0x4e8] ss:$16 sps:$4 sm:$0xff]   ;;  %v7919_v43 = vadd.f32 %v13673_v30, %v7866_v10  ;;  %v7870_v21 = vadd.f32 %v13651_v5, %v7817_v4 }
 0x519   :  { %v7962_v62 = vadd.f32 %v13661_v31, %v7909_v41  ;;  %v8028_v31 = vpop.f32.mrf.mxu0  ;;  %v7917_v20 = vadd.f32 %v13667_v44, %v7864_v42  ;;  %v12443_v5 = vld [vmem:[#allocation8 + $0x4c8] ss:$16 sps:$4 sm:$0xff]   ;;  %v8070_v41 = vadd.f32 %v13693_v15, %v8017_v48 }
 0x51a   :  { %v7960_v19 = vadd.f32 %v13655_v2, %v7907_v11  ;;  %v7966_v1 = vadd.f32 %v13669_v24, %v7913_v35  ;;  %v7923_v24 = vadd.f32 %v13681_v17, %v7870_v21  ;;  %v7972_v44 = vadd.f32 %v13675_v57, %v7919_v43 }
 0x51b   :  { %10035 = vmatpush2.bf16.msra.mxu0 %v12419_v54  ;;  %v12431_v54 = vld [vmem:[#allocation8 + $0x108] ss:$16 sps:$4 sm:$0xff]   ;;  %v8015_v51 = vadd.f32 %v8014_v37, %v7962_v62 }
 0x51c   :  { %10036 = vmatprep.subr.bf16.mxu0 %v12427_v61  ;;  %v13721_v61 = vpop.f32.mrf.mxu1  ;;  %v8013_v33 = vadd.f32 %v13683_v13, %v7960_v19  ;;  %v7921_v13 = vadd.f32 %v13677_v36, %v7868_v0  ;;  %v7976_v57 = vadd.f32 %v13685_v12, %v7923_v24  ;;  %v12469_v24 = vld [vmem:[#allocation8 + $0x44c] ss:$16 sps:$4 sm:$0xff]  }
 0x51d   :  { %v8068_v46 = vadd.f32 %v13690_v40, %v8015_v51  ;;  %v12451_v40 = vld [vmem:[#allocation8 + $0x4ac] ss:$16 sps:$4 sm:$0xff]  }
 0x51e   :  { %v13732_v2 = vpop.f32.mrf.mxu1  ;;  %v8066_v30 = vadd.f32 %v13687_v50, %v8013_v33  ;;  %v7974_v17 = vadd.f32 %v13679_v6, %v7921_v13  ;;  %v12457_v6 = vld [vmem:[#allocation8 + $0x48c] ss:$16 sps:$4 sm:$0xff]   ;;  %v8029_v4 = vadd.f32 %v8028_v31, %v7976_v57  ;;  %v12479_v57 = vld [vmem:[#allocation8 + $0x408] ss:$16 sps:$4 sm:$0xff]  }
 0x51f   :  { %10037 = vmatpush2.bf16.msra.mxu0 %v12425_v3  ;;  %v8019_v3 = vadd.f32 %v8018_v7, %v7966_v1  ;;  %v7970_v7 = vadd.f32 %v13671_v63, %v7917_v20  ;;  %v12461_v20 = vld [vmem:[#allocation8 + $0x468] ss:$16 sps:$4 sm:$0xff]  }
 0x520   :  { %10038 = vmatprep.subr.bf16.mxu0 %v12433_v28  ;;  %v8082_v43 = vadd.f32 %v13732_v2, %v8029_v4  ;;  %v12505_v4 = vld [vmem:[#allocation8 + $0x58c] ss:$16 sps:$4 sm:$0xff]  }
 0x521   :  { %v8072_v50 = vadd.f32 %v13696_v8, %v8019_v3  ;;  %v8023_v15 = vadd.f32 %v13699_v52, %v7970_v7 }
 0x523   :  { %10039 = vmatpush2.bf16.msra.mxu0 %v12431_v54  ;;  %v8027_v54 = vadd.f32 %v8026_v53, %v7974_v17  ;;  %v8076_v52 = vadd.f32 %v13702_v59, %v8023_v15  ;;  %v12484_v15 = vld [vmem:[#allocation8 + $0x26c] ss:$16 sps:$4 sm:$0xff]  }
 0x524   :  { %10114 = vmatprep.subr.bf16.mxu0 %v12439_v27 }
 0x525   :  { %v8080_v51 = vadd.f32 %v13721_v61, %v8027_v54  ;;  %v12485_v54 = vld [vmem:[#allocation8 + $0x5e8] ss:$16 sps:$4 sm:$0xff]  }
 0x526   :  { %v8118_v37 = vpop.f32.mrf.mxu0  ;;  %10041 = vmatmul.mubr.bf16.vlgmr.msra.gmra.mxu0 %v13956_v49 }
 0x527   :  { %10050 = vmatprep.mubr.bf16.mxu0 %v13603_v18  ;;  %10115 = vmatpush1.bf16.msra.mxu0 %v12437_v26  ;;  %v8119_v49 = vadd.f32 %v8118_v37, %v8066_v30  ;;  %v8025_v18 = vadd.f32 %v13707_v16, %v7972_v44  ;;  %v12466_v37 = vld [vmem:[#allocation8 + $0x2cc] ss:$16 sps:$4 sm:$0xff]   ;;  %v12467_v44 = vld [vmem:[#allocation8 + $0x448] ss:$16 sps:$4 sm:$0xff]  }
 0x528   :  { %v8171_v32 = vpop.f32.mrf.mxu1  ;;  %v8120_v29 = vpop.f32.mrf.mxu0  ;;  %10116 = vmatprep.subr.bf16.mxu0 %v12445_v47 }
 0x529   :  { %v8121_v36 = vadd.f32 %v8120_v29, %v8068_v46  ;;  %v8172_v27 = vadd.f32 %v8171_v32, %v8119_v49  ;;  %v8078_v16 = vadd.f32 %v13711_v14, %v8025_v18  ;;  %v12463_v14 = vld [vmem:[#allocation8 + $0x46c] ss:$16 sps:$4 sm:$0xff]   ;;  %v12464_v29 = vld [vmem:[#allocation8 + $0x2c8] ss:$16 sps:$4 sm:$0xff]  }
 0x52a   :  { %v8173_v28 = vpop.f32.mrf.mxu1  ;;  %v8122_v11 = vpop.f32.mrf.mxu0  ;;  %v12478_v18 = vld [vmem:[#allocation8 + $0x28c] ss:$16 sps:$4 sm:$0xff]  }
 0x52b   :  { %v8123_v25 = vadd.f32 %v8122_v11, %v8070_v41  ;;  %10117 = vmatpush1.bf16.msra.mxu0 %v12443_v5  ;;  %v8174_v55 = vadd.f32 %v8173_v28, %v8121_v36  ;;  %v8196_v31 = vmax.f32 %v8172_v27, 0.0  ;;  %v12472_v41 = vld [vmem:[#allocation8 + $0x2ac] ss:$16 sps:$4 sm:$0xff]   ;;  %v12470_v11 = vld [vmem:[#allocation8 + $0x2a8] ss:$16 sps:$4 sm:$0xff]  }
 0x52c   :  { %v8175_v38 = vpop.f32.mrf.mxu1  ;;  %v8124_v9 = vpop.f32.mrf.mxu0  ;;  %10118 = vmatprep.subr.bf16.mxu0 %v12451_v40  ;;  %v12475_v40 = vld [vmem:[#allocation8 + $0x42c] ss:$16 sps:$4 sm:$0xff]   ;;  %v12494_v27 = vld [vmem:[#allocation8 + $0x228] ss:$16 sps:$4 sm:$0xff]  }
 0x52d   :  { %v8176_v63 = vadd.f32 %v8175_v38, %v8123_v25  ;;  %v8125_v62 = vadd.f32 %v8124_v9, %v8072_v50  ;;  %v8197_v42 = vmax.f32 %v8174_v55, 0.0  ;;  %v12473_v50 = vld [vmem:[#allocation8 + $0x428] ss:$16 sps:$4 sm:$0xff]   ;;  %v12481_v25 = vld [vmem:[#allocation8 + $0x40c] ss:$16 sps:$4 sm:$0xff]  }
 0x52e   :  { %v8177_v35 = vpop.f32.mrf.mxu1  ;;  %v8128_v8 = vpop.f32.mrf.mxu0  ;;  %10051 = vmatmul.mubr.bf16.gmra.mxu0 %v13958_v45  ;;  %v12476_v38 = vld [vmem:[#allocation8 + $0x288] ss:$16 sps:$4 sm:$0xff]   ;;  %v12487_v9 = vld [vmem:[#allocation8 + $0x5ec] ss:$16 sps:$4 sm:$0xff]  }
 0x52f   :  { %v8178_v19 = vadd.f32 %v8177_v35, %v8125_v62  ;;  %v8204_v10 = vmax.f32 %v8176_v63, 0.0  ;;  %10119 = vmatpush1.bf16.msra.mxu0 %v12449_v34  ;;  %10146 = vmatprep.mubr.bf16.mxu0 %v13612_v23  ;;  %v8129_v1 = vadd.f32 %v8128_v8, %v8076_v52  ;;  %v12458_v23 = vld [vmem:[#allocation8 + $0x2e8] ss:$16 sps:$4 sm:$0xff]   ;;  %v12490_v55 = vld [vmem:[#allocation8 + $0x24c] ss:$16 sps:$4 sm:$0xff]  }
 0x530   :  { %v8181_v12 = vpop.f32.mrf.mxu1  ;;  %v8130_v53 = vpop.f32.mrf.mxu0  ;;  %10120 = vmatprep.subr.bf16.mxu0 %v12457_v6  ;;  %v12482_v34 = vld [vmem:[#allocation8 + $0x268] ss:$16 sps:$4 sm:$0xff]   ;;  %v12493_v63 = vld [vmem:[#allocation8 + $0x5cc] ss:$16 sps:$4 sm:$0xff]  }
 0x531   :  { %v8205_v33 = vmax.f32 %v8178_v19, 0.0  ;;  %v8131_v26 = vadd.f32 %v8130_v53, %v8078_v16  ;;  %v13758_v21 = vpack.c.bf16 %v8204_v10, %v8196_v31  ;;  %v8182_v2 = vadd.f32 %v8181_v12, %v8129_v1  ;;  %v12488_v62 = vld [vmem:[#allocation8 + $0x248] ss:$16 sps:$4 sm:$0xff]   ;;  %v12496_v35 = vld [vmem:[#allocation8 + $0x22c] ss:$16 sps:$4 sm:$0xff]  }
 0x532   :  { %v8183_v0 = vpop.f32.mrf.mxu1  ;;  %v8132_v45 = vpop.f32.mrf.mxu0  ;;  %v12499_v6 = vld [vmem:[#allocation8 + $0x5ac] ss:$16 sps:$4 sm:$0xff]   ;;  %v12497_v8 = vld [vmem:[#allocation8 + $0x5a8] ss:$16 sps:$4 sm:$0xff]  }
 0x533   :  { %v13756_v59 = vpack.c.bf16 %v8205_v33, %v8197_v42  ;;  %v8133_v48 = vadd.f32 %v8132_v45, %v8080_v51  ;;  %10121 = vmatpush1.bf16.msra.mxu0 %v12455_v56  ;;  %v8184_v13 = vadd.f32 %v8183_v0, %v8131_v26  ;;  %v8212_v7 = vmax.f32 %v8182_v2, 0.0  ;;  %v12502_v16 = vld [vmem:[#allocation8 + $0x20c] ss:$16 sps:$4 sm:$0xff]   ;;  %v12500_v19 = vld [vmem:[#allocation8 + $0x208] ss:$16 sps:$4 sm:$0xff]  }
 0x534   :  { %v8185_v47 = vpop.f32.mrf.mxu1  ;;  %v8134_v61 = vpop.f32.mrf.mxu0  ;;  %10122 = vmatprep.subr.bf16.mxu0 %v12463_v14  ;;  %v12503_v12 = vld [vmem:[#allocation8 + $0x588] ss:$16 sps:$4 sm:$0xff]   ;;  %v12508_v52 = vld [vmem:[#allocation8 + $0x3ec] ss:$16 sps:$4 sm:$0xff]  }
 0x535   :  { %v8135_v46 = vadd.f32 %v8134_v61, %v8082_v43  ;;  %v8186_v3 = vadd.f32 %v8185_v47, %v8133_v48  ;;  %9987 = vmatprep.mubr.bf16.mxu1 %v13756_v59  ;;  %v8213_v36 = vmax.f32 %v8184_v13, 0.0  ;;  %v12511_v10 = vld [vmem:[#allocation8 + $0x56c] ss:$16 sps:$4 sm:$0xff]   ;;  %v12506_v53 = vld [vmem:[#allocation8 + $0x3e8] ss:$16 sps:$4 sm:$0xff]  }
 0x536   :  { %v8187_v32 = vpop.f32.mrf.mxu1  ;;  %9988 = vmatmul.mubr.bf16.vlgmr.msra.gmra.mxu1 %v13758_v21  ;;  %v12509_v56 = vld [vmem:[#allocation8 + $0x568] ss:$16 sps:$4 sm:$0xff]   ;;  %v12514_v51 = vld [vmem:[#allocation8 + $0x3cc] ss:$16 sps:$4 sm:$0xff]  }
 0x537   :  { %v8188_v30 = vadd.f32 %v8187_v32, %v8135_v46  ;;  %10062 = vmatpush1.bf16.msra.mxu1 %v12458_v23  ;;  %v8220_v5 = vmax.f32 %v8186_v3, 0.0  ;;  %10123 = vmatpush1.bf16.msra.mxu0 %v12461_v20  ;;  %v12517_v42 = vld [vmem:[#allocation8 + $0x54c] ss:$16 sps:$4 sm:$0xff]   ;;  %v12512_v33 = vld [vmem:[#allocation8 + $0x3c8] ss:$16 sps:$4 sm:$0xff]  }
 0x538   :  { %10063 = vmatprep.subr.bf16.mxu1 %v12466_v37  ;;  %10124 = vmatprep.subr.bf16.mxu0 %v12469_v24  ;;  %v12515_v26 = vld [vmem:[#allocation8 + $0x548] ss:$16 sps:$4 sm:$0xff]   ;;  %v12520_v0 = vld [vmem:[#allocation8 + $0x3ac] ss:$16 sps:$4 sm:$0xff]  }
 0x539   :  { %v8221_v28 = vmax.f32 %v8188_v30, 0.0  ;;  %v13764_v17 = vpack.c.bf16 %v8220_v5, %v8212_v7  ;;  %v12523_v14 = vld [vmem:[#allocation8 + $0x52c] ss:$16 sps:$4 sm:$0xff]   ;;  %v12518_v31 = vld [vmem:[#allocation8 + $0x3a8] ss:$16 sps:$4 sm:$0xff]  }
 0x53a   :  { %v12521_v1 = vld [vmem:[#allocation8 + $0x528] ss:$16 sps:$4 sm:$0xff]   ;;  %v12526_v45 = vld [vmem:[#allocation8 + $0x38c] ss:$16 sps:$4 sm:$0xff]  }
 0x53b   :  { %v13762_v49 = vpack.c.bf16 %v8221_v28, %v8213_v36  ;;  %10064 = vmatpush1.bf16.msra.mxu1 %v12464_v29  ;;  %10125 = vmatpush1.bf16.msra.mxu0 %v12467_v44  ;;  %v12529_v43 = vld [vmem:[#allocation8 + $0x50c] ss:$16 sps:$4 sm:$0xff]   ;;  %v12524_v48 = vld [vmem:[#allocation8 + $0x388] ss:$16 sps:$4 sm:$0xff]  }
 0x53c   :  { %10065 = vmatprep.subr.bf16.mxu1 %v12472_v41  ;;  %10126 = vmatprep.subr.bf16.mxu0 %v12475_v40  ;;  %v12527_v47 = vld [vmem:[#allocation8 + $0x508] ss:$16 sps:$4 sm:$0xff]   ;;  %v12532_v23 = vld [vmem:[#allocation8 + $0x36c] ss:$16 sps:$4 sm:$0xff]  }
 0x53d   :  { %9997 = vmatprep.mubr.bf16.mxu1 %v13762_v49  ;;  %v12592_v61 = vld [vmem:[#allocation11 + $0x74] ss:$8 sps:$4 sm:$0xff]   ;;  %v12535_v37 = vld [vmem:[#allocation8 + $0x34c] ss:$16 sps:$4 sm:$0xff]   ;;  %v12595_v46 = vld [vmem:[#allocation11 + $0x64] ss:$8 sps:$4 sm:$0xff]  }
 0x53e   :  { %9998 = vmatmul.mubr.bf16.gmra.mxu1 %v13764_v17  ;;  %v12530_v20 = vld [vmem:[#allocation8 + $0x368] ss:$16 sps:$4 sm:$0xff]   ;;  %v12590_v13 = vld [vmem:[#allocation11 + $0x70] ss:$8 sps:$4 sm:$0xff]   ;;  %v12593_v24 = vld [vmem:[#allocation11 + $0x60] ss:$8 sps:$4 sm:$0xff]  }
 0x53f   :  { %10066 = vmatpush1.bf16.msra.mxu1 %v12470_v11  ;;  %10093 = vmatprep.mubr.bf16.mxu1 %v13559_v58  ;;  %v12491_v58 = vld [vmem:[#allocation8 + $0x5c8] ss:$16 sps:$4 sm:$0xff]   ;;  %v12538_v32 = vld [vmem:[#allocation8 + $0x32c] ss:$16 sps:$4 sm:$0xff]  }
 0x540   :  { %10127 = vmatpush1.bf16.msra.mxu0 %v12473_v50  ;;  %10067 = vmatprep.subr.bf16.mxu1 %v12478_v18  ;;  %v12533_v3 = vld [vmem:[#allocation8 + $0x348] ss:$16 sps:$4 sm:$0xff]   ;;  %v12541_v29 = vld [vmem:[#allocation8 + $0x30c] ss:$16 sps:$4 sm:$0xff]   ;;  %v13962_v18 = vld [vmem:[#allocation21_spill] sm:$0xff] }
 0x541   :  { %10128 = vmatprep.subr.bf16.mxu0 %v12481_v25  ;;  %v12598_v2 = vld [vmem:[#allocation11 + $0x54] ss:$8 sps:$4 sm:$0xff]   ;;  %v12596_v5 = vld [vmem:[#allocation11 + $0x50] ss:$8 sps:$4 sm:$0xff]   ;;  %v12601_v44 = vld [vmem:[#allocation11 + $0x44] ss:$8 sps:$4 sm:$0xff]  }
 0x542   :  { %v12536_v30 = vld [vmem:[#allocation8 + $0x328] ss:$16 sps:$4 sm:$0xff]   ;;  %v12599_v41 = vld [vmem:[#allocation11 + $0x40] ss:$8 sps:$4 sm:$0xff]   ;;  %v12602_v7 = vld [vmem:[#allocation11 + $0x30] ss:$8 sps:$4 sm:$0xff]  }
 0x543   :  { %10068 = vmatpush1.bf16.msra.mxu1 %v12476_v38  ;;  %v12604_v36 = vld [vmem:[#allocation11 + $0x34] ss:$8 sps:$4 sm:$0xff]   ;;  %v12547_v40 = vld [vmem:[#allocation8 + $0x6cc] ss:$16 sps:$4 sm:$0xff]   ;;  %v12607_v50 = vld [vmem:[#allocation11 + $0x24] ss:$8 sps:$4 sm:$0xff]  }
 0x544   :  { %10129 = vmatpush1.bf16.msra.mxu0 %v12479_v57  ;;  %10069 = vmatprep.subr.bf16.mxu1 %v12484_v15  ;;  %v12542_v28 = vld [vmem:[#allocation8 + $0x6e8] ss:$16 sps:$4 sm:$0xff]   ;;  %v12550_v25 = vld [vmem:[#allocation8 + $0x6ac] ss:$16 sps:$4 sm:$0xff]  }
 0x545   :  { %10130 = vmatprep.subr.bf16.mxu0 %v12487_v9  ;;  %v13961_v11 = vld [vmem:[#allocation68_spill] sm:$0xff]  ;;  %v12610_v57 = vld [vmem:[#allocation11 + $0x14] ss:$8 sps:$4 sm:$0xff]  }
 0x546   :  { %v12605_v38 = vld [vmem:[#allocation11 + $0x20] ss:$8 sps:$4 sm:$0xff]   ;;  %v12548_v15 = vld [vmem:[#allocation8 + $0x6a8] ss:$16 sps:$4 sm:$0xff]  }
 0x547   :  { %10070 = vmatpush1.bf16.msra.mxu1 %v12482_v34  ;;  %v12553_v9 = vld [vmem:[#allocation8 + $0x68c] ss:$16 sps:$4 sm:$0xff]  }
 0x548   :  { %10131 = vmatpush2.bf16.msra.mxu0 %v12485_v54  ;;  %10071 = vmatprep.subr.bf16.mxu1 %v12490_v55  ;;  %v12608_v34 = vld [vmem:[#allocation11 + $0x10] ss:$8 sps:$4 sm:$0xff]   ;;  %v12613_v55 = vld [vmem:[#allocation11 + $0x4] ss:$8 sps:$4 sm:$0xff]  }
 0x549   :  { %10132 = vmatprep.subr.bf16.mxu0 %v12493_v63  ;;  %v13963_v54 = vld [vmem:[#allocation70_spill] sm:$0xff] }
 0x54a   :  { %v12551_v63 = vld [vmem:[#allocation8 + $0x688] ss:$16 sps:$4 sm:$0xff]  }
 0x54b   :  { %10072 = vmatpush1.bf16.msra.mxu1 %v12488_v62  ;;  %v12556_v62 = vld [vmem:[#allocation8 + $0x66c] ss:$16 sps:$4 sm:$0xff]  }
 0x54c   :  { %10133 = vmatpush2.bf16.msra.mxu0 %v12491_v58  ;;  %10073 = vmatprep.subr.bf16.mxu1 %v12496_v35  ;;  %v12611_v58 = vld [vmem:[#allocation11] ss:$8 sps:$4 sm:$0xff]   ;;  %v12616_v35 = vld [vmem:[#allocation11 + $0xf4] ss:$8 sps:$4 sm:$0xff]  }
 0x54d   :  { %10134 = vmatprep.subr.bf16.mxu0 %v12499_v6  ;;  %v12554_v6 = vld [vmem:[#allocation8 + $0x668] ss:$16 sps:$4 sm:$0xff]  }
 0x54f   :  { %10074 = vmatpush1.bf16.msra.mxu1 %v12494_v27  ;;  %v12559_v27 = vld [vmem:[#allocation8 + $0x64c] ss:$16 sps:$4 sm:$0xff]  }
 0x550   :  { %10135 = vmatpush2.bf16.msra.mxu0 %v12497_v8  ;;  %10075 = vmatprep.subr.bf16.mxu1 %v12502_v16  ;;  %v12614_v8 = vld [vmem:[#allocation11 + $0xf0] ss:$8 sps:$4 sm:$0xff]   ;;  %v12619_v16 = vld [vmem:[#allocation11 + $0xe4] ss:$8 sps:$4 sm:$0xff]  }
 0x551   :  { %10136 = vmatprep.subr.bf16.mxu0 %v12505_v4  ;;  %v12557_v4 = vld [vmem:[#allocation8 + $0x648] ss:$16 sps:$4 sm:$0xff]  }
 0x553   :  { %10076 = vmatpush1.bf16.msra.mxu1 %v12500_v19  ;;  %v12562_v19 = vld [vmem:[#allocation8 + $0x62c] ss:$16 sps:$4 sm:$0xff]  }
 0x554   :  { %10137 = vmatpush2.bf16.msra.mxu0 %v12503_v12  ;;  %10077 = vmatprep.subr.bf16.mxu1 %v12508_v52  ;;  %v12622_v12 = vld [vmem:[#allocation11 + $0xd4] ss:$8 sps:$4 sm:$0xff]  }
 0x555   :  { %10138 = vmatprep.subr.bf16.mxu0 %v12511_v10  ;;  %v12560_v52 = vld [vmem:[#allocation8 + $0x628] ss:$16 sps:$4 sm:$0xff]   ;;  %v12565_v10 = vld [vmem:[#allocation8 + $0x60c] ss:$16 sps:$4 sm:$0xff]  }
 0x557   :  { %10078 = vmatpush2.bf16.msra.mxu1 %v12506_v53  ;;  %v12620_v53 = vld [vmem:[#allocation11 + $0xd0] ss:$8 sps:$4 sm:$0xff]  }
 0x558   :  { %10139 = vmatpush2.bf16.msra.mxu0 %v12509_v56  ;;  %10079 = vmatprep.subr.bf16.mxu1 %v12514_v51  ;;  %v12625_v56 = vld [vmem:[#allocation11 + $0xc4] ss:$8 sps:$4 sm:$0xff]  }
 0x559   :  { %10140 = vmatprep.subr.bf16.mxu0 %v12517_v42  ;;  %v12563_v51 = vld [vmem:[#allocation8 + $0x608] ss:$16 sps:$4 sm:$0xff]   ;;  %v12568_v42 = vld [vmem:[#allocation8 + $0x7ec] ss:$16 sps:$4 sm:$0xff]  }
 0x55b   :  { %10080 = vmatpush2.bf16.msra.mxu1 %v12512_v33  ;;  %v12623_v33 = vld [vmem:[#allocation11 + $0xc0] ss:$8 sps:$4 sm:$0xff]  }
 0x55c   :  { %10141 = vmatpush2.bf16.msra.mxu0 %v12515_v26  ;;  %10081 = vmatprep.subr.bf16.mxu1 %v12520_v0  ;;  %v12628_v26 = vld [vmem:[#allocation11 + $0xb4] ss:$8 sps:$4 sm:$0xff]  }
 0x55d   :  { %10142 = vmatprep.subr.bf16.mxu0 %v12523_v14  ;;  %v12566_v0 = vld [vmem:[#allocation8 + $0x7e8] ss:$16 sps:$4 sm:$0xff]   ;;  %v12571_v14 = vld [vmem:[#allocation8 + $0x7cc] ss:$16 sps:$4 sm:$0xff]  }
 0x55f   :  { %10082 = vmatpush2.bf16.msra.mxu1 %v12518_v31  ;;  %v12626_v31 = vld [vmem:[#allocation11 + $0xb0] ss:$8 sps:$4 sm:$0xff]  }
 0x560   :  { %10143 = vmatpush2.bf16.msra.mxu0 %v12521_v1  ;;  %10083 = vmatprep.subr.bf16.mxu1 %v12526_v45  ;;  %v12631_v1 = vld [vmem:[#allocation11 + $0xa4] ss:$8 sps:$4 sm:$0xff]  }
 0x561   :  { %10144 = vmatprep.subr.bf16.mxu0 %v12529_v43  ;;  %v12569_v45 = vld [vmem:[#allocation8 + $0x7c8] ss:$16 sps:$4 sm:$0xff]   ;;  %v12574_v43 = vld [vmem:[#allocation8 + $0x7ac] ss:$16 sps:$4 sm:$0xff]  }
 0x563   :  { %10084 = vmatpush2.bf16.msra.mxu1 %v12524_v48  ;;  %v12629_v48 = vld [vmem:[#allocation11 + $0xa0] ss:$8 sps:$4 sm:$0xff]  }
 0x564   :  { %10145 = vmatpush2.bf16.msra.mxu0 %v12527_v47  ;;  %10085 = vmatprep.subr.bf16.mxu1 %v12532_v23  ;;  %v12634_v47 = vld [vmem:[#allocation11 + $0x94] ss:$8 sps:$4 sm:$0xff]  }
 0x565   :  { %10640 = vmatprep.subr.bf16.mxu0 %v12592_v61  ;;  %v12572_v23 = vld [vmem:[#allocation8 + $0x7a8] ss:$16 sps:$4 sm:$0xff]   ;;  %v12577_v61 = vld [vmem:[#allocation8 + $0x78c] ss:$16 sps:$4 sm:$0xff]  }
 0x567   :  { %10086 = vmatpush2.bf16.msra.mxu1 %v12530_v20  ;;  %10147 = vmatmul.mubr.bf16.vlgmr.msra.gmra.mxu0 %v13513_v39  ;;  %v12539_v39 = vld [vmem:[#allocation8 + $0x308] ss:$16 sps:$4 sm:$0xff]   ;;  %v12632_v20 = vld [vmem:[#allocation11 + $0x90] ss:$8 sps:$4 sm:$0xff]  }
 0x568   :  { %10156 = vmatprep.mubr.bf16.mxu0 %v13522_v22  ;;  %10087 = vmatprep.subr.bf16.mxu1 %v12535_v37  ;;  %v12544_v22 = vld [vmem:[#allocation8 + $0x6ec] ss:$16 sps:$4 sm:$0xff]   ;;  %v12637_v37 = vld [vmem:[#allocation11 + $0x84] ss:$8 sps:$4 sm:$0xff]  }
 0x569   :  { %10641 = vmatpush1.bf16.msra.mxu0 %v12590_v13  ;;  %v12575_v13 = vld [vmem:[#allocation8 + $0x788] ss:$16 sps:$4 sm:$0xff]  }
 0x56a   :  { %10642 = vmatprep.subr.bf16.mxu0 %v12595_v46  ;;  %v12580_v46 = vld [vmem:[#allocation8 + $0x76c] ss:$16 sps:$4 sm:$0xff]  }
 0x56b   :  { %10088 = vmatpush2.bf16.msra.mxu1 %v12533_v3  ;;  %v12635_v3 = vld [vmem:[#allocation11 + $0x80] ss:$8 sps:$4 sm:$0xff]  }
 0x56c   :  { %10089 = vmatprep.subr.bf16.mxu1 %v12538_v32  ;;  %v12578_v32 = vld [vmem:[#allocation8 + $0x768] ss:$16 sps:$4 sm:$0xff]  }
 0x56d   :  { %10643 = vmatpush1.bf16.msra.mxu0 %v12593_v24  ;;  %v12583_v24 = vld [vmem:[#allocation8 + $0x74c] ss:$16 sps:$4 sm:$0xff]  }
 0x56e   :  { %10644 = vmatprep.subr.bf16.mxu0 %v12598_v2  ;;  %v12581_v2 = vld [vmem:[#allocation8 + $0x748] ss:$16 sps:$4 sm:$0xff]  }
 0x56f   :  { %10090 = vmatpush2.bf16.msra.mxu1 %v12536_v30  ;;  %10157 = vmatmul.mubr.bf16.gmra.mxu0 %v13520_v60  ;;  %v12545_v60 = vld [vmem:[#allocation8 + $0x6c8] ss:$16 sps:$4 sm:$0xff]   ;;  %v12586_v30 = vld [vmem:[#allocation8 + $0x72c] ss:$16 sps:$4 sm:$0xff]  }
 0x570   :  { %10091 = vmatprep.subr.bf16.mxu1 %v12541_v29  ;;  %v12584_v29 = vld [vmem:[#allocation8 + $0x728] ss:$16 sps:$4 sm:$0xff]  }
 0x571   :  { %10645 = vmatpush1.bf16.msra.mxu0 %v12596_v5  ;;  %v12589_v5 = vld [vmem:[#allocation8 + $0x70c] ss:$16 sps:$4 sm:$0xff]  }
 0x572   :  { %10646 = vmatprep.subr.bf16.mxu0 %v12601_v44  ;;  %v12587_v44 = vld [vmem:[#allocation8 + $0x708] ss:$16 sps:$4 sm:$0xff]  }
 0x573   :  { %10092 = vmatpush2.bf16.msra.mxu1 %v12539_v39  ;;  %v12640_v39 = vld [vmem:[#allocation11 + $0x174] ss:$8 sps:$4 sm:$0xff]  }
 0x574   :  { %10167 = vmatprep.subr.bf16.mxu1 %v12544_v22  ;;  %v12638_v22 = vld [vmem:[#allocation11 + $0x170] ss:$8 sps:$4 sm:$0xff]  }
 0x575   :  { %10647 = vmatpush1.bf16.msra.mxu0 %v12599_v41  ;;  %v12643_v41 = vld [vmem:[#allocation11 + $0x164] ss:$8 sps:$4 sm:$0xff]  }
 0x576   :  { %10094 = vmatmul.mubr.bf16.vlgmr.msra.gmra.mxu1 %v13961_v11  ;;  %10648 = vmatprep.subr.bf16.mxu0 %v12604_v36  ;;  %v13779_v36 = vpop.f32.mrf.mxu0  ;;  %v12644_v11 = vld [vmem:[#allocation11 + $0x150] ss:$8 sps:$4 sm:$0xff]  }
 0x577   :  { %10103 = vmatprep.mubr.bf16.mxu1 %v13962_v18  ;;  %10168 = vmatpush1.bf16.msra.mxu1 %v12542_v28  ;;  %v12641_v28 = vld [vmem:[#allocation11 + $0x160] ss:$8 sps:$4 sm:$0xff]  }
 0x578   :  { %10169 = vmatprep.subr.bf16.mxu1 %v12547_v40  ;;  %v12646_v40 = vld [vmem:[#allocation11 + $0x154] ss:$8 sps:$4 sm:$0xff]  }
 0x579   :  { %10649 = vmatpush1.bf16.msra.mxu0 %v12602_v7  ;;  %v13781_v7 = vpop.f32.mrf.mxu0 }
 0x57a   :  { %10650 = vmatprep.subr.bf16.mxu0 %v12607_v50 }
 0x57b   :  { %10170 = vmatpush1.bf16.msra.mxu1 %v12545_v60  ;;  %v9834_v50 = vpop.f32.mrf.mxu0  ;;  %v12650_v60 = vld [vmem:[#allocation11 + $0x130] ss:$8 sps:$4 sm:$0xff]  }
 0x57c   :  { %10171 = vmatprep.subr.bf16.mxu1 %v12550_v25  ;;  %v12655_v25 = vld [vmem:[#allocation11 + $0x124] ss:$8 sps:$4 sm:$0xff]  }
 0x57d   :  { %10651 = vmatpush1.bf16.msra.mxu0 %v12605_v38  ;;  %v9836_v18 = vpop.f32.mrf.mxu0 }
 0x57e   :  { %10104 = vmatmul.mubr.bf16.gmra.mxu1 %v13963_v54  ;;  %10652 = vmatprep.subr.bf16.mxu0 %v12610_v57  ;;  %v12653_v57 = vld [vmem:[#allocation11 + $0x120] ss:$8 sps:$4 sm:$0xff]   ;;  %v12656_v54 = vld [vmem:[#allocation11 + $0x110] ss:$8 sps:$4 sm:$0xff]  }
 0x57f   :  { %10172 = vmatpush1.bf16.msra.mxu1 %v12548_v15  ;;  %10199 = vmatprep.mubr.bf16.mxu1 %v13756_v59  ;;  %v12617_v59 = vld [vmem:[#allocation11 + $0xe0] ss:$8 sps:$4 sm:$0xff]   ;;  %v13783_v38 = vpop.f32.mrf.mxu0  ;;  %v12658_v15 = vld [vmem:[#allocation11 + $0x114] ss:$8 sps:$4 sm:$0xff]  }
 0x580   :  { %10173 = vmatprep.subr.bf16.mxu1 %v12553_v9  ;;  %v9883_v9 = vpop.f32.mrf.mxu1 }
 0x581   :  { %10653 = vmatpush1.bf16.msra.mxu0 %v12608_v34  ;;  %v9842_v34 = vpop.f32.mrf.mxu0 }
 0x582   :  { %10654 = vmatprep.subr.bf16.mxu0 %v12613_v55  ;;  %v12661_v55 = vld [vmem:[#allocation11 + $0x104] ss:$8 sps:$4 sm:$0xff]  }
 0x583   :  { %10174 = vmatpush1.bf16.msra.mxu1 %v12551_v63  ;;  %v9885_v63 = vpop.f32.mrf.mxu1 }
 0x584   :  { %10175 = vmatprep.subr.bf16.mxu1 %v12556_v62  ;;  %v9844_v62 = vpop.f32.mrf.mxu0 }
 0x585   :  { %10655 = vmatpush1.bf16.msra.mxu0 %v12611_v58  ;;  %v12659_v58 = vld [vmem:[#allocation11 + $0x100] ss:$8 sps:$4 sm:$0xff]  }
 0x586   :  { %10656 = vmatprep.subr.bf16.mxu0 %v12616_v35  ;;  %v12664_v35 = vld [vmem:[#allocation11 + $0x1f4] ss:$8 sps:$4 sm:$0xff]  }
 0x587   :  { %10176 = vmatpush1.bf16.msra.mxu1 %v12554_v6  ;;  %v9887_v6 = vpop.f32.mrf.mxu1 }
 0x588   :  { %10177 = vmatprep.subr.bf16.mxu1 %v12559_v27  ;;  %v13785_v27 = vpop.f32.mrf.mxu0 }
 0x589   :  { %10657 = vmatpush2.bf16.msra.mxu0 %v12614_v8  ;;  %v12662_v8 = vld [vmem:[#allocation11 + $0x1f0] ss:$8 sps:$4 sm:$0xff]  }
 0x58a   :  { %10658 = vmatprep.subr.bf16.mxu0 %v12619_v16  ;;  %v12667_v16 = vld [vmem:[#allocation11 + $0x1e4] ss:$8 sps:$4 sm:$0xff]  }
 0x58b   :  { %10178 = vmatpush1.bf16.msra.mxu1 %v12557_v4  ;;  %v9889_v4 = vpop.f32.mrf.mxu1 }
 0x58c   :  { %10179 = vmatprep.subr.bf16.mxu1 %v12562_v19 }
 0x58d   :  { %10659 = vmatpush2.bf16.msra.mxu0 %v12617_v59  ;;  %v12665_v59 = vld [vmem:[#allocation11 + $0x1e0] ss:$8 sps:$4 sm:$0xff]  }
 0x58e   :  { %10660 = vmatprep.subr.bf16.mxu0 %v12622_v12  ;;  %v12670_v12 = vld [vmem:[#allocation11 + $0x1d4] ss:$8 sps:$4 sm:$0xff]  }
 0x58f   :  { %10180 = vmatpush1.bf16.msra.mxu1 %v12560_v52  ;;  %v13787_v52 = vpop.f32.mrf.mxu1 }
 0x590   :  { %10181 = vmatprep.subr.bf16.mxu1 %v12565_v10 }
 0x591   :  { %10661 = vmatpush2.bf16.msra.mxu0 %v12620_v53  ;;  %v12668_v53 = vld [vmem:[#allocation11 + $0x1d0] ss:$8 sps:$4 sm:$0xff]  }
 0x592   :  { %10662 = vmatprep.subr.bf16.mxu0 %v12625_v56  ;;  %v12673_v56 = vld [vmem:[#allocation11 + $0x1c4] ss:$8 sps:$4 sm:$0xff]  }
 0x593   :  { %10182 = vmatpush1.bf16.msra.mxu1 %v12563_v51  ;;  %v9895_v51 = vpop.f32.mrf.mxu1 }
 0x594   :  { %10183 = vmatprep.subr.bf16.mxu1 %v12568_v42 }
 0x595   :  { %10663 = vmatpush2.bf16.msra.mxu0 %v12623_v33  ;;  %v13789_v33 = vld [vmem:[#allocation10] sm:$0xf] }
 0x596   :  { %10664 = vmatprep.subr.bf16.mxu0 %v12628_v26  ;;  %v12671_v26 = vld [vmem:[#allocation11 + $0x1c0] ss:$8 sps:$4 sm:$0xff]  }
 0x597   :  { %10184 = vmatpush2.bf16.msra.mxu1 %v12566_v0  ;;  %v13964_v0 = vld [vmem:[#allocation24_spill] sm:$0xff] }
 0x598   :  { %10185 = vmatprep.subr.bf16.mxu1 %v12571_v14  ;;  %v8503_v14 = vrot.slane %v13789_v33, %v13964_v0 }
 0x599   :  { %10665 = vmatpush2.bf16.msra.mxu0 %v12626_v31  ;;  %v12676_v31 = vld [vmem:[#allocation11 + $0x1b4] ss:$8 sps:$4 sm:$0xff]  }
 0x59a   :  { %10666 = vmatprep.subr.bf16.mxu0 %v12631_v1  ;;  %v13965_v1 = vld [vmem:[#allocation23_spill] sm:$0xff] }
 0x59b   :  { %10186 = vmatpush2.bf16.msra.mxu1 %v12569_v45  ;;  %v8499_v45 = vrot.slane %v13789_v33, %v13965_v1 }
 0x59c   :  { %10187 = vmatprep.subr.bf16.mxu1 %v12574_v43  ;;  %v9897_v43 = vpop.f32.mrf.mxu1 }
 0x59d   :  { %10667 = vmatpush2.bf16.msra.mxu0 %v12629_v48 }
 0x59e   :  { %10668 = vmatprep.subr.bf16.mxu0 %v12634_v47  ;;  %v12674_v47 = vld [vmem:[#allocation11 + $0x1b0] ss:$8 sps:$4 sm:$0xff]  }
 0x59f   :  { %10188 = vmatpush2.bf16.msra.mxu1 %v12572_v23  ;;  %v9833_v23 = vadd.f32 %v13781_v7, %v8503_v14 }
 0x5a0   :  { %10189 = vmatprep.subr.bf16.mxu1 %v12577_v61  ;;  %v9835_v61 = vadd.f32 %v9834_v50, %v8499_v45 }
 0x5a1   :  { %10669 = vmatpush2.bf16.msra.mxu0 %v12632_v20  ;;  %v9831_v20 = vadd.f32 %v13779_v36, %v8499_v45  ;;  %v9845_v36 = vadd.f32 %v9844_v62, %v8499_v45 }
 0x5a2   :  { %10670 = vmatprep.subr.bf16.mxu0 %v12637_v37  ;;  %v9899_v37 = vpop.f32.mrf.mxu1 }
 0x5a3   :  { %10190 = vmatpush2.bf16.msra.mxu1 %v12575_v13 }
 0x5a4   :  { %10191 = vmatprep.subr.bf16.mxu1 %v12580_v46  ;;  %v9837_v46 = vadd.f32 %v9836_v18, %v8503_v14 }
 0x5a5   :  { %10671 = vmatpush2.bf16.msra.mxu0 %v12635_v3 }
 0x5a6   :  { %v9936_v19 = vpop.f32.mrf.mxu0 }
 0x5a7   :  { %10192 = vmatpush2.bf16.msra.mxu1 %v12578_v32  ;;  %v9886_v32 = vadd.f32 %v9885_v63, %v9833_v23  ;;  %v9898_v63 = vadd.f32 %v9897_v43, %v9845_v36 }
 0x5a8   :  { %10193 = vmatprep.subr.bf16.mxu1 %v12583_v24  ;;  %v9938_v10 = vpop.f32.mrf.mxu0  ;;  %v9888_v24 = vadd.f32 %v9887_v6, %v9835_v61 }
 0x5aa   :  { %v9940_v42 = vpop.f32.mrf.mxu0 }
 0x5ab   :  { %10194 = vmatpush2.bf16.msra.mxu1 %v12581_v2  ;;  %v12679_v2 = vld [vmem:[#allocation11 + $0x1a4] ss:$8 sps:$4 sm:$0xff]  }
 0x5ac   :  { %10195 = vmatprep.subr.bf16.mxu1 %v12586_v30  ;;  %v9942_v48 = vpop.f32.mrf.mxu0  ;;  %v9884_v30 = vadd.f32 %v9883_v9, %v9831_v20 }
 0x5ae   :  { %v9946_v13 = vpop.f32.mrf.mxu0 }
 0x5af   :  { %10196 = vmatpush2.bf16.msra.mxu1 %v12584_v29 }
 0x5b0   :  { %10197 = vmatprep.subr.bf16.mxu1 %v12589_v5  ;;  %v9948_v29 = vpop.f32.mrf.mxu0 }
 0x5b2   :  { %v9950_v18 = vpop.f32.mrf.mxu0 }
 0x5b3   :  { %10198 = vmatpush2.bf16.msra.mxu1 %v12587_v44  ;;  %v12677_v44 = vld [vmem:[#allocation11 + $0x1a0] ss:$8 sps:$4 sm:$0xff]  }
 0x5b4   :  { %10693 = vmatprep.subr.bf16.mxu1 %v12640_v39  ;;  %v9890_v39 = vadd.f32 %v9889_v4, %v9837_v46  ;;  %v12683_v4 = vld [vmem:[#allocation11 + $0x180] ss:$8 sps:$4 sm:$0xff]  }
 0x5b6   :  { %10200 = vmatmul.mubr.bf16.vlgmr.msra.gmra.mxu1 %v13758_v21  ;;  %v12649_v21 = vld [vmem:[#allocation11 + $0x144] ss:$8 sps:$4 sm:$0xff]  }
 0x5b7   :  { %10209 = vmatprep.mubr.bf16.mxu1 %v13762_v49  ;;  %10694 = vmatpush1.bf16.msra.mxu1 %v12638_v22  ;;  %v12647_v49 = vld [vmem:[#allocation11 + $0x140] ss:$8 sps:$4 sm:$0xff]   ;;  %v9939_v22 = vadd.f32 %v9938_v10, %v9886_v32 }
 0x5b8   :  { %10695 = vmatprep.subr.bf16.mxu1 %v12643_v41  ;;  %v9941_v41 = vadd.f32 %v9940_v42, %v9888_v24 }
 0x5bb   :  { %10696 = vmatpush1.bf16.msra.mxu1 %v12641_v28  ;;  %v9843_v28 = vadd.f32 %v9842_v34, %v8503_v14 }
 0x5bc   :  { %10697 = vmatprep.subr.bf16.mxu1 %v12646_v40  ;;  %v9937_v40 = vadd.f32 %v9936_v19, %v9884_v30 }
 0x5be   :  { %10210 = vmatmul.mubr.bf16.gmra.mxu1 %v13764_v17  ;;  %v12652_v17 = vld [vmem:[#allocation11 + $0x134] ss:$8 sps:$4 sm:$0xff]  }
 0x5bf   :  { %10698 = vmatpush1.bf16.msra.mxu1 %v12644_v11  ;;  %v9943_v11 = vadd.f32 %v9942_v48, %v9890_v39 }
 0x5c0   :  { %10699 = vmatprep.subr.bf16.mxu1 %v12649_v21 }
 0x5c3   :  { %10700 = vmatpush1.bf16.msra.mxu1 %v12647_v49  ;;  %v12682_v49 = vld [vmem:[#allocation11 + $0x194] ss:$8 sps:$4 sm:$0xff]  }
 0x5c4   :  { %10701 = vmatprep.subr.bf16.mxu1 %v12652_v17  ;;  %v9841_v17 = vadd.f32 %v13783_v38, %v8499_v45 }
 0x5c6   :  { %v9894_v6 = vadd.f32 %v13787_v52, %v9841_v17 }
 0x5c7   :  { %10702 = vmatpush1.bf16.msra.mxu1 %v12650_v60 }
 0x5c8   :  { %10703 = vmatprep.subr.bf16.mxu1 %v12655_v25  ;;  %v9947_v10 = vadd.f32 %v9946_v13, %v9894_v6 }
 0x5cb   :  { %10704 = vmatpush1.bf16.msra.mxu1 %v12653_v57  ;;  %v12680_v57 = vld [vmem:[#allocation11 + $0x190] ss:$8 sps:$4 sm:$0xff]  }
 0x5cc   :  { %10705 = vmatprep.subr.bf16.mxu1 %v12658_v15  ;;  %v9847_v15 = vadd.f32 %v13785_v27, %v8503_v14 }
 0x5ce   :  { %v9900_v19 = vadd.f32 %v9899_v37, %v9847_v15 }
 0x5cf   :  { %10706 = vmatpush1.bf16.msra.mxu1 %v12656_v54 }
 0x5d0   :  { %10707 = vmatprep.subr.bf16.mxu1 %v12661_v55  ;;  %v9896_v55 = vadd.f32 %v9895_v51, %v9843_v28 }
 0x5d3   :  { %10708 = vmatpush1.bf16.msra.mxu1 %v12659_v58 }
 0x5d4   :  { %10709 = vmatprep.subr.bf16.mxu1 %v12664_v35  ;;  %v12685_v35 = vld [vmem:[#allocation11 + $0x184] ss:$8 sps:$4 sm:$0xff]  }
 0x5d7   :  { %10710 = vmatpush2.bf16.msra.mxu1 %v12662_v8  ;;  %v9952_v8 = vpop.f32.mrf.mxu0 }
 0x5d8   :  { %10711 = vmatprep.subr.bf16.mxu1 %v12667_v16  ;;  %v9953_v51 = vadd.f32 %v9952_v8, %v9900_v19 }
 0x5db   :  { %10712 = vmatpush2.bf16.msra.mxu1 %v12665_v59  ;;  %v9949_v59 = vadd.f32 %v9948_v29, %v9896_v55 }
 0x5dc   :  { %10713 = vmatprep.subr.bf16.mxu1 %v12670_v12  ;;  %v9951_v12 = vadd.f32 %v9950_v18, %v9898_v63 }
 0x5df   :  { %10714 = vmatpush2.bf16.msra.mxu1 %v12668_v53 }
 0x5e0   :  { %10715 = vmatprep.subr.bf16.mxu1 %v12673_v56 }
 0x5e3   :  { %10716 = vmatpush2.bf16.msra.mxu1 %v12671_v26 }
 0x5e4   :  { %10717 = vmatprep.subr.bf16.mxu1 %v12676_v31 }
 0x5e6   :  { %v10042_v20 = vpop.f32.mrf.mxu0 }
 0x5e7   :  { %10718 = vmatpush2.bf16.msra.mxu1 %v12674_v47 }
 0x5e8   :  { %10719 = vmatprep.subr.bf16.mxu1 %v12679_v2  ;;  %v10044_v37 = vpop.f32.mrf.mxu0 }
 0x5ea   :  { %v10046_v13 = vpop.f32.mrf.mxu0 }
 0x5eb   :  { %10720 = vmatpush2.bf16.msra.mxu1 %v12677_v44 }
 0x5ec   :  { %10721 = vmatprep.subr.bf16.mxu1 %v12682_v49  ;;  %v10048_v46 = vpop.f32.mrf.mxu0 }
 0x5ef   :  { %10722 = vmatpush2.bf16.msra.mxu1 %v12680_v57 }
 0x5f0   :  { %10723 = vmatprep.subr.bf16.mxu1 %v12685_v35 }
 0x5f3   :  { %10724 = vmatpush2.bf16.msra.mxu1 %v12683_v4 }
 0x5f6   :  { %v9989_v3 = vpop.f32.mrf.mxu1 }
 0x5f7   :  { %v9990_v60 = vadd.f32 %v9989_v3, %v9937_v40  ;;  %v10052_v3 = vpop.f32.mrf.mxu0 }
 0x5f8   :  { %v9991_v5 = vpop.f32.mrf.mxu1 }
 0x5f9   :  { %v9992_v21 = vadd.f32 %v9991_v5, %v9939_v22  ;;  %v10220_v38 = vmax.f32 %v9990_v60, 0.0  ;;  %v10054_v24 = vpop.f32.mrf.mxu0 }
 0x5fa   :  { %v9993_v7 = vpop.f32.mrf.mxu1 }
 0x5fb   :  { %v9994_v50 = vadd.f32 %v9993_v7, %v9941_v41  ;;  %v10221_v62 = vmax.f32 %v9992_v21, 0.0  ;;  %v10056_v30 = vpop.f32.mrf.mxu0  ;;  %v13966_v7 = vld [vmem:[#allocation22_spill] sm:$0xff] }
 0x5fc   :  { %v9995_v25 = vpop.f32.mrf.mxu1  ;;  %v13967_v36 = vsub.s32 3, %v13966_v7  ;;  %v13968_v21 = vsub.s32 2, %v13966_v7 }
 0x5fd   :  { %v9996_v9 = vadd.f32 %v9995_v25, %v9943_v11  ;;  %v10224_v54 = vmax.f32 %v9994_v50, 0.0  ;;  %v10058_v5 = vpop.f32.mrf.mxu0 }
 0x5fe   :  { %v9999_v34 = vpop.f32.mrf.mxu1  ;;  %v8511_v11 = vrot.slane %v13789_v33, %v13967_v36  ;;  %v8507_v50 = vrot.slane %v13789_v33, %v13968_v21 }
 0x5ff   :  { %v10225_v58 = vmax.f32 %v9996_v9, 0.0  ;;  %v10236_v53 = vpack.c.bf16 %v10224_v54, %v10220_v38  ;;  %v10000_v14 = vadd.f32 %v9999_v34, %v9947_v10 }
 0x600   :  { %v10001_v16 = vpop.f32.mrf.mxu1  ;;  %v10045_v18 = vadd.f32 %v10044_v37, %v8511_v11  ;;  %v10047_v60 = vadd.f32 %v10046_v13, %v8507_v50  ;;  %v10043_v25 = vadd.f32 %v10042_v20, %v8507_v50  ;;  %v10049_v15 = vadd.f32 %v10048_v46, %v8511_v11 }
 0x601   :  { %v10237_v27 = vpack.c.bf16 %v10225_v58, %v10221_v62  ;;  %v10002_v42 = vadd.f32 %v10001_v16, %v9949_v59  ;;  %v10228_v47 = vmax.f32 %v10000_v14, 0.0  ;;  %v10055_v8 = vadd.f32 %v10054_v24, %v8511_v11 }
 0x602   :  { %v10003_v56 = vpop.f32.mrf.mxu1  ;;  %v10057_v4 = vadd.f32 %v10056_v30, %v8507_v50 }
 0x603   :  { %v10004_v26 = vadd.f32 %v10003_v56, %v9951_v12  ;;  %10672 = vmatprep.mubr.bf16.mxu0 %v10237_v27  ;;  %v10229_v43 = vmax.f32 %v10002_v42, 0.0  ;;  %v10053_v27 = vadd.f32 %v10052_v3, %v8507_v50  ;;  %v10059_v56 = vadd.f32 %v10058_v5, %v8511_v11 }
 0x604   :  { %v10005_v31 = vpop.f32.mrf.mxu1  ;;  %10673 = vmatmul.mubr.bf16.vlgmr.msra.gmra.mxu0 %v10236_v53 }
 0x605   :  { %v10006_v52 = vadd.f32 %v10005_v31, %v9953_v51  ;;  %v10232_v45 = vmax.f32 %v10004_v26, 0.0 }
 0x607   :  { %v10233_v48 = vmax.f32 %v10006_v52, 0.0  ;;  %v10240_v61 = vpack.c.bf16 %v10232_v45, %v10228_v47 }
 0x609   :  { %v10241_v23 = vpack.c.bf16 %v10233_v48, %v10229_v43 }
 0x60b   :  { %10682 = vmatprep.mubr.bf16.mxu0 %v10241_v23 }
 0x60c   :  { %10683 = vmatmul.mubr.bf16.gmra.mxu0 %v10240_v61 }
 0x627   :  { %v10148_v39 = vpop.f32.mrf.mxu0 }
 0x629   :  { %v10150_v41 = vpop.f32.mrf.mxu0 }
 0x62b   :  { %v10152_v40 = vpop.f32.mrf.mxu0 }
 0x62d   :  { %v10154_v17 = vpop.f32.mrf.mxu0 }
 0x62f   :  { %v10158_v34 = vpop.f32.mrf.mxu0 }
 0x631   :  { %v10160_v38 = vpop.f32.mrf.mxu0 }
 0x633   :  { %v10162_v14 = vpop.f32.mrf.mxu0 }
 0x635   :  { %v10164_v46 = vpop.f32.mrf.mxu0 }
 0x636   :  { %v10095_v32 = vpop.f32.mrf.mxu1 }
 0x637   :  { %v10096_v55 = vadd.f32 %v10095_v32, %v10043_v25 }
 0x638   :  { %v10097_v2 = vpop.f32.mrf.mxu1 }
 0x639   :  { %v10098_v9 = vadd.f32 %v10097_v2, %v10045_v18  ;;  %v10149_v16 = vadd.f32 %v10148_v39, %v10096_v55 }
 0x63a   :  { %v10099_v29 = vpop.f32.mrf.mxu1 }
 0x63b   :  { %v10100_v54 = vadd.f32 %v10099_v29, %v10047_v60  ;;  %v10151_v35 = vadd.f32 %v10150_v41, %v10098_v9  ;;  %v10308_v60 = vld [vmem:[#allocation13] sm:$0x3] }
 0x63c   :  { %v10101_v44 = vpop.f32.mrf.mxu1  ;;  %v10313_v9 = vrot.slane %v10308_v60, %v13965_v1 }
 0x63d   :  { %v10102_v62 = vadd.f32 %v10101_v44, %v10049_v15  ;;  %v10153_v6 = vadd.f32 %v10152_v40, %v10100_v54 }
 0x63e   :  { %v10105_v22 = vpop.f32.mrf.mxu1 }
 0x63f   :  { %v10155_v12 = vadd.f32 %v10154_v17, %v10102_v62  ;;  %v10106_v31 = vadd.f32 %v10105_v22, %v10053_v27 }
 0x640   :  { %v10107_v28 = vpop.f32.mrf.mxu1 }
 0x641   :  { %v10108_v51 = vadd.f32 %v10107_v28, %v10055_v8  ;;  %v10159_v32 = vadd.f32 %v10158_v34, %v10106_v31  ;;  %v10317_v34 = vrot.slane %v10308_v60, %v13964_v0 }
 0x642   :  { %v10109_v49 = vpop.f32.mrf.mxu1 }
 0x643   :  { %v10110_v42 = vadd.f32 %v10109_v49, %v10057_v4  ;;  %v10161_v37 = vadd.f32 %v10160_v38, %v10108_v51 }
 0x644   :  { %v10111_v57 = vpop.f32.mrf.mxu1 }
 0x645   :  { %v10112_v43 = vadd.f32 %v10111_v57, %v10059_v56  ;;  %v10163_v13 = vadd.f32 %v10162_v14, %v10110_v42 }
 0x647   :  { %v10165_v29 = vadd.f32 %v10164_v46, %v10112_v43 }
 0x676   :  { %v10201_v63 = vpop.f32.mrf.mxu1 }
 0x677   :  { %v10202_v10 = vadd.f32 %v10201_v63, %v10149_v16 }
 0x678   :  { %v10203_v58 = vpop.f32.mrf.mxu1 }
 0x679   :  { %v10204_v19 = vadd.f32 %v10203_v58, %v10151_v35  ;;  %v10222_v23 = vmax.f32 %v10202_v10, 0.0 }
 0x67a   :  { %v10205_v33 = vpop.f32.mrf.mxu1 }
 0x67b   :  { %v10206_v59 = vadd.f32 %v10205_v33, %v10153_v6  ;;  %v10223_v48 = vmax.f32 %v10204_v19, 0.0 }
 0x67c   :  { %v10207_v53 = vpop.f32.mrf.mxu1 }
 0x67d   :  { %v10208_v26 = vadd.f32 %v10207_v53, %v10155_v12  ;;  %v10226_v52 = vmax.f32 %v10206_v59, 0.0 }
 0x67e   :  { %v10211_v45 = vpop.f32.mrf.mxu1 }
 0x67f   :  { %v10227_v47 = vmax.f32 %v10208_v26, 0.0  ;;  %v10238_v3 = vpack.c.bf16 %v10226_v52, %v10222_v23  ;;  %v10212_v5 = vadd.f32 %v10211_v45, %v10159_v32 }
 0x680   :  { %v10213_v61 = vpop.f32.mrf.mxu1 }
 0x681   :  { %v10239_v20 = vpack.c.bf16 %v10227_v47, %v10223_v48  ;;  %v10214_v2 = vadd.f32 %v10213_v61, %v10161_v37  ;;  %v10230_v40 = vmax.f32 %v10212_v5, 0.0 }
 0x682   :  { %v10215_v24 = vpop.f32.mrf.mxu1 }
 0x683   :  { %v10216_v30 = vadd.f32 %v10215_v24, %v10163_v13  ;;  %10725 = vmatprep.mubr.bf16.mxu1 %v10239_v20  ;;  %v10231_v41 = vmax.f32 %v10214_v2, 0.0  ;;  %v13969_v2 = vlaneseq }
 0x684   :  { %v10217_v44 = vpop.f32.mrf.mxu1  ;;  %10726 = vmatmul.mubr.bf16.vlgmr.msra.gmra.mxu1 %v10238_v3 }
 0x685   :  { %v10218_v39 = vadd.f32 %v10217_v44, %v10165_v29  ;;  %v10234_v22 = vmax.f32 %v10216_v30, 0.0  ;;  %v10781_v30 = vand.u32 127, %v13969_v2 }
 0x687   :  { %v10235_v28 = vmax.f32 %v10218_v39, 0.0  ;;  %v10242_v11 = vpack.c.bf16 %v10234_v22, %v10230_v40  ;;  %v10786_v44 = vadd.s32 4294967288, %v10781_v30  ;;  %v10784_v40 = vsub.s32 %v10781_v30, %v13966_v7 }
 0x689   :  { %v10243_v36 = vpack.c.bf16 %v10235_v28, %v10231_v41 }
 0x68b   :  { %10735 = vmatprep.mubr.bf16.mxu1 %v10243_v36  ;;  %v10789_v36 = vsub.s32 %v10786_v44, %v13966_v7 }
 0x68c   :  { %10736 = vmatmul.mubr.bf16.gmra.mxu1 %v10242_v11 }
 0x6c4   :  { %v10674_v21 = vpop.f32.mrf.mxu0 }
 0x6c5   :  { %v10675_v62 = vadd.f32 %v10674_v21, %v10313_v9 }
 0x6c6   :  { %v10676_v50 = vpop.f32.mrf.mxu0 }
 0x6c7   :  { %v10677_v6 = vadd.f32 %v10676_v50, %v10317_v34 }
 0x6c8   :  { %v10678_v49 = vpop.f32.mrf.mxu0 }
 0x6c9   :  { %v10679_v4 = vadd.f32 %v10678_v49, %v10313_v9 }
 0x6ca   :  { %v10680_v17 = vpop.f32.mrf.mxu0 }
 0x6cb   :  { %v10681_v1 = vadd.f32 %v10680_v17, %v10317_v34 }
 0x6cc   :  { %v10684_v18 = vpop.f32.mrf.mxu0 }
 0x6cd   :  { %v10685_v58 = vadd.f32 %v10684_v18, %v10313_v9 }
 0x6ce   :  { %v10686_v57 = vpop.f32.mrf.mxu0 }
 0x6cf   :  { %v10687_v8 = vadd.f32 %v10686_v57, %v10317_v34 }
 0x6d0   :  { %v10688_v55 = vpop.f32.mrf.mxu0 }
 0x6d1   :  { %v10689_v59 = vadd.f32 %v10688_v55, %v10313_v9 }
 0x6d2   :  { %v10690_v38 = vpop.f32.mrf.mxu0 }
 0x6d3   :  { %v10691_v53 = vadd.f32 %v10690_v38, %v10317_v34 }
 0x744   :  { %v10727_v25 = vpop.f32.mrf.mxu1 }
 0x745   :  { %v10728_v16 = vadd.f32 %v10727_v25, %v10675_v62 }
 0x746   :  { %v10729_v15 = vpop.f32.mrf.mxu1 }
 0x747   :  { %v10730_v12 = vadd.f32 %v10729_v15, %v10677_v6 }
 0x748   :  { %v10731_v54 = vpop.f32.mrf.mxu1 }
 0x749   :  { %v10732_v0 = vadd.f32 %v10731_v54, %v10679_v4 }
 0x74a   :  { %v10733_v63 = vpop.f32.mrf.mxu1 }
 0x74b   :  { %v10734_v31 = vadd.f32 %v10733_v63, %v10681_v1 }
 0x74c   :  { %v10737_v35 = vpop.f32.mrf.mxu1 }
 0x74d   :  { %v10738_v33 = vadd.f32 %v10737_v35, %v10685_v58 }
 0x74e   :  { %v10739_v19 = vpop.f32.mrf.mxu1 }
 0x74f   :  { %v10746_v27 = vsub.f32 %v10728_v16, %v10738_v33  ;;  %v10740_v10 = vadd.f32 %v10739_v19, %v10687_v8 }
 0x750   :  { %v10741_v56 = vpop.f32.mrf.mxu1 }
 0x751   :  { %v10747_v51 = vsub.f32 %v10730_v12, %v10740_v10  ;;  %v10742_v42 = vadd.f32 %v10741_v56, %v10689_v59  ;;  %v10750_v26 = vadd.f32 1e-06, %v10746_v27 }
 0x752   :  { %v10743_v14 = vpop.f32.mrf.mxu1 }
 0x753   :  { %v10748_v52 = vsub.f32 %v10732_v0, %v10742_v42  ;;  %v10744_v45 = vadd.f32 %v10743_v14, %v10691_v53  ;;  %v10751_v43 = vadd.f32 1e-06, %v10747_v51  ;;  %v10754_v23 = vmul.f32 %v10750_v26, %v10750_v26 }
 0x755   :  { %v10752_v48 = vadd.f32 1e-06, %v10748_v52  ;;  %v10749_v47 = vsub.f32 %v10734_v31, %v10744_v45  ;;  %v10755_v61 = vmul.f32 %v10751_v43, %v10751_v43 }
 0x757   :  { %v10753_v20 = vadd.f32 1e-06, %v10749_v47  ;;  %v10758_v37 = vadd.f32 %v10755_v61, %v10754_v23  ;;  %v10756_v13 = vmul.f32 %v10752_v48, %v10752_v48 }
 0x759   :  { %10759 = vadd.xlane.f32.xlu0 %v10758_v37  ;;  %v10757_v46 = vmul.f32 %v10753_v20, %v10753_v20 }
 0x75b   :  { %v10761_v3 = vadd.f32 %v10757_v46, %v10756_v13 }
 0x75d   :  { %10762 = vadd.xlane.f32.xlu0 %v10761_v3 }
 0x7e2   :  { %v10760_v32 = vpop.xlane.xlu0 %10759 }
 0x7e3   :  { %12686 = vrsqrt.f32 %v10760_v32  ;;  %vm10766_vm0 = vcmp.eq.f32.partialorder %v10760_v32, inf  ;;  %v10769_v41 = vand.u32 2147483648, %v10760_v32  ;;  %vm10768_vm1 = vcmp.eq.f32.partialorder %v10760_v32, 0.0 }
 0x7e6   :  { %v10763_v24 = vpop.xlane.xlu0 %10762 }
 0x7e7   :  { %12688 = vrsqrt.f32 %v10763_v24  ;;  %vm10773_vm2 = vcmp.eq.f32.partialorder %v10763_v24, inf  ;;  %v10776_v11 = vand.u32 2147483648, %v10763_v24  ;;  %vm10775_vm3 = vcmp.eq.f32.partialorder %v10763_v24, 0.0 }
 0x7f0   :  { %v12687_v29 = vpop.eup %12686 }
 0x7f1   :  { %v10765_v5 = vmul.f32 %v12687_v29, %v10760_v32 }
 0x7f3   :  { %v10767_v39 = vsel %vm10766_vm0, %v10760_v32, %v10765_v5 }
 0x7f4   :  { %v12689_v22 = vpop.eup %12688  ;;  %v10770_v21 = vsel %vm10768_vm1, %v10769_v41, %v10767_v39 }
 0x7f5   :  { %v10772_v28 = vmul.f32 %v12689_v22, %v10763_v24  ;;  %v10785_v17 = vrot.slane %v10770_v21, %v10784_v40 }
 0x7f7   :  { %v10774_v50 = vsel %vm10773_vm2, %v10763_v24, %v10772_v28 }
 0x7f8   :  { %v10777_v49 = vsel %vm10775_vm3, %v10776_v11, %v10774_v50 }
 0x7f9   :  { %v10790_v18 = vrot.slane %v10777_v49, %v10789_v36 }
 0x7fb   :  { %v10792_v60 = vsel %vm10791_vm4, %v10790_v18, %v10785_v17 }
 0x7fc   :  { %10795 = vst.msk [vmem:[#allocation14] sm:$0x1] %vm10794_vm5, %v10792_v60 }
 0x7fd   :  { %12844 = shalt.err (!%p12841_p11)
}
 0x7fe   :  { %10805 = dma.vmem_to_hbm [thread:$0]  %s10803_s6, 16, %s13821_s7, [#allocation4]  }
 0x7ff   :  { %12861 = dma.done.wait [#allocation4], 16  }
 0x800   :  { %12862 = vsyncadd [#allocation4], 4294967280 }
 0x801   :  { %10809 = vsyncpa [#allocation3], 1 }
 0x802   :  { %10810 = vsyncpa [#allocation6], 1 }
 0x803   :  { %10811 = vsyncpa [#allocation9], 1 }
 0x804   :  { %10812 = vsyncpa [#allocation12], 1 }
 0x805   :  { %10813 = vsyncpa [#allocation4], 1 }

</bundles_post_ra>
